<compile_context>
chip_gen: v7x
topology: tpu7x:2x2x1
jax: 0.10.0
libtpu: 0.0.40
codegen_flags: <defaults>
</compile_context>

<pallas_src>
import math
import functools

import numpy as np
import jax
import jax.numpy as jnp
from jax.experimental import pallas as pl
from jax.experimental.pallas import tpu as pltpu

BIG_NUMBER = 10000000000.0

EMBED = 180                                  # embedding_size == layer_sizes[-1] (reshape(5,180) hard-codes it)
N_COMPS = 5                                  # comps_embeddings.reshape(5, 180)
LOOP_FEAT = 26                               # loops_representation feature width
H_PAD = ((EMBED + 127) // 128) * 128         # 256: lane-aligned pad of EMBED / per-gate stride


# ----------------------------------------------------------------------------
# Fused kernel: comp MLP + tree walk (2 LSTMs + rec-loop) + heads, one launch
# ----------------------------------------------------------------------------
def _fused_forward_kernel(
        # scalar-prefetch schedule tables (SMEM)
        kind_ref, lidx_ref, hc_ref, nch_ref, cslot_ref, ncmp_ref, cidx_ref,
        # tensor inputs / outputs / scratch (unpacked below)
        *refs,
        n_mlp, n_nodes, max_child, max_comp, h_pad):
    rep_ref = refs[0]
    mlp_refs = refs[1:1 + 2 * n_mlp]
    (loops_ref, no_nodes_ref, no_comps_ref,
     nwih_ref, nwhh_ref, nb_ref, cwih_ref, cwhh_ref, cb_ref,
     rw1n_ref, rw1c_ref, rw1l_ref, rb1_ref, rw2_ref, rb2_ref,
     pw1_ref, pb1_ref, pw2_ref, pb2_ref, lw_ref, lb_ref, vw_ref, vb_ref,
     mask_ref,
     logits_ref, value_ref,
     comps_tab, emb_tab, nseq_ref, cseq_ref) = refs[1 + 2 * n_mlp:]

    def mm(x, w_ref):
        w = w_ref[...]
        return jnp.dot(x.astype(w.dtype), w, preferred_element_type=jnp.float32)

    # -------- 1. comp-embedding MLP (fused SlimFC chain, stays in VMEM) --------
    x = rep_ref[...]                                           # (1, obs_flat)
    for l in range(n_mlp):
        x = jnp.maximum(mm(x, mlp_refs[2 * l]) + mlp_refs[2 * l + 1][...], 0.0)
    # Last layer's 5x180 output columns were laid out at a 256-lane stride, so
    # each computation row is an aligned lane slice (no in-kernel reshape).
    for c in range(N_COMPS):
        comps_tab[pl.ds(c, 1), :] = x[:, c * h_pad:(c + 1) * h_pad]

    emb_tab[...] = jnp.zeros_like(emb_tab)                     # kind==0 rows stay zero

    def lstm_step(gates, h, c, upd):
        i_g = jax.nn.sigmoid(gates[:, 0:h_pad])
        f_g = jax.nn.sigmoid(gates[:, h_pad:2 * h_pad])
        g_g = jnp.tanh(gates[:, 2 * h_pad:3 * h_pad])
        o_g = jax.nn.sigmoid(gates[:, 3 * h_pad:4 * h_pad])
        c_new = f_g * c + i_g * g_g
        h_new = o_g * jnp.tanh(c_new)
        return jnp.where(upd, h_new, h), jnp.where(upd, c_new, c)

    # -------- 2. tree walk: post-order schedule, one in-kernel loop ------------
    @pl.loop(0, n_nodes)
    def _node(n):
        @pl.when(kind_ref[n] == 1)                             # skip dead (all-zero) nodes entirely
        def _live_node():
            n_child = nch_ref[n]
            n_comp = ncmp_ref[n]
            # gather children / selected computation embeddings (256-lane padded rows)
            for k in range(max_child):
                slot = cslot_ref[n * max_child + k]
                nseq_ref[pl.ds(k, 1), :] = emb_tab[pl.ds(slot, 1), :]
            for k in range(max_comp):
                idx = cidx_ref[n * max_comp + k]
                cseq_ref[pl.ds(k, 1), :] = comps_tab[pl.ds(idx, 1), :]

            # packed-gate input projections: one matmul per LSTM for the whole sequence
            xproj_n = mm(nseq_ref[...], nwih_ref) + nb_ref[...]
            xproj_c = mm(cseq_ref[...], cwih_ref) + cb_ref[...]

            # interleaved recurrences: two independent latency chains overlap on MXU/EUP
            h_n = jnp.zeros((1, h_pad), jnp.float32)
            c_n = jnp.zeros((1, h_pad), jnp.float32)
            h_c = jnp.zeros((1, h_pad), jnp.float32)
            c_c = jnp.zeros((1, h_pad), jnp.float32)
            for t in range(max(max_child, max_comp)):
                if t < max_child:
                    g_n = xproj_n[t:t + 1, :] + mm(h_n, nwhh_ref)
                if t < max_comp:
                    g_c = xproj_c[t:t + 1, :] + mm(h_c, cwhh_ref)
                if t < max_child:
                    h_n, c_n = lstm_step(g_n, h_n, c_n, n_child > t)   # mask steps beyond real length
                if t < max_comp:
                    h_c, c_c = lstm_step(g_c, h_c, c_c, n_comp > t)

            nodes_h = jnp.where(n_child > 0, h_n, no_nodes_ref[...])
            comps_h = jnp.where(hc_ref[n] == 1, h_c, no_comps_ref[...])
            loop_row = loops_ref[pl.ds(lidx_ref[n], 1), :]

            # rec-loop layer 1: the (386, hid) weight is split row-wise -> no concat needed
            y = jnp.maximum(mm(nodes_h, rw1n_ref) + mm(comps_h, rw1c_ref)
                            + mm(loop_row, rw1l_ref) + rb1_ref[...], 0.0)
            x_emb = jnp.maximum(mm(y, rw2_ref) + rb2_ref[...], 0.0)   # (1, 256), lanes >=180 are 0
            emb_tab[pl.ds(n, 1), :] = x_emb

    # -------- 3. heads: prediction layers + logits + value + action mask -------
    root = emb_tab[n_nodes - 1:n_nodes, :]                     # (1, 256) program embedding
    f = jnp.maximum(mm(root, pw1_ref) + pb1_ref[...], 0.0)
    f = jnp.maximum(mm(f, pw2_ref) + pb2_ref[...], 0.0)
    logits = mm(f, lw_ref) + lb_ref[...]
    logits_ref[...] = logits - BIG_NUMBER * (1.0 - mask_ref[...])
    value_ref[...] = mm(f, vw_ref) + vb_ref[...]


def fused_forward(params, rep_flat, loops2d, action_mask, sched):
    kind, lidx, hc, nch, cslot, ncmp, cidx = sched
    n_nodes = int(kind.shape[0])
    max_child = int(cslot.shape[0]) // n_nodes
    max_comp = int(cidx.shape[0]) // n_nodes

    tp = params["tree"]
    nwih, nwhh, nb = tp["nodes_lstm"]
    cwih, cwhh, cb = tp["comps_lstm"]
    (pw1, pb1), (pw2, pb2) = params["pred_layers"]
    lw, lb = params["logits"]
    vw, vb = params["value"]
    assert params["comp_layers"][-1][0].shape[1] == N_COMPS * H_PAD

    mlp_args = []
    for (w, b) in params["comp_layers"]:
        mlp_args.extend([w, b])

    tensor_args = ([rep_flat] + mlp_args +
                   [loops2d, tp["no_nodes"], tp["no_comps"],
                    nwih, nwhh, nb, cwih, cwhh, cb,
                    tp["rec1_nodes"], tp["rec1_comps"], tp["rec1_loop"], tp["rec1_b"],
                    tp["rec2_w"], tp["rec2_b"],
                    pw1, pb1, pw2, pb2, lw, lb, vw, vb, action_mask])

    def full_spec(a):
        nd = a.ndim
        return pl.BlockSpec(tuple(a.shape), lambda *args, _nd=nd: (0,) * _nd)

    b, a = action_mask.shape
    grid_spec = pltpu.PrefetchScalarGridSpec(
        num_scalar_prefetch=7,
        grid=(1,),
        in_specs=[full_spec(t) for t in tensor_args],
        out_specs=(pl.BlockSpec((b, a), lambda *args: (0, 0)),
                   pl.BlockSpec((1, 1), lambda *args: (0, 0))),
        scratch_shapes=[
            pltpu.VMEM((N_COMPS, H_PAD), jnp.float32),     # computation-embedding table
            pltpu.VMEM((n_nodes, H_PAD), jnp.float32),     # per-node embedding table
            pltpu.VMEM((max_child, H_PAD), jnp.float32),   # children sequence buffer
            pltpu.VMEM((max_comp, H_PAD), jnp.float32),    # comps sequence buffer
        ])
    kernel = functools.partial(
        _fused_forward_kernel, n_mlp=len(params["comp_layers"]), n_nodes=n_nodes,
        max_child=max_child, max_comp=max_comp, h_pad=H_PAD)
    return pl.pallas_call(
        kernel,
        out_shape=(jax.ShapeDtypeStruct((b, a), jnp.float32),
                   jax.ShapeDtypeStruct((1, 1), jnp.float32)),
        grid_spec=grid_spec,
        compiler_params=pltpu.CompilerParams(dimension_semantics=("arbitrary",)),
    )(kind, lidx, hc, nch, cslot, ncmp, cidx, *tensor_args)


# ----------------------------------------------------------------------------
# Parameter init (shapes follow __init__; bf16 weights, lane-padded layouts)
# ----------------------------------------------------------------------------
def init_params(key, obs_flat_dim, layer_sizes, num_actions, loop_feat=LOOP_FEAT,
                wdtype=jnp.bfloat16):
    keys = iter(jax.random.split(key, 128))

    def fc(in_s, out_s, std=1.0):
        w = jax.random.normal(next(keys), (in_s, out_s), jnp.float32)
        w = w * std / jnp.sqrt(jnp.sum(w * w, axis=0, keepdims=True) + 1e-8)  # normc-style
        b = jnp.zeros((1, out_s), jnp.float32)
        return w, b

    embedding_size = layer_sizes[-1]
    assert embedding_size == EMBED, "layer_sizes[-1] must be 180 (reshape(5,180) in forward)"
    assert len(layer_sizes) == 4, "layer index 3 (forced to 900) must be the last comp layer"
    hidden = layer_sizes[-2:]

    def pad_rows(w, rows):
        out = jnp.zeros((rows, w.shape[1]), jnp.float32)
        return out.at[:w.shape[0]].set(w)

    def pad_cols(w, cols):
        out = jnp.zeros((w.shape[0], cols), jnp.float32)
        return out.at[:, :w.shape[1]].set(w)

    # _comp_embd_layers (layer index 3 forced to 5*180=900); its 900 output columns are
    # scattered to a 256-lane stride per computation so the kernel slices aligned rows.
    comp_layers = []
    prev = obs_flat_dim
    for cpt, size in enumerate(layer_sizes):
        if cpt == 3:
            w, _ = fc(prev, N_COMPS * EMBED)
            w_pad = jnp.zeros((prev, N_COMPS * H_PAD), jnp.float32)
            for c in range(N_COMPS):
                w_pad = w_pad.at[:, c * H_PAD:c * H_PAD + EMBED].set(
                    w[:, c * EMBED:(c + 1) * EMBED])
            comp_layers.append((w_pad.astype(wdtype),
                                jnp.zeros((1, N_COMPS * H_PAD), jnp.float32)))
            prev = N_COMPS * EMBED
        else:
            w, b = fc(prev, size)
            comp_layers.append((w.astype(wdtype), b))
            prev = size

    # _rec_loop_embd_layers: in = 2*180 + 26 ; layer-1 weight split row-wise, row-padded to 256.
    rec_in = embedding_size * 2 + loop_feat
    rw1, rb1 = fc(rec_in, hidden[0])
    rw2, rb2 = fc(hidden[0], hidden[1])
    rec1_nodes = pad_rows(rw1[0:EMBED], H_PAD).astype(wdtype)
    rec1_comps = pad_rows(rw1[EMBED:2 * EMBED], H_PAD).astype(wdtype)
    rec1_loop = rw1[2 * EMBED:].astype(wdtype)
    rec2_w = pad_cols(rw2, H_PAD).astype(wdtype)      # output lanes 180..255 stay exactly zero
    rec2_b = pad_cols(rb2, H_PAD)

    # _prediction_layers + heads (first pred layer consumes the 256-lane-padded embedding)
    pw1, pb1 = fc(hidden[1], hidden[0])
    pw2, pb2 = fc(hidden[0], hidden[1])
    pred_layers = [(pad_rows(pw1, H_PAD).astype(wdtype), pb1),
                   (pw2.astype(wdtype), pb2)]
    lw, lb = fc(hidden[1], num_actions, std=0.01)
    vw, vb = fc(hidden[1], 1, std=0.01)

    # packed LSTM weights: gate order (i, f, g, o), each gate at a 256-lane stride;
    # input rows are padded to 256 so the padded sequence rows feed straight in.
    def lstm_packed(in_s, hid):
        k = 1.0 / np.sqrt(hid)
        wih = jnp.zeros((H_PAD, 4 * H_PAD), jnp.float32)
        whh = jnp.zeros((H_PAD, 4 * H_PAD), jnp.float32)
        b = jnp.zeros((1, 4 * H_PAD), jnp.float32)
        for g in range(4):
            wih = wih.at[:in_s, g * H_PAD:g * H_PAD + hid].set(
                jax.random.uniform(next(keys), (in_s, hid), jnp.float32, -k, k))
            whh = whh.at[:hid, g * H_PAD:g * H_PAD + hid].set(
                jax.random.uniform(next(keys), (hid, hid), jnp.float32, -k, k))
            b = b.at[:, g * H_PAD:g * H_PAD + hid].set(
                jax.random.uniform(next(keys), (1, hid), jnp.float32, -k, k)
                + jax.random.uniform(next(keys), (1, hid), jnp.float32, -k, k))  # b_ih + b_hh
        return wih.astype(wdtype), whh.astype(wdtype), b

    xav = math.sqrt(6.0 / (1 + embedding_size))

    def pad_lanes(v):
        out = jnp.zeros((1, H_PAD), jnp.float32)
        return out.at[:, :v.shape[1]].set(v)

    no_comps = pad_lanes(jax.random.uniform(next(keys), (1, embedding_size), jnp.float32, -xav, xav))
    no_nodes = pad_lanes(jax.random.uniform(next(keys), (1, embedding_size), jnp.float32, -xav, xav))

    tree = {
        "no_nodes": no_nodes,
        "no_comps": no_comps,
        "nodes_lstm": lstm_packed(embedding_size, embedding_size),
        "comps_lstm": lstm_packed(embedding_size, embedding_size),
        "rec1_nodes": rec1_nodes,
        "rec1_comps": rec1_comps,
        "rec1_loop": rec1_loop,
        "rec1_b": rb1,
        "rec2_w": rec2_w,
        "rec2_b": rec2_b,
    }
    return {"comp_layers": comp_layers, "pred_layers": pred_layers,
            "logits": (lw.astype(wdtype), lb), "value": (vw.astype(wdtype), vb),
            "tree": tree}


# ----------------------------------------------------------------------------
# Host-side schedule builder: mirrors get_hidden_state() recursion exactly,
# but only records *what* to compute (post-order), as int32 tables.
# ----------------------------------------------------------------------------
def build_schedule(child_list, computations_indices, has_comps, n_loops, n_comps):
    child_b0 = np.asarray(child_list)[0]                 # (L, C)
    comp_b0 = np.asarray(computations_indices)[0]        # (L, C)
    has_list = list(np.asarray(has_comps)[0])
    max_child = child_b0.shape[1]
    max_comp = comp_b0.shape[1]
    entries = []

    def rec(child_vals, loop_index):
        child_vals = list(np.asarray(child_vals).reshape(-1))
        if len(child_vals) != 0 and (not all(el == 0 for el in child_vals)):
            child_slots = []
            comp_cur = None
            for child in child_vals:
                tmp = math.floor(child)                  # negative -> last row, as in torch
                childs = child_b0[tmp]
                comp_cur = comp_b0[tmp]                  # overwritten each child, as in reference
                childs_f = childs[childs != -1]
                if len(childs_f) != 0:
                    child_slots.append(rec(childs_f, tmp))
            ci = np.asarray(comp_cur)
            ci = ci[ci != -1]
            hc = 1 if int(has_list[loop_index]) == 1 else 0
            # NOTE: % clamps guard the in-kernel gathers; reference indexes directly.
            entries.append(dict(kind=1, loop_idx=int(loop_index) % n_loops, hc=hc,
                                child_slots=child_slots,
                                comp_ids=[int(v) % n_comps for v in ci.tolist()]))
        else:                                            # all-zero (or empty) child list -> zeros(1,180)
            entries.append(dict(kind=0, loop_idx=0, hc=0, child_slots=[], comp_ids=[]))
        return len(entries) - 1

    rec(child_b0[0], 0)                                  # forward() starts at loop_index 0

    n = len(entries)
    kind = np.array([e["kind"] for e in entries], np.int32)
    lidx = np.array([e["loop_idx"] for e in entries], np.int32)
    hc = np.array([e["hc"] for e in entries], np.int32)
    nch = np.array([min(len(e["child_slots"]), max_child) for e in entries], np.int32)
    ncmp = np.array([min(len(e["comp_ids"]), max_comp) for e in entries], np.int32)
    cslot = np.zeros((n, max_child), np.int32)
    cidx = np.zeros((n, max_comp), np.int32)
    for r, e in enumerate(entries):
        for k, s in enumerate(e["child_slots"][:max_child]):
            cslot[r, k] = s
        for k, s in enumerate(e["comp_ids"][:max_comp]):
            cidx[r, k] = s
    return (jnp.asarray(kind), jnp.asarray(lidx), jnp.asarray(hc), jnp.asarray(nch),
            jnp.asarray(cslot.reshape(-1)), jnp.asarray(ncmp), jnp.asarray(cidx.reshape(-1)))


# ----------------------------------------------------------------------------
# Forward pass (1 pallas_call total)
# ----------------------------------------------------------------------------
@jax.jit
def _forward_jit(params, rep_flat, loops2d, action_mask, sched):
    return fused_forward(params, rep_flat, loops2d, action_mask, sched)


def forward(params, obs):
    # Same batch-index conventions as the reference: representation[-1], loops[-1],
    # child_list / computations_indices / has_comps from batch row 0.
    rep_flat = obs["representation"][-1, :, :].reshape(1, -1)
    loops2d = obs["loops_representation"][-1]            # (L, 26)
    sched = build_schedule(obs["child_list"], obs["computations_indices"], obs["has_comps"],
                           n_loops=int(obs["loops_representation"].shape[1]),
                           n_comps=N_COMPS)
    return _forward_jit(params, rep_flat, loops2d, obs["action_mask"], sched)


# ----------------------------------------------------------------------------
# Main
# ----------------------------------------------------------------------------
if __name__ == "__main__":
    key = jax.random.PRNGKey(0)
    k_rep, k_loops, k_mask, k_par = jax.random.split(key, 4)

    B = 2                # batch
    F = 32               # per-computation feature width (representation is (5, F))
    L = 4                # number of loops
    C = 3                # max children / max computation indices per loop
    NUM_ACTIONS = 32
    LAYER_SIZES = [64, 64, 64, EMBED]

    representation = jax.random.normal(k_rep, (B, N_COMPS, F), jnp.float32)
    loops_representation = jax.random.normal(k_loops, (B, L, LOOP_FEAT), jnp.float32)
    action_mask = (jax.random.uniform(k_mask, (B, NUM_ACTIONS)) > 0.3).astype(jnp.float32)

    # Structural tensors (host numpy; drive the schedule builder only)
    child_list = np.full((B, L, C), -1.0, dtype=np.float32)
    child_list[:, 0, :] = [1.0, 2.0, 3.0]
    child_list[:, 2, 0] = 3.0
    computations_indices = np.full((B, L, C), -1.0, dtype=np.float32)
    computations_indices[:, 0, :2] = [0.0, 1.0]
    computations_indices[:, 2, 0] = 2.0
    computations_indices[:, 3, :2] = [0.0, 2.0]
    has_comps = np.array([[1, 0, 0, 1]] * B, dtype=np.int32)

    obs = {
        "representation": representation,
        "loops_representation": loops_representation,
        "child_list": child_list,
        "computations_indices": computations_indices,
        "has_comps": has_comps,
        "action_mask": action_mask,
    }

    params = init_params(k_par, obs_flat_dim=N_COMPS * F,
                         layer_sizes=LAYER_SIZES, num_actions=NUM_ACTIONS)

    logits, value = forward(params, obs)
    jax.block_until_ready(logits)
    jax.block_until_ready(value)

    assert logits.shape == (B, NUM_ACTIONS)
    assert value.shape == (1, 1)
    assert bool(jnp.all(jnp.isfinite(logits)))
    assert bool(jnp.all(jnp.isfinite(value)))
    # value_function() equivalent: value.squeeze(1) -> shape (1,)
    print("KERNEL_OK")
</pallas_src>

<mosaic_0001>
module attributes {stable_mosaic.version = 11 : i64} {
  func.func @_fused_forward_kernel(%arg0: i32, %arg1: memref<2xi32, #tpu.memory_space<smem>>, %arg2: memref<2xi32, #tpu.memory_space<smem>>, %arg3: memref<2xi32, #tpu.memory_space<smem>>, %arg4: memref<2xi32, #tpu.memory_space<smem>>, %arg5: memref<6xi32, #tpu.memory_space<smem>>, %arg6: memref<2xi32, #tpu.memory_space<smem>>, %arg7: memref<6xi32, #tpu.memory_space<smem>>, %arg8: memref<1x160xf32, #tpu.memory_space<vmem>>, %arg9: memref<160x64xbf16, #tpu.memory_space<vmem>>, %arg10: memref<1x64xf32, #tpu.memory_space<vmem>>, %arg11: memref<64x64xbf16, #tpu.memory_space<vmem>>, %arg12: memref<1x64xf32, #tpu.memory_space<vmem>>, %arg13: memref<64x64xbf16, #tpu.memory_space<vmem>>, %arg14: memref<1x64xf32, #tpu.memory_space<vmem>>, %arg15: memref<64x1280xbf16, #tpu.memory_space<vmem>>, %arg16: memref<1x1280xf32, #tpu.memory_space<vmem>>, %arg17: memref<4x26xf32, #tpu.memory_space<vmem>>, %arg18: memref<1x256xf32, #tpu.memory_space<vmem>>, %arg19: memref<1x256xf32, #tpu.memory_space<vmem>>, %arg20: memref<256x1024xbf16, #tpu.memory_space<vmem>>, %arg21: memref<256x1024xbf16, #tpu.memory_space<vmem>>, %arg22: memref<1x1024xf32, #tpu.memory_space<vmem>>, %arg23: memref<256x1024xbf16, #tpu.memory_space<vmem>>, %arg24: memref<256x1024xbf16, #tpu.memory_space<vmem>>, %arg25: memref<1x1024xf32, #tpu.memory_space<vmem>>, %arg26: memref<256x64xbf16, #tpu.memory_space<vmem>>, %arg27: memref<256x64xbf16, #tpu.memory_space<vmem>>, %arg28: memref<26x64xbf16, #tpu.memory_space<vmem>>, %arg29: memref<1x64xf32, #tpu.memory_space<vmem>>, %arg30: memref<64x256xbf16, #tpu.memory_space<vmem>>, %arg31: memref<1x256xf32, #tpu.memory_space<vmem>>, %arg32: memref<256x64xbf16, #tpu.memory_space<vmem>>, %arg33: memref<1x64xf32, #tpu.memory_space<vmem>>, %arg34: memref<64x180xbf16, #tpu.memory_space<vmem>>, %arg35: memref<1x180xf32, #tpu.memory_space<vmem>>, %arg36: memref<180x32xbf16, #tpu.memory_space<vmem>>, %arg37: memref<1x32xf32, #tpu.memory_space<vmem>>, %arg38: memref<180x1xbf16, #tpu.memory_space<vmem>>, %arg39: memref<1x1xf32, #tpu.memory_space<vmem>>, %arg40: memref<2x32xf32, #tpu.memory_space<vmem>>, %arg41: memref<2x32xf32, #tpu.memory_space<vmem>>, %arg42: memref<1x1xf32, #tpu.memory_space<vmem>>, %arg43: memref<5x256xf32, #tpu.memory_space<vmem>>, %arg44: memref<2x256xf32, #tpu.memory_space<vmem>>, %arg45: memref<3x256xf32, #tpu.memory_space<vmem>>, %arg46: memref<3x256xf32, #tpu.memory_space<vmem>>) attributes {dimension_semantics = [#tpu.dimension_semantics<arbitrary>], iteration_bounds = array<i64: 1>, scalar_prefetch = 7 : i64, scratch_operands = 4 : i64, tpu.core_type = #tpu.core_type<tc>, window_params = [{pipeline_mode = #tpu.pipeline_mode<synchronous>, transform_indices = @transform_0, window_bounds = array<i64: 1, 160>}, {pipeline_mode = #tpu.pipeline_mode<synchronous>, transform_indices = @transform_1, window_bounds = array<i64: 160, 64>}, {pipeline_mode = #tpu.pipeline_mode<synchronous>, transform_indices = @transform_2, window_bounds = array<i64: 1, 64>}, {pipeline_mode = #tpu.pipeline_mode<synchronous>, transform_indices = @transform_3, window_bounds = array<i64: 64, 64>}, {pipeline_mode = #tpu.pipeline_mode<synchronous>, transform_indices = @transform_4, window_bounds = array<i64: 1, 64>}, {pipeline_mode = #tpu.pipeline_mode<synchronous>, transform_indices = @transform_5, window_bounds = array<i64: 64, 64>}, {pipeline_mode = #tpu.pipeline_mode<synchronous>, transform_indices = @transform_6, window_bounds = array<i64: 1, 64>}, {pipeline_mode = #tpu.pipeline_mode<synchronous>, transform_indices = @transform_7, window_bounds = array<i64: 64, 1280>}, {pipeline_mode = #tpu.pipeline_mode<synchronous>, transform_indices = @transform_8, window_bounds = array<i64: 1, 1280>}, {pipeline_mode = #tpu.pipeline_mode<synchronous>, transform_indices = @transform_9, window_bounds = array<i64: 4, 26>}, {pipeline_mode = #tpu.pipeline_mode<synchronous>, transform_indices = @transform_10, window_bounds = array<i64: 1, 256>}, {pipeline_mode = #tpu.pipeline_mode<synchronous>, transform_indices = @transform_11, window_bounds = array<i64: 1, 256>}, {pipeline_mode = #tpu.pipeline_mode<synchronous>, transform_indices = @transform_12, window_bounds = array<i64: 256, 1024>}, {pipeline_mode = #tpu.pipeline_mode<synchronous>, transform_indices = @transform_13, window_bounds = array<i64: 256, 1024>}, {pipeline_mode = #tpu.pipeline_mode<synchronous>, transform_indices = @transform_14, window_bounds = array<i64: 1, 1024>}, {pipeline_mode = #tpu.pipeline_mode<synchronous>, transform_indices = @transform_15, window_bounds = array<i64: 256, 1024>}, {pipeline_mode = #tpu.pipeline_mode<synchronous>, transform_indices = @transform_16, window_bounds = array<i64: 256, 1024>}, {pipeline_mode = #tpu.pipeline_mode<synchronous>, transform_indices = @transform_17, window_bounds = array<i64: 1, 1024>}, {pipeline_mode = #tpu.pipeline_mode<synchronous>, transform_indices = @transform_18, window_bounds = array<i64: 256, 64>}, {pipeline_mode = #tpu.pipeline_mode<synchronous>, transform_indices = @transform_19, window_bounds = array<i64: 256, 64>}, {pipeline_mode = #tpu.pipeline_mode<synchronous>, transform_indices = @transform_20, window_bounds = array<i64: 26, 64>}, {pipeline_mode = #tpu.pipeline_mode<synchronous>, transform_indices = @transform_21, window_bounds = array<i64: 1, 64>}, {pipeline_mode = #tpu.pipeline_mode<synchronous>, transform_indices = @transform_22, window_bounds = array<i64: 64, 256>}, {pipeline_mode = #tpu.pipeline_mode<synchronous>, transform_indices = @transform_23, window_bounds = array<i64: 1, 256>}, {pipeline_mode = #tpu.pipeline_mode<synchronous>, transform_indices = @transform_24, window_bounds = array<i64: 256, 64>}, {pipeline_mode = #tpu.pipeline_mode<synchronous>, transform_indices = @transform_25, window_bounds = array<i64: 1, 64>}, {pipeline_mode = #tpu.pipeline_mode<synchronous>, transform_indices = @transform_26, window_bounds = array<i64: 64, 180>}, {pipeline_mode = #tpu.pipeline_mode<synchronous>, transform_indices = @transform_27, window_bounds = array<i64: 1, 180>}, {pipeline_mode = #tpu.pipeline_mode<synchronous>, transform_indices = @transform_28, window_bounds = array<i64: 180, 32>}, {pipeline_mode = #tpu.pipeline_mode<synchronous>, transform_indices = @transform_29, window_bounds = array<i64: 1, 32>}, {pipeline_mode = #tpu.pipeline_mode<synchronous>, transform_indices = @transform_30, window_bounds = array<i64: 180, 1>}, {pipeline_mode = #tpu.pipeline_mode<synchronous>, transform_indices = @transform_31, window_bounds = array<i64: 1, 1>}, {pipeline_mode = #tpu.pipeline_mode<synchronous>, transform_indices = @transform_32, window_bounds = array<i64: 2, 32>}, {pipeline_mode = #tpu.pipeline_mode<synchronous>, transform_indices = @transform_33, window_bounds = array<i64: 2, 32>}, {pipeline_mode = #tpu.pipeline_mode<synchronous>, transform_indices = @transform_34, window_bounds = array<i64: 1, 1>}]} {
    %c0 = arith.constant 0 : index
    %c0_0 = arith.constant 0 : index
    %0 = vector.load %arg8[%c0, %c0_0] : memref<1x160xf32, #tpu.memory_space<vmem>>, vector<1x160xf32>
    %c0_1 = arith.constant 0 : index
    %c0_2 = arith.constant 0 : index
    %1 = vector.load %arg9[%c0_1, %c0_2] : memref<160x64xbf16, #tpu.memory_space<vmem>>, vector<160x64xbf16>
    %2 = arith.truncf %0 : vector<1x160xf32> to vector<1x160xbf16>
    %cst = arith.constant dense<0.000000e+00> : vector<1x64xf32>
    %3 = tpu.matmul %2, %1, %cst {dimension_numbers = #tpu.dot_dimension_numbers<[1], [0], [0], [1], [0, 0, 1, 1], [], []>} : vector<1x160xbf16>, vector<160x64xbf16>, vector<1x64xf32> -> vector<1x64xf32>
    %c0_3 = arith.constant 0 : index
    %c0_4 = arith.constant 0 : index
    %4 = vector.load %arg10[%c0_3, %c0_4] : memref<1x64xf32, #tpu.memory_space<vmem>>, vector<1x64xf32>
    %5 = arith.addf %3, %4 : vector<1x64xf32>
    %cst_5 = arith.constant 0.000000e+00 : f32
    %6 = vector.broadcast %cst_5 : f32 to vector<1x64xf32>
    %7 = arith.maximumf %5, %6 : vector<1x64xf32>
    %c0_6 = arith.constant 0 : index
    %c0_7 = arith.constant 0 : index
    %8 = vector.load %arg11[%c0_6, %c0_7] : memref<64x64xbf16, #tpu.memory_space<vmem>>, vector<64x64xbf16>
    %9 = arith.truncf %7 : vector<1x64xf32> to vector<1x64xbf16>
    %cst_8 = arith.constant dense<0.000000e+00> : vector<1x64xf32>
    %10 = tpu.matmul %9, %8, %cst_8 {dimension_numbers = #tpu.dot_dimension_numbers<[1], [0], [0], [1], [0, 0, 1, 1], [], []>} : vector<1x64xbf16>, vector<64x64xbf16>, vector<1x64xf32> -> vector<1x64xf32>
    %c0_9 = arith.constant 0 : index
    %c0_10 = arith.constant 0 : index
    %11 = vector.load %arg12[%c0_9, %c0_10] : memref<1x64xf32, #tpu.memory_space<vmem>>, vector<1x64xf32>
    %12 = arith.addf %10, %11 : vector<1x64xf32>
    %cst_11 = arith.constant 0.000000e+00 : f32
    %13 = vector.broadcast %cst_11 : f32 to vector<1x64xf32>
    %14 = arith.maximumf %12, %13 : vector<1x64xf32>
    %c0_12 = arith.constant 0 : index
    %c0_13 = arith.constant 0 : index
    %15 = vector.load %arg13[%c0_12, %c0_13] : memref<64x64xbf16, #tpu.memory_space<vmem>>, vector<64x64xbf16>
    %16 = arith.truncf %14 : vector<1x64xf32> to vector<1x64xbf16>
    %cst_14 = arith.constant dense<0.000000e+00> : vector<1x64xf32>
    %17 = tpu.matmul %16, %15, %cst_14 {dimension_numbers = #tpu.dot_dimension_numbers<[1], [0], [0], [1], [0, 0, 1, 1], [], []>} : vector<1x64xbf16>, vector<64x64xbf16>, vector<1x64xf32> -> vector<1x64xf32>
    %c0_15 = arith.constant 0 : index
    %c0_16 = arith.constant 0 : index
    %18 = vector.load %arg14[%c0_15, %c0_16] : memref<1x64xf32, #tpu.memory_space<vmem>>, vector<1x64xf32>
    %19 = arith.addf %17, %18 : vector<1x64xf32>
    %cst_17 = arith.constant 0.000000e+00 : f32
    %20 = vector.broadcast %cst_17 : f32 to vector<1x64xf32>
    %21 = arith.maximumf %19, %20 : vector<1x64xf32>
    %c0_18 = arith.constant 0 : index
    %c0_19 = arith.constant 0 : index
    %22 = vector.load %arg15[%c0_18, %c0_19] : memref<64x1280xbf16, #tpu.memory_space<vmem>>, vector<64x1280xbf16>
    %23 = arith.truncf %21 : vector<1x64xf32> to vector<1x64xbf16>
    %cst_20 = arith.constant dense<0.000000e+00> : vector<1x1280xf32>
    %24 = tpu.matmul %23, %22, %cst_20 {dimension_numbers = #tpu.dot_dimension_numbers<[1], [0], [0], [1], [0, 0, 1, 1], [], []>} : vector<1x64xbf16>, vector<64x1280xbf16>, vector<1x1280xf32> -> vector<1x1280xf32>
    %c0_21 = arith.constant 0 : index
    %c0_22 = arith.constant 0 : index
    %25 = vector.load %arg16[%c0_21, %c0_22] : memref<1x1280xf32, #tpu.memory_space<vmem>>, vector<1x1280xf32>
    %26 = arith.addf %24, %25 : vector<1x1280xf32>
    %cst_23 = arith.constant 0.000000e+00 : f32
    %27 = vector.broadcast %cst_23 : f32 to vector<1x1280xf32>
    %28 = arith.maximumf %26, %27 : vector<1x1280xf32>
    %29 = vector.extract_strided_slice %28 {offsets = [0, 0], sizes = [1, 256], strides = [1, 1]} : vector<1x1280xf32> to vector<1x256xf32>
    %c0_24 = arith.constant 0 : index
    %c0_25 = arith.constant 0 : index
    %30 = vector.load %arg43[%c0_24, %c0_25] : memref<5x256xf32, #tpu.memory_space<vmem>>, vector<1x256xf32>
    tpu.vector_store %arg43[%c0_24, %c0_25], %29 {strides = array<i32>} : memref<5x256xf32, #tpu.memory_space<vmem>>, vector<1x256xf32>,
    %31 = vector.extract_strided_slice %28 {offsets = [0, 256], sizes = [1, 256], strides = [1, 1]} : vector<1x1280xf32> to vector<1x256xf32>
    %c1 = arith.constant 1 : index
    %c0_26 = arith.constant 0 : index
    %32 = vector.load %arg43[%c1, %c0_26] : memref<5x256xf32, #tpu.memory_space<vmem>>, vector<1x256xf32>
    tpu.vector_store %arg43[%c1, %c0_26], %31 {strides = array<i32>} : memref<5x256xf32, #tpu.memory_space<vmem>>, vector<1x256xf32>,
    %33 = vector.extract_strided_slice %28 {offsets = [0, 512], sizes = [1, 256], strides = [1, 1]} : vector<1x1280xf32> to vector<1x256xf32>
    %c2 = arith.constant 2 : index
    %c0_27 = arith.constant 0 : index
    %34 = vector.load %arg43[%c2, %c0_27] : memref<5x256xf32, #tpu.memory_space<vmem>>, vector<1x256xf32>
    tpu.vector_store %arg43[%c2, %c0_27], %33 {strides = array<i32>} : memref<5x256xf32, #tpu.memory_space<vmem>>, vector<1x256xf32>,
    %35 = vector.extract_strided_slice %28 {offsets = [0, 768], sizes = [1, 256], strides = [1, 1]} : vector<1x1280xf32> to vector<1x256xf32>
    %c3 = arith.constant 3 : index
    %c0_28 = arith.constant 0 : index
    %36 = vector.load %arg43[%c3, %c0_28] : memref<5x256xf32, #tpu.memory_space<vmem>>, vector<1x256xf32>
    tpu.vector_store %arg43[%c3, %c0_28], %35 {strides = array<i32>} : memref<5x256xf32, #tpu.memory_space<vmem>>, vector<1x256xf32>,
    %37 = vector.extract_strided_slice %28 {offsets = [0, 1024], sizes = [1, 256], strides = [1, 1]} : vector<1x1280xf32> to vector<1x256xf32>
    %c4 = arith.constant 4 : index
    %c0_29 = arith.constant 0 : index
    %38 = vector.load %arg43[%c4, %c0_29] : memref<5x256xf32, #tpu.memory_space<vmem>>, vector<1x256xf32>
    tpu.vector_store %arg43[%c4, %c0_29], %37 {strides = array<i32>} : memref<5x256xf32, #tpu.memory_space<vmem>>, vector<1x256xf32>,
    %cst_30 = arith.constant 0.000000e+00 : f32
    %39 = vector.broadcast %cst_30 : f32 to vector<2x256xf32>
    %c0_31 = arith.constant 0 : index
    %c0_32 = arith.constant 0 : index
    %40 = vector.load %arg44[%c0_31, %c0_32] : memref<2x256xf32, #tpu.memory_space<vmem>>, vector<2x256xf32>
    tpu.vector_store %arg44[%c0_31, %c0_32], %39 {strides = array<i32>} : memref<2x256xf32, #tpu.memory_space<vmem>>, vector<2x256xf32>,
    %c0_i32 = arith.constant 0 : i32
    %c2_i32 = arith.constant 2 : i32
    %41 = arith.addi %c0_i32, %c2_i32 : i32
    %c1_i32 = arith.constant 1 : i32
    scf.for %arg47 = %c0_i32 to %41 step %c1_i32  : i32 {
      %c1_i32_66 = arith.constant 1 : i32
      %76 = arith.muli %arg47, %c1_i32_66 : i32
      %c0_i32_67 = arith.constant 0 : i32
      %77 = arith.addi %c0_i32_67, %76 : i32
      %78 = arith.index_cast %77 : i32 to index
      %79 = memref.load %arg1[%78] : memref<2xi32, #tpu.memory_space<smem>>
      %c1_i32_68 = arith.constant 1 : i32
      %80 = arith.cmpi eq, %79, %c1_i32_68 : i32
      %81 = arith.extui %80 : i1 to i32
      %c0_i32_69 = arith.constant 0 : i32
      %82 = arith.cmpi ne, %81, %c0_i32_69 : i32
      scf.if %82 {
        %83 = arith.index_cast %77 : i32 to index
        %84 = memref.load %arg4[%83] : memref<2xi32, #tpu.memory_space<smem>>
        %85 = arith.index_cast %77 : i32 to index
        %86 = memref.load %arg6[%85] : memref<2xi32, #tpu.memory_space<smem>>
        %c3_i32 = arith.constant 3 : i32
        %87 = arith.muli %77, %c3_i32 : i32
        %c0_i32_70 = arith.constant 0 : i32
        %88 = arith.addi %87, %c0_i32_70 : i32
        %89 = arith.index_cast %88 : i32 to index
        %90 = memref.load %arg5[%89] : memref<6xi32, #tpu.memory_space<smem>>
        %91 = arith.index_cast %90 : i32 to index
        %c0_71 = arith.constant 0 : index
        %92 = vector.load %arg44[%91, %c0_71] : memref<2x256xf32, #tpu.memory_space<vmem>>, vector<1x256xf32>
        %c0_72 = arith.constant 0 : index
        %c0_73 = arith.constant 0 : index
        %93 = vector.load %arg45[%c0_72, %c0_73] : memref<3x256xf32, #tpu.memory_space<vmem>>, vector<1x256xf32>
        tpu.vector_store %arg45[%c0_72, %c0_73], %92 {strides = array<i32>} : memref<3x256xf32, #tpu.memory_space<vmem>>, vector<1x256xf32>,
        %c3_i32_74 = arith.constant 3 : i32
        %94 = arith.muli %77, %c3_i32_74 : i32
        %c1_i32_75 = arith.constant 1 : i32
        %95 = arith.addi %94, %c1_i32_75 : i32
        %96 = arith.index_cast %95 : i32 to index
        %97 = memref.load %arg5[%96] : memref<6xi32, #tpu.memory_space<smem>>
        %98 = arith.index_cast %97 : i32 to index
        %c0_76 = arith.constant 0 : index
        %99 = vector.load %arg44[%98, %c0_76] : memref<2x256xf32, #tpu.memory_space<vmem>>, vector<1x256xf32>
        %c1_77 = arith.constant 1 : index
        %c0_78 = arith.constant 0 : index
        %100 = vector.load %arg45[%c1_77, %c0_78] : memref<3x256xf32, #tpu.memory_space<vmem>>, vector<1x256xf32>
        tpu.vector_store %arg45[%c1_77, %c0_78], %99 {strides = array<i32>} : memref<3x256xf32, #tpu.memory_space<vmem>>, vector<1x256xf32>,
        %c3_i32_79 = arith.constant 3 : i32
        %101 = arith.muli %77, %c3_i32_79 : i32
        %c2_i32_80 = arith.constant 2 : i32
        %102 = arith.addi %101, %c2_i32_80 : i32
        %103 = arith.index_cast %102 : i32 to index
        %104 = memref.load %arg5[%103] : memref<6xi32, #tpu.memory_space<smem>>
        %105 = arith.index_cast %104 : i32 to index
        %c0_81 = arith.constant 0 : index
        %106 = vector.load %arg44[%105, %c0_81] : memref<2x256xf32, #tpu.memory_space<vmem>>, vector<1x256xf32>
        %c2_82 = arith.constant 2 : index
        %c0_83 = arith.constant 0 : index
        %107 = vector.load %arg45[%c2_82, %c0_83] : memref<3x256xf32, #tpu.memory_space<vmem>>, vector<1x256xf32>
        tpu.vector_store %arg45[%c2_82, %c0_83], %106 {strides = array<i32>} : memref<3x256xf32, #tpu.memory_space<vmem>>, vector<1x256xf32>,
        %c3_i32_84 = arith.constant 3 : i32
        %108 = arith.muli %77, %c3_i32_84 : i32
        %c0_i32_85 = arith.constant 0 : i32
        %109 = arith.addi %108, %c0_i32_85 : i32
        %110 = arith.index_cast %109 : i32 to index
        %111 = memref.load %arg7[%110] : memref<6xi32, #tpu.memory_space<smem>>
        %112 = arith.index_cast %111 : i32 to index
        %c0_86 = arith.constant 0 : index
        %113 = vector.load %arg43[%112, %c0_86] : memref<5x256xf32, #tpu.memory_space<vmem>>, vector<1x256xf32>
        %c0_87 = arith.constant 0 : index
        %c0_88 = arith.constant 0 : index
        %114 = vector.load %arg46[%c0_87, %c0_88] : memref<3x256xf32, #tpu.memory_space<vmem>>, vector<1x256xf32>
        tpu.vector_store %arg46[%c0_87, %c0_88], %113 {strides = array<i32>} : memref<3x256xf32, #tpu.memory_space<vmem>>, vector<1x256xf32>,
        %c3_i32_89 = arith.constant 3 : i32
        %115 = arith.muli %77, %c3_i32_89 : i32
        %c1_i32_90 = arith.constant 1 : i32
        %116 = arith.addi %115, %c1_i32_90 : i32
        %117 = arith.index_cast %116 : i32 to index
        %118 = memref.load %arg7[%117] : memref<6xi32, #tpu.memory_space<smem>>
        %119 = arith.index_cast %118 : i32 to index
        %c0_91 = arith.constant 0 : index
        %120 = vector.load %arg43[%119, %c0_91] : memref<5x256xf32, #tpu.memory_space<vmem>>, vector<1x256xf32>
        %c1_92 = arith.constant 1 : index
        %c0_93 = arith.constant 0 : index
        %121 = vector.load %arg46[%c1_92, %c0_93] : memref<3x256xf32, #tpu.memory_space<vmem>>, vector<1x256xf32>
        tpu.vector_store %arg46[%c1_92, %c0_93], %120 {strides = array<i32>} : memref<3x256xf32, #tpu.memory_space<vmem>>, vector<1x256xf32>,
        %c3_i32_94 = arith.constant 3 : i32
        %122 = arith.muli %77, %c3_i32_94 : i32
        %c2_i32_95 = arith.constant 2 : i32
        %123 = arith.addi %122, %c2_i32_95 : i32
        %124 = arith.index_cast %123 : i32 to index
        %125 = memref.load %arg7[%124] : memref<6xi32, #tpu.memory_space<smem>>
        %126 = arith.index_cast %125 : i32 to index
        %c0_96 = arith.constant 0 : index
        %127 = vector.load %arg43[%126, %c0_96] : memref<5x256xf32, #tpu.memory_space<vmem>>, vector<1x256xf32>
        %c2_97 = arith.constant 2 : index
        %c0_98 = arith.constant 0 : index
        %128 = vector.load %arg46[%c2_97, %c0_98] : memref<3x256xf32, #tpu.memory_space<vmem>>, vector<1x256xf32>
        tpu.vector_store %arg46[%c2_97, %c0_98], %127 {strides = array<i32>} : memref<3x256xf32, #tpu.memory_space<vmem>>, vector<1x256xf32>,
        %c0_99 = arith.constant 0 : index
        %c0_100 = arith.constant 0 : index
        %129 = vector.load %arg45[%c0_99, %c0_100] : memref<3x256xf32, #tpu.memory_space<vmem>>, vector<3x256xf32>
        %c0_101 = arith.constant 0 : index
        %c0_102 = arith.constant 0 : index
        %130 = vector.load %arg20[%c0_101, %c0_102] : memref<256x1024xbf16, #tpu.memory_space<vmem>>, vector<256x1024xbf16>
        %131 = arith.truncf %129 : vector<3x256xf32> to vector<3x256xbf16>
        %cst_103 = arith.constant dense<0.000000e+00> : vector<3x1024xf32>
        %132 = tpu.matmul %131, %130, %cst_103 {dimension_numbers = #tpu.dot_dimension_numbers<[1], [0], [0], [1], [0, 0, 1, 1], [], []>} : vector<3x256xbf16>, vector<256x1024xbf16>, vector<3x1024xf32> -> vector<3x1024xf32>
        %c0_104 = arith.constant 0 : index
        %c0_105 = arith.constant 0 : index
        %133 = vector.load %arg22[%c0_104, %c0_105] : memref<1x1024xf32, #tpu.memory_space<vmem>>, vector<1x1024xf32>
        %134 = vector.broadcast %133 : vector<1x1024xf32> to vector<3x1024xf32>
        %135 = arith.addf %132, %134 : vector<3x1024xf32>
        %c0_106 = arith.constant 0 : index
        %c0_107 = arith.constant 0 : index
        %136 = vector.load %arg46[%c0_106, %c0_107] : memref<3x256xf32, #tpu.memory_space<vmem>>, vector<3x256xf32>
        %c0_108 = arith.constant 0 : index
        %c0_109 = arith.constant 0 : index
        %137 = vector.load %arg23[%c0_108, %c0_109] : memref<256x1024xbf16, #tpu.memory_space<vmem>>, vector<256x1024xbf16>
        %138 = arith.truncf %136 : vector<3x256xf32> to vector<3x256xbf16>
        %cst_110 = arith.constant dense<0.000000e+00> : vector<3x1024xf32>
        %139 = tpu.matmul %138, %137, %cst_110 {dimension_numbers = #tpu.dot_dimension_numbers<[1], [0], [0], [1], [0, 0, 1, 1], [], []>} : vector<3x256xbf16>, vector<256x1024xbf16>, vector<3x1024xf32> -> vector<3x1024xf32>
        %c0_111 = arith.constant 0 : index
        %c0_112 = arith.constant 0 : index
        %140 = vector.load %arg25[%c0_111, %c0_112] : memref<1x1024xf32, #tpu.memory_space<vmem>>, vector<1x1024xf32>
        %141 = vector.broadcast %140 : vector<1x1024xf32> to vector<3x1024xf32>
        %142 = arith.addf %139, %141 : vector<3x1024xf32>
        %cst_113 = arith.constant 0.000000e+00 : f32
        %143 = vector.broadcast %cst_113 : f32 to vector<1x256xf32>
        %cst_114 = arith.constant 0.000000e+00 : f32
        %144 = vector.broadcast %cst_114 : f32 to vector<1x256xf32>
        %cst_115 = arith.constant 0.000000e+00 : f32
        %145 = vector.broadcast %cst_115 : f32 to vector<1x256xf32>
        %cst_116 = arith.constant 0.000000e+00 : f32
        %146 = vector.broadcast %cst_116 : f32 to vector<1x256xf32>
        %147 = vector.extract_strided_slice %135 {offsets = [0, 0], sizes = [1, 1024], strides = [1, 1]} : vector<3x1024xf32> to vector<1x1024xf32>
        %c0_117 = arith.constant 0 : index
        %c0_118 = arith.constant 0 : index
        %148 = vector.load %arg21[%c0_117, %c0_118] : memref<256x1024xbf16, #tpu.memory_space<vmem>>, vector<256x1024xbf16>
        %149 = arith.truncf %143 : vector<1x256xf32> to vector<1x256xbf16>
        %cst_119 = arith.constant dense<0.000000e+00> : vector<1x1024xf32>
        %150 = tpu.matmul %149, %148, %cst_119 {dimension_numbers = #tpu.dot_dimension_numbers<[1], [0], [0], [1], [0, 0, 1, 1], [], []>} : vector<1x256xbf16>, vector<256x1024xbf16>, vector<1x1024xf32> -> vector<1x1024xf32>
        %151 = arith.addf %147, %150 : vector<1x1024xf32>
        %152 = vector.extract_strided_slice %142 {offsets = [0, 0], sizes = [1, 1024], strides = [1, 1]} : vector<3x1024xf32> to vector<1x1024xf32>
        %c0_120 = arith.constant 0 : index
        %c0_121 = arith.constant 0 : index
        %153 = vector.load %arg24[%c0_120, %c0_121] : memref<256x1024xbf16, #tpu.memory_space<vmem>>, vector<256x1024xbf16>
        %154 = arith.truncf %145 : vector<1x256xf32> to vector<1x256xbf16>
        %cst_122 = arith.constant dense<0.000000e+00> : vector<1x1024xf32>
        %155 = tpu.matmul %154, %153, %cst_122 {dimension_numbers = #tpu.dot_dimension_numbers<[1], [0], [0], [1], [0, 0, 1, 1], [], []>} : vector<1x256xbf16>, vector<256x1024xbf16>, vector<1x1024xf32> -> vector<1x1024xf32>
        %156 = arith.addf %152, %155 : vector<1x1024xf32>
        %c0_i32_123 = arith.constant 0 : i32
        %157 = arith.cmpi sgt, %84, %c0_i32_123 : i32
        %158 = vector.extract_strided_slice %151 {offsets = [0, 0], sizes = [1, 256], strides = [1, 1]} : vector<1x1024xf32> to vector<1x256xf32>
        %159 = arith.negf %158 : vector<1x256xf32>
        %160 = math.exp %159 : vector<1x256xf32>
        %cst_124 = arith.constant 1.000000e+00 : f32
        %161 = vector.broadcast %cst_124 : f32 to vector<1x256xf32>
        %162 = arith.addf %161, %160 : vector<1x256xf32>
        %163 = arith.divf %161, %162 : vector<1x256xf32>
        %164 = vector.extract_strided_slice %151 {offsets = [0, 256], sizes = [1, 256], strides = [1, 1]} : vector<1x1024xf32> to vector<1x256xf32>
        %165 = arith.negf %164 : vector<1x256xf32>
        %166 = math.exp %165 : vector<1x256xf32>
        %cst_125 = arith.constant 1.000000e+00 : f32
        %167 = vector.broadcast %cst_125 : f32 to vector<1x256xf32>
        %168 = arith.addf %167, %166 : vector<1x256xf32>
        %169 = arith.divf %167, %168 : vector<1x256xf32>
        %170 = vector.extract_strided_slice %151 {offsets = [0, 512], sizes = [1, 256], strides = [1, 1]} : vector<1x1024xf32> to vector<1x256xf32>
        %171 = math.tanh %170 : vector<1x256xf32>
        %172 = vector.extract_strided_slice %151 {offsets = [0, 768], sizes = [1, 256], strides = [1, 1]} : vector<1x1024xf32> to vector<1x256xf32>
        %173 = arith.negf %172 : vector<1x256xf32>
        %174 = math.exp %173 : vector<1x256xf32>
        %cst_126 = arith.constant 1.000000e+00 : f32
        %175 = vector.broadcast %cst_126 : f32 to vector<1x256xf32>
        %176 = arith.addf %175, %174 : vector<1x256xf32>
        %177 = arith.divf %175, %176 : vector<1x256xf32>
        %178 = arith.mulf %169, %144 : vector<1x256xf32>
        %179 = arith.mulf %163, %171 : vector<1x256xf32>
        %180 = arith.addf %178, %179 : vector<1x256xf32>
        %181 = math.tanh %180 : vector<1x256xf32>
        %182 = arith.mulf %177, %181 : vector<1x256xf32>
        %183 = arith.select %157, %182, %143 : vector<1x256xf32>
        %184 = arith.select %157, %180, %144 : vector<1x256xf32>
        %c0_i32_127 = arith.constant 0 : i32
        %185 = arith.cmpi sgt, %86, %c0_i32_127 : i32
        %186 = vector.extract_strided_slice %156 {offsets = [0, 0], sizes = [1, 256], strides = [1, 1]} : vector<1x1024xf32> to vector<1x256xf32>
        %187 = arith.negf %186 : vector<1x256xf32>
        %188 = math.exp %187 : vector<1x256xf32>
        %cst_128 = arith.constant 1.000000e+00 : f32
        %189 = vector.broadcast %cst_128 : f32 to vector<1x256xf32>
        %190 = arith.addf %189, %188 : vector<1x256xf32>
        %191 = arith.divf %189, %190 : vector<1x256xf32>
        %192 = vector.extract_strided_slice %156 {offsets = [0, 256], sizes = [1, 256], strides = [1, 1]} : vector<1x1024xf32> to vector<1x256xf32>
        %193 = arith.negf %192 : vector<1x256xf32>
        %194 = math.exp %193 : vector<1x256xf32>
        %cst_129 = arith.constant 1.000000e+00 : f32
        %195 = vector.broadcast %cst_129 : f32 to vector<1x256xf32>
        %196 = arith.addf %195, %194 : vector<1x256xf32>
        %197 = arith.divf %195, %196 : vector<1x256xf32>
        %198 = vector.extract_strided_slice %156 {offsets = [0, 512], sizes = [1, 256], strides = [1, 1]} : vector<1x1024xf32> to vector<1x256xf32>
        %199 = math.tanh %198 : vector<1x256xf32>
        %200 = vector.extract_strided_slice %156 {offsets = [0, 768], sizes = [1, 256], strides = [1, 1]} : vector<1x1024xf32> to vector<1x256xf32>
        %201 = arith.negf %200 : vector<1x256xf32>
        %202 = math.exp %201 : vector<1x256xf32>
        %cst_130 = arith.constant 1.000000e+00 : f32
        %203 = vector.broadcast %cst_130 : f32 to vector<1x256xf32>
        %204 = arith.addf %203, %202 : vector<1x256xf32>
        %205 = arith.divf %203, %204 : vector<1x256xf32>
        %206 = arith.mulf %197, %146 : vector<1x256xf32>
        %207 = arith.mulf %191, %199 : vector<1x256xf32>
        %208 = arith.addf %206, %207 : vector<1x256xf32>
        %209 = math.tanh %208 : vector<1x256xf32>
        %210 = arith.mulf %205, %209 : vector<1x256xf32>
        %211 = arith.select %185, %210, %145 : vector<1x256xf32>
        %212 = arith.select %185, %208, %146 : vector<1x256xf32>
        %213 = vector.extract_strided_slice %135 {offsets = [1, 0], sizes = [1, 1024], strides = [1, 1]} : vector<3x1024xf32> to vector<1x1024xf32>
        %c0_131 = arith.constant 0 : index
        %c0_132 = arith.constant 0 : index
        %214 = vector.load %arg21[%c0_131, %c0_132] : memref<256x1024xbf16, #tpu.memory_space<vmem>>, vector<256x1024xbf16>
        %215 = arith.truncf %183 : vector<1x256xf32> to vector<1x256xbf16>
        %cst_133 = arith.constant dense<0.000000e+00> : vector<1x1024xf32>
        %216 = tpu.matmul %215, %214, %cst_133 {dimension_numbers = #tpu.dot_dimension_numbers<[1], [0], [0], [1], [0, 0, 1, 1], [], []>} : vector<1x256xbf16>, vector<256x1024xbf16>, vector<1x1024xf32> -> vector<1x1024xf32>
        %217 = arith.addf %213, %216 : vector<1x1024xf32>
        %218 = vector.extract_strided_slice %142 {offsets = [1, 0], sizes = [1, 1024], strides = [1, 1]} : vector<3x1024xf32> to vector<1x1024xf32>
        %c0_134 = arith.constant 0 : index
        %c0_135 = arith.constant 0 : index
        %219 = vector.load %arg24[%c0_134, %c0_135] : memref<256x1024xbf16, #tpu.memory_space<vmem>>, vector<256x1024xbf16>
        %220 = arith.truncf %211 : vector<1x256xf32> to vector<1x256xbf16>
        %cst_136 = arith.constant dense<0.000000e+00> : vector<1x1024xf32>
        %221 = tpu.matmul %220, %219, %cst_136 {dimension_numbers = #tpu.dot_dimension_numbers<[1], [0], [0], [1], [0, 0, 1, 1], [], []>} : vector<1x256xbf16>, vector<256x1024xbf16>, vector<1x1024xf32> -> vector<1x1024xf32>
        %222 = arith.addf %218, %221 : vector<1x1024xf32>
        %c1_i32_137 = arith.constant 1 : i32
        %223 = arith.cmpi sgt, %84, %c1_i32_137 : i32
        %224 = vector.extract_strided_slice %217 {offsets = [0, 0], sizes = [1, 256], strides = [1, 1]} : vector<1x1024xf32> to vector<1x256xf32>
        %225 = arith.negf %224 : vector<1x256xf32>
        %226 = math.exp %225 : vector<1x256xf32>
        %cst_138 = arith.constant 1.000000e+00 : f32
        %227 = vector.broadcast %cst_138 : f32 to vector<1x256xf32>
        %228 = arith.addf %227, %226 : vector<1x256xf32>
        %229 = arith.divf %227, %228 : vector<1x256xf32>
        %230 = vector.extract_strided_slice %217 {offsets = [0, 256], sizes = [1, 256], strides = [1, 1]} : vector<1x1024xf32> to vector<1x256xf32>
        %231 = arith.negf %230 : vector<1x256xf32>
        %232 = math.exp %231 : vector<1x256xf32>
        %cst_139 = arith.constant 1.000000e+00 : f32
        %233 = vector.broadcast %cst_139 : f32 to vector<1x256xf32>
        %234 = arith.addf %233, %232 : vector<1x256xf32>
        %235 = arith.divf %233, %234 : vector<1x256xf32>
        %236 = vector.extract_strided_slice %217 {offsets = [0, 512], sizes = [1, 256], strides = [1, 1]} : vector<1x1024xf32> to vector<1x256xf32>
        %237 = math.tanh %236 : vector<1x256xf32>
        %238 = vector.extract_strided_slice %217 {offsets = [0, 768], sizes = [1, 256], strides = [1, 1]} : vector<1x1024xf32> to vector<1x256xf32>
        %239 = arith.negf %238 : vector<1x256xf32>
        %240 = math.exp %239 : vector<1x256xf32>
        %cst_140 = arith.constant 1.000000e+00 : f32
        %241 = vector.broadcast %cst_140 : f32 to vector<1x256xf32>
        %242 = arith.addf %241, %240 : vector<1x256xf32>
        %243 = arith.divf %241, %242 : vector<1x256xf32>
        %244 = arith.mulf %235, %184 : vector<1x256xf32>
        %245 = arith.mulf %229, %237 : vector<1x256xf32>
        %246 = arith.addf %244, %245 : vector<1x256xf32>
        %247 = math.tanh %246 : vector<1x256xf32>
        %248 = arith.mulf %243, %247 : vector<1x256xf32>
        %249 = arith.select %223, %248, %183 : vector<1x256xf32>
        %250 = arith.select %223, %246, %184 : vector<1x256xf32>
        %c1_i32_141 = arith.constant 1 : i32
        %251 = arith.cmpi sgt, %86, %c1_i32_141 : i32
        %252 = vector.extract_strided_slice %222 {offsets = [0, 0], sizes = [1, 256], strides = [1, 1]} : vector<1x1024xf32> to vector<1x256xf32>
        %253 = arith.negf %252 : vector<1x256xf32>
        %254 = math.exp %253 : vector<1x256xf32>
        %cst_142 = arith.constant 1.000000e+00 : f32
        %255 = vector.broadcast %cst_142 : f32 to vector<1x256xf32>
        %256 = arith.addf %255, %254 : vector<1x256xf32>
        %257 = arith.divf %255, %256 : vector<1x256xf32>
        %258 = vector.extract_strided_slice %222 {offsets = [0, 256], sizes = [1, 256], strides = [1, 1]} : vector<1x1024xf32> to vector<1x256xf32>
        %259 = arith.negf %258 : vector<1x256xf32>
        %260 = math.exp %259 : vector<1x256xf32>
        %cst_143 = arith.constant 1.000000e+00 : f32
        %261 = vector.broadcast %cst_143 : f32 to vector<1x256xf32>
        %262 = arith.addf %261, %260 : vector<1x256xf32>
        %263 = arith.divf %261, %262 : vector<1x256xf32>
        %264 = vector.extract_strided_slice %222 {offsets = [0, 512], sizes = [1, 256], strides = [1, 1]} : vector<1x1024xf32> to vector<1x256xf32>
        %265 = math.tanh %264 : vector<1x256xf32>
        %266 = vector.extract_strided_slice %222 {offsets = [0, 768], sizes = [1, 256], strides = [1, 1]} : vector<1x1024xf32> to vector<1x256xf32>
        %267 = arith.negf %266 : vector<1x256xf32>
        %268 = math.exp %267 : vector<1x256xf32>
        %cst_144 = arith.constant 1.000000e+00 : f32
        %269 = vector.broadcast %cst_144 : f32 to vector<1x256xf32>
        %270 = arith.addf %269, %268 : vector<1x256xf32>
        %271 = arith.divf %269, %270 : vector<1x256xf32>
        %272 = arith.mulf %263, %212 : vector<1x256xf32>
        %273 = arith.mulf %257, %265 : vector<1x256xf32>
        %274 = arith.addf %272, %273 : vector<1x256xf32>
        %275 = math.tanh %274 : vector<1x256xf32>
        %276 = arith.mulf %271, %275 : vector<1x256xf32>
        %277 = arith.select %251, %276, %211 : vector<1x256xf32>
        %278 = arith.select %251, %274, %212 : vector<1x256xf32>
        %279 = vector.extract_strided_slice %135 {offsets = [2, 0], sizes = [1, 1024], strides = [1, 1]} : vector<3x1024xf32> to vector<1x1024xf32>
        %c0_145 = arith.constant 0 : index
        %c0_146 = arith.constant 0 : index
        %280 = vector.load %arg21[%c0_145, %c0_146] : memref<256x1024xbf16, #tpu.memory_space<vmem>>, vector<256x1024xbf16>
        %281 = arith.truncf %249 : vector<1x256xf32> to vector<1x256xbf16>
        %cst_147 = arith.constant dense<0.000000e+00> : vector<1x1024xf32>
        %282 = tpu.matmul %281, %280, %cst_147 {dimension_numbers = #tpu.dot_dimension_numbers<[1], [0], [0], [1], [0, 0, 1, 1], [], []>} : vector<1x256xbf16>, vector<256x1024xbf16>, vector<1x1024xf32> -> vector<1x1024xf32>
        %283 = arith.addf %279, %282 : vector<1x1024xf32>
        %284 = vector.extract_strided_slice %142 {offsets = [2, 0], sizes = [1, 1024], strides = [1, 1]} : vector<3x1024xf32> to vector<1x1024xf32>
        %c0_148 = arith.constant 0 : index
        %c0_149 = arith.constant 0 : index
        %285 = vector.load %arg24[%c0_148, %c0_149] : memref<256x1024xbf16, #tpu.memory_space<vmem>>, vector<256x1024xbf16>
        %286 = arith.truncf %277 : vector<1x256xf32> to vector<1x256xbf16>
        %cst_150 = arith.constant dense<0.000000e+00> : vector<1x1024xf32>
        %287 = tpu.matmul %286, %285, %cst_150 {dimension_numbers = #tpu.dot_dimension_numbers<[1], [0], [0], [1], [0, 0, 1, 1], [], []>} : vector<1x256xbf16>, vector<256x1024xbf16>, vector<1x1024xf32> -> vector<1x1024xf32>
        %288 = arith.addf %284, %287 : vector<1x1024xf32>
        %c2_i32_151 = arith.constant 2 : i32
        %289 = arith.cmpi sgt, %84, %c2_i32_151 : i32
        %290 = vector.extract_strided_slice %283 {offsets = [0, 0], sizes = [1, 256], strides = [1, 1]} : vector<1x1024xf32> to vector<1x256xf32>
        %291 = arith.negf %290 : vector<1x256xf32>
        %292 = math.exp %291 : vector<1x256xf32>
        %cst_152 = arith.constant 1.000000e+00 : f32
        %293 = vector.broadcast %cst_152 : f32 to vector<1x256xf32>
        %294 = arith.addf %293, %292 : vector<1x256xf32>
        %295 = arith.divf %293, %294 : vector<1x256xf32>
        %296 = vector.extract_strided_slice %283 {offsets = [0, 256], sizes = [1, 256], strides = [1, 1]} : vector<1x1024xf32> to vector<1x256xf32>
        %297 = arith.negf %296 : vector<1x256xf32>
        %298 = math.exp %297 : vector<1x256xf32>
        %cst_153 = arith.constant 1.000000e+00 : f32
        %299 = vector.broadcast %cst_153 : f32 to vector<1x256xf32>
        %300 = arith.addf %299, %298 : vector<1x256xf32>
        %301 = arith.divf %299, %300 : vector<1x256xf32>
        %302 = vector.extract_strided_slice %283 {offsets = [0, 512], sizes = [1, 256], strides = [1, 1]} : vector<1x1024xf32> to vector<1x256xf32>
        %303 = math.tanh %302 : vector<1x256xf32>
        %304 = vector.extract_strided_slice %283 {offsets = [0, 768], sizes = [1, 256], strides = [1, 1]} : vector<1x1024xf32> to vector<1x256xf32>
        %305 = arith.negf %304 : vector<1x256xf32>
        %306 = math.exp %305 : vector<1x256xf32>
        %cst_154 = arith.constant 1.000000e+00 : f32
        %307 = vector.broadcast %cst_154 : f32 to vector<1x256xf32>
        %308 = arith.addf %307, %306 : vector<1x256xf32>
        %309 = arith.divf %307, %308 : vector<1x256xf32>
        %310 = arith.mulf %301, %250 : vector<1x256xf32>
        %311 = arith.mulf %295, %303 : vector<1x256xf32>
        %312 = arith.addf %310, %311 : vector<1x256xf32>
        %313 = math.tanh %312 : vector<1x256xf32>
        %314 = arith.mulf %309, %313 : vector<1x256xf32>
        %315 = arith.select %289, %314, %249 : vector<1x256xf32>
        %c2_i32_155 = arith.constant 2 : i32
        %316 = arith.cmpi sgt, %86, %c2_i32_155 : i32
        %317 = vector.extract_strided_slice %288 {offsets = [0, 0], sizes = [1, 256], strides = [1, 1]} : vector<1x1024xf32> to vector<1x256xf32>
        %318 = arith.negf %317 : vector<1x256xf32>
        %319 = math.exp %318 : vector<1x256xf32>
        %cst_156 = arith.constant 1.000000e+00 : f32
        %320 = vector.broadcast %cst_156 : f32 to vector<1x256xf32>
        %321 = arith.addf %320, %319 : vector<1x256xf32>
        %322 = arith.divf %320, %321 : vector<1x256xf32>
        %323 = vector.extract_strided_slice %288 {offsets = [0, 256], sizes = [1, 256], strides = [1, 1]} : vector<1x1024xf32> to vector<1x256xf32>
        %324 = arith.negf %323 : vector<1x256xf32>
        %325 = math.exp %324 : vector<1x256xf32>
        %cst_157 = arith.constant 1.000000e+00 : f32
        %326 = vector.broadcast %cst_157 : f32 to vector<1x256xf32>
        %327 = arith.addf %326, %325 : vector<1x256xf32>
        %328 = arith.divf %326, %327 : vector<1x256xf32>
        %329 = vector.extract_strided_slice %288 {offsets = [0, 512], sizes = [1, 256], strides = [1, 1]} : vector<1x1024xf32> to vector<1x256xf32>
        %330 = math.tanh %329 : vector<1x256xf32>
        %331 = vector.extract_strided_slice %288 {offsets = [0, 768], sizes = [1, 256], strides = [1, 1]} : vector<1x1024xf32> to vector<1x256xf32>
        %332 = arith.negf %331 : vector<1x256xf32>
        %333 = math.exp %332 : vector<1x256xf32>
        %cst_158 = arith.constant 1.000000e+00 : f32
        %334 = vector.broadcast %cst_158 : f32 to vector<1x256xf32>
        %335 = arith.addf %334, %333 : vector<1x256xf32>
        %336 = arith.divf %334, %335 : vector<1x256xf32>
        %337 = arith.mulf %328, %278 : vector<1x256xf32>
        %338 = arith.mulf %322, %330 : vector<1x256xf32>
        %339 = arith.addf %337, %338 : vector<1x256xf32>
        %340 = math.tanh %339 : vector<1x256xf32>
        %341 = arith.mulf %336, %340 : vector<1x256xf32>
        %342 = arith.select %316, %341, %277 : vector<1x256xf32>
        %c0_i32_159 = arith.constant 0 : i32
        %343 = arith.cmpi sgt, %84, %c0_i32_159 : i32
        %c0_160 = arith.constant 0 : index
        %c0_161 = arith.constant 0 : index
        %344 = vector.load %arg18[%c0_160, %c0_161] : memref<1x256xf32, #tpu.memory_space<vmem>>, vector<1x256xf32>
        %345 = arith.select %343, %315, %344 : vector<1x256xf32>
        %346 = arith.index_cast %77 : i32 to index
        %347 = memref.load %arg3[%346] : memref<2xi32, #tpu.memory_space<smem>>
        %c1_i32_162 = arith.constant 1 : i32
        %348 = arith.cmpi eq, %347, %c1_i32_162 : i32
        %c0_163 = arith.constant 0 : index
        %c0_164 = arith.constant 0 : index
        %349 = vector.load %arg19[%c0_163, %c0_164] : memref<1x256xf32, #tpu.memory_space<vmem>>, vector<1x256xf32>
        %350 = arith.select %348, %342, %349 : vector<1x256xf32>
        %351 = arith.index_cast %77 : i32 to index
        %352 = memref.load %arg2[%351] : memref<2xi32, #tpu.memory_space<smem>>
        %353 = arith.index_cast %352 : i32 to index
        %c0_165 = arith.constant 0 : index
        %354 = vector.load %arg17[%353, %c0_165] : memref<4x26xf32, #tpu.memory_space<vmem>>, vector<1x26xf32>
        %c0_166 = arith.constant 0 : index
        %c0_167 = arith.constant 0 : index
        %355 = vector.load %arg26[%c0_166, %c0_167] : memref<256x64xbf16, #tpu.memory_space<vmem>>, vector<256x64xbf16>
        %356 = arith.truncf %345 : vector<1x256xf32> to vector<1x256xbf16>
        %cst_168 = arith.constant dense<0.000000e+00> : vector<1x64xf32>
        %357 = tpu.matmul %356, %355, %cst_168 {dimension_numbers = #tpu.dot_dimension_numbers<[1], [0], [0], [1], [0, 0, 1, 1], [], []>} : vector<1x256xbf16>, vector<256x64xbf16>, vector<1x64xf32> -> vector<1x64xf32>
        %c0_169 = arith.constant 0 : index
        %c0_170 = arith.constant 0 : index
        %358 = vector.load %arg27[%c0_169, %c0_170] : memref<256x64xbf16, #tpu.memory_space<vmem>>, vector<256x64xbf16>
        %359 = arith.truncf %350 : vector<1x256xf32> to vector<1x256xbf16>
        %cst_171 = arith.constant dense<0.000000e+00> : vector<1x64xf32>
        %360 = tpu.matmul %359, %358, %cst_171 {dimension_numbers = #tpu.dot_dimension_numbers<[1], [0], [0], [1], [0, 0, 1, 1], [], []>} : vector<1x256xbf16>, vector<256x64xbf16>, vector<1x64xf32> -> vector<1x64xf32>
        %361 = arith.addf %357, %360 : vector<1x64xf32>
        %c0_172 = arith.constant 0 : index
        %c0_173 = arith.constant 0 : index
        %362 = vector.load %arg28[%c0_172, %c0_173] : memref<26x64xbf16, #tpu.memory_space<vmem>>, vector<26x64xbf16>
        %363 = arith.truncf %354 : vector<1x26xf32> to vector<1x26xbf16>
        %cst_174 = arith.constant dense<0.000000e+00> : vector<1x64xf32>
        %364 = tpu.matmul %363, %362, %cst_174 {dimension_numbers = #tpu.dot_dimension_numbers<[1], [0], [0], [1], [0, 0, 1, 1], [], []>} : vector<1x26xbf16>, vector<26x64xbf16>, vector<1x64xf32> -> vector<1x64xf32>
        %365 = arith.addf %361, %364 : vector<1x64xf32>
        %c0_175 = arith.constant 0 : index
        %c0_176 = arith.constant 0 : index
        %366 = vector.load %arg29[%c0_175, %c0_176] : memref<1x64xf32, #tpu.memory_space<vmem>>, vector<1x64xf32>
        %367 = arith.addf %365, %366 : vector<1x64xf32>
        %cst_177 = arith.constant 0.000000e+00 : f32
        %368 = vector.broadcast %cst_177 : f32 to vector<1x64xf32>
        %369 = arith.maximumf %367, %368 : vector<1x64xf32>
        %c0_178 = arith.constant 0 : index
        %c0_179 = arith.constant 0 : index
        %370 = vector.load %arg30[%c0_178, %c0_179] : memref<64x256xbf16, #tpu.memory_space<vmem>>, vector<64x256xbf16>
        %371 = arith.truncf %369 : vector<1x64xf32> to vector<1x64xbf16>
        %cst_180 = arith.constant dense<0.000000e+00> : vector<1x256xf32>
        %372 = tpu.matmul %371, %370, %cst_180 {dimension_numbers = #tpu.dot_dimension_numbers<[1], [0], [0], [1], [0, 0, 1, 1], [], []>} : vector<1x64xbf16>, vector<64x256xbf16>, vector<1x256xf32> -> vector<1x256xf32>
        %c0_181 = arith.constant 0 : index
        %c0_182 = arith.constant 0 : index
        %373 = vector.load %arg31[%c0_181, %c0_182] : memref<1x256xf32, #tpu.memory_space<vmem>>, vector<1x256xf32>
        %374 = arith.addf %372, %373 : vector<1x256xf32>
        %cst_183 = arith.constant 0.000000e+00 : f32
        %375 = vector.broadcast %cst_183 : f32 to vector<1x256xf32>
        %376 = arith.maximumf %374, %375 : vector<1x256xf32>
        %377 = arith.index_cast %77 : i32 to index
        %c0_184 = arith.constant 0 : index
        %378 = vector.load %arg44[%377, %c0_184] : memref<2x256xf32, #tpu.memory_space<vmem>>, vector<1x256xf32>
        tpu.vector_store %arg44[%377, %c0_184], %376 {strides = array<i32>} : memref<2x256xf32, #tpu.memory_space<vmem>>, vector<1x256xf32>,
      } else {
      }
    }
    %c2_i32_33 = arith.constant 2 : i32
    %c1_34 = arith.constant 1 : index
    %c0_35 = arith.constant 0 : index
    %42 = vector.load %arg44[%c1_34, %c0_35] : memref<2x256xf32, #tpu.memory_space<vmem>>, vector<1x256xf32>
    %c0_36 = arith.constant 0 : index
    %c0_37 = arith.constant 0 : index
    %43 = vector.load %arg32[%c0_36, %c0_37] : memref<256x64xbf16, #tpu.memory_space<vmem>>, vector<256x64xbf16>
    %44 = arith.truncf %42 : vector<1x256xf32> to vector<1x256xbf16>
    %cst_38 = arith.constant dense<0.000000e+00> : vector<1x64xf32>
    %45 = tpu.matmul %44, %43, %cst_38 {dimension_numbers = #tpu.dot_dimension_numbers<[1], [0], [0], [1], [0, 0, 1, 1], [], []>} : vector<1x256xbf16>, vector<256x64xbf16>, vector<1x64xf32> -> vector<1x64xf32>
    %c0_39 = arith.constant 0 : index
    %c0_40 = arith.constant 0 : index
    %46 = vector.load %arg33[%c0_39, %c0_40] : memref<1x64xf32, #tpu.memory_space<vmem>>, vector<1x64xf32>
    %47 = arith.addf %45, %46 : vector<1x64xf32>
    %cst_41 = arith.constant 0.000000e+00 : f32
    %48 = vector.broadcast %cst_41 : f32 to vector<1x64xf32>
    %49 = arith.maximumf %47, %48 : vector<1x64xf32>
    %c0_42 = arith.constant 0 : index
    %c0_43 = arith.constant 0 : index
    %50 = vector.load %arg34[%c0_42, %c0_43] : memref<64x180xbf16, #tpu.memory_space<vmem>>, vector<64x180xbf16>
    %51 = arith.truncf %49 : vector<1x64xf32> to vector<1x64xbf16>
    %cst_44 = arith.constant dense<0.000000e+00> : vector<1x180xf32>
    %52 = tpu.matmul %51, %50, %cst_44 {dimension_numbers = #tpu.dot_dimension_numbers<[1], [0], [0], [1], [0, 0, 1, 1], [], []>} : vector<1x64xbf16>, vector<64x180xbf16>, vector<1x180xf32> -> vector<1x180xf32>
    %c0_45 = arith.constant 0 : index
    %c0_46 = arith.constant 0 : index
    %53 = vector.load %arg35[%c0_45, %c0_46] : memref<1x180xf32, #tpu.memory_space<vmem>>, vector<1x180xf32>
    %54 = arith.addf %52, %53 : vector<1x180xf32>
    %cst_47 = arith.constant 0.000000e+00 : f32
    %55 = vector.broadcast %cst_47 : f32 to vector<1x180xf32>
    %56 = arith.maximumf %54, %55 : vector<1x180xf32>
    %c0_48 = arith.constant 0 : index
    %c0_49 = arith.constant 0 : index
    %57 = vector.load %arg36[%c0_48, %c0_49] : memref<180x32xbf16, #tpu.memory_space<vmem>>, vector<180x32xbf16>
    %58 = arith.truncf %56 : vector<1x180xf32> to vector<1x180xbf16>
    %cst_50 = arith.constant dense<0.000000e+00> : vector<1x32xf32>
    %59 = tpu.matmul %58, %57, %cst_50 {dimension_numbers = #tpu.dot_dimension_numbers<[1], [0], [0], [1], [0, 0, 1, 1], [], []>} : vector<1x180xbf16>, vector<180x32xbf16>, vector<1x32xf32> -> vector<1x32xf32>
    %c0_51 = arith.constant 0 : index
    %c0_52 = arith.constant 0 : index
    %60 = vector.load %arg37[%c0_51, %c0_52] : memref<1x32xf32, #tpu.memory_space<vmem>>, vector<1x32xf32>
    %61 = arith.addf %59, %60 : vector<1x32xf32>
    %c0_53 = arith.constant 0 : index
    %c0_54 = arith.constant 0 : index
    %62 = vector.load %arg40[%c0_53, %c0_54] : memref<2x32xf32, #tpu.memory_space<vmem>>, vector<2x32xf32>
    %cst_55 = arith.constant 1.000000e+00 : f32
    %63 = vector.broadcast %cst_55 : f32 to vector<2x32xf32>
    %64 = arith.subf %63, %62 : vector<2x32xf32>
    %cst_56 = arith.constant 1.000000e+10 : f32
    %65 = vector.broadcast %cst_56 : f32 to vector<2x32xf32>
    %66 = arith.mulf %65, %64 : vector<2x32xf32>
    %67 = vector.broadcast %61 : vector<1x32xf32> to vector<2x32xf32>
    %68 = arith.subf %67, %66 : vector<2x32xf32>
    %c0_57 = arith.constant 0 : index
    %c0_58 = arith.constant 0 : index
    %69 = vector.load %arg41[%c0_57, %c0_58] : memref<2x32xf32, #tpu.memory_space<vmem>>, vector<2x32xf32>
    tpu.vector_store %arg41[%c0_57, %c0_58], %68 {strides = array<i32>} : memref<2x32xf32, #tpu.memory_space<vmem>>, vector<2x32xf32>,
    %c0_59 = arith.constant 0 : index
    %c0_60 = arith.constant 0 : index
    %70 = vector.load %arg38[%c0_59, %c0_60] : memref<180x1xbf16, #tpu.memory_space<vmem>>, vector<180x1xbf16>
    %71 = arith.truncf %56 : vector<1x180xf32> to vector<1x180xbf16>
    %cst_61 = arith.constant dense<0.000000e+00> : vector<1x1xf32>
    %72 = tpu.matmul %71, %70, %cst_61 {dimension_numbers = #tpu.dot_dimension_numbers<[1], [0], [0], [1], [0, 0, 1, 1], [], []>} : vector<1x180xbf16>, vector<180x1xbf16>, vector<1x1xf32> -> vector<1x1xf32>
    %c0_62 = arith.constant 0 : index
    %c0_63 = arith.constant 0 : index
    %73 = vector.load %arg39[%c0_62, %c0_63] : memref<1x1xf32, #tpu.memory_space<vmem>>, vector<1x1xf32>
    %74 = arith.addf %72, %73 : vector<1x1xf32>
    %c0_64 = arith.constant 0 : index
    %c0_65 = arith.constant 0 : index
    %75 = vector.load %arg42[%c0_64, %c0_65] : memref<1x1xf32, #tpu.memory_space<vmem>>, vector<1x1xf32>
    tpu.vector_store %arg42[%c0_64, %c0_65], %74 {strides = array<i32>} : memref<1x1xf32, #tpu.memory_space<vmem>>, vector<1x1xf32>,
    return
  }
  func.func @transform_0(%arg0: i32, %arg1: memref<2xi32, #tpu.memory_space<smem>>, %arg2: memref<2xi32, #tpu.memory_space<smem>>, %arg3: memref<2xi32, #tpu.memory_space<smem>>, %arg4: memref<2xi32, #tpu.memory_space<smem>>, %arg5: memref<6xi32, #tpu.memory_space<smem>>, %arg6: memref<2xi32, #tpu.memory_space<smem>>, %arg7: memref<6xi32, #tpu.memory_space<smem>>) -> (i32, i32) {
    %c0_i32 = arith.constant 0 : i32
    %c0_i32_0 = arith.constant 0 : i32
    %c0_i32_1 = arith.constant 0 : i32
    return %c0_i32, %c0_i32_0 : i32, i32
  }
  func.func @transform_1(%arg0: i32, %arg1: memref<2xi32, #tpu.memory_space<smem>>, %arg2: memref<2xi32, #tpu.memory_space<smem>>, %arg3: memref<2xi32, #tpu.memory_space<smem>>, %arg4: memref<2xi32, #tpu.memory_space<smem>>, %arg5: memref<6xi32, #tpu.memory_space<smem>>, %arg6: memref<2xi32, #tpu.memory_space<smem>>, %arg7: memref<6xi32, #tpu.memory_space<smem>>) -> (i32, i32) {
    %c0_i32 = arith.constant 0 : i32
    %c0_i32_0 = arith.constant 0 : i32
    %c0_i32_1 = arith.constant 0 : i32
    return %c0_i32, %c0_i32_0 : i32, i32
  }
  func.func @transform_2(%arg0: i32, %arg1: memref<2xi32, #tpu.memory_space<smem>>, %arg2: memref<2xi32, #tpu.memory_space<smem>>, %arg3: memref<2xi32, #tpu.memory_space<smem>>, %arg4: memref<2xi32, #tpu.memory_space<smem>>, %arg5: memref<6xi32, #tpu.memory_space<smem>>, %arg6: memref<2xi32, #tpu.memory_space<smem>>, %arg7: memref<6xi32, #tpu.memory_space<smem>>) -> (i32, i32) {
    %c0_i32 = arith.constant 0 : i32
    %c0_i32_0 = arith.constant 0 : i32
    %c0_i32_1 = arith.constant 0 : i32
    return %c0_i32, %c0_i32_0 : i32, i32
  }
  func.func @transform_3(%arg0: i32, %arg1: memref<2xi32, #tpu.memory_space<smem>>, %arg2: memref<2xi32, #tpu.memory_space<smem>>, %arg3: memref<2xi32, #tpu.memory_space<smem>>, %arg4: memref<2xi32, #tpu.memory_space<smem>>, %arg5: memref<6xi32, #tpu.memory_space<smem>>, %arg6: memref<2xi32, #tpu.memory_space<smem>>, %arg7: memref<6xi32, #tpu.memory_space<smem>>) -> (i32, i32) {
    %c0_i32 = arith.constant 0 : i32
    %c0_i32_0 = arith.constant 0 : i32
    %c0_i32_1 = arith.constant 0 : i32
    return %c0_i32, %c0_i32_0 : i32, i32
  }
  func.func @transform_4(%arg0: i32, %arg1: memref<2xi32, #tpu.memory_space<smem>>, %arg2: memref<2xi32, #tpu.memory_space<smem>>, %arg3: memref<2xi32, #tpu.memory_space<smem>>, %arg4: memref<2xi32, #tpu.memory_space<smem>>, %arg5: memref<6xi32, #tpu.memory_space<smem>>, %arg6: memref<2xi32, #tpu.memory_space<smem>>, %arg7: memref<6xi32, #tpu.memory_space<smem>>) -> (i32, i32) {
    %c0_i32 = arith.constant 0 : i32
    %c0_i32_0 = arith.constant 0 : i32
    %c0_i32_1 = arith.constant 0 : i32
    return %c0_i32, %c0_i32_0 : i32, i32
  }
  func.func @transform_5(%arg0: i32, %arg1: memref<2xi32, #tpu.memory_space<smem>>, %arg2: memref<2xi32, #tpu.memory_space<smem>>, %arg3: memref<2xi32, #tpu.memory_space<smem>>, %arg4: memref<2xi32, #tpu.memory_space<smem>>, %arg5: memref<6xi32, #tpu.memory_space<smem>>, %arg6: memref<2xi32, #tpu.memory_space<smem>>, %arg7: memref<6xi32, #tpu.memory_space<smem>>) -> (i32, i32) {
    %c0_i32 = arith.constant 0 : i32
    %c0_i32_0 = arith.constant 0 : i32
    %c0_i32_1 = arith.constant 0 : i32
    return %c0_i32, %c0_i32_0 : i32, i32
  }
  func.func @transform_6(%arg0: i32, %arg1: memref<2xi32, #tpu.memory_space<smem>>, %arg2: memref<2xi32, #tpu.memory_space<smem>>, %arg3: memref<2xi32, #tpu.memory_space<smem>>, %arg4: memref<2xi32, #tpu.memory_space<smem>>, %arg5: memref<6xi32, #tpu.memory_space<smem>>, %arg6: memref<2xi32, #tpu.memory_space<smem>>, %arg7: memref<6xi32, #tpu.memory_space<smem>>) -> (i32, i32) {
    %c0_i32 = arith.constant 0 : i32
    %c0_i32_0 = arith.constant 0 : i32
    %c0_i32_1 = arith.constant 0 : i32
    return %c0_i32, %c0_i32_0 : i32, i32
  }
  func.func @transform_7(%arg0: i32, %arg1: memref<2xi32, #tpu.memory_space<smem>>, %arg2: memref<2xi32, #tpu.memory_space<smem>>, %arg3: memref<2xi32, #tpu.memory_space<smem>>, %arg4: memref<2xi32, #tpu.memory_space<smem>>, %arg5: memref<6xi32, #tpu.memory_space<smem>>, %arg6: memref<2xi32, #tpu.memory_space<smem>>, %arg7: memref<6xi32, #tpu.memory_space<smem>>) -> (i32, i32) {
    %c0_i32 = arith.constant 0 : i32
    %c0_i32_0 = arith.constant 0 : i32
    %c0_i32_1 = arith.constant 0 : i32
    return %c0_i32, %c0_i32_0 : i32, i32
  }
  func.func @transform_8(%arg0: i32, %arg1: memref<2xi32, #tpu.memory_space<smem>>, %arg2: memref<2xi32, #tpu.memory_space<smem>>, %arg3: memref<2xi32, #tpu.memory_space<smem>>, %arg4: memref<2xi32, #tpu.memory_space<smem>>, %arg5: memref<6xi32, #tpu.memory_space<smem>>, %arg6: memref<2xi32, #tpu.memory_space<smem>>, %arg7: memref<6xi32, #tpu.memory_space<smem>>) -> (i32, i32) {
    %c0_i32 = arith.constant 0 : i32
    %c0_i32_0 = arith.constant 0 : i32
    %c0_i32_1 = arith.constant 0 : i32
    return %c0_i32, %c0_i32_0 : i32, i32
  }
  func.func @transform_9(%arg0: i32, %arg1: memref<2xi32, #tpu.memory_space<smem>>, %arg2: memref<2xi32, #tpu.memory_space<smem>>, %arg3: memref<2xi32, #tpu.memory_space<smem>>, %arg4: memref<2xi32, #tpu.memory_space<smem>>, %arg5: memref<6xi32, #tpu.memory_space<smem>>, %arg6: memref<2xi32, #tpu.memory_space<smem>>, %arg7: memref<6xi32, #tpu.memory_space<smem>>) -> (i32, i32) {
    %c0_i32 = arith.constant 0 : i32
    %c0_i32_0 = arith.constant 0 : i32
    %c0_i32_1 = arith.constant 0 : i32
    return %c0_i32, %c0_i32_0 : i32, i32
  }
  func.func @transform_10(%arg0: i32, %arg1: memref<2xi32, #tpu.memory_space<smem>>, %arg2: memref<2xi32, #tpu.memory_space<smem>>, %arg3: memref<2xi32, #tpu.memory_space<smem>>, %arg4: memref<2xi32, #tpu.memory_space<smem>>, %arg5: memref<6xi32, #tpu.memory_space<smem>>, %arg6: memref<2xi32, #tpu.memory_space<smem>>, %arg7: memref<6xi32, #tpu.memory_space<smem>>) -> (i32, i32) {
    %c0_i32 = arith.constant 0 : i32
    %c0_i32_0 = arith.constant 0 : i32
    %c0_i32_1 = arith.constant 0 : i32
    return %c0_i32, %c0_i32_0 : i32, i32
  }
  func.func @transform_11(%arg0: i32, %arg1: memref<2xi32, #tpu.memory_space<smem>>, %arg2: memref<2xi32, #tpu.memory_space<smem>>, %arg3: memref<2xi32, #tpu.memory_space<smem>>, %arg4: memref<2xi32, #tpu.memory_space<smem>>, %arg5: memref<6xi32, #tpu.memory_space<smem>>, %arg6: memref<2xi32, #tpu.memory_space<smem>>, %arg7: memref<6xi32, #tpu.memory_space<smem>>) -> (i32, i32) {
    %c0_i32 = arith.constant 0 : i32
    %c0_i32_0 = arith.constant 0 : i32
    %c0_i32_1 = arith.constant 0 : i32
    return %c0_i32, %c0_i32_0 : i32, i32
  }
  func.func @transform_12(%arg0: i32, %arg1: memref<2xi32, #tpu.memory_space<smem>>, %arg2: memref<2xi32, #tpu.memory_space<smem>>, %arg3: memref<2xi32, #tpu.memory_space<smem>>, %arg4: memref<2xi32, #tpu.memory_space<smem>>, %arg5: memref<6xi32, #tpu.memory_space<smem>>, %arg6: memref<2xi32, #tpu.memory_space<smem>>, %arg7: memref<6xi32, #tpu.memory_space<smem>>) -> (i32, i32) {
    %c0_i32 = arith.constant 0 : i32
    %c0_i32_0 = arith.constant 0 : i32
    %c0_i32_1 = arith.constant 0 : i32
    return %c0_i32, %c0_i32_0 : i32, i32
  }
  func.func @transform_13(%arg0: i32, %arg1: memref<2xi32, #tpu.memory_space<smem>>, %arg2: memref<2xi32, #tpu.memory_space<smem>>, %arg3: memref<2xi32, #tpu.memory_space<smem>>, %arg4: memref<2xi32, #tpu.memory_space<smem>>, %arg5: memref<6xi32, #tpu.memory_space<smem>>, %arg6: memref<2xi32, #tpu.memory_space<smem>>, %arg7: memref<6xi32, #tpu.memory_space<smem>>) -> (i32, i32) {
    %c0_i32 = arith.constant 0 : i32
    %c0_i32_0 = arith.constant 0 : i32
    %c0_i32_1 = arith.constant 0 : i32
    return %c0_i32, %c0_i32_0 : i32, i32
  }
  func.func @transform_14(%arg0: i32, %arg1: memref<2xi32, #tpu.memory_space<smem>>, %arg2: memref<2xi32, #tpu.memory_space<smem>>, %arg3: memref<2xi32, #tpu.memory_space<smem>>, %arg4: memref<2xi32, #tpu.memory_space<smem>>, %arg5: memref<6xi32, #tpu.memory_space<smem>>, %arg6: memref<2xi32, #tpu.memory_space<smem>>, %arg7: memref<6xi32, #tpu.memory_space<smem>>) -> (i32, i32) {
    %c0_i32 = arith.constant 0 : i32
    %c0_i32_0 = arith.constant 0 : i32
    %c0_i32_1 = arith.constant 0 : i32
    return %c0_i32, %c0_i32_0 : i32, i32
  }
  func.func @transform_15(%arg0: i32, %arg1: memref<2xi32, #tpu.memory_space<smem>>, %arg2: memref<2xi32, #tpu.memory_space<smem>>, %arg3: memref<2xi32, #tpu.memory_space<smem>>, %arg4: memref<2xi32, #tpu.memory_space<smem>>, %arg5: memref<6xi32, #tpu.memory_space<smem>>, %arg6: memref<2xi32, #tpu.memory_space<smem>>, %arg7: memref<6xi32, #tpu.memory_space<smem>>) -> (i32, i32) {
    %c0_i32 = arith.constant 0 : i32
    %c0_i32_0 = arith.constant 0 : i32
    %c0_i32_1 = arith.constant 0 : i32
    return %c0_i32, %c0_i32_0 : i32, i32
  }
  func.func @transform_16(%arg0: i32, %arg1: memref<2xi32, #tpu.memory_space<smem>>, %arg2: memref<2xi32, #tpu.memory_space<smem>>, %arg3: memref<2xi32, #tpu.memory_space<smem>>, %arg4: memref<2xi32, #tpu.memory_space<smem>>, %arg5: memref<6xi32, #tpu.memory_space<smem>>, %arg6: memref<2xi32, #tpu.memory_space<smem>>, %arg7: memref<6xi32, #tpu.memory_space<smem>>) -> (i32, i32) {
    %c0_i32 = arith.constant 0 : i32
    %c0_i32_0 = arith.constant 0 : i32
    %c0_i32_1 = arith.constant 0 : i32
    return %c0_i32, %c0_i32_0 : i32, i32
  }
  func.func @transform_17(%arg0: i32, %arg1: memref<2xi32, #tpu.memory_space<smem>>, %arg2: memref<2xi32, #tpu.memory_space<smem>>, %arg3: memref<2xi32, #tpu.memory_space<smem>>, %arg4: memref<2xi32, #tpu.memory_space<smem>>, %arg5: memref<6xi32, #tpu.memory_space<smem>>, %arg6: memref<2xi32, #tpu.memory_space<smem>>, %arg7: memref<6xi32, #tpu.memory_space<smem>>) -> (i32, i32) {
    %c0_i32 = arith.constant 0 : i32
    %c0_i32_0 = arith.constant 0 : i32
    %c0_i32_1 = arith.constant 0 : i32
    return %c0_i32, %c0_i32_0 : i32, i32
  }
  func.func @transform_18(%arg0: i32, %arg1: memref<2xi32, #tpu.memory_space<smem>>, %arg2: memref<2xi32, #tpu.memory_space<smem>>, %arg3: memref<2xi32, #tpu.memory_space<smem>>, %arg4: memref<2xi32, #tpu.memory_space<smem>>, %arg5: memref<6xi32, #tpu.memory_space<smem>>, %arg6: memref<2xi32, #tpu.memory_space<smem>>, %arg7: memref<6xi32, #tpu.memory_space<smem>>) -> (i32, i32) {
    %c0_i32 = arith.constant 0 : i32
    %c0_i32_0 = arith.constant 0 : i32
    %c0_i32_1 = arith.constant 0 : i32
    return %c0_i32, %c0_i32_0 : i32, i32
  }
  func.func @transform_19(%arg0: i32, %arg1: memref<2xi32, #tpu.memory_space<smem>>, %arg2: memref<2xi32, #tpu.memory_space<smem>>, %arg3: memref<2xi32, #tpu.memory_space<smem>>, %arg4: memref<2xi32, #tpu.memory_space<smem>>, %arg5: memref<6xi32, #tpu.memory_space<smem>>, %arg6: memref<2xi32, #tpu.memory_space<smem>>, %arg7: memref<6xi32, #tpu.memory_space<smem>>) -> (i32, i32) {
    %c0_i32 = arith.constant 0 : i32
    %c0_i32_0 = arith.constant 0 : i32
    %c0_i32_1 = arith.constant 0 : i32
    return %c0_i32, %c0_i32_0 : i32, i32
  }
  func.func @transform_20(%arg0: i32, %arg1: memref<2xi32, #tpu.memory_space<smem>>, %arg2: memref<2xi32, #tpu.memory_space<smem>>, %arg3: memref<2xi32, #tpu.memory_space<smem>>, %arg4: memref<2xi32, #tpu.memory_space<smem>>, %arg5: memref<6xi32, #tpu.memory_space<smem>>, %arg6: memref<2xi32, #tpu.memory_space<smem>>, %arg7: memref<6xi32, #tpu.memory_space<smem>>) -> (i32, i32) {
    %c0_i32 = arith.constant 0 : i32
    %c0_i32_0 = arith.constant 0 : i32
    %c0_i32_1 = arith.constant 0 : i32
    return %c0_i32, %c0_i32_0 : i32, i32
  }
  func.func @transform_21(%arg0: i32, %arg1: memref<2xi32, #tpu.memory_space<smem>>, %arg2: memref<2xi32, #tpu.memory_space<smem>>, %arg3: memref<2xi32, #tpu.memory_space<smem>>, %arg4: memref<2xi32, #tpu.memory_space<smem>>, %arg5: memref<6xi32, #tpu.memory_space<smem>>, %arg6: memref<2xi32, #tpu.memory_space<smem>>, %arg7: memref<6xi32, #tpu.memory_space<smem>>) -> (i32, i32) {
    %c0_i32 = arith.constant 0 : i32
    %c0_i32_0 = arith.constant 0 : i32
    %c0_i32_1 = arith.constant 0 : i32
    return %c0_i32, %c0_i32_0 : i32, i32
  }
  func.func @transform_22(%arg0: i32, %arg1: memref<2xi32, #tpu.memory_space<smem>>, %arg2: memref<2xi32, #tpu.memory_space<smem>>, %arg3: memref<2xi32, #tpu.memory_space<smem>>, %arg4: memref<2xi32, #tpu.memory_space<smem>>, %arg5: memref<6xi32, #tpu.memory_space<smem>>, %arg6: memref<2xi32, #tpu.memory_space<smem>>, %arg7: memref<6xi32, #tpu.memory_space<smem>>) -> (i32, i32) {
    %c0_i32 = arith.constant 0 : i32
    %c0_i32_0 = arith.constant 0 : i32
    %c0_i32_1 = arith.constant 0 : i32
    return %c0_i32, %c0_i32_0 : i32, i32
  }
  func.func @transform_23(%arg0: i32, %arg1: memref<2xi32, #tpu.memory_space<smem>>, %arg2: memref<2xi32, #tpu.memory_space<smem>>, %arg3: memref<2xi32, #tpu.memory_space<smem>>, %arg4: memref<2xi32, #tpu.memory_space<smem>>, %arg5: memref<6xi32, #tpu.memory_space<smem>>, %arg6: memref<2xi32, #tpu.memory_space<smem>>, %arg7: memref<6xi32, #tpu.memory_space<smem>>) -> (i32, i32) {
    %c0_i32 = arith.constant 0 : i32
    %c0_i32_0 = arith.constant 0 : i32
    %c0_i32_1 = arith.constant 0 : i32
    return %c0_i32, %c0_i32_0 : i32, i32
  }
  func.func @transform_24(%arg0: i32, %arg1: memref<2xi32, #tpu.memory_space<smem>>, %arg2: memref<2xi32, #tpu.memory_space<smem>>, %arg3: memref<2xi32, #tpu.memory_space<smem>>, %arg4: memref<2xi32, #tpu.memory_space<smem>>, %arg5: memref<6xi32, #tpu.memory_space<smem>>, %arg6: memref<2xi32, #tpu.memory_space<smem>>, %arg7: memref<6xi32, #tpu.memory_space<smem>>) -> (i32, i32) {
    %c0_i32 = arith.constant 0 : i32
    %c0_i32_0 = arith.constant 0 : i32
    %c0_i32_1 = arith.constant 0 : i32
    return %c0_i32, %c0_i32_0 : i32, i32
  }
  func.func @transform_25(%arg0: i32, %arg1: memref<2xi32, #tpu.memory_space<smem>>, %arg2: memref<2xi32, #tpu.memory_space<smem>>, %arg3: memref<2xi32, #tpu.memory_space<smem>>, %arg4: memref<2xi32, #tpu.memory_space<smem>>, %arg5: memref<6xi32, #tpu.memory_space<smem>>, %arg6: memref<2xi32, #tpu.memory_space<smem>>, %arg7: memref<6xi32, #tpu.memory_space<smem>>) -> (i32, i32) {
    %c0_i32 = arith.constant 0 : i32
    %c0_i32_0 = arith.constant 0 : i32
    %c0_i32_1 = arith.constant 0 : i32
    return %c0_i32, %c0_i32_0 : i32, i32
  }
  func.func @transform_26(%arg0: i32, %arg1: memref<2xi32, #tpu.memory_space<smem>>, %arg2: memref<2xi32, #tpu.memory_space<smem>>, %arg3: memref<2xi32, #tpu.memory_space<smem>>, %arg4: memref<2xi32, #tpu.memory_space<smem>>, %arg5: memref<6xi32, #tpu.memory_space<smem>>, %arg6: memref<2xi32, #tpu.memory_space<smem>>, %arg7: memref<6xi32, #tpu.memory_space<smem>>) -> (i32, i32) {
    %c0_i32 = arith.constant 0 : i32
    %c0_i32_0 = arith.constant 0 : i32
    %c0_i32_1 = arith.constant 0 : i32
    return %c0_i32, %c0_i32_0 : i32, i32
  }
  func.func @transform_27(%arg0: i32, %arg1: memref<2xi32, #tpu.memory_space<smem>>, %arg2: memref<2xi32, #tpu.memory_space<smem>>, %arg3: memref<2xi32, #tpu.memory_space<smem>>, %arg4: memref<2xi32, #tpu.memory_space<smem>>, %arg5: memref<6xi32, #tpu.memory_space<smem>>, %arg6: memref<2xi32, #tpu.memory_space<smem>>, %arg7: memref<6xi32, #tpu.memory_space<smem>>) -> (i32, i32) {
    %c0_i32 = arith.constant 0 : i32
    %c0_i32_0 = arith.constant 0 : i32
    %c0_i32_1 = arith.constant 0 : i32
    return %c0_i32, %c0_i32_0 : i32, i32
  }
  func.func @transform_28(%arg0: i32, %arg1: memref<2xi32, #tpu.memory_space<smem>>, %arg2: memref<2xi32, #tpu.memory_space<smem>>, %arg3: memref<2xi32, #tpu.memory_space<smem>>, %arg4: memref<2xi32, #tpu.memory_space<smem>>, %arg5: memref<6xi32, #tpu.memory_space<smem>>, %arg6: memref<2xi32, #tpu.memory_space<smem>>, %arg7: memref<6xi32, #tpu.memory_space<smem>>) -> (i32, i32) {
    %c0_i32 = arith.constant 0 : i32
    %c0_i32_0 = arith.constant 0 : i32
    %c0_i32_1 = arith.constant 0 : i32
    return %c0_i32, %c0_i32_0 : i32, i32
  }
  func.func @transform_29(%arg0: i32, %arg1: memref<2xi32, #tpu.memory_space<smem>>, %arg2: memref<2xi32, #tpu.memory_space<smem>>, %arg3: memref<2xi32, #tpu.memory_space<smem>>, %arg4: memref<2xi32, #tpu.memory_space<smem>>, %arg5: memref<6xi32, #tpu.memory_space<smem>>, %arg6: memref<2xi32, #tpu.memory_space<smem>>, %arg7: memref<6xi32, #tpu.memory_space<smem>>) -> (i32, i32) {
    %c0_i32 = arith.constant 0 : i32
    %c0_i32_0 = arith.constant 0 : i32
    %c0_i32_1 = arith.constant 0 : i32
    return %c0_i32, %c0_i32_0 : i32, i32
  }
  func.func @transform_30(%arg0: i32, %arg1: memref<2xi32, #tpu.memory_space<smem>>, %arg2: memref<2xi32, #tpu.memory_space<smem>>, %arg3: memref<2xi32, #tpu.memory_space<smem>>, %arg4: memref<2xi32, #tpu.memory_space<smem>>, %arg5: memref<6xi32, #tpu.memory_space<smem>>, %arg6: memref<2xi32, #tpu.memory_space<smem>>, %arg7: memref<6xi32, #tpu.memory_space<smem>>) -> (i32, i32) {
    %c0_i32 = arith.constant 0 : i32
    %c0_i32_0 = arith.constant 0 : i32
    %c0_i32_1 = arith.constant 0 : i32
    return %c0_i32, %c0_i32_0 : i32, i32
  }
  func.func @transform_31(%arg0: i32, %arg1: memref<2xi32, #tpu.memory_space<smem>>, %arg2: memref<2xi32, #tpu.memory_space<smem>>, %arg3: memref<2xi32, #tpu.memory_space<smem>>, %arg4: memref<2xi32, #tpu.memory_space<smem>>, %arg5: memref<6xi32, #tpu.memory_space<smem>>, %arg6: memref<2xi32, #tpu.memory_space<smem>>, %arg7: memref<6xi32, #tpu.memory_space<smem>>) -> (i32, i32) {
    %c0_i32 = arith.constant 0 : i32
    %c0_i32_0 = arith.constant 0 : i32
    %c0_i32_1 = arith.constant 0 : i32
    return %c0_i32, %c0_i32_0 : i32, i32
  }
  func.func @transform_32(%arg0: i32, %arg1: memref<2xi32, #tpu.memory_space<smem>>, %arg2: memref<2xi32, #tpu.memory_space<smem>>, %arg3: memref<2xi32, #tpu.memory_space<smem>>, %arg4: memref<2xi32, #tpu.memory_space<smem>>, %arg5: memref<6xi32, #tpu.memory_space<smem>>, %arg6: memref<2xi32, #tpu.memory_space<smem>>, %arg7: memref<6xi32, #tpu.memory_space<smem>>) -> (i32, i32) {
    %c0_i32 = arith.constant 0 : i32
    %c0_i32_0 = arith.constant 0 : i32
    %c0_i32_1 = arith.constant 0 : i32
    return %c0_i32, %c0_i32_0 : i32, i32
  }
  func.func @transform_33(%arg0: i32, %arg1: memref<2xi32, #tpu.memory_space<smem>>, %arg2: memref<2xi32, #tpu.memory_space<smem>>, %arg3: memref<2xi32, #tpu.memory_space<smem>>, %arg4: memref<2xi32, #tpu.memory_space<smem>>, %arg5: memref<6xi32, #tpu.memory_space<smem>>, %arg6: memref<2xi32, #tpu.memory_space<smem>>, %arg7: memref<6xi32, #tpu.memory_space<smem>>) -> (i32, i32) {
    %c0_i32 = arith.constant 0 : i32
    %c0_i32_0 = arith.constant 0 : i32
    %c0_i32_1 = arith.constant 0 : i32
    return %c0_i32, %c0_i32_0 : i32, i32
  }
  func.func @transform_34(%arg0: i32, %arg1: memref<2xi32, #tpu.memory_space<smem>>, %arg2: memref<2xi32, #tpu.memory_space<smem>>, %arg3: memref<2xi32, #tpu.memory_space<smem>>, %arg4: memref<2xi32, #tpu.memory_space<smem>>, %arg5: memref<6xi32, #tpu.memory_space<smem>>, %arg6: memref<2xi32, #tpu.memory_space<smem>>, %arg7: memref<6xi32, #tpu.memory_space<smem>>) -> (i32, i32) {
    %c0_i32 = arith.constant 0 : i32
    %c0_i32_0 = arith.constant 0 : i32
    %c0_i32_1 = arith.constant 0 : i32
    return %c0_i32, %c0_i32_0 : i32, i32
  }
}

</mosaic_0001>

<bundles_post_ra>
// kernel: _forward_jit.1
= control target key start
LH: loop header
LB: loop body
LE: loop exit
PB: predicated region body
PF: predicated region fallthrough
CT: control target
= control target key end

     0   :  { %s9117_s6 = smov 7   ;;  %s9118_s10 = smov 8   ;;  %s11566_s0 = inlined_call_operand.smem [shape: u32[42], index: -1, kind: input, shape index: {}] }
   0x1   :  { %s9188_s5 = sld [smem:[%s11566_s0]]   ;;  %s9119_s14 = smov 9  }
   0x2   :  { %s9193_s9 = sld [smem:[%s11566_s0 + %s9117_s6]]   ;;  %s9120_s18 = smov 10  }
   0x3   :  { %s9198_s13 = sld [smem:[%s11566_s0 + %s9118_s10]]   ;;  %s9121_s22 = smov 11  }
   0x4   :  { %s9203_s17 = sld [smem:[%s11566_s0 + %s9119_s14]]   ;;  %s9122_s26 = smov 12  }
   0x5   :  { %s9208_s21 = sld [smem:[%s11566_s0 + %s9120_s18]]   ;;  %s9123_s30 = smov 13  }
   0x6   :  { %s9213_s25 = sld [smem:[%s11566_s0 + %s9121_s22]]   ;;  %s9124_s4 = smov 14  }
   0x7   :  { %s9218_s29 = sld [smem:[%s11566_s0 + %s9122_s26]]   ;;  %s9125_s10 = smov 15  }
   0x8   :  { %s9223_s3 = sld [smem:[%s11566_s0 + %s9123_s30]]   ;;  %s9126_s15 = smov 16  }
   0x9   :  { %s9228_s8 = sld [smem:[%s11566_s0 + %s9124_s4]]   ;;  %s9127_s20 = smov 17  }
   0xa   :  { %s9233_s14 = sld [smem:[%s11566_s0 + %s9125_s10]]   ;;  %s9128_s26 = smov 18  }
   0xb   :  { %s9238_s19 = sld [smem:[%s11566_s0 + %s9126_s15]]   ;;  %s9129_s1 = smov 19  }
   0xc   :  { %s9243_s24 = sld [smem:[%s11566_s0 + %s9127_s20]]   ;;  %s9130_s7 = smov 20  }
   0xd   :  { %s9248_s30 = sld [smem:[%s11566_s0 + %s9128_s26]]   ;;  %s9131_s15 = smov 21  }
   0xe   :  { %s9253_s6 = sld [smem:[%s11566_s0 + %s9129_s1]]   ;;  %s9132_s22 = smov 22  }
   0xf   :  { %s9258_s12 = sld [smem:[%s11566_s0 + %s9130_s7]]   ;;  %s9133_s28 = smov 23  }
  0x10   :  { %12065 = sst [smem:[#allocation32_spill]] %s9233_s14  ;;  %s9134_s7 = smov 24  }
  0x11   :  { %12066 = sst [smem:[#allocation33_spill]] %s9238_s19 }
  0x12   :  { %12067 = sst [smem:[#allocation34_spill]] %s9243_s24 }
  0x13   :  { %12068 = sst [smem:[#allocation35_spill]] %s9248_s30 }
  0x14   :  { %s9263_s20 = sld [smem:[%s11566_s0 + %s9131_s15]]   ;;  %s9135_s15 = smov 25  }
  0x15   :  { %s9268_s27 = sld [smem:[%s11566_s0 + %s9132_s22]]   ;;  %s9136_s22 = smov 26  }
  0x16   :  { %s9273_s4 = sld [smem:[%s11566_s0 + %s9133_s28]]   ;;  %s9137_s28 = smov 27  }
  0x17   :  { %s9278_s19 = sld [smem:[%s11566_s0 + %s9134_s7]]   ;;  %s9138_s7 = smov 28  }
  0x18   :  { %s9283_s30 = sld [smem:[%s11566_s0 + %s9135_s15]]   ;;  %s9139_s15 = smov 29  }
  0x19   :  { %s9288_s24 = sld [smem:[%s11566_s0 + %s9136_s22]]   ;;  %s9140_s22 = smov 30  }
  0x1a   :  { %12069 = sst [smem:[#allocation36_spill]] %s9263_s20 }
  0x1b   :  { %s9293_s20 = sld [smem:[%s11566_s0 + %s9137_s28]]   ;;  %s9141_s28 = smov 31  }
  0x1d   :  { %12070 = sst [smem:[#allocation37_spill]] %s9278_s19 }
  0x1e   :  { %12071 = sst [smem:[#allocation38_spill]] %s9283_s30 }
  0x1f   :  { %12072 = sst [smem:[#allocation39_spill]] %s9288_s24 }
  0x20   :  { %s9298_s19 = sld [smem:[%s11566_s0 + %s9138_s7]]   ;;  %s9142_s7 = smov 32  }
  0x21   :  { %12073 = sst [smem:[#allocation40_spill]] %s9293_s20 }
  0x22   :  { %s9303_s30 = sld [smem:[%s11566_s0 + %s9139_s15]]   ;;  %s9143_s15 = smov 33  }
  0x23   :  { %s9308_s24 = sld [smem:[%s11566_s0 + %s9140_s22]]   ;;  %s9144_s22 = smov 34  }
  0x24   :  { %s9313_s20 = sld [smem:[%s11566_s0 + %s9141_s28]]   ;;  %s9145_s28 = smov 35  }
  0x25   :  { %s9323_s23 = sld [smem:[%s11566_s0 + %s9143_s15]]   ;;  %s9147_s15 = smov 37  }
  0x26   :  { %12074 = sst [smem:[#allocation41_spill]] %s9298_s19 }
  0x27   :  { %s9318_s19 = sld [smem:[%s11566_s0 + %s9142_s7]]   ;;  %s9146_s7 = smov 36  }
  0x28   :  { %12075 = sst [smem:[#allocation42_spill]] %s9303_s30 }
  0x29   :  { %12076 = sst [smem:[#allocation43_spill]] %s9308_s24  ;;  %s9148_s24 = smov 39  }
  0x2a   :  { %12077 = sst [smem:[#allocation44_spill]] %s9313_s20  ;;  %s9149_s20 = smov 40  }
  0x2b   :  { %12079 = sst [smem:[#allocation46_spill]] %s9323_s23  ;;  %s89_s23 = sshll.u32 %s9188_s5, 4  ;;  %s90_s23 = int_to_ptr.vmem [resolvable:$true] %s89_s23 }
  0x2c   :  { %s9328_s1 = sld [smem:[%s11566_s0 + %s9144_s22]]   ;;  %p8886_p1 = scmp.lt.s32.totalorder %s90_s23, %s90_s23 }
  0x2d   :  { %12078 = sst [smem:[#allocation45_spill]] %s9318_s19  ;;  %s9150_s19 = smov 41  }
  0x2e   :  { %s9333_s10 = sld [smem:[%s11566_s0 + %s9145_s28]]  }
  0x2f   :  { %s9338_s16 = sld [smem:[%s11566_s0 + %s9146_s7]]  }
  0x30   :  { %s9343_s30 = sld [smem:[%s11566_s0 + %s9147_s15]]   ;;  %s8881_s15 = scalar_lea.vmem %s90_s23, 16 }
  0x31   :  { %p8882_p0 = scmp.ne.s32.totalorder %s90_s23, %s8881_s15  ;;  %p8887_p2 = scmp.lt.s32.totalorder %s8881_s15, %s8881_s15 }
  0x32   :  { %12080 = sst [smem:[#allocation47_spill]] %s9328_s1 }
  0x33   :  { %s9348_s1 = sld [smem:[%s11566_s0 + %s9148_s24]]   ;;  %p8888_p3 = por %p8887_p2, %p8886_p1 }
  0x34   :  { %12081 = sst [smem:[#allocation48_spill]] %s9333_s10 }
  0x35   :  { %12082 = sst [smem:[#allocation49_spill]] %s9338_s16  ;;  %p8889_p4 = pnand %p8888_p3, %p8882_p0 }
  0x36   :  { %12083 = sst [smem:[#allocation50_spill]] %s9343_s30 }
  0x37   :  { %s9353_s10 = sld [smem:[%s11566_s0 + %s9149_s20]]  }
  0x38   :  { %s9358_s16 = sld [smem:[%s11566_s0 + %s9150_s19]]  }
  0x39   :  { %12084 = sst [smem:[#allocation51_spill]] %s9348_s1 }
  0x3d   :  { %12085 = sst [smem:[#allocation52_spill]] %s9353_s10 }
  0x3e   :  { %12086 = sst [smem:[#allocation53_spill]] %s9358_s16 }
  0x3f   :  { %8892 = shalt.err (!%p8889_p4)  }
  0x40   :  { %s9151_s18 = smov [#allocation7]   ;;  %s9152_s24 = smov 1  }
  0x41   :  { %92 = dma.vmem_to_smem %s90_s23, 16, %s9151_s18, [#allocation6] }
  0x42   :  { %s7509_s20 = sld [smem:[%s11566_s0 + %s9152_s24]]   ;;  %s9153_s28 = smov 2  }
  0x43   :  { %s7510_s5 = sld [smem:[%s11566_s0 + %s9153_s28]]   ;;  %s9154_s7 = smov 3  }
  0x44   :  { %s7511_s15 = sld [smem:[%s11566_s0 + %s9154_s7]]   ;;  %s9155_s16 = smov 4  }
  0x45   :  { %s9373_s23 = sld [smem:[%s11566_s0 + %s9155_s16]]   ;;  %s9156_s14 = smov 5  }
  0x46   :  { %s9378_s26 = sld [smem:[%s11566_s0 + %s9156_s14]]  }
  0x48   :  { %s93_s18 = sshll.u32 %s7509_s20, 4  ;;  %s94_s18 = int_to_ptr.vmem [resolvable:$true] %s93_s18 }
  0x49   :  { %s97_s28 = sshll.u32 %s7510_s5, 4  ;;  %s8893_s2 = scalar_lea.vmem %s94_s18, 16  ;;  %s98_s28 = int_to_ptr.vmem [resolvable:$true] %s97_s28 }
  0x4a   :  { %p8894_p5 = scmp.ne.s32.totalorder %s94_s18, %s8893_s2  ;;  %p8898_p6 = scmp.lt.s32.totalorder %s94_s18, %s94_s18 }
  0x4b   :  { %p8899_p7 = scmp.lt.s32.totalorder %s8893_s2, %s8893_s2 }
  0x4d   :  { %p8900_p8 = por %p8899_p7, %p8898_p6 }
  0x4f   :  { %p8901_p9 = pnand %p8900_p8, %p8894_p5 }
  0x51   :  { %8904 = shalt.err (!%p8901_p9)  }
  0x52   :  { %s9157_s10 = smov [#allocation8]   ;;  %s101_s30 = sshll.u32 %s7511_s15, 4  ;;  %s102_s30 = int_to_ptr.vmem [resolvable:$true] %s101_s30 }
  0x53   :  { %96 = dma.vmem_to_smem %s94_s18, 16, %s9157_s10, [#allocation6] }
  0x54   :  { %s8905_s1 = scalar_lea.vmem %s98_s28, 16  ;;  %p8910_p11 = scmp.lt.s32.totalorder %s98_s28, %s98_s28 }
  0x55   :  { %p8906_p10 = scmp.ne.s32.totalorder %s98_s28, %s8905_s1  ;;  %p8911_p12 = scmp.lt.s32.totalorder %s8905_s1, %s8905_s1 }
  0x57   :  { %p8912_p13 = por %p8911_p12, %p8910_p11 }
  0x59   :  { %p8913_p0 = pnand %p8912_p13, %p8906_p10 }
  0x5b   :  { %8916 = shalt.err (!%p8913_p0)  }
  0x5c   :  { %s9158_s14 = smov [#allocation9]   ;;  %s105_s16 = sshll.u32 %s9373_s23, 4  ;;  %s106_s16 = int_to_ptr.vmem [resolvable:$true] %s105_s16 }
  0x5d   :  { %100 = dma.vmem_to_smem %s98_s28, 16, %s9158_s14, [#allocation6] }
  0x5e   :  { %s8917_s20 = scalar_lea.vmem %s102_s30, 16  ;;  %p8922_p2 = scmp.lt.s32.totalorder %s102_s30, %s102_s30 }
  0x5f   :  { %p8918_p1 = scmp.ne.s32.totalorder %s102_s30, %s8917_s20  ;;  %p8923_p3 = scmp.lt.s32.totalorder %s8917_s20, %s8917_s20 }
  0x61   :  { %p8924_p4 = por %p8923_p3, %p8922_p2 }
  0x63   :  { %p8925_p5 = pnand %p8924_p4, %p8918_p1 }
  0x65   :  { %8928 = shalt.err (!%p8925_p5)  }
  0x66   :  { %s9159_s19 = smov [#allocation10]   ;;  %s109_s5 = sshll.u32 %s9378_s26, 4  ;;  %s110_s5 = int_to_ptr.vmem [resolvable:$true] %s109_s5 }
  0x67   :  { %104 = dma.vmem_to_smem %s102_s30, 16, %s9159_s19, [#allocation6] }
  0x68   :  { %s8929_s7 = scalar_lea.vmem %s106_s16, 16  ;;  %p8934_p7 = scmp.lt.s32.totalorder %s106_s16, %s106_s16 }
  0x69   :  { %p8930_p6 = scmp.ne.s32.totalorder %s106_s16, %s8929_s7  ;;  %p8935_p8 = scmp.lt.s32.totalorder %s8929_s7, %s8929_s7 }
  0x6b   :  { %p8936_p9 = por %p8935_p8, %p8934_p7 }
  0x6d   :  { %p8937_p10 = pnand %p8936_p9, %p8930_p6 }
  0x6f   :  { %8940 = shalt.err (!%p8937_p10)  }
  0x70   :  { %s9160_s11 = smov [#allocation11]   ;;  %s8941_s15 = scalar_lea.vmem %s110_s5, 16 }
  0x71   :  { %108 = dma.vmem_to_smem %s106_s16, 16, %s9160_s11, [#allocation6] }
  0x72   :  { %p8942_p11 = scmp.ne.s32.totalorder %s110_s5, %s8941_s15  ;;  %p8946_p12 = scmp.lt.s32.totalorder %s110_s5, %s110_s5 }
  0x73   :  { %p8947_p13 = scmp.lt.s32.totalorder %s8941_s15, %s8941_s15 }
  0x75   :  { %p8948_p0 = por %p8947_p13, %p8946_p12 }
  0x77   :  { %p8949_p1 = pnand %p8948_p0, %p8942_p11 }
  0x79   :  { %8952 = shalt.err (!%p8949_p1)  }
  0x7a   :  { %s9161_s23 = smov [#allocation12]   ;;  %s9162_s18 = smov 6  }
  0x7b   :  { %112 = dma.vmem_to_smem %s110_s5, 16, %s9161_s23, [#allocation6] }
  0x7c   :  { %s7514_s26 = sld [smem:[%s11566_s0 + %s9162_s18]]   ;;  %s9163_s28 = smov 38  }
  0x7d   :  { %s7546_s30 = sld [smem:[%s11566_s0 + %s9163_s28]]  }
  0x82   :  { %s113_s1 = sshll.u32 %s7514_s26, 4  ;;  %s114_s1 = int_to_ptr.vmem [resolvable:$true] %s113_s1 }
  0x83   :  { %s8953_s14 = scalar_lea.vmem %s114_s1, 16  ;;  %p8958_p3 = scmp.lt.s32.totalorder %s114_s1, %s114_s1 }
  0x84   :  { %p8954_p2 = scmp.ne.s32.totalorder %s114_s1, %s8953_s14  ;;  %p8959_p4 = scmp.lt.s32.totalorder %s8953_s14, %s8953_s14 }
  0x86   :  { %p8960_p5 = por %p8959_p4, %p8958_p3 }
  0x88   :  { %p8961_p6 = pnand %p8960_p5, %p8954_p2 }
  0x8a   :  { %8964 = shalt.err (!%p8961_p6)  }
  0x8b   :  { %s9164_s16 = smov [#allocation13]   ;;  %v117_v0 = vstv %s7546_s30 }
  0x8c   :  { %116 = dma.vmem_to_smem %s114_s1, 16, %s9164_s16, [#allocation6]  ;;  %118 = vst [vmem:[#allocation14] sm:$0x1] %v117_v0 }
  0x8d   :  { %9101 = dma.done.wait [#allocation6], 112 }
  0x8e   :  { %9102 = vsyncadd [#allocation6], 4294967184 }
  0x8f   :  { %120 = sfence }
  0x90   :  { %121 = vsyncpa [#allocation16], 0 }
  0x91   :  { %122 = vsyncpa [#allocation19], 0 }
  0x92   :  { %123 = vsyncpa [#allocation22], 0 }
  0x93   :  { %124 = vsyncpa [#allocation17], 0 }
  0x94   :  { %125 = vsyncpa [#allocation25], 0  ;;  %s9165_s0 = smov [#allocation18]   ;;  %s9166_s19 = smov [#allocation15]  }
  0x95   :  { %s167_s20 = sshll.u32 %s9165_s0, 4  ;;  %s155_s5 = sshll.u32 %s9166_s19, 4  ;;  %s168_s20 = int_to_ptr.vmem [resolvable:$true] %s167_s20  ;;  %s9388_s5 = int_to_ptr.vmem [resolvable:$true] %s155_s5 }
  0x96   :  { %s8965_s7 = scalar_lea.hbm %s9258_s12, 16384 }
  0x97   :  { %p8966_p7 = scmp.ne.s32.totalorder %s9258_s12, %s8965_s7  ;;  %p8969_p8 = scmp.lt.u32.totalorder %s8965_s7, %s9258_s12 }
  0x99   :  { %p8971_p9 = pnand %p8969_p8, %p8966_p7 }
  0x9b   :  { %8974 = shalt.err (!%p8971_p9)
}
  0x9c   :  { %s8975_s11 = scalar_lea.vmem %s168_s20, 16384  ;;  %p8980_p11 = scmp.lt.s32.totalorder %s168_s20, %s168_s20 }
  0x9d   :  { %p8976_p10 = scmp.ne.s32.totalorder %s168_s20, %s8975_s11  ;;  %p8981_p12 = scmp.lt.s32.totalorder %s8975_s11, %s8975_s11 }
  0x9f   :  { %p8982_p13 = por %p8981_p12, %p8980_p11 }
  0xa1   :  { %p8983_p0 = pnand %p8982_p13, %p8976_p10 }
  0xa3   :  { %8986 = shalt.err (!%p8983_p0)
}
  0xa4   :  { %s9167_s15 = smov 512   ;;  %s9168_s23 = smov 32  }
  0xa5   :  { %173 = dma.hbm_to_vmem [thread:$0]  %s9258_s12, 16384, %s168_s20, [#allocation19], %s9167_s15, %s9167_s15, %s9168_s23  }
  0xa6   :  { %s8987_s18 = scalar_lea.hbm %s9253_s6, 16384 }
  0xa7   :  { %p8988_p1 = scmp.ne.s32.totalorder %s9253_s6, %s8987_s18  ;;  %p8991_p2 = scmp.lt.u32.totalorder %s8987_s18, %s9253_s6 }
  0xa9   :  { %p8993_p3 = pnand %p8991_p2, %p8988_p1 }
  0xab   :  { %8996 = shalt.err (!%p8993_p3)
}
  0xac   :  { %s8997_s22 = scalar_lea.vmem %s9388_s5, 16384  ;;  %p9002_p5 = scmp.lt.s32.totalorder %s9388_s5, %s9388_s5 }
  0xad   :  { %p8998_p4 = scmp.ne.s32.totalorder %s9388_s5, %s8997_s22  ;;  %p9003_p6 = scmp.lt.s32.totalorder %s8997_s22, %s8997_s22 }
  0xaf   :  { %p9004_p7 = por %p9003_p6, %p9002_p5 }
  0xb1   :  { %p9005_p8 = pnand %p9004_p7, %p8998_p4 }
  0xb3   :  { %9008 = shalt.err (!%p9005_p8)
}
  0xb4   :  { %161 = dma.hbm_to_vmem [thread:$0]  %s9253_s6, 16384, %s9388_s5, [#allocation16], %s9167_s15, %s9167_s15, %s9168_s23  }
  0xb5   :  { %s9169_s12 = smov [#allocation20]   ;;  %s9170_s26 = smov [#allocation21]  }
  0xb6   :  { %s181_s24 = sshll.u32 %s9169_s12, 4  ;;  %s193_s28 = sshll.u32 %s9170_s26, 4  ;;  %s182_s24 = int_to_ptr.vmem [resolvable:$true] %s181_s24  ;;  %s9409_s28 = int_to_ptr.vmem [resolvable:$true] %s193_s28 }
  0xb7   :  { %s9009_s2 = scalar_lea.hbm %s9268_s27, 16384 }
  0xb8   :  { %p9010_p9 = scmp.ne.s32.totalorder %s9268_s27, %s9009_s2  ;;  %p9013_p10 = scmp.lt.u32.totalorder %s9009_s2, %s9268_s27 }
  0xba   :  { %p9015_p11 = pnand %p9013_p10, %p9010_p9 }
  0xbc   :  { %9018 = shalt.err (!%p9015_p11)
}
  0xbd   :  { %s9019_s10 = scalar_lea.vmem %s182_s24, 16384  ;;  %p9024_p13 = scmp.lt.s32.totalorder %s182_s24, %s182_s24 }
  0xbe   :  { %p9020_p12 = scmp.ne.s32.totalorder %s182_s24, %s9019_s10  ;;  %p9025_p0 = scmp.lt.s32.totalorder %s9019_s10, %s9019_s10 }
  0xc0   :  { %p9026_p1 = por %p9025_p0, %p9024_p13 }
  0xc2   :  { %p9027_p2 = pnand %p9026_p1, %p9020_p12 }
  0xc4   :  { %9030 = shalt.err (!%p9027_p2)
}
  0xc5   :  { %187 = dma.hbm_to_vmem [thread:$0]  %s9268_s27, 16384, %s182_s24, [#allocation19], %s9167_s15, %s9167_s15, %s9168_s23  }
  0xc6   :  { %s9031_s6 = scalar_lea.hbm %s9273_s4, 16384 }
  0xc7   :  { %p9032_p3 = scmp.ne.s32.totalorder %s9273_s4, %s9031_s6  ;;  %p9035_p4 = scmp.lt.u32.totalorder %s9031_s6, %s9273_s4 }
  0xc9   :  { %p9037_p5 = pnand %p9035_p4, %p9032_p3 }
  0xcb   :  { %9040 = shalt.err (!%p9037_p5)
}
  0xcc   :  { %s9041_s30 = scalar_lea.vmem %s9409_s28, 16384  ;;  %p9046_p7 = scmp.lt.s32.totalorder %s9409_s28, %s9409_s28 }
  0xcd   :  { %p9042_p6 = scmp.ne.s32.totalorder %s9409_s28, %s9041_s30  ;;  %p9047_p8 = scmp.lt.s32.totalorder %s9041_s30, %s9041_s30 }
  0xcf   :  { %p9048_p9 = por %p9047_p8, %p9046_p7 }
  0xd1   :  { %p9049_p10 = pnand %p9048_p9, %p9042_p6 }
  0xd3   :  { %9052 = shalt.err (!%p9049_p10)
}
  0xd4   :  { %199 = dma.hbm_to_vmem [thread:$0]  %s9273_s4, 16384, %s9409_s28, [#allocation22], %s9167_s15, %s9167_s15, %s9168_s23  }
  0xd5   :  { %9103 = dma.done.wait [#allocation16], 16384  }
  0xd6   :  { %9104 = vsyncadd [#allocation16], 4294950912 }
  0xd7   :  { %9105 = dma.done.wait [#allocation19], 32768  }
  0xd8   :  { %9106 = vsyncadd [#allocation19], 4294934528 }
  0xd9   :  { %9107 = dma.done.wait [#allocation22], 16384  }
  0xda   :  { %9108 = vsyncadd [#allocation22], 4294950912  ;;  %v11578_v1 = vmov 0   ;;  %v9172_v2 = vmov 0.0   ;;  %v267_v3 = vlaneseq  ;;  %v8511_v4 = vld [vmem:[%s9198_s13] sm:$0xff]   ;;  %v8512_v5 = vld [vmem:[%s9198_s13 + $0x8] sm:$0xff]  }
  0xdb   :  { %344 = vmatprep.subr.bf16.mxu0 %v11578_v1  ;;  %8408 = vmatprep.subr.bf16.mxu1 %v9172_v2  ;;  %1163 = vst [vmem:[#allocation3] sm:$0xf] %v9172_v2  ;;  %v8513_v7 = vld [vmem:[%s9198_s13 + $0x10] sm:$0xff]   ;;  %v8514_v9 = vld [vmem:[%s9198_s13 + $0x18] sm:$0xff]   ;;  %v245_v10 = vld [vmem:[%s9193_s9] sm:$0x3] }
  0xdc   :  { %345 = vmatpush1.bf16.msra.mxu0 %v8511_v4  ;;  %v9437_v6 = vshrl.u32 %v267_v3, 7  ;;  %v8521_v12 = vld [vmem:[%s9208_s21] sm:$0xff]   ;;  %vm340_vm0 = vcmask 261120   ;;  %v8522_v14 = vld [vmem:[%s9208_s21 + $0x8] sm:$0xff]   ;;  %v8517_v17 = vld [vmem:[%s9198_s13 + $0x30] sm:$0xff]   ;;  %vm9173_vm1 = vmmov 0  }
  0xdd   :  { %346 = vmatprep.subr.bf16.mxu0 %v11578_v1  ;;  %v8515_v13 = vld [vmem:[%s9198_s13 + $0x20] sm:$0xff]   ;;  %8409 = vmatpush3.bf16.msra.mxu1 %v8521_v12  ;;  %v8516_v16 = vld [vmem:[%s9198_s13 + $0x28] sm:$0xff]   ;;  %v8518_v18 = vld [vmem:[%s9198_s13 + $0x38] sm:$0xff]   ;;  %vm419_vm2 = vcmask 523264   ;;  %s12089_s9 = sld [smem:[#allocation32_spill]]  ;;  %vm9553_vm3 = vcmp.lt.s32.totalorder %v267_v3, 256 }
  0xde   :  { %v9442_v8 = vsub.s32 1, %v9437_v6  ;;  %8410 = vmatprep.subr.bf16.mxu1 %v9172_v2  ;;  %v9461_v19 = vsub.s32 0, %v9437_v6  ;;  %v8519_v20 = vld [vmem:[%s9198_s13 + $0x40] sm:$0xff]   ;;  %v8520_v22 = vld [vmem:[%s9198_s13 + $0x48] sm:$0xff]   ;;  %v8523_v24 = vld [vmem:[%s9208_s21 + $0x10] sm:$0xff]   ;;  %8416 = vmatprep.mubr.msk.bf16.mxu1 %vm9173_vm1, %v9172_v2  ;;  %s9594_s13 = smov 0  }
  0xdf   :  { %v8524_v25 = vld [vmem:[%s9208_s21 + $0x18] sm:$0xff]   ;;  %v279_v26 = vld [vmem:[%s9203_s17] sm:$0x1]  ;;  %v8526_v35 = vld [vmem:[%s9218_s29 + $0x8] sm:$0xff]  }
  0xe0   :  { %347 = vmatpush1.bf16.msra.mxu0 %v8512_v5  ;;  %12087 = vst [vmem:[#allocation54_spill] sm:$0xff] %v9442_v8  ;;  %v274_v11 = vrot.slane %v245_v10, %v9442_v8  ;;  %12088 = vst [vmem:[#allocation55_spill] sm:$0xff] %v9461_v19  ;;  %v270_v21 = vrot.slane %v245_v10, %v9461_v19  ;;  %v8525_v33 = vld [vmem:[%s9218_s29] sm:$0xff]   ;;  %v8527_v36 = vld [vmem:[%s9218_s29 + $0x10] sm:$0xff]  }
  0xe1   :  { %348 = vmatprep.subr.bf16.mxu0 %v11578_v1  ;;  %8411 = vmatpush3.bf16.msra.mxu1 %v8522_v14  ;;  %v8528_v37 = vld [vmem:[%s9218_s29 + $0x18] sm:$0xff]   ;;  %v8531_v38 = vld [vmem:[%s9228_s8 + $0x4] ss:$40 sps:$4 sm:$0xff]   ;;  %v8532_v39 = vld [vmem:[%s9228_s8 + $0x8] ss:$40 sps:$4 sm:$0xff]  }
  0xe2   :  { %v278_v15 = vpack.c.bf16 %v274_v11, %v274_v11  ;;  %8412 = vmatprep.subr.bf16.mxu1 %v9172_v2  ;;  %v277_v23 = vpack.c.bf16 %v270_v21, %v270_v21  ;;  %v8534_v40 = vld [vmem:[%s9228_s8 + $0xc] ss:$40 sps:$4 sm:$0xff]   ;;  %v8540_v41 = vld [vmem:[%s9228_s8 + $0x5c] ss:$40 sps:$4 sm:$0xff]   ;;  %v8538_v42 = vld [vmem:[%s9228_s8 + $0x58] ss:$40 sps:$4 sm:$0xff]  }
  0xe3   :  { %v8546_v43 = vld [vmem:[%s9228_s8 + $0xac] ss:$40 sps:$4 sm:$0xff]   ;;  %v8544_v44 = vld [vmem:[%s9228_s8 + $0xa8] ss:$40 sps:$4 sm:$0xff]   ;;  %v394_v45 = vld [vmem:[%s9213_s25] sm:$0x1] }
  0xe4   :  { %349 = vmatpush1.bf16.msra.mxu0 %v8513_v7  ;;  %7560 = vmatprep.mubr.msk.bf16.mxu0 %vm340_vm0, %v278_v15  ;;  %v8529_v52 = vld [vmem:[%s9228_s8] ss:$40 sps:$4 sm:$0xff]   ;;  %v8537_v54 = vld [vmem:[%s9228_s8 + $0x54] ss:$40 sps:$4 sm:$0xff]   ;;  %v8535_v55 = vld [vmem:[%s9228_s8 + $0x50] ss:$40 sps:$4 sm:$0xff]  }
  0xe5   :  { %350 = vmatprep.subr.bf16.mxu0 %v11578_v1  ;;  %8413 = vmatpush3.bf16.msra.mxu1 %v8523_v24  ;;  %v8543_v56 = vld [vmem:[%s9228_s8 + $0xa4] ss:$40 sps:$4 sm:$0xff]   ;;  %v8541_v57 = vld [vmem:[%s9228_s8 + $0xa0] ss:$40 sps:$4 sm:$0xff]   ;;  %v8549_v58 = vld [vmem:[%s9228_s8 + $0xf4] ss:$40 sps:$4 sm:$0xff]  }
  0xe6   :  { %8414 = vmatprep.subr.bf16.mxu1 %v9172_v2  ;;  %v8552_v59 = vld [vmem:[%s9228_s8 + $0xfc] ss:$40 sps:$4 sm:$0xff]   ;;  %v8547_v60 = vld [vmem:[%s9228_s8 + $0xf0] ss:$40 sps:$4 sm:$0xff]   ;;  %v473_v0 = vld [vmem:[%s9223_s3] sm:$0x1] }
  0xe7   :  { %v8550_v61 = vld [vmem:[%s9228_s8 + $0xf8] ss:$40 sps:$4 sm:$0xff]   ;;  %v8555_v62 = vld [vmem:[%s9228_s8 + $0x14] ss:$40 sps:$4 sm:$0xff]   ;;  %v8561_v14 = vld [vmem:[%s9228_s8 + $0x64] ss:$40 sps:$4 sm:$0xff]  }
  0xe8   :  { %351 = vmatpush1.bf16.msra.mxu0 %v8514_v9  ;;  %v8558_v63 = vld [vmem:[%s9228_s8 + $0x1c] ss:$40 sps:$4 sm:$0xff]   ;;  %v8553_v11 = vld [vmem:[%s9228_s8 + $0x10] ss:$40 sps:$4 sm:$0xff]   ;;  %v8564_v15 = vld [vmem:[%s9228_s8 + $0x6c] ss:$40 sps:$4 sm:$0xff]  }
  0xe9   :  { %352 = vmatprep.subr.bf16.mxu0 %v11578_v1  ;;  %8415 = vmatpush3.bf16.msra.mxu1 %v8524_v25  ;;  %v8556_v12 = vld [vmem:[%s9228_s8 + $0x18] ss:$40 sps:$4 sm:$0xff]   ;;  %v8576_v24 = vld [vmem:[%s9228_s8 + $0x10c] ss:$40 sps:$4 sm:$0xff]  }
  0xea   :  { %8420 = vmatprep.subr.bf16.mxu1 %v9172_v2  ;;  %v8565_v21 = vld [vmem:[%s9228_s8 + $0xb0] ss:$40 sps:$4 sm:$0xff]   ;;  %v8571_v25 = vld [vmem:[%s9228_s8 + $0x100] ss:$40 sps:$4 sm:$0xff]  }
  0xec   :  { %353 = vmatpush1.bf16.msra.mxu0 %v8515_v13 }
  0xed   :  { %354 = vmatprep.subr.bf16.mxu0 %v11578_v1 }
  0xf0   :  { %355 = vmatpush1.bf16.msra.mxu0 %v8516_v16  ;;  %v8559_v16 = vld [vmem:[%s9228_s8 + $0x60] ss:$40 sps:$4 sm:$0xff]  }
  0xf1   :  { %356 = vmatprep.subr.bf16.mxu0 %v11578_v1 }
  0xf4   :  { %357 = vmatpush1.bf16.msra.mxu0 %v8517_v17  ;;  %v8562_v17 = vld [vmem:[%s9228_s8 + $0x68] ss:$40 sps:$4 sm:$0xff]  }
  0xf5   :  { %358 = vmatprep.subr.bf16.mxu0 %v11578_v1 }
  0xf8   :  { %359 = vmatpush1.bf16.msra.mxu0 %v8518_v18  ;;  %v8567_v18 = vld [vmem:[%s9228_s8 + $0xb4] ss:$40 sps:$4 sm:$0xff]  }
  0xf9   :  { %360 = vmatprep.subr.bf16.mxu0 %v11578_v1 }
  0xfc   :  { %361 = vmatpush1.bf16.msra.mxu0 %v8519_v20  ;;  %v8570_v20 = vld [vmem:[%s9228_s8 + $0xbc] ss:$40 sps:$4 sm:$0xff]  }
  0xfd   :  { %362 = vmatprep.subr.bf16.mxu0 %v11578_v1 }
 0x100   :  { %363 = vmatpush1.bf16.msra.mxu0 %v8520_v22  ;;  %v8568_v22 = vld [vmem:[%s9228_s8 + $0xb8] ss:$40 sps:$4 sm:$0xff]  }
 0x101   :  { %881 = vmatprep.subr.bf16.mxu0 %v8534_v40 }
 0x103   :  { %377 = vmatmul.mubr.bf16.vlgmr.msra.gmra.mrb[0].mxu0 %v277_v23  ;;  %v8573_v23 = vld [vmem:[%s9228_s8 + $0x104] ss:$40 sps:$4 sm:$0xff]  }
 0x104   :  { %913 = vmatprep.mubr.bf16.mxu0 %v11578_v1  ;;  %882 = vmatpush1.bf16.msra.mxu0 %v8532_v39 }
 0x105   :  { %883 = vmatprep.subr.bf16.mxu0 %v8540_v41 }
 0x108   :  { %884 = vmatpush1.bf16.msra.mxu0 %v8538_v42 }
 0x109   :  { %885 = vmatprep.subr.bf16.mxu0 %v8546_v43 }
 0x10c   :  { %886 = vmatpush1.bf16.msra.mxu0 %v8544_v44 }
 0x10d   :  { %887 = vmatprep.subr.bf16.mxu0 %v8552_v59 }
 0x110   :  { %888 = vmatpush1.bf16.msra.mxu0 %v8550_v61 }
 0x111   :  { %963 = vmatprep.subr.bf16.mxu0 %v8558_v63 }
 0x1d6   :  { %v378_v27 = vpop.f32.mrb[0].mxu0 }
 0x1d7   :  { %v379_v28 = vadd.f32 %v378_v27, %v279_v26  ;;  %v380_v29 = vpop.f32.mrb[1].mxu0  ;;  %v8574_v26 = vld [vmem:[%s9228_s8 + $0x108] ss:$40 sps:$4 sm:$0xff]   ;;  %v8579_v27 = vld [vmem:[%s9228_s8 + $0x24] ss:$40 sps:$4 sm:$0xff]  }
 0x1d8   :  { %v381_v30 = vpop.f32.mrb[2].mxu0  ;;  %v8582_v29 = vld [vmem:[%s9228_s8 + $0x74] ss:$40 sps:$4 sm:$0xff]  }
 0x1d9   :  { %v384_v31 = vmax.f32 %v379_v28, 0.0  ;;  %v382_v32 = vpop.f32.mrb[3].mxu0  ;;  %v8577_v28 = vld [vmem:[%s9228_s8 + $0x20] ss:$40 sps:$4 sm:$0xff]   ;;  %v8580_v30 = vld [vmem:[%s9228_s8 + $0x70] ss:$40 sps:$4 sm:$0xff]  }
 0x1da   :  { %v8583_v32 = vld [vmem:[%s9228_s8 + $0xc0] ss:$40 sps:$4 sm:$0xff]  }
 0x1db   :  { %v393_v34 = vpack.c.bf16 %v384_v31, %v384_v31  ;;  %v8585_v31 = vld [vmem:[%s9228_s8 + $0xc4] ss:$40 sps:$4 sm:$0xff]  }
 0x1dd   :  { %8417 = vmatmul.mubr.msk.bf16.vlgmr.msra.gmra.mrb[0].mxu1 %vm419_vm2, %v393_v34  ;;  %v8586_v34 = vld [vmem:[%s9228_s8 + $0x110] ss:$40 sps:$4 sm:$0xff]  }
 0x1de   :  { %8421 = vmatpush3.bf16.msra.mxu1 %v8525_v33  ;;  %8428 = vmatprep.mubr.msk.bf16.mxu1 %vm9173_vm1, %v9172_v2  ;;  %v8588_v33 = vld [vmem:[%s9228_s8 + $0x114] ss:$40 sps:$4 sm:$0xff]  }
 0x1df   :  { %8422 = vmatprep.subr.bf16.mxu1 %v9172_v2 }
 0x1e2   :  { %8423 = vmatpush3.bf16.msra.mxu1 %v8526_v35  ;;  %v9537_v35 = vsub.s32 2, %v9437_v6 }
 0x1e3   :  { %8424 = vmatprep.subr.bf16.mxu1 %v9172_v2 }
 0x1e4   :  { %12090 = vst [vmem:[#allocation56_spill] sm:$0xff] %v9537_v35 }
 0x1e6   :  { %8425 = vmatpush3.bf16.msra.mxu1 %v8527_v36  ;;  %v583_v36 = vld [vmem:[%s12089_s9] sm:$0xff] }
 0x1e7   :  { %8426 = vmatprep.subr.bf16.mxu1 %v9172_v2  ;;  %v790_v40 = vrot.slane %v583_v36, %v9461_v19  ;;  %v798_v41 = vrot.slane %v583_v36, %v9537_v35  ;;  %v794_v42 = vrot.slane %v583_v36, %v9442_v8 }
 0x1ea   :  { %8427 = vmatpush3.bf16.msra.mxu1 %v8528_v37  ;;  %v9541_v37 = vsub.s32 3, %v9437_v6 }
 0x1eb   :  { %840 = vmatprep.subr.bf16.mxu1 %v8531_v38  ;;  %v9174_v38 = vmov 1966171168  }
 0x1ec   :  { %12091 = vst [vmem:[#allocation57_spill] sm:$0xff] %v9541_v37  ;;  %v1059_v39 = vunpack.c.l.s4 %v9174_v38  ;;  %v802_v43 = vrot.slane %v583_v36, %v9541_v37 }
 0x2b0   :  { %v457_v46 = vpop.f32.mrb[0].mxu1 }
 0x2b1   :  { %v458_v47 = vadd.f32 %v457_v46, %v394_v45  ;;  %v8418_v48 = vpop.f32.mrb[1].mxu1  ;;  %v1060_v46 = vunpack.c.0.s8 %v1059_v39 }
 0x2b2   :  { %v460_v49 = vpop.f32.mrb[2].mxu1 }
 0x2b3   :  { %v463_v50 = vmax.f32 %v458_v47, 0.0  ;;  %v8419_v51 = vpop.f32.mrb[3].mxu1 }
 0x2b5   :  { %v472_v53 = vpack.c.bf16 %v463_v50, %v463_v50 }
 0x2b7   :  { %8429 = vmatmul.mubr.msk.bf16.vlgmr.msra.gmra.mrb[4].mxu1 %vm419_vm2, %v472_v53 }
 0x2b8   :  { %841 = vmatpush1.bf16.msra.mxu1 %v8529_v52  ;;  %872 = vmatprep.mubr.bf16.mxu1 %v11578_v1 }
 0x2b9   :  { %842 = vmatprep.subr.bf16.mxu1 %v8537_v54 }
 0x2bc   :  { %843 = vmatpush1.bf16.msra.mxu1 %v8535_v55 }
 0x2bd   :  { %844 = vmatprep.subr.bf16.mxu1 %v8543_v56 }
 0x2c0   :  { %845 = vmatpush1.bf16.msra.mxu1 %v8541_v57 }
 0x2c1   :  { %846 = vmatprep.subr.bf16.mxu1 %v8549_v58 }
 0x2c4   :  { %847 = vmatpush1.bf16.msra.mxu1 %v8547_v60  ;;  %v9548_v60 = vsub.s32 %v1060_v46, %v9437_v6 }
 0x2c5   :  { %922 = vmatprep.subr.bf16.mxu1 %v8555_v62 }
 0x2c6   :  { %12092 = vst [vmem:[#allocation58_spill] sm:$0xff] %v9548_v60 }
 0x38a   :  { %v535_v2 = vpop.f32.mrb[4].mxu1 }
 0x38b   :  { %v536_v4 = vadd.f32 %v535_v2, %v473_v0  ;;  %v8430_v5 = vpop.f32.mrb[5].mxu1 }
 0x38c   :  { %v538_v7 = vpop.f32.mrb[6].mxu1  ;;  %v9558_v5 = vsub.s32 4, %v9437_v6 }
 0x38d   :  { %v541_v9 = vmax.f32 %v536_v4, 0.0  ;;  %v8431_v10 = vpop.f32.mrb[7].mxu1  ;;  %v12093_v4 = vmov 0  ;;  %v9561_v7 = vsub.s32 6, %v9437_v6 }
 0x38e   :  { %v12094_v4 = vsel %vm9553_vm3, 4294967295, %v12093_v4  ;;  %12096 = vst [vmem:[#allocation60_spill] sm:$0xff] %v9558_v5  ;;  %v806_v3 = vrot.slane %v583_v36, %v9558_v5 }
 0x38f   :  { %v582_v13 = vpack.c.bf16 %v541_v9, %v541_v9  ;;  %12095 = vst [vmem:[#allocation59_spill] sm:$0xff] %v12094_v4  ;;  %12097 = vst [vmem:[#allocation61_spill] sm:$0xff] %v9561_v7 }
 0x391   :  { %7611 = vmatmul.mubr.msk.bf16.vlgmr.msra.gmra.mrb[8].mxu1 %vm419_vm2, %v582_v13  ;;  %7612 = vmatmul.mubr.msk.bf16.vlgmr.msra.gmra.mrb[4].mxu0 %vm419_vm2, %v582_v13 }
 0x392   :  { %923 = vmatpush1.bf16.msra.mxu1 %v8553_v11  ;;  %964 = vmatpush1.bf16.msra.mxu0 %v8556_v12  ;;  %v9566_v11 = vsub.s32 5, %v9437_v6  ;;  %v9569_v12 = vsub.s32 7, %v9437_v6 }
 0x393   :  { %924 = vmatprep.subr.bf16.mxu1 %v8561_v14  ;;  %965 = vmatprep.subr.bf16.mxu0 %v8564_v15 }
 0x394   :  { %954 = vmatprep.mubr.bf16.mxu1 %v11578_v1  ;;  %995 = vmatprep.mubr.bf16.mxu0 %v11578_v1  ;;  %12098 = vst [vmem:[#allocation62_spill] sm:$0xff] %v9566_v11  ;;  %12099 = vst [vmem:[#allocation63_spill] sm:$0xff] %v9569_v12  ;;  %v810_v14 = vrot.slane %v583_v36, %v9566_v11  ;;  %v818_v15 = vrot.slane %v583_v36, %v9569_v12 }
 0x396   :  { %925 = vmatpush1.bf16.msra.mxu1 %v8559_v16  ;;  %966 = vmatpush1.bf16.msra.mxu0 %v8562_v17 }
 0x397   :  { %926 = vmatprep.subr.bf16.mxu1 %v8567_v18  ;;  %967 = vmatprep.subr.bf16.mxu0 %v8570_v20 }
 0x39a   :  { %927 = vmatpush1.bf16.msra.mxu1 %v8565_v21  ;;  %968 = vmatpush1.bf16.msra.mxu0 %v8568_v22 }
 0x39b   :  { %928 = vmatprep.subr.bf16.mxu1 %v8573_v23  ;;  %969 = vmatprep.subr.bf16.mxu0 %v8576_v24 }
 0x39e   :  { %929 = vmatpush1.bf16.msra.mxu1 %v8571_v25  ;;  %970 = vmatpush1.bf16.msra.mxu0 %v8574_v26 }
 0x39f   :  { %1004 = vmatprep.subr.bf16.mxu1 %v8579_v27 }
 0x3a1   :  { %7613 = vmatmul.mubr.msk.bf16.vlgmr.msra.gmra.mrb[12].mxu1 %vm419_vm2, %v582_v13  ;;  %7614 = vmatmul.mubr.msk.bf16.vlgmr.msra.gmra.mrb[8].mxu0 %vm419_vm2, %v582_v13 }
 0x3a2   :  { %1005 = vmatpush1.bf16.msra.mxu1 %v8577_v28  ;;  %1036 = vmatprep.mubr.bf16.mxu1 %v11578_v1 }
 0x3a3   :  { %1006 = vmatprep.subr.bf16.mxu1 %v8582_v29 }
 0x3a6   :  { %1007 = vmatpush1.bf16.msra.mxu1 %v8580_v30 }
 0x3a7   :  { %1008 = vmatprep.subr.bf16.mxu1 %v8585_v31 }
 0x3aa   :  { %1009 = vmatpush1.bf16.msra.mxu1 %v8583_v32 }
 0x3ab   :  { %1010 = vmatprep.subr.bf16.mxu1 %v8588_v33 }
 0x3ae   :  { %1011 = vmatpush1.bf16.msra.mxu1 %v8586_v34 }
 0x3b1   :  { %7615 = vmatmul.mubr.msk.bf16.vlgmr.msra.gmra.mrb[16].mxu1 %vm419_vm2, %v582_v13  ;;  %v814_v13 = vrot.slane %v583_v36, %v9561_v7 }
 0x464   :  { %v874_v44 = vpop.f32.mrb[8].mxu1  ;;  %v915_v45 = vpop.f32.mrb[4].mxu0 }
 0x465   :  { %v875_v47 = vadd.f32 %v874_v44, %v790_v40  ;;  %v916_v48 = vadd.f32 %v915_v45, %v798_v41  ;;  %v876_v49 = vpop.f32.mrb[9].mxu1  ;;  %v917_v50 = vpop.f32.mrb[5].mxu0  ;;  %v584_v40 = vld [vmem:[%s12089_s9 + $0x8] sm:$0x3] }
 0x466   :  { %v877_v51 = vadd.f32 %v876_v49, %v794_v42  ;;  %v918_v52 = vadd.f32 %v917_v50, %v802_v43  ;;  %v878_v53 = vpop.f32.mrb[10].mxu1  ;;  %v919_v54 = vpop.f32.mrb[6].mxu0  ;;  %v822_v41 = vrot.slane %v584_v40, %v9461_v19  ;;  %v826_v42 = vrot.slane %v584_v40, %v9442_v8 }
 0x467   :  { %v1045_v55 = vmax.f32 %v875_v47, 0.0  ;;  %v1047_v56 = vmax.f32 %v916_v48, 0.0  ;;  %v879_v57 = vpop.f32.mrb[11].mxu1  ;;  %v920_v58 = vpop.f32.mrb[7].mxu0 }
 0x468   :  { %v1046_v59 = vmax.f32 %v877_v51, 0.0  ;;  %v1048_v61 = vmax.f32 %v918_v52, 0.0 }
 0x46a   :  { %v1057_v62 = vcombine.low %v1045_v55, %v1046_v59  ;;  %v1081_v63 = vcombine.low %v1047_v56, %v1048_v61 }
 0x46c   :  { %v1064_v0 = vrot.slane %v1057_v62, %v9548_v60  ;;  %v1088_v2 = vrot.slane %v1081_v63, %v9548_v60 }
 0x46e   :  { %v1071_v9 = vrot.slane %v1064_v0, %v9548_v60  ;;  %v1095_v10 = vrot.slane %v1088_v2, %v9548_v60 }
 0x470   :  { %1077 = vst.msk [vmem:[#allocation2] ss:$8 sm:$0x3] %vm9553_vm3, %v1071_v9  ;;  %1098 = vst.msk [vmem:[#allocation2 + $0x1] ss:$8 sm:$0x3] %vm9553_vm3, %v1095_v10 }
 0x474   :  { %v956_v16 = vpop.f32.mrb[12].mxu1  ;;  %v997_v17 = vpop.f32.mrb[8].mxu0 }
 0x475   :  { %v957_v18 = vadd.f32 %v956_v16, %v806_v3  ;;  %v998_v20 = vadd.f32 %v997_v17, %v814_v13  ;;  %v958_v6 = vpop.f32.mrb[13].mxu1  ;;  %v999_v21 = vpop.f32.mrb[9].mxu0 }
 0x476   :  { %v959_v22 = vadd.f32 %v958_v6, %v810_v14  ;;  %v1000_v23 = vadd.f32 %v999_v21, %v818_v15  ;;  %v960_v24 = vpop.f32.mrb[14].mxu1  ;;  %v1001_v25 = vpop.f32.mrb[10].mxu0 }
 0x477   :  { %v1049_v26 = vmax.f32 %v957_v18, 0.0  ;;  %v1051_v27 = vmax.f32 %v998_v20, 0.0  ;;  %v961_v28 = vpop.f32.mrb[15].mxu1  ;;  %v1002_v29 = vpop.f32.mrb[11].mxu0 }
 0x478   :  { %v1050_v30 = vmax.f32 %v959_v22, 0.0  ;;  %v1052_v31 = vmax.f32 %v1000_v23, 0.0 }
 0x47a   :  { %v1102_v32 = vcombine.low %v1049_v26, %v1050_v30  ;;  %v1123_v33 = vcombine.low %v1051_v27, %v1052_v31 }
 0x47c   :  { %v1109_v34 = vrot.slane %v1102_v32, %v9548_v60  ;;  %v1130_v36 = vrot.slane %v1123_v33, %v9548_v60 }
 0x47e   :  { %v1116_v38 = vrot.slane %v1109_v34, %v9548_v60  ;;  %v1137_v39 = vrot.slane %v1130_v36, %v9548_v60 }
 0x480   :  { %1119 = vst.msk [vmem:[#allocation2 + $0x2] ss:$8 sm:$0x3] %vm9553_vm3, %v1116_v38  ;;  %1140 = vst.msk [vmem:[#allocation2 + $0x3] ss:$8 sm:$0x3] %vm9553_vm3, %v1137_v39 }
 0x484   :  { %v1038_v43 = vpop.f32.mrb[16].mxu1 }
 0x485   :  { %v1039_v44 = vadd.f32 %v1038_v43, %v822_v41  ;;  %v1040_v45 = vpop.f32.mrb[17].mxu1 }
 0x486   :  { %v1041_v46 = vadd.f32 %v1040_v45, %v826_v42  ;;  %v1042_v47 = vpop.f32.mrb[18].mxu1 }
 0x487   :  { %v1053_v48 = vmax.f32 %v1039_v44, 0.0  ;;  %v1043_v49 = vpop.f32.mrb[19].mxu1 }
 0x488   :  { %v1054_v50 = vmax.f32 %v1041_v46, 0.0 }
 0x48a   :  { %v1144_v51 = vcombine.low %v1053_v48, %v1054_v50 }
 0x48c   :  { %v1151_v52 = vrot.slane %v1144_v51, %v9548_v60 }
 0x48e   :  { %v1158_v53 = vrot.slane %v1151_v52, %v9548_v60 }
 0x490   :  { %1161 = vst.msk [vmem:[#allocation2 + $0x4] ss:$8 sm:$0x3] %vm9553_vm3, %v1158_v53 }
 0x491 LB: > { %s1170_s17 = sld [smem:[#allocation7 + %s9115_s13]]  ;;  %s9115_s13 = sphi %s9594_s13, %s1169_s13  }
 0x497   : > { %p7616_p11 = scmp.ne.s32.totalorder %s1170_s17, 1 }
 0x499   : > { %1174 = sbr.rel (%p7616_p11) target bundleno = 3035 (0xbdb), region = 160 }
 0x4a0   : > { %v1251_v54 = vld [vmem:[#allocation15] sm:$0xff]  ;;  %v1252_v56 = vld [vmem:[#allocation15 + $0x8] sm:$0xff]  ;;  %s9601_s21 = smul.u32 3, %s9115_s13  ;;  %vm6686_vm13 = vcmask 1044480   ;;  %vm9177_vm14 = vmmov 0   ;;  %vm6682_vm15 = vcmask 211968  }
 0x4a1   : > { %v1255_v55 = vld [vmem:[#allocation15 + $0x20] sm:$0xff]  ;;  %v1256_v58 = vld [vmem:[#allocation15 + $0x28] sm:$0xff] }
 0x4a2   : > { %v7630_v57 = vcombine.high %v1251_v54, %v1255_v55  ;;  %v7629_v59 = vcombine.low %v1251_v54, %v1255_v55  ;;  %v1259_v61 = vld [vmem:[#allocation15 + $0x40] sm:$0xff]  ;;  %v7632_v63 = vcombine.high %v1252_v56, %v1256_v58  ;;  %v7631_v0 = vcombine.low %v1252_v56, %v1256_v58  ;;  %v1260_v9 = vld [vmem:[#allocation15 + $0x48] sm:$0xff]  ;;  %s9604_s25 = sld [smem:[#allocation11 + %s9601_s21]]  ;;  %s1189_s29 = sadd.s32 1, %s9601_s21 }
 0x4a3   : > { %v1263_v62 = vld [vmem:[#allocation15 + $0x60] sm:$0xff]  ;;  %v1264_v10 = vld [vmem:[#allocation15 + $0x68] sm:$0xff]  ;;  %s9609_s3 = sld [smem:[#allocation11 + %s1189_s29]]  ;;  %s1202_s8 = sadd.s32 2, %s9601_s21 }
 0x4a4   : > { %v7638_v2 = vcombine.high %v1259_v61, %v1263_v62  ;;  %v1267_v3 = vld [vmem:[#allocation15 + $0x80] sm:$0xff]  ;;  %2066 = vmatprep.subr.bf16.mxu0 %v7630_v57  ;;  %v7640_v13 = vcombine.high %v1260_v9, %v1264_v10  ;;  %v1268_v15 = vld [vmem:[#allocation15 + $0x88] sm:$0xff]  ;;  %2107 = vmatprep.subr.bf16.mxu1 %v7632_v63  ;;  %v7637_v17 = vcombine.low %v1259_v61, %v1263_v62  ;;  %s9614_s27 = sld [smem:[#allocation11 + %s1202_s8]] }
 0x4a5   : > { %v1271_v14 = vld [vmem:[#allocation15 + $0xa0] sm:$0xff]  ;;  %v1272_v16 = vld [vmem:[#allocation15 + $0xa8] sm:$0xff]  ;;  %2067 = vmatpush1.bf16.msra.mxu0 %v7629_v59  ;;  %2108 = vmatpush1.bf16.msra.mxu1 %v7631_v0  ;;  %v7639_v18 = vcombine.low %v1260_v9, %v1264_v10  ;;  %s9637_s24 = sld [smem:[#allocation13 + %s9601_s21]] }
 0x4a6   : > { %2068 = vmatprep.subr.bf16.mxu0 %v7638_v2  ;;  %v7646_v20 = vcombine.high %v1267_v3, %v1271_v14  ;;  %2109 = vmatprep.subr.bf16.mxu1 %v7640_v13  ;;  %v7648_v6 = vcombine.high %v1268_v15, %v1272_v16  ;;  %v1275_v21 = vld [vmem:[#allocation15 + $0xc0] sm:$0xff]  ;;  %v1276_v23 = vld [vmem:[#allocation15 + $0xc8] sm:$0xff]  ;;  %v7645_v25 = vcombine.low %v1267_v3, %v1271_v14  ;;  %s9641_s26 = sld [smem:[#allocation13 + %s1189_s29]] }
 0x4a7   : > { %v1279_v22 = vld [vmem:[#allocation15 + $0xe0] sm:$0xff]  ;;  %v1280_v24 = vld [vmem:[#allocation15 + $0xe8] sm:$0xff]  ;;  %v7647_v26 = vcombine.low %v1268_v15, %v1272_v16  ;;  %s9645_s28 = sld [smem:[#allocation13 + %s1202_s8]] }
 0x4a8   : > { %s1179_s4 = sshra.s32 %s9604_s25, 1  ;;  %v7654_v27 = vcombine.high %v1275_v21, %v1279_v22  ;;  %v7656_v28 = vcombine.high %v1276_v23, %v1280_v24  ;;  %v1283_v29 = vld [vmem:[#allocation15 + $0x100] sm:$0xff]  ;;  %v1284_v31 = vld [vmem:[#allocation15 + $0x108] sm:$0xff]  ;;  %s1182_s14 = sand.u32 1, %s9604_s25  ;;  %v7653_v33 = vcombine.low %v1275_v21, %v1279_v22  ;;  %v7655_v34 = vcombine.low %v1276_v23, %v1280_v24 }
 0x4a9   : > { %2069 = vmatpush1.bf16.msra.mxu0 %v7637_v17  ;;  %2110 = vmatpush1.bf16.msra.mxu1 %v7639_v18  ;;  %v1287_v30 = vld [vmem:[#allocation15 + $0x120] sm:$0xff]  ;;  %s1191_s1 = sshra.s32 %s9609_s3, 1  ;;  %v1288_v32 = vld [vmem:[#allocation15 + $0x128] sm:$0xff]  ;;  %s8322_s16 = sshll.u32 %s1179_s4, 2 }
 0x4aa   : > { %2070 = vmatprep.subr.bf16.mxu0 %v7646_v20  ;;  %2111 = vmatprep.subr.bf16.mxu1 %v7648_v6  ;;  %s1194_s0 = sand.u32 1, %s9609_s3  ;;  %s1204_s20 = sshra.s32 %s9614_s27, 1  ;;  %v7662_v36 = vcombine.high %v1283_v29, %v1287_v30  ;;  %v7664_v38 = vcombine.high %v1284_v31, %v1288_v32  ;;  %v1291_v39 = vld [vmem:[#allocation15 + $0x140] sm:$0xff]  ;;  %v1292_v41 = vld [vmem:[#allocation15 + $0x148] sm:$0xff]  ;;  %v7661_v43 = vcombine.low %v1283_v29, %v1287_v30 }
 0x4ab   : > { %s8323_s19 = sshll.u32 %s1191_s1, 2  ;;  %s1207_s5 = sand.u32 1, %s9614_s27  ;;  %v1295_v40 = vld [vmem:[#allocation15 + $0x160] sm:$0xff]  ;;  %v1296_v42 = vld [vmem:[#allocation15 + $0x168] sm:$0xff]  ;;  %v7663_v44 = vcombine.low %v1284_v31, %v1288_v32 }
 0x4ac   : > { %s8324_s7 = sshll.u32 %s1204_s20, 2  ;;  %s1185_s11 = sadd.s32 %s8322_s16, %s1182_s14  ;;  %v7670_v45 = vcombine.high %v1291_v39, %v1295_v40  ;;  %v7672_v46 = vcombine.high %v1292_v41, %v1296_v42  ;;  %v1299_v47 = vld [vmem:[#allocation15 + $0x180] sm:$0xff]  ;;  %v1300_v49 = vld [vmem:[#allocation15 + $0x188] sm:$0xff]  ;;  %v7669_v51 = vcombine.low %v1291_v39, %v1295_v40  ;;  %v7671_v52 = vcombine.low %v1292_v41, %v1296_v42 }
 0x4ad   : > { %2071 = vmatpush1.bf16.msra.mxu0 %v7645_v25  ;;  %2112 = vmatpush1.bf16.msra.mxu1 %v7647_v26  ;;  %s1197_s15 = sadd.s32 %s8323_s19, %s1194_s0  ;;  %s1210_s23 = sadd.s32 %s8324_s7, %s1207_s5  ;;  %v1303_v48 = vld [vmem:[#allocation15 + $0x1a0] sm:$0xff]  ;;  %v1304_v50 = vld [vmem:[#allocation15 + $0x1a8] sm:$0xff] }
 0x4ae   : > { %2072 = vmatprep.subr.bf16.mxu0 %v7654_v27  ;;  %2113 = vmatprep.subr.bf16.mxu1 %v7656_v28  ;;  %v7678_v53 = vcombine.high %v1299_v47, %v1303_v48  ;;  %v1307_v54 = vld [vmem:[#allocation15 + $0x1c0] sm:$0xff]  ;;  %s1186_s18 = scalar_lea.vmem [#allocation3], %s1185_s11  ;;  %v7680_v57 = vcombine.high %v1300_v49, %v1304_v50  ;;  %s1198_s22 = scalar_lea.vmem [#allocation3], %s1197_s15  ;;  %v1308_v61 = vld [vmem:[#allocation15 + $0x1c8] sm:$0xff]  ;;  %v7677_v63 = vcombine.low %v1299_v47, %v1303_v48 }
 0x4af   : > { %v1311_v55 = vld [vmem:[#allocation15 + $0x1e0] sm:$0xff]  ;;  %v1187_v56 = vld [vmem:[%s1186_s18] ss:$2 sm:$0x3]  ;;  %s1211_s12 = scalar_lea.vmem [#allocation3], %s1210_s23  ;;  %v1312_v62 = vld [vmem:[#allocation15 + $0x1e8] sm:$0xff]  ;;  %v7679_v0 = vcombine.low %v1300_v49, %v1304_v50 }
 0x4b0   : > { %1188 = vst.msk [vmem:[#allocation4] ss:$4 sm:$0x3] %vm9553_vm3, %v1187_v56  ;;  %v1199_v58 = vld [vmem:[%s1198_s22] ss:$2 sm:$0x3]  ;;  %v7686_v2 = vcombine.high %v1307_v54, %v1311_v55  ;;  %v7688_v9 = vcombine.high %v1308_v61, %v1312_v62  ;;  %v7685_v15 = vcombine.low %v1307_v54, %v1311_v55  ;;  %v7687_v16 = vcombine.low %v1308_v61, %v1312_v62 }
 0x4b1   : > { %2073 = vmatpush1.bf16.msra.mxu0 %v7653_v33  ;;  %2114 = vmatpush1.bf16.msra.mxu1 %v7655_v34  ;;  %v1212_v59 = vld [vmem:[%s1211_s12] ss:$2 sm:$0x3]  ;;  %1201 = vst.msk [vmem:[#allocation4 + $0x1] ss:$4 sm:$0x3] %vm9553_vm3, %v1199_v58 }
 0x4b2   : > { %2074 = vmatprep.subr.bf16.mxu0 %v7662_v36  ;;  %2115 = vmatprep.subr.bf16.mxu1 %v7664_v38  ;;  %1214 = vst.msk [vmem:[#allocation4 + $0x2] ss:$4 sm:$0x3] %vm9553_vm3, %v1212_v59  ;;  %v1315_v10 = vld [vmem:[#allocation15 + $0x200] sm:$0xff]  ;;  %v1316_v13 = vld [vmem:[#allocation15 + $0x208] sm:$0xff]  ;;  %s1216_s2 = sshra.s32 %s9637_s24, 3 }
 0x4b3   : > { %v1319_v3 = vld [vmem:[#allocation15 + $0x220] sm:$0xff]  ;;  %v1320_v14 = vld [vmem:[#allocation15 + $0x228] sm:$0xff]  ;;  %s1227_s10 = sshra.s32 %s9641_s26, 3  ;;  %s1239_s6 = sshra.s32 %s9645_s28, 3 }
 0x4b4   : > { %v7694_v17 = vcombine.high %v1315_v10, %v1319_v3  ;;  %v7696_v18 = vcombine.high %v1316_v13, %v1320_v14  ;;  %v1323_v20 = vld [vmem:[#allocation15 + $0x240] sm:$0xff]  ;;  %v1324_v22 = vld [vmem:[#allocation15 + $0x248] sm:$0xff]  ;;  %v7693_v25 = vcombine.low %v1315_v10, %v1319_v3  ;;  %v7695_v26 = vcombine.low %v1316_v13, %v1320_v14  ;;  %s1219_s30 = sand.u32 7, %s9637_s24  ;;  %s8325_s9 = sshll.u32 %s1216_s2, 4 }
 0x4b5   : > { %2075 = vmatpush1.bf16.msra.mxu0 %v7661_v43  ;;  %2116 = vmatpush1.bf16.msra.mxu1 %v7663_v44  ;;  %v1327_v6 = vld [vmem:[#allocation15 + $0x260] sm:$0xff]  ;;  %v1328_v23 = vld [vmem:[#allocation15 + $0x268] sm:$0xff]  ;;  %s1230_s17 = sand.u32 7, %s9641_s26  ;;  %s8326_s21 = sshll.u32 %s1227_s10, 4 }
 0x4b6   : > { %2076 = vmatprep.subr.bf16.mxu0 %v7670_v45  ;;  %2117 = vmatprep.subr.bf16.mxu1 %v7672_v46  ;;  %v7702_v27 = vcombine.high %v1323_v20, %v1327_v6  ;;  %v7704_v29 = vcombine.high %v1324_v22, %v1328_v23  ;;  %v1331_v30 = vld [vmem:[#allocation15 + $0x280] sm:$0xff]  ;;  %v1332_v32 = vld [vmem:[#allocation15 + $0x288] sm:$0xff]  ;;  %v7701_v34 = vcombine.low %v1323_v20, %v1327_v6  ;;  %s1242_s25 = sand.u32 7, %s9645_s28  ;;  %s8327_s29 = sshll.u32 %s1239_s6, 4 }
 0x4b7   : > { %v1335_v31 = vld [vmem:[#allocation15 + $0x2a0] sm:$0xff]  ;;  %v1336_v33 = vld [vmem:[#allocation15 + $0x2a8] sm:$0xff]  ;;  %v7703_v36 = vcombine.low %v1324_v22, %v1328_v23  ;;  %s1222_s3 = sadd.s32 %s8325_s9, %s1219_s30  ;;  %s1233_s8 = sadd.s32 %s8326_s21, %s1230_s17 }
 0x4b8   : > { %v7710_v38 = vcombine.high %v1331_v30, %v1335_v31  ;;  %v7712_v39 = vcombine.high %v1332_v32, %v1336_v33  ;;  %v1339_v40 = vld [vmem:[#allocation15 + $0x2c0] sm:$0xff]  ;;  %v1340_v42 = vld [vmem:[#allocation15 + $0x2c8] sm:$0xff]  ;;  %v7709_v44 = vcombine.low %v1331_v30, %v1335_v31  ;;  %v7711_v45 = vcombine.low %v1332_v32, %v1336_v33  ;;  %v1258_v30 = vld [vmem:[#allocation15 + $0x38] sm:$0xff]  ;;  %s1245_s27 = sadd.s32 %s8327_s29, %s1242_s25  ;;  %s1223_s4 = scalar_lea.vmem [#allocation2], %s1222_s3 }
 0x4b9   : > { %2077 = vmatpush1.bf16.msra.mxu0 %v7669_v51  ;;  %2118 = vmatpush1.bf16.msra.mxu1 %v7671_v52  ;;  %v9628_v21 = vld [vmem:[#allocation4] sm:$0x77]  ;;  %v1343_v41 = vld [vmem:[#allocation15 + $0x2e0] sm:$0xff]  ;;  %s1234_s1 = scalar_lea.vmem [#allocation2], %s1233_s8  ;;  %s1246_s14 = scalar_lea.vmem [#allocation2], %s1245_s27 }
 0x4ba   : > { %2078 = vmatprep.subr.bf16.mxu0 %v7678_v53  ;;  %2119 = vmatprep.subr.bf16.mxu1 %v7680_v57  ;;  %v1380_v24 = vcombine.high %v9628_v21, %v9628_v21  ;;  %v1344_v43 = vld [vmem:[#allocation15 + $0x2e8] sm:$0xff]  ;;  %v7718_v46 = vcombine.high %v1339_v40, %v1343_v41  ;;  %v1347_v48 = vld [vmem:[#allocation15 + $0x300] sm:$0xff]  ;;  %v7717_v52 = vcombine.low %v1339_v40, %v1343_v41  ;;  %v1262_v40 = vld [vmem:[#allocation15 + $0x58] sm:$0xff]  ;;  %s12340_s16 = sld [smem:[#allocation36_spill]]  ;;  %s12438_s19 = sld [smem:[#allocation37_spill]] }
 0x4bb   : > { %v7720_v47 = vcombine.high %v1340_v42, %v1344_v43  ;;  %v1351_v49 = vld [vmem:[#allocation15 + $0x320] sm:$0xff]  ;;  %v1348_v50 = vld [vmem:[#allocation15 + $0x308] sm:$0xff]  ;;  %v7719_v53 = vcombine.low %v1340_v42, %v1344_v43  ;;  %v1266_v41 = vld [vmem:[#allocation15 + $0x78] sm:$0xff]  ;;  %s10611_s0 = sld [smem:[#allocation10 + %s9115_s13]]  ;;  %s6859_s29 = sshra.s32 %s9115_s13, 1 }
 0x4bc   : > { %v9632_v28 = vpack.c.bf16 %v1380_v24, %v1380_v24  ;;  %v1352_v51 = vld [vmem:[#allocation15 + $0x328] sm:$0xff]  ;;  %v7726_v54 = vcombine.high %v1347_v48, %v1351_v49  ;;  %v1355_v56 = vld [vmem:[#allocation15 + $0x340] sm:$0xff]  ;;  %v7725_v61 = vcombine.low %v1347_v48, %v1351_v49  ;;  %v7644_v48 = vcombine.high %v1262_v40, %v1266_v41  ;;  %s10817_s5 = sld [smem:[#allocation12 + %s9115_s13]]  ;;  %s6862_s3 = sand.u32 1, %s9115_s13 }
 0x4bd   : > { %2079 = vmatpush1.bf16.msra.mxu0 %v7677_v63  ;;  %2120 = vmatpush1.bf16.msra.mxu1 %v7679_v0  ;;  %v7728_v55 = vcombine.high %v1348_v50, %v1352_v51  ;;  %v1359_v57 = vld [vmem:[#allocation15 + $0x360] sm:$0xff]  ;;  %v1356_v58 = vld [vmem:[#allocation15 + $0x348] sm:$0xff]  ;;  %v7727_v62 = vcombine.low %v1348_v50, %v1352_v51  ;;  %v1270_v50 = vld [vmem:[#allocation15 + $0x98] sm:$0xff]  ;;  %s12816_s23 = sld [smem:[#allocation38_spill]]  ;;  %s12823_s18 = sld [smem:[#allocation39_spill]] }
 0x4be   : > { %2080 = vmatprep.subr.bf16.mxu0 %v7686_v2  ;;  %2121 = vmatprep.subr.bf16.mxu1 %v7688_v9  ;;  %v1360_v59 = vld [vmem:[#allocation15 + $0x368] sm:$0xff]  ;;  %v7734_v63 = vcombine.high %v1355_v56, %v1359_v57  ;;  %v1363_v2 = vld [vmem:[#allocation15 + $0x380] sm:$0xff]  ;;  %v7733_v13 = vcombine.low %v1355_v56, %v1359_v57  ;;  %v1274_v51 = vld [vmem:[#allocation15 + $0xb8] sm:$0xff]  ;;  %s12826_s22 = sld [smem:[#allocation34_spill]]  ;;  %s12834_s26 = sld [smem:[#allocation35_spill]] }
 0x4bf   : > { %2098 = vmatprep.mubr.bf16.mxu0 %v9632_v28  ;;  %2139 = vmatprep.mubr.bf16.mxu1 %v9632_v28  ;;  %v7736_v0 = vcombine.high %v1356_v58, %v1360_v59  ;;  %v1367_v9 = vld [vmem:[#allocation15 + $0x3a0] sm:$0xff]  ;;  %v1364_v10 = vld [vmem:[#allocation15 + $0x388] sm:$0xff]  ;;  %v7735_v14 = vcombine.low %v1356_v58, %v1360_v59  ;;  %v1281_v56 = vld [vmem:[#allocation15 + $0xf0] sm:$0xff]  ;;  %v7652_v58 = vcombine.high %v1270_v50, %v1274_v51  ;;  %s6292_s24 = sld [smem:[#allocation9 + %s9115_s13]]  ;;  %s8328_s8 = sshll.u32 %s6859_s29, 2 }
 0x4c0   : > { %v1368_v3 = vld [vmem:[#allocation15 + $0x3a8] sm:$0xff]  ;;  %v7741_v22 = vcombine.low %v1363_v2, %v1367_v9  ;;  %v1247_v49 = vld [vmem:[%s1246_s14] ss:$8 sm:$0x3]  ;;  %s12835_s10 = sld [smem:[#allocation40_spill]]  ;;  %s12836_s6 = sld [smem:[#allocation33_spill]] }
 0x4c1   : > { %2081 = vmatpush1.bf16.msra.mxu0 %v7685_v15  ;;  %2122 = vmatpush1.bf16.msra.mxu1 %v7687_v16  ;;  %v7742_v15 = vcombine.high %v1363_v2, %v1367_v9  ;;  %v7744_v16 = vcombine.high %v1364_v10, %v1368_v3  ;;  %v1372_v20 = vld [vmem:[#allocation15 + $0x3c8] sm:$0xff]  ;;  %v7743_v23 = vcombine.low %v1364_v10, %v1368_v3  ;;  %v1278_v57 = vld [vmem:[#allocation15 + $0xd8] sm:$0xff]  ;;  %v1289_v2 = vld [vmem:[#allocation15 + $0x130] sm:$0xff]  ;;  %p5090_p12 = scmp.gt.s32.totalorder %s10611_s0, 0  ;;  %p5598_p0 = scmp.gt.s32.totalorder %s10611_s0, 1 }
 0x4c2   : > { %2082 = vmatprep.subr.bf16.mxu0 %v7694_v17  ;;  %2123 = vmatprep.subr.bf16.mxu1 %v7696_v18  ;;  %v1371_v17 = vld [vmem:[#allocation15 + $0x3c0] sm:$0xff]  ;;  %v1376_v6 = vld [vmem:[#allocation15 + $0x3e8] sm:$0xff]  ;;  %1249 = vst.msk [vmem:[#allocation5 + $0x2] ss:$4 sm:$0x3] %vm9553_vm3, %v1247_v49  ;;  %v1282_v59 = vld [vmem:[#allocation15 + $0xf8] sm:$0xff]  ;;  %s6865_s27 = sadd.s32 %s8328_s8, %s6862_s3 }
 0x4c3   : > { %v1375_v18 = vld [vmem:[#allocation15 + $0x3e0] sm:$0xff]  ;;  %v7751_v32 = vcombine.low %v1372_v20, %v1376_v6  ;;  %v7660_v9 = vcombine.high %v1278_v57, %v1282_v59  ;;  %v1286_v10 = vld [vmem:[#allocation15 + $0x118] sm:$0xff]  ;;  %v3291_v1 = vld [vmem:[#allocation18 + $0x288] sm:$0xff]  ;;  %s5139_s20 = scalar_select %p5090_p12, 1, 0 }
 0x4c4   : > { %v7750_v24 = vcombine.high %v1371_v17, %v1375_v18  ;;  %v7749_v31 = vcombine.low %v1371_v17, %v1375_v18  ;;  %v1290_v3 = vld [vmem:[#allocation15 + $0x138] sm:$0xff]  ;;  %v3298_v4 = vld [vmem:[#allocation18 + $0x2c0] sm:$0xff]  ;;  %v3299_v12 = vld [vmem:[#allocation18 + $0x2c8] sm:$0xff]  ;;  %p5146_p13 = scmp.gt.s32.totalorder %s10817_s5, 0  ;;  %p5666_p1 = scmp.gt.s32.totalorder %s10817_s5, 1 }
 0x4c5   : > { %2083 = vmatpush1.bf16.msra.mxu0 %v7693_v25  ;;  %2124 = vmatpush1.bf16.msra.mxu1 %v7695_v26  ;;  %v7752_v25 = vcombine.high %v1372_v20, %v1376_v6  ;;  %v1253_v26 = vld [vmem:[#allocation15 + $0x10] sm:$0xff]  ;;  %v1294_v17 = vld [vmem:[#allocation15 + $0x158] sm:$0xff]  ;;  %v7668_v18 = vcombine.high %v1286_v10, %v1290_v3  ;;  %v3302_v60 = vld [vmem:[#allocation18 + $0x2e0] sm:$0xff]  ;;  %s5653_s11 = scalar_select %p5598_p0, 1, 0 }
 0x4c6   : > { %2084 = vmatprep.subr.bf16.mxu0 %v7702_v27  ;;  %2125 = vmatprep.subr.bf16.mxu1 %v7704_v29  ;;  %v1257_v27 = vld [vmem:[#allocation15 + $0x30] sm:$0xff]  ;;  %v1254_v29 = vld [vmem:[#allocation15 + $0x18] sm:$0xff]  ;;  %v3303_v11 = vld [vmem:[#allocation18 + $0x2e8] sm:$0xff]  ;;  %s5195_s7 = scalar_select %p5146_p13, 1, 0 }
 0x4c7   : > { %v7634_v33 = vcombine.high %v1253_v26, %v1257_v27  ;;  %v7633_v42 = vcombine.low %v1253_v26, %v1257_v27  ;;  %v7635_v43 = vcombine.low %v1254_v29, %v1258_v30  ;;  %v1298_v20 = vld [vmem:[#allocation15 + $0x178] sm:$0xff]  ;;  %v3306_v7 = vld [vmem:[#allocation18 + $0x300] sm:$0xff]  ;;  %v3315_v37 = vld [vmem:[#allocation18 + $0x348] sm:$0xff]  ;;  %s5721_s15 = scalar_select %p5666_p1, 1, 0 }
 0x4c8   : > { %v1302_v26 = vld [vmem:[#allocation15 + $0x198] sm:$0xff]  ;;  %v7676_v27 = vcombine.high %v1294_v17, %v1298_v20  ;;  %v3310_v5 = vld [vmem:[#allocation18 + $0x320] sm:$0xff]  ;;  %v3319_v8 = vld [vmem:[#allocation18 + $0x368] sm:$0xff]  ;;  %p6146_p2 = scmp.gt.s32.totalorder %s10611_s0, 2  ;;  %p6212_p3 = scmp.gt.s32.totalorder %s10817_s5, 2 }
 0x4c9   : > { %2085 = vmatpush1.bf16.msra.mxu0 %v7701_v34  ;;  %2126 = vmatpush1.bf16.msra.mxu1 %v7703_v36  ;;  %v7636_v34 = vcombine.high %v1254_v29, %v1258_v30  ;;  %v1261_v36 = vld [vmem:[#allocation15 + $0x50] sm:$0xff]  ;;  %v1306_v29 = vld [vmem:[#allocation15 + $0x1b8] sm:$0xff]  ;;  %v3322_v35 = vld [vmem:[#allocation18 + $0x380] sm:$0xff]  ;;  %p6293_p4 = scmp.eq.s32.totalorder %s6292_s24, 1  ;;  %s6311_s30 = sld [smem:[#allocation8 + %s9115_s13]] }
 0x4ca   : > { %2086 = vmatprep.subr.bf16.mxu0 %v7710_v38  ;;  %2127 = vmatprep.subr.bf16.mxu1 %v7712_v39  ;;  %v1265_v38 = vld [vmem:[#allocation15 + $0x70] sm:$0xff]  ;;  %v9655_v39 = vpack.c.bf16 %v9628_v21, %v9628_v21  ;;  %v1235_v21 = vld [vmem:[%s1234_s1] ss:$8 sm:$0x3]  ;;  %s6201_s12 = scalar_select %p6146_p2, 1, 0 }
 0x4cb   : > { %1237 = vst.msk [vmem:[#allocation5 + $0x1] ss:$4 sm:$0x3] %vm9553_vm3, %v1235_v21  ;;  %v3326_v19 = vld [vmem:[#allocation18 + $0x3a0] sm:$0xff]  ;;  %s6267_s28 = scalar_select %p6212_p3, 1, 0 }
 0x4cc   : > { %s6295_s2 = scalar_select %p6293_p4, 1, 0 }
 0x4cd   : > { %2087 = vmatpush1.bf16.msra.mxu0 %v7709_v44  ;;  %2128 = vmatpush1.bf16.msra.mxu1 %v7711_v45  ;;  %v7642_v44 = vcombine.high %v1261_v36, %v1265_v38  ;;  %v1269_v45 = vld [vmem:[#allocation15 + $0x90] sm:$0xff]  ;;  %s12837_s9 = sld [smem:[#allocation42_spill]]  ;;  %s12838_s21 = sld [smem:[#allocation41_spill]] }
 0x4ce   : > { %2088 = vmatprep.subr.bf16.mxu0 %v7718_v46  ;;  %2129 = vmatprep.subr.bf16.mxu1 %v7720_v47  ;;  %v1273_v46 = vld [vmem:[#allocation15 + $0xb0] sm:$0xff]  ;;  %v1224_v47 = vld [vmem:[%s1223_s4] ss:$8 sm:$0x3]  ;;  %s12839_s25 = sld [smem:[#allocation43_spill]]  ;;  %s6866_s4 = scalar_lea.vmem [#allocation3], %s6865_s27 }
 0x4cf   : > { %1225 = vst.msk [vmem:[#allocation5] ss:$4 sm:$0x3] %vm9553_vm3, %v1224_v47  ;;  %s6312_s17 = scalar_lea.vmem %s12836_s6, %s6311_s30 }
 0x4d1   : > { %2089 = vmatpush1.bf16.msra.mxu0 %v7717_v52  ;;  %2130 = vmatpush1.bf16.msra.mxu1 %v7719_v53  ;;  %v7641_v52 = vcombine.low %v1261_v36, %v1265_v38  ;;  %v7643_v53 = vcombine.low %v1262_v40, %v1266_v41  ;;  %v1310_v36 = vld [vmem:[#allocation15 + $0x1d8] sm:$0xff]  ;;  %v7684_v38 = vcombine.high %v1302_v26, %v1306_v29 }
 0x4d2   : > { %2090 = vmatprep.subr.bf16.mxu0 %v7726_v54  ;;  %2131 = vmatprep.subr.bf16.mxu1 %v7728_v55  ;;  %v7650_v54 = vcombine.high %v1269_v45, %v1273_v46  ;;  %v1277_v55 = vld [vmem:[#allocation15 + $0xd0] sm:$0xff]  ;;  %v1314_v40 = vld [vmem:[#allocation15 + $0x1f8] sm:$0xff] }
 0x4d3   : > { %v7692_v47 = vcombine.high %v1310_v36, %v1314_v40  ;;  %v7691_v49 = vcombine.low %v1310_v36, %v1314_v40 }
 0x4d5   : > { %2091 = vmatpush1.bf16.msra.mxu0 %v7725_v61  ;;  %2132 = vmatpush1.bf16.msra.mxu1 %v7727_v62  ;;  %v7649_v61 = vcombine.low %v1269_v45, %v1273_v46  ;;  %v7651_v62 = vcombine.low %v1270_v50, %v1274_v51  ;;  %v1321_v45 = vld [vmem:[#allocation15 + $0x230] sm:$0xff]  ;;  %v1318_v46 = vld [vmem:[#allocation15 + $0x218] sm:$0xff] }
 0x4d6   : > { %2092 = vmatprep.subr.bf16.mxu0 %v7734_v63  ;;  %2133 = vmatprep.subr.bf16.mxu1 %v7736_v0  ;;  %v7658_v63 = vcombine.high %v1277_v55, %v1281_v56  ;;  %v1285_v0 = vld [vmem:[#allocation15 + $0x110] sm:$0xff] }
 0x4d7   : > { %v7665_v6 = vcombine.low %v1285_v0, %v1289_v2  ;;  %v1325_v51 = vld [vmem:[#allocation15 + $0x250] sm:$0xff] }
 0x4d9   : > { %2093 = vmatpush1.bf16.msra.mxu0 %v7733_v13  ;;  %2134 = vmatpush1.bf16.msra.mxu1 %v7735_v14  ;;  %v7657_v13 = vcombine.low %v1277_v55, %v1281_v56  ;;  %v7659_v14 = vcombine.low %v1278_v57, %v1282_v59  ;;  %v1330_v55 = vld [vmem:[#allocation15 + $0x278] sm:$0xff]  ;;  %v1333_v59 = vld [vmem:[#allocation15 + $0x290] sm:$0xff] }
 0x4da   : > { %2094 = vmatprep.subr.bf16.mxu0 %v7742_v15  ;;  %2135 = vmatprep.subr.bf16.mxu1 %v7744_v16  ;;  %v7666_v15 = vcombine.high %v1285_v0, %v1289_v2  ;;  %v1293_v16 = vld [vmem:[#allocation15 + $0x150] sm:$0xff]  ;;  %v1338_v0 = vld [vmem:[#allocation15 + $0x2b8] sm:$0xff] }
 0x4dd   : > { %2095 = vmatpush1.bf16.msra.mxu0 %v7741_v22  ;;  %2136 = vmatpush1.bf16.msra.mxu1 %v7743_v23  ;;  %v7667_v22 = vcombine.low %v1286_v10, %v1290_v3  ;;  %v1341_v3 = vld [vmem:[#allocation15 + $0x2d0] sm:$0xff] }
 0x4de   : > { %2096 = vmatprep.subr.bf16.mxu0 %v7750_v24  ;;  %2137 = vmatprep.subr.bf16.mxu1 %v7752_v25  ;;  %v1301_v24 = vld [vmem:[#allocation15 + $0x190] sm:$0xff] }
 0x4df   : > { %v1305_v25 = vld [vmem:[#allocation15 + $0x1b0] sm:$0xff] }
 0x4e0   : > { %v7681_v41 = vcombine.low %v1301_v24, %v1305_v25 }
 0x4e1   : > { %2097 = vmatpush1.bf16.msra.mxu0 %v7749_v31  ;;  %2138 = vmatpush1.bf16.msra.mxu1 %v7751_v32  ;;  %v7675_v31 = vcombine.low %v1294_v17, %v1298_v20  ;;  %v7682_v32 = vcombine.high %v1301_v24, %v1305_v25  ;;  %v1349_v20 = vld [vmem:[#allocation15 + $0x310] sm:$0xff]  ;;  %v1354_v24 = vld [vmem:[#allocation15 + $0x338] sm:$0xff] }
 0x4e2   : > { %2148 = vmatprep.subr.bf16.mxu0 %v7634_v33  ;;  %2189 = vmatprep.subr.bf16.mxu1 %v7636_v34  ;;  %v1309_v33 = vld [vmem:[#allocation15 + $0x1d0] sm:$0xff] }
 0x4e3   : > { %v1313_v34 = vld [vmem:[#allocation15 + $0x1f0] sm:$0xff] }
 0x4e4   : > { %2099 = vmatmul.mubr.bf16.vlgmr.msra.gmra.mrb[0].mxu0 %v9655_v39  ;;  %2140 = vmatmul.mubr.bf16.vlgmr.msra.gmra.mrb[0].mxu1 %v9655_v39  ;;  %v7689_v21 = vcombine.low %v1309_v33, %v1313_v34 }
 0x4e5   : > { %2149 = vmatpush1.bf16.msra.mxu0 %v7633_v42  ;;  %2190 = vmatpush1.bf16.msra.mxu1 %v7635_v43  ;;  %v7683_v42 = vcombine.low %v1302_v26, %v1306_v29  ;;  %v7690_v43 = vcombine.high %v1309_v33, %v1313_v34  ;;  %v1362_v33 = vld [vmem:[#allocation15 + $0x378] sm:$0xff] }
 0x4e6   : > { %2150 = vmatprep.subr.bf16.mxu0 %v7642_v44  ;;  %2191 = vmatprep.subr.bf16.mxu1 %v7644_v48  ;;  %v1317_v44 = vld [vmem:[#allocation15 + $0x210] sm:$0xff]  ;;  %v1322_v48 = vld [vmem:[#allocation15 + $0x238] sm:$0xff] }
 0x4e7   : > { %2180 = vmatprep.mubr.bf16.mxu0 %v9632_v28  ;;  %2221 = vmatprep.mubr.bf16.mxu1 %v9632_v28  ;;  %v1297_v28 = vld [vmem:[#allocation15 + $0x170] sm:$0xff]  ;;  %v7698_v50 = vcombine.high %v1317_v44, %v1321_v45  ;;  %v7697_v56 = vcombine.low %v1317_v44, %v1321_v45  ;;  %v7699_v57 = vcombine.low %v1318_v46, %v1322_v48  ;;  %v1370_v44 = vld [vmem:[#allocation15 + $0x3b8] sm:$0xff] }
 0x4e8   : > { %v7674_v23 = vcombine.high %v1293_v16, %v1297_v28  ;;  %v7673_v30 = vcombine.low %v1293_v16, %v1297_v28  ;;  %v1346_v16 = vld [vmem:[#allocation15 + $0x2f8] sm:$0xff] }
 0x4e9   : > { %2151 = vmatpush1.bf16.msra.mxu0 %v7641_v52  ;;  %2192 = vmatpush1.bf16.msra.mxu1 %v7643_v53  ;;  %v1329_v52 = vld [vmem:[#allocation15 + $0x270] sm:$0xff]  ;;  %v1326_v53 = vld [vmem:[#allocation15 + $0x258] sm:$0xff] }
 0x4ea   : > { %2152 = vmatprep.subr.bf16.mxu0 %v7650_v54  ;;  %2193 = vmatprep.subr.bf16.mxu1 %v7652_v58  ;;  %v7700_v54 = vcombine.high %v1318_v46, %v1322_v48  ;;  %v7706_v58 = vcombine.high %v1325_v51, %v1329_v52  ;;  %v7705_v2 = vcombine.low %v1325_v51, %v1329_v52  ;;  %v1378_v51 = vld [vmem:[#allocation15 + $0x3f8] sm:$0xff] }
 0x4ed   : > { %2153 = vmatpush1.bf16.msra.mxu0 %v7649_v61  ;;  %2194 = vmatpush1.bf16.msra.mxu1 %v7651_v62  ;;  %v1337_v61 = vld [vmem:[#allocation15 + $0x2b0] sm:$0xff]  ;;  %v1334_v62 = vld [vmem:[#allocation15 + $0x298] sm:$0xff] }
 0x4ee   : > { %2154 = vmatprep.subr.bf16.mxu0 %v7658_v63  ;;  %2195 = vmatprep.subr.bf16.mxu1 %v7660_v9  ;;  %v7708_v63 = vcombine.high %v1326_v53, %v1330_v55  ;;  %v7707_v9 = vcombine.low %v1326_v53, %v1330_v55  ;;  %v7714_v10 = vcombine.high %v1333_v59, %v1337_v61 }
 0x4ef   : > { %v7713_v28 = vcombine.low %v1333_v59, %v1337_v61  ;;  %v7715_v17 = vcombine.low %v1334_v62, %v1338_v0  ;;  %v2236_v59 = vld [vmem:[#allocation20 + $0x28] sm:$0xff]  ;;  %v9667_v61 = vld [vmem:[#allocation5] sm:$0x77] }
 0x4f1   : > { %2155 = vmatpush1.bf16.msra.mxu0 %v7657_v13  ;;  %2196 = vmatpush1.bf16.msra.mxu1 %v7659_v14  ;;  %v1345_v13 = vld [vmem:[#allocation15 + $0x2f0] sm:$0xff]  ;;  %v1342_v14 = vld [vmem:[#allocation15 + $0x2d8] sm:$0xff] }
 0x4f2   : > { %2156 = vmatprep.subr.bf16.mxu0 %v7666_v15  ;;  %2197 = vmatprep.subr.bf16.mxu1 %v7668_v18  ;;  %v7716_v15 = vcombine.high %v1334_v62, %v1338_v0  ;;  %v7722_v18 = vcombine.high %v1341_v3, %v1345_v13  ;;  %v7721_v25 = vcombine.low %v1341_v3, %v1345_v13  ;;  %v2240_v13 = vld [vmem:[#allocation20 + $0x48] sm:$0xff] }
 0x4f3   : > { %v7723_v26 = vcombine.low %v1342_v14, %v1346_v16  ;;  %v2360_v3 = vcombine.high %v9667_v61, %v9667_v61 }
 0x4f5   : > { %2157 = vmatpush1.bf16.msra.mxu0 %v7665_v6  ;;  %2198 = vmatpush1.bf16.msra.mxu1 %v7667_v22  ;;  %v7724_v6 = vcombine.high %v1342_v14, %v1346_v16  ;;  %v1353_v22 = vld [vmem:[#allocation15 + $0x330] sm:$0xff]  ;;  %v2244_v14 = vld [vmem:[#allocation20 + $0x68] sm:$0xff] }
 0x4f6   : > { %2158 = vmatprep.subr.bf16.mxu0 %v7674_v23  ;;  %2199 = vmatprep.subr.bf16.mxu1 %v7676_v27  ;;  %v1350_v23 = vld [vmem:[#allocation15 + $0x318] sm:$0xff]  ;;  %v7730_v27 = vcombine.high %v1349_v20, %v1353_v22  ;;  %v7729_v34 = vcombine.low %v1349_v20, %v1353_v22  ;;  %v2251_v20 = vld [vmem:[#allocation20 + $0xa0] sm:$0xff]  ;;  %v2248_v22 = vld [vmem:[#allocation20 + $0x88] sm:$0xff] }
 0x4f7   : > { %v7732_v29 = vcombine.high %v1350_v23, %v1354_v24  ;;  %v7731_v36 = vcombine.low %v1350_v23, %v1354_v24  ;;  %v2252_v23 = vld [vmem:[#allocation20 + $0xa8] sm:$0xff] }
 0x4f9   : > { %2159 = vmatpush1.bf16.msra.mxu0 %v7673_v30  ;;  %2200 = vmatpush1.bf16.msra.mxu1 %v7675_v31  ;;  %v1357_v30 = vld [vmem:[#allocation15 + $0x350] sm:$0xff] }
 0x4fa   : > { %2160 = vmatprep.subr.bf16.mxu0 %v7682_v32  ;;  %2201 = vmatprep.subr.bf16.mxu1 %v7684_v38  ;;  %v1361_v31 = vld [vmem:[#allocation15 + $0x370] sm:$0xff]  ;;  %v1358_v32 = vld [vmem:[#allocation15 + $0x358] sm:$0xff] }
 0x4fb   : > { %v7738_v38 = vcombine.high %v1357_v30, %v1361_v31  ;;  %v7740_v40 = vcombine.high %v1358_v32, %v1362_v33  ;;  %v7737_v45 = vcombine.low %v1357_v30, %v1361_v31  ;;  %v7739_v46 = vcombine.low %v1358_v32, %v1362_v33  ;;  %v2259_v30 = vld [vmem:[#allocation20 + $0xe0] sm:$0xff]  ;;  %v2256_v31 = vld [vmem:[#allocation20 + $0xc8] sm:$0xff] }
 0x4fc   : > { %v2260_v32 = vld [vmem:[#allocation20 + $0xe8] sm:$0xff] }
 0x4fd   : > { %2161 = vmatpush1.bf16.msra.mxu0 %v7681_v41  ;;  %2202 = vmatpush1.bf16.msra.mxu1 %v7683_v42  ;;  %v1365_v41 = vld [vmem:[#allocation15 + $0x390] sm:$0xff] }
 0x4fe   : > { %2162 = vmatprep.subr.bf16.mxu0 %v7690_v43  ;;  %2203 = vmatprep.subr.bf16.mxu1 %v7692_v47  ;;  %v1369_v42 = vld [vmem:[#allocation15 + $0x3b0] sm:$0xff]  ;;  %v1366_v43 = vld [vmem:[#allocation15 + $0x398] sm:$0xff] }
 0x4ff   : > { %v7746_v47 = vcombine.high %v1365_v41, %v1369_v42  ;;  %v7748_v48 = vcombine.high %v1366_v43, %v1370_v44  ;;  %v7745_v52 = vcombine.low %v1365_v41, %v1369_v42  ;;  %v7747_v53 = vcombine.low %v1366_v43, %v1370_v44  ;;  %v2264_v41 = vld [vmem:[#allocation20 + $0x108] sm:$0xff] }
 0x500   : > { %v2268_v42 = vld [vmem:[#allocation20 + $0x128] sm:$0xff]  ;;  %v7783_v44 = vcombine.low %v2256_v31, %v2260_v32 }
 0x501   : > { %2163 = vmatpush1.bf16.msra.mxu0 %v7689_v21  ;;  %2204 = vmatpush1.bf16.msra.mxu1 %v7691_v49  ;;  %v1373_v21 = vld [vmem:[#allocation15 + $0x3d0] sm:$0xff] }
 0x502   : > { %2164 = vmatprep.subr.bf16.mxu0 %v7698_v50  ;;  %2205 = vmatprep.subr.bf16.mxu1 %v7700_v54  ;;  %v1377_v49 = vld [vmem:[#allocation15 + $0x3f0] sm:$0xff]  ;;  %v1374_v50 = vld [vmem:[#allocation15 + $0x3d8] sm:$0xff] }
 0x503   : > { %v7754_v54 = vcombine.high %v1373_v21, %v1377_v49  ;;  %v7756_v55 = vcombine.high %v1374_v50, %v1378_v51  ;;  %v7753_v62 = vcombine.low %v1373_v21, %v1377_v49  ;;  %v2272_v21 = vld [vmem:[#allocation20 + $0x148] sm:$0xff] }
 0x504   : > { %v2276_v49 = vld [vmem:[#allocation20 + $0x168] sm:$0xff] }
 0x505   : > { %2165 = vmatpush1.bf16.msra.mxu0 %v7697_v56  ;;  %2206 = vmatpush1.bf16.msra.mxu1 %v7699_v57  ;;  %v2231_v56 = vld [vmem:[#allocation20] sm:$0xff] }
 0x506   : > { %2166 = vmatprep.subr.bf16.mxu0 %v7706_v58  ;;  %2207 = vmatprep.subr.bf16.mxu1 %v7708_v63  ;;  %v2235_v57 = vld [vmem:[#allocation20 + $0x20] sm:$0xff]  ;;  %v2232_v58 = vld [vmem:[#allocation20 + $0x8] sm:$0xff]  ;;  %v7755_v63 = vcombine.low %v1374_v50, %v1378_v51  ;;  %v7791_v51 = vcombine.low %v2264_v41, %v2268_v42 }
 0x507   : > { %v7758_v0 = vcombine.high %v2231_v56, %v2235_v57  ;;  %v7759_v16 = vcombine.low %v2232_v58, %v2236_v59 }
 0x509   : > { %2167 = vmatpush1.bf16.msra.mxu0 %v7705_v2  ;;  %2208 = vmatpush1.bf16.msra.mxu1 %v7707_v9  ;;  %v7760_v2 = vcombine.high %v2232_v58, %v2236_v59  ;;  %v2239_v9 = vld [vmem:[#allocation20 + $0x40] sm:$0xff]  ;;  %v7799_v59 = vcombine.low %v2272_v21, %v2276_v49 }
 0x50a   : > { %2168 = vmatprep.subr.bf16.mxu0 %v7714_v10  ;;  %2209 = vmatprep.subr.bf16.mxu1 %v7716_v15  ;;  %v2243_v10 = vld [vmem:[#allocation20 + $0x60] sm:$0xff]  ;;  %v7757_v15 = vcombine.low %v2231_v56, %v2235_v57  ;;  %v2280_v56 = vld [vmem:[#allocation20 + $0x188] sm:$0xff] }
 0x50b   : > { %v7765_v24 = vcombine.low %v2239_v9, %v2243_v10  ;;  %v2284_v57 = vld [vmem:[#allocation20 + $0x1a8] sm:$0xff] }
 0x50d   : > { %2169 = vmatpush1.bf16.msra.mxu0 %v7713_v28  ;;  %2210 = vmatpush1.bf16.msra.mxu1 %v7715_v17  ;;  %v7766_v28 = vcombine.high %v2239_v9, %v2243_v10  ;;  %v7768_v17 = vcombine.high %v2240_v13, %v2244_v14  ;;  %v2288_v9 = vld [vmem:[#allocation20 + $0x1c8] sm:$0xff] }
 0x50e   : > { %2170 = vmatprep.subr.bf16.mxu0 %v7722_v18  ;;  %2211 = vmatprep.subr.bf16.mxu1 %v7724_v6  ;;  %v2247_v18 = vld [vmem:[#allocation20 + $0x80] sm:$0xff]  ;;  %v9671_v6 = vpack.c.bf16 %v2360_v3, %v2360_v3  ;;  %v2292_v10 = vld [vmem:[#allocation20 + $0x1e8] sm:$0xff] }
 0x50f   : > { %v7773_v33 = vcombine.low %v2247_v18, %v2251_v20 }
 0x511   : > { %2171 = vmatpush1.bf16.msra.mxu0 %v7721_v25  ;;  %2212 = vmatpush1.bf16.msra.mxu1 %v7723_v26  ;;  %v7767_v25 = vcombine.low %v2240_v13, %v2244_v14  ;;  %v7774_v26 = vcombine.high %v2247_v18, %v2251_v20  ;;  %v7807_v13 = vcombine.low %v2280_v56, %v2284_v57  ;;  %v2300_v18 = vld [vmem:[#allocation20 + $0x228] sm:$0xff] }
 0x512   : > { %2172 = vmatprep.subr.bf16.mxu0 %v7730_v27  ;;  %2213 = vmatprep.subr.bf16.mxu1 %v7732_v29  ;;  %v7776_v27 = vcombine.high %v2248_v22, %v2252_v23  ;;  %v2255_v29 = vld [vmem:[#allocation20 + $0xc0] sm:$0xff] }
 0x513   : > { %v7781_v43 = vcombine.low %v2255_v29, %v2259_v30 }
 0x515   : > { %2173 = vmatpush1.bf16.msra.mxu0 %v7729_v34  ;;  %2214 = vmatpush1.bf16.msra.mxu1 %v7731_v36  ;;  %v7782_v34 = vcombine.high %v2255_v29, %v2259_v30  ;;  %v7784_v36 = vcombine.high %v2256_v31, %v2260_v32  ;;  %v2308_v29 = vld [vmem:[#allocation20 + $0x268] sm:$0xff] }
 0x516   : > { %2174 = vmatprep.subr.bf16.mxu0 %v7738_v38  ;;  %2215 = vmatprep.subr.bf16.mxu1 %v7740_v40  ;;  %v2263_v38 = vld [vmem:[#allocation20 + $0x100] sm:$0xff] }
 0x517   : > { %v2267_v40 = vld [vmem:[#allocation20 + $0x120] sm:$0xff] }
 0x518   : > { %v7789_v50 = vcombine.low %v2263_v38, %v2267_v40 }
 0x519   : > { %2175 = vmatpush1.bf16.msra.mxu0 %v7737_v45  ;;  %2216 = vmatpush1.bf16.msra.mxu1 %v7739_v46  ;;  %v7790_v45 = vcombine.high %v2263_v38, %v2267_v40  ;;  %v7792_v46 = vcombine.high %v2264_v41, %v2268_v42  ;;  %v2316_v38 = vld [vmem:[#allocation20 + $0x2a8] sm:$0xff] }
 0x51a   : > { %2176 = vmatprep.subr.bf16.mxu0 %v7746_v47  ;;  %2217 = vmatprep.subr.bf16.mxu1 %v7748_v48  ;;  %v2271_v47 = vld [vmem:[#allocation20 + $0x140] sm:$0xff] }
 0x51b   : > { %v2275_v48 = vld [vmem:[#allocation20 + $0x160] sm:$0xff] }
 0x51c   : > { %v7797_v58 = vcombine.low %v2271_v47, %v2275_v48 }
 0x51d   : > { %2177 = vmatpush1.bf16.msra.mxu0 %v7745_v52  ;;  %2218 = vmatpush1.bf16.msra.mxu1 %v7747_v53  ;;  %v7798_v52 = vcombine.high %v2271_v47, %v2275_v48  ;;  %v7800_v53 = vcombine.high %v2272_v21, %v2276_v49  ;;  %v2324_v47 = vld [vmem:[#allocation20 + $0x2e8] sm:$0xff] }
 0x51e   : > { %2178 = vmatprep.subr.bf16.mxu0 %v7754_v54  ;;  %2219 = vmatprep.subr.bf16.mxu1 %v7756_v55  ;;  %v2279_v54 = vld [vmem:[#allocation20 + $0x180] sm:$0xff] }
 0x51f   : > { %v2283_v55 = vld [vmem:[#allocation20 + $0x1a0] sm:$0xff] }
 0x520   : > { %v7805_v3 = vcombine.low %v2279_v54, %v2283_v55 }
 0x521   : > { %2179 = vmatpush1.bf16.msra.mxu0 %v7753_v62  ;;  %2220 = vmatpush1.bf16.msra.mxu1 %v7755_v63  ;;  %v7806_v62 = vcombine.high %v2279_v54, %v2283_v55  ;;  %v7808_v63 = vcombine.high %v2280_v56, %v2284_v57  ;;  %v2332_v54 = vld [vmem:[#allocation20 + $0x328] sm:$0xff] }
 0x522   : > { %3046 = vmatprep.subr.bf16.mxu0 %v7758_v0  ;;  %3087 = vmatprep.subr.bf16.mxu1 %v7760_v2  ;;  %v2287_v0 = vld [vmem:[#allocation20 + $0x1c0] sm:$0xff] }
 0x523   : > { %v2291_v2 = vld [vmem:[#allocation20 + $0x1e0] sm:$0xff] }
 0x524   : > { %2181 = vmatmul.mubr.bf16.vlgmr.msra.gmra.mrb[4].mxu0 %v9655_v39  ;;  %2222 = vmatmul.mubr.bf16.vlgmr.msra.gmra.mrb[4].mxu1 %v9655_v39  ;;  %v7775_v39 = vcombine.low %v2248_v22, %v2252_v23  ;;  %v7814_v14 = vcombine.high %v2287_v0, %v2291_v2  ;;  %v7813_v20 = vcombine.low %v2287_v0, %v2291_v2  ;;  %v2340_v0 = vld [vmem:[#allocation20 + $0x368] sm:$0xff] }
 0x525   : > { %3047 = vmatpush1.bf16.msra.mxu0 %v7757_v15  ;;  %3088 = vmatpush1.bf16.msra.mxu1 %v7759_v16  ;;  %v7816_v15 = vcombine.high %v2288_v9, %v2292_v10  ;;  %v2295_v16 = vld [vmem:[#allocation20 + $0x200] sm:$0xff]  ;;  %v7815_v22 = vcombine.low %v2288_v9, %v2292_v10 }
 0x526   : > { %3048 = vmatprep.subr.bf16.mxu0 %v7766_v28  ;;  %3089 = vmatprep.subr.bf16.mxu1 %v7768_v17  ;;  %v2299_v28 = vld [vmem:[#allocation20 + $0x220] sm:$0xff]  ;;  %v2296_v17 = vld [vmem:[#allocation20 + $0x208] sm:$0xff] }
 0x527   : > { %3078 = vmatprep.mubr.bf16.mxu0 %v9671_v6  ;;  %3119 = vmatprep.mubr.bf16.mxu1 %v9671_v6  ;;  %v7822_v23 = vcombine.high %v2295_v16, %v2299_v28  ;;  %v7821_v30 = vcombine.low %v2295_v16, %v2299_v28  ;;  %v7823_v31 = vcombine.low %v2296_v17, %v2300_v18  ;;  %v2348_v16 = vld [vmem:[#allocation20 + $0x3a8] sm:$0xff] }
 0x529   : > { %3049 = vmatpush1.bf16.msra.mxu0 %v7765_v24  ;;  %3090 = vmatpush1.bf16.msra.mxu1 %v7767_v25  ;;  %v7824_v24 = vcombine.high %v2296_v17, %v2300_v18  ;;  %v2303_v25 = vld [vmem:[#allocation20 + $0x240] sm:$0xff] }
 0x52a   : > { %3050 = vmatprep.subr.bf16.mxu0 %v7774_v26  ;;  %3091 = vmatprep.subr.bf16.mxu1 %v7776_v27  ;;  %v2307_v26 = vld [vmem:[#allocation20 + $0x260] sm:$0xff]  ;;  %v2304_v27 = vld [vmem:[#allocation20 + $0x248] sm:$0xff] }
 0x52b   : > { %v7830_v32 = vcombine.high %v2303_v25, %v2307_v26  ;;  %v7829_v40 = vcombine.low %v2303_v25, %v2307_v26  ;;  %v7831_v41 = vcombine.low %v2304_v27, %v2308_v29  ;;  %v2356_v25 = vld [vmem:[#allocation20 + $0x3e8] sm:$0xff] }
 0x52d   : > { %3051 = vmatpush1.bf16.msra.mxu0 %v7773_v33  ;;  %3092 = vmatpush1.bf16.msra.mxu1 %v7775_v39  ;;  %v7832_v33 = vcombine.high %v2304_v27, %v2308_v29  ;;  %v2311_v39 = vld [vmem:[#allocation20 + $0x280] sm:$0xff] }
 0x52e   : > { %3052 = vmatprep.subr.bf16.mxu0 %v7782_v34  ;;  %3093 = vmatprep.subr.bf16.mxu1 %v7784_v36  ;;  %v2315_v34 = vld [vmem:[#allocation20 + $0x2a0] sm:$0xff]  ;;  %v2312_v36 = vld [vmem:[#allocation20 + $0x288] sm:$0xff] }
 0x52f   : > { %v7838_v42 = vcombine.high %v2311_v39, %v2315_v34  ;;  %v7837_v48 = vcombine.low %v2311_v39, %v2315_v34  ;;  %v7839_v21 = vcombine.low %v2312_v36, %v2316_v38  ;;  %v2238_v39 = vld [vmem:[#allocation20 + $0x38] sm:$0xff] }
 0x531   : > { %3053 = vmatpush1.bf16.msra.mxu0 %v7781_v43  ;;  %3094 = vmatpush1.bf16.msra.mxu1 %v7783_v44  ;;  %v7840_v43 = vcombine.high %v2312_v36, %v2316_v38  ;;  %v2319_v44 = vld [vmem:[#allocation20 + $0x2c0] sm:$0xff] }
 0x532   : > { %3054 = vmatprep.subr.bf16.mxu0 %v7790_v45  ;;  %3095 = vmatprep.subr.bf16.mxu1 %v7792_v46  ;;  %v2323_v45 = vld [vmem:[#allocation20 + $0x2e0] sm:$0xff]  ;;  %v2320_v46 = vld [vmem:[#allocation20 + $0x2c8] sm:$0xff] }
 0x533   : > { %v7846_v49 = vcombine.high %v2319_v44, %v2323_v45  ;;  %v7845_v55 = vcombine.low %v2319_v44, %v2323_v45  ;;  %v7847_v56 = vcombine.low %v2320_v46, %v2324_v47  ;;  %v2242_v44 = vld [vmem:[#allocation20 + $0x58] sm:$0xff] }
 0x534   : > { %v2246_v45 = vld [vmem:[#allocation20 + $0x78] sm:$0xff] }
 0x535   : > { %3055 = vmatpush1.bf16.msra.mxu0 %v7789_v50  ;;  %3096 = vmatpush1.bf16.msra.mxu1 %v7791_v51  ;;  %v7848_v50 = vcombine.high %v2320_v46, %v2324_v47  ;;  %v2327_v51 = vld [vmem:[#allocation20 + $0x300] sm:$0xff] }
 0x536   : > { %3056 = vmatprep.subr.bf16.mxu0 %v7798_v52  ;;  %3097 = vmatprep.subr.bf16.mxu1 %v7800_v53  ;;  %v2331_v52 = vld [vmem:[#allocation20 + $0x320] sm:$0xff]  ;;  %v2328_v53 = vld [vmem:[#allocation20 + $0x308] sm:$0xff] }
 0x537   : > { %v7854_v57 = vcombine.high %v2327_v51, %v2331_v52  ;;  %v7853_v2 = vcombine.low %v2327_v51, %v2331_v52  ;;  %v7855_v9 = vcombine.low %v2328_v53, %v2332_v54  ;;  %v2250_v51 = vld [vmem:[#allocation20 + $0x98] sm:$0xff] }
 0x538   : > { %v2254_v52 = vld [vmem:[#allocation20 + $0xb8] sm:$0xff] }
 0x539   : > { %3057 = vmatpush1.bf16.msra.mxu0 %v7797_v58  ;;  %3098 = vmatpush1.bf16.msra.mxu1 %v7799_v59  ;;  %v7856_v58 = vcombine.high %v2328_v53, %v2332_v54  ;;  %v2335_v59 = vld [vmem:[#allocation20 + $0x340] sm:$0xff]  ;;  %v7771_v53 = vcombine.low %v2242_v44, %v2246_v45 }
 0x53a   : > { %3058 = vmatprep.subr.bf16.mxu0 %v7806_v62  ;;  %3099 = vmatprep.subr.bf16.mxu1 %v7808_v63  ;;  %v2339_v62 = vld [vmem:[#allocation20 + $0x360] sm:$0xff]  ;;  %v2336_v63 = vld [vmem:[#allocation20 + $0x348] sm:$0xff] }
 0x53b   : > { %v7862_v10 = vcombine.high %v2335_v59, %v2339_v62  ;;  %v7861_v28 = vcombine.low %v2335_v59, %v2339_v62  ;;  %v7863_v17 = vcombine.low %v2336_v63, %v2340_v0  ;;  %v2262_v59 = vld [vmem:[#allocation20 + $0xf8] sm:$0xff] }
 0x53d   : > { %3059 = vmatpush1.bf16.msra.mxu0 %v7805_v3  ;;  %3100 = vmatpush1.bf16.msra.mxu1 %v7807_v13  ;;  %v7864_v3 = vcombine.high %v2336_v63, %v2340_v0  ;;  %v2343_v13 = vld [vmem:[#allocation20 + $0x380] sm:$0xff]  ;;  %v7779_v63 = vcombine.low %v2250_v51, %v2254_v52 }
 0x53e   : > { %3060 = vmatprep.subr.bf16.mxu0 %v7814_v14  ;;  %3101 = vmatprep.subr.bf16.mxu1 %v7816_v15  ;;  %v2347_v14 = vld [vmem:[#allocation20 + $0x3a0] sm:$0xff]  ;;  %v2344_v15 = vld [vmem:[#allocation20 + $0x388] sm:$0xff] }
 0x53f   : > { %v7870_v18 = vcombine.high %v2343_v13, %v2347_v14  ;;  %v7869_v26 = vcombine.low %v2343_v13, %v2347_v14  ;;  %v7871_v27 = vcombine.low %v2344_v15, %v2348_v16  ;;  %v2270_v13 = vld [vmem:[#allocation20 + $0x138] sm:$0xff] }
 0x541   : > { %3061 = vmatpush1.bf16.msra.mxu0 %v7813_v20  ;;  %3102 = vmatpush1.bf16.msra.mxu1 %v7815_v22  ;;  %v7872_v20 = vcombine.high %v2344_v15, %v2348_v16  ;;  %v2351_v22 = vld [vmem:[#allocation20 + $0x3c0] sm:$0xff] }
 0x542   : > { %3062 = vmatprep.subr.bf16.mxu0 %v7822_v23  ;;  %3103 = vmatprep.subr.bf16.mxu1 %v7824_v24  ;;  %v2355_v23 = vld [vmem:[#allocation20 + $0x3e0] sm:$0xff]  ;;  %v2352_v24 = vld [vmem:[#allocation20 + $0x3c8] sm:$0xff] }
 0x543   : > { %v7878_v29 = vcombine.high %v2351_v22, %v2355_v23  ;;  %v7877_v34 = vcombine.low %v2351_v22, %v2355_v23  ;;  %v7879_v36 = vcombine.low %v2352_v24, %v2356_v25 }
 0x545   : > { %3063 = vmatpush1.bf16.msra.mxu0 %v7821_v30  ;;  %3104 = vmatpush1.bf16.msra.mxu1 %v7823_v31  ;;  %v7880_v30 = vcombine.high %v2352_v24, %v2356_v25  ;;  %v2233_v31 = vld [vmem:[#allocation20 + $0x10] sm:$0xff] }
 0x546   : > { %3064 = vmatprep.subr.bf16.mxu0 %v7830_v32  ;;  %3105 = vmatprep.subr.bf16.mxu1 %v7832_v33  ;;  %v2237_v32 = vld [vmem:[#allocation20 + $0x30] sm:$0xff]  ;;  %v2234_v33 = vld [vmem:[#allocation20 + $0x18] sm:$0xff] }
 0x547   : > { %v7762_v38 = vcombine.high %v2233_v31, %v2237_v32  ;;  %v7761_v46 = vcombine.low %v2233_v31, %v2237_v32  ;;  %v7763_v47 = vcombine.low %v2234_v33, %v2238_v39 }
 0x549   : > { %3065 = vmatpush1.bf16.msra.mxu0 %v7829_v40  ;;  %3106 = vmatpush1.bf16.msra.mxu1 %v7831_v41  ;;  %v7764_v40 = vcombine.high %v2234_v33, %v2238_v39  ;;  %v2241_v41 = vld [vmem:[#allocation20 + $0x50] sm:$0xff] }
 0x54a   : > { %3066 = vmatprep.subr.bf16.mxu0 %v7838_v42  ;;  %3107 = vmatprep.subr.bf16.mxu1 %v7840_v43  ;;  %v2245_v42 = vld [vmem:[#allocation20 + $0x70] sm:$0xff]  ;;  %v9679_v43 = vpack.c.bf16 %v9667_v61, %v9667_v61 }
 0x54b   : > { %v7769_v61 = vcombine.low %v2241_v41, %v2245_v42 }
 0x54d   : > { %3067 = vmatpush1.bf16.msra.mxu0 %v7837_v48  ;;  %3108 = vmatpush1.bf16.msra.mxu1 %v7839_v21  ;;  %v7770_v48 = vcombine.high %v2241_v41, %v2245_v42  ;;  %v7772_v21 = vcombine.high %v2242_v44, %v2246_v45 }
 0x54e   : > { %3068 = vmatprep.subr.bf16.mxu0 %v7846_v49  ;;  %3109 = vmatprep.subr.bf16.mxu1 %v7848_v50  ;;  %v2249_v49 = vld [vmem:[#allocation20 + $0x90] sm:$0xff] }
 0x54f   : > { %v2253_v50 = vld [vmem:[#allocation20 + $0xb0] sm:$0xff] }
 0x550   : > { %v7778_v54 = vcombine.high %v2249_v49, %v2253_v50  ;;  %v7777_v62 = vcombine.low %v2249_v49, %v2253_v50 }
 0x551   : > { %3069 = vmatpush1.bf16.msra.mxu0 %v7845_v55  ;;  %3110 = vmatpush1.bf16.msra.mxu1 %v7847_v56  ;;  %v7780_v55 = vcombine.high %v2250_v51, %v2254_v52  ;;  %v2257_v56 = vld [vmem:[#allocation20 + $0xd0] sm:$0xff] }
 0x552   : > { %3070 = vmatprep.subr.bf16.mxu0 %v7854_v57  ;;  %3111 = vmatprep.subr.bf16.mxu1 %v7856_v58  ;;  %v2261_v57 = vld [vmem:[#allocation20 + $0xf0] sm:$0xff]  ;;  %v2258_v58 = vld [vmem:[#allocation20 + $0xd8] sm:$0xff] }
 0x553   : > { %v7786_v0 = vcombine.high %v2257_v56, %v2261_v57  ;;  %v7785_v14 = vcombine.low %v2257_v56, %v2261_v57  ;;  %v7787_v15 = vcombine.low %v2258_v58, %v2262_v59 }
 0x555   : > { %3071 = vmatpush1.bf16.msra.mxu0 %v7853_v2  ;;  %3112 = vmatpush1.bf16.msra.mxu1 %v7855_v9  ;;  %v7788_v2 = vcombine.high %v2258_v58, %v2262_v59  ;;  %v2265_v9 = vld [vmem:[#allocation20 + $0x110] sm:$0xff] }
 0x556   : > { %3072 = vmatprep.subr.bf16.mxu0 %v7862_v10  ;;  %3113 = vmatprep.subr.bf16.mxu1 %v7864_v3  ;;  %v2269_v10 = vld [vmem:[#allocation20 + $0x130] sm:$0xff]  ;;  %v2266_v3 = vld [vmem:[#allocation20 + $0x118] sm:$0xff] }
 0x557   : > { %v7794_v16 = vcombine.high %v2265_v9, %v2269_v10  ;;  %v7793_v22 = vcombine.low %v2265_v9, %v2269_v10  ;;  %v7795_v23 = vcombine.low %v2266_v3, %v2270_v13 }
 0x559   : > { %3073 = vmatpush1.bf16.msra.mxu0 %v7861_v28  ;;  %3114 = vmatpush1.bf16.msra.mxu1 %v7863_v17  ;;  %v2273_v28 = vld [vmem:[#allocation20 + $0x150] sm:$0xff] }
 0x55a   : > { %3074 = vmatprep.subr.bf16.mxu0 %v7870_v18  ;;  %3115 = vmatprep.subr.bf16.mxu1 %v7872_v20  ;;  %v2277_v17 = vld [vmem:[#allocation20 + $0x170] sm:$0xff]  ;;  %v2274_v18 = vld [vmem:[#allocation20 + $0x158] sm:$0xff] }
 0x55b   : > { %v2278_v20 = vld [vmem:[#allocation20 + $0x178] sm:$0xff]  ;;  %v7802_v24 = vcombine.high %v2273_v28, %v2277_v17  ;;  %v7801_v31 = vcombine.low %v2273_v28, %v2277_v17 }
 0x55c   : > { %v7804_v25 = vcombine.high %v2274_v18, %v2278_v20  ;;  %v7803_v32 = vcombine.low %v2274_v18, %v2278_v20 }
 0x55d   : > { %3075 = vmatpush1.bf16.msra.mxu0 %v7869_v26  ;;  %3116 = vmatpush1.bf16.msra.mxu1 %v7871_v27  ;;  %v2281_v26 = vld [vmem:[#allocation20 + $0x190] sm:$0xff] }
 0x55e   : > { %3076 = vmatprep.subr.bf16.mxu0 %v7878_v29  ;;  %3117 = vmatprep.subr.bf16.mxu1 %v7880_v30  ;;  %v2285_v27 = vld [vmem:[#allocation20 + $0x1b0] sm:$0xff]  ;;  %v2282_v29 = vld [vmem:[#allocation20 + $0x198] sm:$0xff] }
 0x55f   : > { %v2286_v30 = vld [vmem:[#allocation20 + $0x1b8] sm:$0xff]  ;;  %v7810_v33 = vcombine.high %v2281_v26, %v2285_v27  ;;  %v7809_v41 = vcombine.low %v2281_v26, %v2285_v27 }
 0x560   : > { %v7812_v39 = vcombine.high %v2282_v29, %v2286_v30  ;;  %v7811_v42 = vcombine.low %v2282_v29, %v2286_v30 }
 0x561   : > { %3077 = vmatpush1.bf16.msra.mxu0 %v7877_v34  ;;  %3118 = vmatpush1.bf16.msra.mxu1 %v7879_v36  ;;  %v2289_v34 = vld [vmem:[#allocation20 + $0x1d0] sm:$0xff] }
 0x562   : > { %3128 = vmatprep.subr.bf16.mxu0 %v7762_v38  ;;  %3169 = vmatprep.subr.bf16.mxu1 %v7764_v40  ;;  %v2293_v36 = vld [vmem:[#allocation20 + $0x1f0] sm:$0xff]  ;;  %v2290_v38 = vld [vmem:[#allocation20 + $0x1d8] sm:$0xff] }
 0x563   : > { %v2294_v40 = vld [vmem:[#allocation20 + $0x1f8] sm:$0xff]  ;;  %v7818_v44 = vcombine.high %v2289_v34, %v2293_v36  ;;  %v7817_v49 = vcombine.low %v2289_v34, %v2293_v36 }
 0x564   : > { %3079 = vmatmul.mubr.bf16.vlgmr.msra.gmra.mrb[8].mxu0 %v9679_v43  ;;  %3120 = vmatmul.mubr.bf16.vlgmr.msra.gmra.mrb[8].mxu1 %v9679_v43  ;;  %v7820_v45 = vcombine.high %v2290_v38, %v2294_v40  ;;  %v7819_v50 = vcombine.low %v2290_v38, %v2294_v40 }
 0x565   : > { %3129 = vmatpush1.bf16.msra.mxu0 %v7761_v46  ;;  %3170 = vmatpush1.bf16.msra.mxu1 %v7763_v47  ;;  %v2297_v46 = vld [vmem:[#allocation20 + $0x210] sm:$0xff] }
 0x566   : > { %3130 = vmatprep.subr.bf16.mxu0 %v7770_v48  ;;  %3171 = vmatprep.subr.bf16.mxu1 %v7772_v21  ;;  %v2301_v47 = vld [vmem:[#allocation20 + $0x230] sm:$0xff]  ;;  %v2298_v48 = vld [vmem:[#allocation20 + $0x218] sm:$0xff] }
 0x567   : > { %3160 = vmatprep.mubr.bf16.mxu0 %v9671_v6  ;;  %3201 = vmatprep.mubr.bf16.mxu1 %v9671_v6  ;;  %v7796_v6 = vcombine.high %v2266_v3, %v2270_v13  ;;  %v2302_v21 = vld [vmem:[#allocation20 + $0x238] sm:$0xff]  ;;  %v7826_v51 = vcombine.high %v2297_v46, %v2301_v47  ;;  %v7825_v56 = vcombine.low %v2297_v46, %v2301_v47 }
 0x568   : > { %v7828_v52 = vcombine.high %v2298_v48, %v2302_v21  ;;  %v7827_v57 = vcombine.low %v2298_v48, %v2302_v21 }
 0x569   : > { %3131 = vmatpush1.bf16.msra.mxu0 %v7769_v61  ;;  %3172 = vmatpush1.bf16.msra.mxu1 %v7771_v53  ;;  %v2305_v61 = vld [vmem:[#allocation20 + $0x250] sm:$0xff] }
 0x56a   : > { %3132 = vmatprep.subr.bf16.mxu0 %v7778_v54  ;;  %3173 = vmatprep.subr.bf16.mxu1 %v7780_v55  ;;  %v2309_v53 = vld [vmem:[#allocation20 + $0x270] sm:$0xff]  ;;  %v2306_v54 = vld [vmem:[#allocation20 + $0x258] sm:$0xff] }
 0x56b   : > { %v2310_v55 = vld [vmem:[#allocation20 + $0x278] sm:$0xff]  ;;  %v7834_v58 = vcombine.high %v2305_v61, %v2309_v53  ;;  %v7833_v9 = vcombine.low %v2305_v61, %v2309_v53 }
 0x56c   : > { %v7836_v59 = vcombine.high %v2306_v54, %v2310_v55  ;;  %v7835_v10 = vcombine.low %v2306_v54, %v2310_v55 }
 0x56d   : > { %3133 = vmatpush1.bf16.msra.mxu0 %v7777_v62  ;;  %3174 = vmatpush1.bf16.msra.mxu1 %v7779_v63  ;;  %v2313_v62 = vld [vmem:[#allocation20 + $0x290] sm:$0xff] }
 0x56e   : > { %3134 = vmatprep.subr.bf16.mxu0 %v7786_v0  ;;  %3175 = vmatprep.subr.bf16.mxu1 %v7788_v2  ;;  %v2317_v63 = vld [vmem:[#allocation20 + $0x2b0] sm:$0xff]  ;;  %v2314_v0 = vld [vmem:[#allocation20 + $0x298] sm:$0xff] }
 0x56f   : > { %v2318_v2 = vld [vmem:[#allocation20 + $0x2b8] sm:$0xff]  ;;  %v7842_v3 = vcombine.high %v2313_v62, %v2317_v63  ;;  %v7841_v28 = vcombine.low %v2313_v62, %v2317_v63 }
 0x570   : > { %v7844_v13 = vcombine.high %v2314_v0, %v2318_v2  ;;  %v7843_v17 = vcombine.low %v2314_v0, %v2318_v2 }
 0x571   : > { %3135 = vmatpush1.bf16.msra.mxu0 %v7785_v14  ;;  %3176 = vmatpush1.bf16.msra.mxu1 %v7787_v15  ;;  %v2321_v14 = vld [vmem:[#allocation20 + $0x2d0] sm:$0xff] }
 0x572   : > { %3136 = vmatprep.subr.bf16.mxu0 %v7794_v16  ;;  %3177 = vmatprep.subr.bf16.mxu1 %v7796_v6  ;;  %v2325_v15 = vld [vmem:[#allocation20 + $0x2f0] sm:$0xff]  ;;  %v2322_v16 = vld [vmem:[#allocation20 + $0x2d8] sm:$0xff] }
 0x573   : > { %v2326_v6 = vld [vmem:[#allocation20 + $0x2f8] sm:$0xff]  ;;  %v7850_v18 = vcombine.high %v2321_v14, %v2325_v15  ;;  %v7849_v26 = vcombine.low %v2321_v14, %v2325_v15 }
 0x574   : > { %v7852_v20 = vcombine.high %v2322_v16, %v2326_v6  ;;  %v7851_v27 = vcombine.low %v2322_v16, %v2326_v6 }
 0x575   : > { %3137 = vmatpush1.bf16.msra.mxu0 %v7793_v22  ;;  %3178 = vmatpush1.bf16.msra.mxu1 %v7795_v23  ;;  %v2329_v22 = vld [vmem:[#allocation20 + $0x310] sm:$0xff] }
 0x576   : > { %3138 = vmatprep.subr.bf16.mxu0 %v7802_v24  ;;  %3179 = vmatprep.subr.bf16.mxu1 %v7804_v25  ;;  %v2333_v23 = vld [vmem:[#allocation20 + $0x330] sm:$0xff]  ;;  %v2330_v24 = vld [vmem:[#allocation20 + $0x318] sm:$0xff] }
 0x577   : > { %v2334_v25 = vld [vmem:[#allocation20 + $0x338] sm:$0xff]  ;;  %v7858_v29 = vcombine.high %v2329_v22, %v2333_v23  ;;  %v7857_v34 = vcombine.low %v2329_v22, %v2333_v23 }
 0x578   : > { %v7860_v30 = vcombine.high %v2330_v24, %v2334_v25  ;;  %v7859_v36 = vcombine.low %v2330_v24, %v2334_v25 }
 0x579   : > { %3139 = vmatpush1.bf16.msra.mxu0 %v7801_v31  ;;  %3180 = vmatpush1.bf16.msra.mxu1 %v7803_v32  ;;  %v2337_v31 = vld [vmem:[#allocation20 + $0x350] sm:$0xff] }
 0x57a   : > { %3140 = vmatprep.subr.bf16.mxu0 %v7810_v33  ;;  %3181 = vmatprep.subr.bf16.mxu1 %v7812_v39  ;;  %v2341_v32 = vld [vmem:[#allocation20 + $0x370] sm:$0xff]  ;;  %v2338_v33 = vld [vmem:[#allocation20 + $0x358] sm:$0xff] }
 0x57b   : > { %v2342_v39 = vld [vmem:[#allocation20 + $0x378] sm:$0xff]  ;;  %v7866_v38 = vcombine.high %v2337_v31, %v2341_v32  ;;  %v7865_v46 = vcombine.low %v2337_v31, %v2341_v32 }
 0x57c   : > { %v7868_v40 = vcombine.high %v2338_v33, %v2342_v39  ;;  %v7867_v47 = vcombine.low %v2338_v33, %v2342_v39 }
 0x57d   : > { %3141 = vmatpush1.bf16.msra.mxu0 %v7809_v41  ;;  %3182 = vmatpush1.bf16.msra.mxu1 %v7811_v42  ;;  %v2345_v41 = vld [vmem:[#allocation20 + $0x390] sm:$0xff] }
 0x57e   : > { %3142 = vmatprep.subr.bf16.mxu0 %v7818_v44  ;;  %3183 = vmatprep.subr.bf16.mxu1 %v7820_v45  ;;  %v2349_v42 = vld [vmem:[#allocation20 + $0x3b0] sm:$0xff]  ;;  %v2346_v44 = vld [vmem:[#allocation20 + $0x398] sm:$0xff] }
 0x57f   : > { %v2350_v45 = vld [vmem:[#allocation20 + $0x3b8] sm:$0xff]  ;;  %v7874_v48 = vcombine.high %v2345_v41, %v2349_v42  ;;  %v7873_v61 = vcombine.low %v2345_v41, %v2349_v42 }
 0x580   : > { %v7876_v21 = vcombine.high %v2346_v44, %v2350_v45  ;;  %v7875_v53 = vcombine.low %v2346_v44, %v2350_v45 }
 0x581   : > { %3143 = vmatpush1.bf16.msra.mxu0 %v7817_v49  ;;  %3184 = vmatpush1.bf16.msra.mxu1 %v7819_v50  ;;  %v2353_v49 = vld [vmem:[#allocation20 + $0x3d0] sm:$0xff] }
 0x582   : > { %3144 = vmatprep.subr.bf16.mxu0 %v7826_v51  ;;  %3185 = vmatprep.subr.bf16.mxu1 %v7828_v52  ;;  %v2357_v50 = vld [vmem:[#allocation20 + $0x3f0] sm:$0xff]  ;;  %v2354_v51 = vld [vmem:[#allocation20 + $0x3d8] sm:$0xff] }
 0x583   : > { %v2358_v52 = vld [vmem:[#allocation20 + $0x3f8] sm:$0xff]  ;;  %v7882_v54 = vcombine.high %v2353_v49, %v2357_v50  ;;  %v7881_v62 = vcombine.low %v2353_v49, %v2357_v50 }
 0x584   : > { %v7884_v55 = vcombine.high %v2354_v51, %v2358_v52  ;;  %v7883_v63 = vcombine.low %v2354_v51, %v2358_v52 }
 0x585   : > { %3145 = vmatpush1.bf16.msra.mxu0 %v7825_v56  ;;  %3186 = vmatpush1.bf16.msra.mxu1 %v7827_v57  ;;  %v3210_v56 = vld [vmem:[#allocation18] sm:$0xff] }
 0x586   : > { %3146 = vmatprep.subr.bf16.mxu0 %v7834_v58  ;;  %3187 = vmatprep.subr.bf16.mxu1 %v7836_v59  ;;  %v3214_v57 = vld [vmem:[#allocation18 + $0x20] sm:$0xff]  ;;  %v3211_v58 = vld [vmem:[#allocation18 + $0x8] sm:$0xff] }
 0x587   : > { %v3215_v59 = vld [vmem:[#allocation18 + $0x28] sm:$0xff]  ;;  %v9685_v0 = vcombine.high %v3210_v56, %v3214_v57  ;;  %v9689_v14 = vcombine.low %v3210_v56, %v3214_v57 }
 0x588   : > { %v9687_v2 = vcombine.high %v3211_v58, %v3215_v59  ;;  %v9692_v15 = vcombine.low %v3211_v58, %v3215_v59 }
 0x589   : > { %3147 = vmatpush1.bf16.msra.mxu0 %v7833_v9  ;;  %3188 = vmatpush1.bf16.msra.mxu1 %v7835_v10  ;;  %v3218_v9 = vld [vmem:[#allocation18 + $0x40] sm:$0xff] }
 0x58a   : > { %3148 = vmatprep.subr.bf16.mxu0 %v7842_v3  ;;  %3189 = vmatprep.subr.bf16.mxu1 %v7844_v13  ;;  %v3222_v10 = vld [vmem:[#allocation18 + $0x60] sm:$0xff]  ;;  %v3219_v3 = vld [vmem:[#allocation18 + $0x48] sm:$0xff] }
 0x58b   : > { %v3223_v13 = vld [vmem:[#allocation18 + $0x68] sm:$0xff]  ;;  %v9694_v16 = vcombine.high %v3218_v9, %v3222_v10  ;;  %v9702_v22 = vcombine.low %v3218_v9, %v3222_v10  ;;  %v3270_v9 = vld [vmem:[#allocation18 + $0x1e0] sm:$0xff] }
 0x58c   : > { %v9697_v6 = vcombine.high %v3219_v3, %v3223_v13  ;;  %v9706_v23 = vcombine.low %v3219_v3, %v3223_v13  ;;  %v3267_v13 = vld [vmem:[#allocation18 + $0x1c8] sm:$0xff] }
 0x58d   : > { %3149 = vmatpush1.bf16.msra.mxu0 %v7841_v28  ;;  %3190 = vmatpush1.bf16.msra.mxu1 %v7843_v17  ;;  %v3226_v28 = vld [vmem:[#allocation18 + $0x80] sm:$0xff] }
 0x58e   : > { %3150 = vmatprep.subr.bf16.mxu0 %v7850_v18  ;;  %3191 = vmatprep.subr.bf16.mxu1 %v7852_v20  ;;  %v3230_v17 = vld [vmem:[#allocation18 + $0xa0] sm:$0xff]  ;;  %v3227_v18 = vld [vmem:[#allocation18 + $0x88] sm:$0xff] }
 0x58f   : > { %v3231_v20 = vld [vmem:[#allocation18 + $0xa8] sm:$0xff]  ;;  %v9708_v24 = vcombine.high %v3226_v28, %v3230_v17  ;;  %v9716_v31 = vcombine.low %v3226_v28, %v3230_v17 }
 0x590   : > { %v9711_v25 = vcombine.high %v3227_v18, %v3231_v20  ;;  %v9720_v32 = vcombine.low %v3227_v18, %v3231_v20  ;;  %v3271_v28 = vld [vmem:[#allocation18 + $0x1e8] sm:$0xff] }
 0x591   : > { %3151 = vmatpush1.bf16.msra.mxu0 %v7849_v26  ;;  %3192 = vmatpush1.bf16.msra.mxu1 %v7851_v27  ;;  %v3234_v26 = vld [vmem:[#allocation18 + $0xc0] sm:$0xff] }
 0x592   : > { %3152 = vmatprep.subr.bf16.mxu0 %v7858_v29  ;;  %3193 = vmatprep.subr.bf16.mxu1 %v7860_v30  ;;  %v3238_v27 = vld [vmem:[#allocation18 + $0xe0] sm:$0xff]  ;;  %v11580_v29 = vmov 0   ;;  %v3239_v30 = vld [vmem:[#allocation18 + $0xe8] sm:$0xff] }
 0x593   : > { %v9722_v33 = vcombine.high %v3234_v26, %v3238_v27  ;;  %v9728_v41 = vcombine.low %v3234_v26, %v3238_v27 }
 0x595   : > { %3153 = vmatpush1.bf16.msra.mxu0 %v7857_v34  ;;  %3194 = vmatpush1.bf16.msra.mxu1 %v7859_v36  ;;  %v3242_v34 = vld [vmem:[#allocation18 + $0x100] sm:$0xff] }
 0x596   : > { %3154 = vmatprep.subr.bf16.mxu0 %v7866_v38  ;;  %3195 = vmatprep.subr.bf16.mxu1 %v7868_v40  ;;  %v3246_v36 = vld [vmem:[#allocation18 + $0x120] sm:$0xff]  ;;  %v3243_v38 = vld [vmem:[#allocation18 + $0x108] sm:$0xff] }
 0x597   : > { %v3247_v40 = vld [vmem:[#allocation18 + $0x128] sm:$0xff]  ;;  %v9734_v44 = vcombine.high %v3242_v34, %v3246_v36  ;;  %v9740_v49 = vcombine.low %v3242_v34, %v3246_v36  ;;  %v9781_v36 = vcombine.high %v3267_v13, %v3271_v28 }
 0x598   : > { %v9737_v45 = vcombine.high %v3243_v38, %v3247_v40  ;;  %v9744_v50 = vcombine.low %v3243_v38, %v3247_v40  ;;  %v3274_v38 = vld [vmem:[#allocation18 + $0x200] sm:$0xff] }
 0x599   : > { %3155 = vmatpush1.bf16.msra.mxu0 %v7865_v46  ;;  %3196 = vmatpush1.bf16.msra.mxu1 %v7867_v47  ;;  %v3250_v46 = vld [vmem:[#allocation18 + $0x140] sm:$0xff]  ;;  %12113 = vst [vmem:[#allocation76_spill] sm:$0xff] %v9781_v36 }
 0x59a   : > { %3156 = vmatprep.subr.bf16.mxu0 %v7874_v48  ;;  %3197 = vmatprep.subr.bf16.mxu1 %v7876_v21  ;;  %v3254_v47 = vld [vmem:[#allocation18 + $0x160] sm:$0xff]  ;;  %v3251_v48 = vld [vmem:[#allocation18 + $0x148] sm:$0xff] }
 0x59b   : > { %v3255_v21 = vld [vmem:[#allocation18 + $0x168] sm:$0xff]  ;;  %v9746_v51 = vcombine.high %v3250_v46, %v3254_v47  ;;  %v9752_v56 = vcombine.low %v3250_v46, %v3254_v47  ;;  %v3278_v40 = vld [vmem:[#allocation18 + $0x220] sm:$0xff] }
 0x59c   : > { %v9749_v52 = vcombine.high %v3251_v48, %v3255_v21  ;;  %v9756_v57 = vcombine.low %v3251_v48, %v3255_v21  ;;  %v3275_v46 = vld [vmem:[#allocation18 + $0x208] sm:$0xff]  ;;  %v9788_v21 = vcombine.low %v3267_v13, %v3271_v28 }
 0x59d   : > { %3157 = vmatpush1.bf16.msra.mxu0 %v7873_v61  ;;  %3198 = vmatpush1.bf16.msra.mxu1 %v7875_v53  ;;  %v3258_v61 = vld [vmem:[#allocation18 + $0x180] sm:$0xff]  ;;  %12102 = vst [vmem:[#allocation65_spill] sm:$0xff] %v9752_v56  ;;  %v3279_v47 = vld [vmem:[#allocation18 + $0x228] sm:$0xff] }
 0x59e   : > { %3158 = vmatprep.subr.bf16.mxu0 %v7882_v54  ;;  %3199 = vmatprep.subr.bf16.mxu1 %v7884_v55  ;;  %12101 = vst [vmem:[#allocation64_spill] sm:$0xff] %v9749_v52  ;;  %v3262_v53 = vld [vmem:[#allocation18 + $0x1a0] sm:$0xff]  ;;  %v3259_v54 = vld [vmem:[#allocation18 + $0x188] sm:$0xff]  ;;  %12103 = vst [vmem:[#allocation66_spill] sm:$0xff] %v9756_v57 }
 0x59f   : > { %v3263_v55 = vld [vmem:[#allocation18 + $0x1a8] sm:$0xff]  ;;  %v9758_v58 = vcombine.high %v3258_v61, %v3262_v53  ;;  %v9772_v20 = vcombine.low %v3258_v61, %v3262_v53  ;;  %12115 = vst [vmem:[#allocation78_spill] sm:$0xff] %v9788_v21  ;;  %v9790_v61 = vcombine.high %v3274_v38, %v3278_v40  ;;  %v9793_v53 = vcombine.high %v3275_v46, %v3279_v47 }
 0x5a1   : > { %3159 = vmatpush1.bf16.msra.mxu0 %v7881_v62  ;;  %3200 = vmatpush1.bf16.msra.mxu1 %v7883_v63  ;;  %12104 = vst [vmem:[#allocation67_spill] sm:$0xff] %v9758_v58  ;;  %v9763_v62 = vcombine.high %v3259_v54, %v3263_v55  ;;  %v3266_v63 = vld [vmem:[#allocation18 + $0x1c0] sm:$0xff]  ;;  %12110 = vst [vmem:[#allocation73_spill] sm:$0xff] %v9772_v20 }
 0x5a2   : > { %3978 = vmatprep.subr.bf16.mxu0 %v9685_v0  ;;  %4019 = vmatprep.subr.bf16.mxu1 %v9687_v2  ;;  %v9784_v48 = vcombine.low %v3266_v63, %v3270_v9  ;;  %12116 = vst [vmem:[#allocation79_spill] sm:$0xff] %v9790_v61  ;;  %12117 = vst [vmem:[#allocation80_spill] sm:$0xff] %v9793_v53 }
 0x5a3   : > { %12106 = vst [vmem:[#allocation69_spill] sm:$0xff] %v9763_v62 }
 0x5a4   : > { %3161 = vmatmul.mubr.bf16.vlgmr.msra.gmra.mrb[12].mxu0 %v9679_v43  ;;  %3202 = vmatmul.mubr.bf16.vlgmr.msra.gmra.mrb[12].mxu1 %v9679_v43  ;;  %v3235_v43 = vld [vmem:[#allocation18 + $0xc8] sm:$0xff]  ;;  %12114 = vst [vmem:[#allocation77_spill] sm:$0xff] %v9784_v48 }
 0x5a5   : > { %3979 = vmatpush1.bf16.msra.mxu0 %v9689_v14  ;;  %4020 = vmatpush1.bf16.msra.mxu1 %v9692_v15  ;;  %v9725_v39 = vcombine.high %v3235_v43, %v3239_v30  ;;  %v9732_v42 = vcombine.low %v3235_v43, %v3239_v30  ;;  %v9776_v43 = vcombine.low %v3259_v54, %v3263_v55  ;;  %v3282_v54 = vld [vmem:[#allocation18 + $0x240] sm:$0xff] }
 0x5a6   : > { %3980 = vmatprep.subr.bf16.mxu0 %v9694_v16  ;;  %4021 = vmatprep.subr.bf16.mxu1 %v9697_v6  ;;  %v9778_v30 = vcombine.high %v3266_v63, %v3270_v9  ;;  %v3286_v55 = vld [vmem:[#allocation18 + $0x260] sm:$0xff]  ;;  %v9796_v63 = vcombine.low %v3274_v38, %v3278_v40  ;;  %v9800_v9 = vcombine.low %v3275_v46, %v3279_v47 }
 0x5a7   : > { %4010 = vmatprep.mubr.bf16.mxu0 %v11580_v29  ;;  %4051 = vmatprep.mubr.bf16.mxu1 %v11580_v29  ;;  %12111 = vst [vmem:[#allocation74_spill] sm:$0xff] %v9776_v43  ;;  %v9802_v13 = vcombine.high %v3282_v54, %v3286_v55  ;;  %v3295_v29 = vld [vmem:[#allocation18 + $0x2a8] sm:$0xff]  ;;  %v9808_v38 = vcombine.low %v3282_v54, %v3286_v55 }
 0x5a8   : > { %12112 = vst [vmem:[#allocation75_spill] sm:$0xff] %v9778_v30  ;;  %12118 = vst [vmem:[#allocation81_spill] sm:$0xff] %v9796_v63  ;;  %v9817_v47 = vcombine.high %v3291_v1, %v3295_v29  ;;  %v9824_v55 = vcombine.low %v3291_v1, %v3295_v29  ;;  %v9836_v1 = vcombine.low %v3299_v12, %v3303_v11 }
 0x5a9   : > { %3981 = vmatpush1.bf16.msra.mxu0 %v9702_v22  ;;  %4022 = vmatpush1.bf16.msra.mxu1 %v9706_v23  ;;  %12119 = vst [vmem:[#allocation82_spill] sm:$0xff] %v9800_v9  ;;  %12120 = vst [vmem:[#allocation83_spill] sm:$0xff] %v9802_v13  ;;  %v9838_v29 = vcombine.high %v3306_v7, %v3310_v5 }
 0x5aa   : > { %3982 = vmatprep.subr.bf16.mxu0 %v9708_v24  ;;  %4023 = vmatprep.subr.bf16.mxu1 %v9711_v25  ;;  %12122 = vst [vmem:[#allocation85_spill] sm:$0xff] %v9808_v38  ;;  %12125 = vst [vmem:[#allocation88_spill] sm:$0xff] %v9817_v47 }
 0x5ab   : > { %12127 = vst [vmem:[#allocation90_spill] sm:$0xff] %v9824_v55  ;;  %12131 = vst [vmem:[#allocation94_spill] sm:$0xff] %v9836_v1 }
 0x5ac   : > { %12132 = vst [vmem:[#allocation95_spill] sm:$0xff] %v9838_v29 }
 0x5ad   : > { %3983 = vmatpush1.bf16.msra.mxu0 %v9716_v31  ;;  %4024 = vmatpush1.bf16.msra.mxu1 %v9720_v32 }
 0x5ae   : > { %3984 = vmatprep.subr.bf16.mxu0 %v9722_v33  ;;  %4025 = vmatprep.subr.bf16.mxu1 %v9725_v39 }
 0x5b1   : > { %3985 = vmatpush1.bf16.msra.mxu0 %v9728_v41  ;;  %4026 = vmatpush1.bf16.msra.mxu1 %v9732_v42 }
 0x5b2   : > { %3986 = vmatprep.subr.bf16.mxu0 %v9734_v44  ;;  %4027 = vmatprep.subr.bf16.mxu1 %v9737_v45 }
 0x5b5   : > { %3987 = vmatpush1.bf16.msra.mxu0 %v9740_v49  ;;  %4028 = vmatpush1.bf16.msra.mxu1 %v9744_v50 }
 0x5b6   : > { %3988 = vmatprep.subr.bf16.mxu0 %v9746_v51  ;;  %4029 = vmatprep.subr.bf16.mxu1 %v9749_v52 }
 0x5b7   : > { %v9760_v59 = vpop.f32.mrb[0].mxu0  ;;  %v9765_v10 = vpop.f32.mrb[0].mxu1 }
 0x5b8   : > { %12105 = vst [vmem:[#allocation68_spill] sm:$0xff] %v9760_v59  ;;  %12107 = vst [vmem:[#allocation70_spill] sm:$0xff] %v9765_v10  ;;  %v9767_v3 = vpop.f32.mrb[1].mxu0  ;;  %v9769_v17 = vpop.f32.mrb[1].mxu1  ;;  %v3314_v10 = vld [vmem:[#allocation18 + $0x340] sm:$0xff] }
 0x5b9   : > { %12108 = vst [vmem:[#allocation71_spill] sm:$0xff] %v9767_v3  ;;  %12109 = vst [vmem:[#allocation72_spill] sm:$0xff] %v9769_v17  ;;  %v2104_v18 = vpop.f32.mrb[2].mxu0  ;;  %3989 = vmatpush1.bf16.msra.mxu0 %v9752_v56  ;;  %v2145_v26 = vpop.f32.mrb[2].mxu1  ;;  %4030 = vmatpush1.bf16.msra.mxu1 %v9756_v57  ;;  %v3307_v17 = vld [vmem:[#allocation18 + $0x308] sm:$0xff]  ;;  %v3318_v59 = vld [vmem:[#allocation18 + $0x360] sm:$0xff] }
 0x5ba   : > { %v2105_v27 = vpop.f32.mrb[3].mxu0  ;;  %3990 = vmatprep.subr.bf16.mxu0 %v9758_v58  ;;  %v2146_v34 = vpop.f32.mrb[3].mxu1  ;;  %4031 = vmatprep.subr.bf16.mxu1 %v9763_v62  ;;  %v3283_v18 = vld [vmem:[#allocation18 + $0x248] sm:$0xff] }
 0x5bb   : > { %v3287_v26 = vld [vmem:[#allocation18 + $0x268] sm:$0xff]  ;;  %v3290_v27 = vld [vmem:[#allocation18 + $0x280] sm:$0xff] }
 0x5bc   : > { %v9805_v28 = vcombine.high %v3283_v18, %v3287_v26  ;;  %v3294_v34 = vld [vmem:[#allocation18 + $0x2a0] sm:$0xff]  ;;  %v9812_v40 = vcombine.low %v3283_v18, %v3287_v26  ;;  %v9826_v18 = vcombine.high %v3298_v4, %v3302_v60  ;;  %v9829_v26 = vcombine.high %v3299_v12, %v3303_v11  ;;  %v3311_v3 = vld [vmem:[#allocation18 + $0x328] sm:$0xff] }
 0x5bd   : > { %3991 = vmatpush1.bf16.msra.mxu0 %v9772_v20  ;;  %4032 = vmatpush1.bf16.msra.mxu1 %v9776_v43  ;;  %v9814_v46 = vcombine.high %v3290_v27, %v3294_v34  ;;  %v9820_v54 = vcombine.low %v3290_v27, %v3294_v34  ;;  %v9832_v27 = vcombine.low %v3298_v4, %v3302_v60 }
 0x5be   : > { %3992 = vmatprep.subr.bf16.mxu0 %v9778_v30  ;;  %4033 = vmatprep.subr.bf16.mxu1 %v9781_v36  ;;  %12121 = vst [vmem:[#allocation84_spill] sm:$0xff] %v9805_v28  ;;  %12123 = vst [vmem:[#allocation86_spill] sm:$0xff] %v9812_v40  ;;  %v9841_v34 = vcombine.high %v3307_v17, %v3311_v3  ;;  %v9844_v60 = vcombine.low %v3306_v7, %v3310_v5 }
 0x5bf   : > { %12124 = vst [vmem:[#allocation87_spill] sm:$0xff] %v9814_v46  ;;  %12126 = vst [vmem:[#allocation89_spill] sm:$0xff] %v9820_v54  ;;  %v9848_v4 = vcombine.low %v3307_v17, %v3311_v3  ;;  %v9850_v11 = vcombine.high %v3314_v10, %v3318_v59  ;;  %v9853_v12 = vcombine.high %v3315_v37, %v3319_v8 }
 0x5c0   : > { %12128 = vst [vmem:[#allocation91_spill] sm:$0xff] %v9826_v18  ;;  %12129 = vst [vmem:[#allocation92_spill] sm:$0xff] %v9829_v26  ;;  %v9856_v5 = vcombine.low %v3314_v10, %v3318_v59  ;;  %v9860_v7 = vcombine.low %v3315_v37, %v3319_v8  ;;  %v9862_v3 = vcombine.high %v3322_v35, %v3326_v19 }
 0x5c1   : > { %3993 = vmatpush1.bf16.msra.mxu0 %v9784_v48  ;;  %4034 = vmatpush1.bf16.msra.mxu1 %v9788_v21  ;;  %12130 = vst [vmem:[#allocation93_spill] sm:$0xff] %v9832_v27  ;;  %12133 = vst [vmem:[#allocation96_spill] sm:$0xff] %v9841_v34  ;;  %v9868_v59 = vcombine.low %v3322_v35, %v3326_v19 }
 0x5c2   : > { %3994 = vmatprep.subr.bf16.mxu0 %v9790_v61  ;;  %4035 = vmatprep.subr.bf16.mxu1 %v9793_v53  ;;  %12134 = vst [vmem:[#allocation97_spill] sm:$0xff] %v9844_v60  ;;  %12135 = vst [vmem:[#allocation98_spill] sm:$0xff] %v9848_v4 }
 0x5c3   : > { %12136 = vst [vmem:[#allocation99_spill] sm:$0xff] %v9850_v11  ;;  %12137 = vst [vmem:[#allocation100_spill] sm:$0xff] %v9853_v12 }
 0x5c4   : > { %12138 = vst [vmem:[#allocation101_spill] sm:$0xff] %v9856_v5  ;;  %12139 = vst [vmem:[#allocation102_spill] sm:$0xff] %v9860_v7 }
 0x5c5   : > { %3995 = vmatpush1.bf16.msra.mxu0 %v9796_v63  ;;  %4036 = vmatpush1.bf16.msra.mxu1 %v9800_v9  ;;  %12140 = vst [vmem:[#allocation103_spill] sm:$0xff] %v9862_v3  ;;  %12142 = vst [vmem:[#allocation105_spill] sm:$0xff] %v9868_v59 }
 0x5c6   : > { %3996 = vmatprep.subr.bf16.mxu0 %v9802_v13  ;;  %4037 = vmatprep.subr.bf16.mxu1 %v9805_v28 }
 0x5c9   : > { %3997 = vmatpush1.bf16.msra.mxu0 %v9808_v38  ;;  %4038 = vmatpush1.bf16.msra.mxu1 %v9812_v40 }
 0x5ca   : > { %3998 = vmatprep.subr.bf16.mxu0 %v9814_v46  ;;  %4039 = vmatprep.subr.bf16.mxu1 %v9817_v47 }
 0x5cd   : > { %3999 = vmatpush1.bf16.msra.mxu0 %v9820_v54  ;;  %4040 = vmatpush1.bf16.msra.mxu1 %v9824_v55  ;;  %v3249_v55 = vld [vmem:[#allocation18 + $0x138] sm:$0xff] }
 0x5ce   : > { %4000 = vmatprep.subr.bf16.mxu0 %v9826_v18  ;;  %4041 = vmatprep.subr.bf16.mxu1 %v9829_v26  ;;  %v3323_v26 = vld [vmem:[#allocation18 + $0x388] sm:$0xff] }
 0x5cf   : > { %v3327_v18 = vld [vmem:[#allocation18 + $0x3a8] sm:$0xff] }
 0x5d0   : > { %v9865_v17 = vcombine.high %v3323_v26, %v3327_v18  ;;  %v9872_v8 = vcombine.low %v3323_v26, %v3327_v18 }
 0x5d1   : > { %4001 = vmatpush1.bf16.msra.mxu0 %v9832_v27  ;;  %4042 = vmatpush1.bf16.msra.mxu1 %v9836_v1  ;;  %v3331_v1 = vld [vmem:[#allocation18 + $0x3c8] sm:$0xff] }
 0x5d2   : > { %4002 = vmatprep.subr.bf16.mxu0 %v9838_v29  ;;  %4043 = vmatprep.subr.bf16.mxu1 %v9841_v34  ;;  %12141 = vst [vmem:[#allocation104_spill] sm:$0xff] %v9865_v17  ;;  %v3330_v34 = vld [vmem:[#allocation18 + $0x3c0] sm:$0xff]  ;;  %v3335_v27 = vld [vmem:[#allocation18 + $0x3e8] sm:$0xff]  ;;  %12143 = vst [vmem:[#allocation106_spill] sm:$0xff] %v9872_v8 }
 0x5d3   : > { %v3334_v29 = vld [vmem:[#allocation18 + $0x3e0] sm:$0xff]  ;;  %v9877_v10 = vcombine.high %v3331_v1, %v3335_v27  ;;  %v9884_v35 = vcombine.low %v3331_v1, %v3335_v27 }
 0x5d4   : > { %v9874_v37 = vcombine.high %v3330_v34, %v3334_v29  ;;  %v9880_v19 = vcombine.low %v3330_v34, %v3334_v29 }
 0x5d5   : > { %4003 = vmatpush1.bf16.msra.mxu0 %v9844_v60  ;;  %4044 = vmatpush1.bf16.msra.mxu1 %v9848_v4  ;;  %12145 = vst [vmem:[#allocation108_spill] sm:$0xff] %v9877_v10  ;;  %v3213_v4 = vld [vmem:[#allocation18 + $0x18] sm:$0xff]  ;;  %12147 = vst [vmem:[#allocation110_spill] sm:$0xff] %v9884_v35 }
 0x5d6   : > { %4004 = vmatprep.subr.bf16.mxu0 %v9850_v11  ;;  %4045 = vmatprep.subr.bf16.mxu1 %v9853_v12  ;;  %12144 = vst [vmem:[#allocation107_spill] sm:$0xff] %v9874_v37  ;;  %v3212_v12 = vld [vmem:[#allocation18 + $0x10] sm:$0xff]  ;;  %v3217_v60 = vld [vmem:[#allocation18 + $0x38] sm:$0xff]  ;;  %12146 = vst [vmem:[#allocation109_spill] sm:$0xff] %v9880_v19 }
 0x5d7   : > { %v3216_v11 = vld [vmem:[#allocation18 + $0x30] sm:$0xff]  ;;  %v9889_v26 = vcombine.high %v3213_v4, %v3217_v60  ;;  %v9896_v27 = vcombine.low %v3213_v4, %v3217_v60 }
 0x5d8   : > { %v9886_v18 = vcombine.high %v3212_v12, %v3216_v11  ;;  %v9892_v29 = vcombine.low %v3212_v12, %v3216_v11 }
 0x5d9   : > { %4005 = vmatpush1.bf16.msra.mxu0 %v9856_v5  ;;  %4046 = vmatpush1.bf16.msra.mxu1 %v9860_v7  ;;  %12149 = vst [vmem:[#allocation112_spill] sm:$0xff] %v9889_v26  ;;  %v3221_v7 = vld [vmem:[#allocation18 + $0x58] sm:$0xff]  ;;  %12151 = vst [vmem:[#allocation114_spill] sm:$0xff] %v9896_v27 }
 0x5da   : > { %4006 = vmatprep.subr.bf16.mxu0 %v9862_v3  ;;  %4047 = vmatprep.subr.bf16.mxu1 %v9865_v17  ;;  %12148 = vst [vmem:[#allocation111_spill] sm:$0xff] %v9886_v18  ;;  %v3220_v17 = vld [vmem:[#allocation18 + $0x50] sm:$0xff]  ;;  %v3225_v5 = vld [vmem:[#allocation18 + $0x78] sm:$0xff]  ;;  %12150 = vst [vmem:[#allocation113_spill] sm:$0xff] %v9892_v29 }
 0x5db   : > { %v3224_v3 = vld [vmem:[#allocation18 + $0x70] sm:$0xff]  ;;  %v9901_v34 = vcombine.high %v3221_v7, %v3225_v5  ;;  %v9910_v60 = vcombine.low %v3221_v7, %v3225_v5 }
 0x5dc   : > { %v9898_v1 = vcombine.high %v3220_v17, %v3224_v3  ;;  %v9906_v11 = vcombine.low %v3220_v17, %v3224_v3 }
 0x5dd   : > { %4007 = vmatpush1.bf16.msra.mxu0 %v9868_v59  ;;  %4048 = vmatpush1.bf16.msra.mxu1 %v9872_v8  ;;  %12153 = vst [vmem:[#allocation116_spill] sm:$0xff] %v9901_v34  ;;  %v12154_v8 = vmov 0   ;;  %v3229_v59 = vld [vmem:[#allocation18 + $0x98] sm:$0xff]  ;;  %12156 = vst [vmem:[#allocation118_spill] sm:$0xff] %v9910_v60 }
 0x5de   : > { %4008 = vmatprep.subr.bf16.mxu0 %v9874_v37  ;;  %4049 = vmatprep.subr.bf16.mxu1 %v9877_v10  ;;  %12152 = vst [vmem:[#allocation115_spill] sm:$0xff] %v9898_v1  ;;  %v3228_v10 = vld [vmem:[#allocation18 + $0x90] sm:$0xff]  ;;  %12155 = vst [vmem:[#allocation117_spill] sm:$0xff] %v9906_v11 }
 0x5df   : > { %v3232_v37 = vld [vmem:[#allocation18 + $0xb0] sm:$0xff] }
 0x5e0   : > { %v9912_v4 = vcombine.high %v3228_v10, %v3232_v37  ;;  %v9920_v3 = vcombine.low %v3228_v10, %v3232_v37 }
 0x5e1   : > { %4009 = vmatpush1.bf16.msra.mxu0 %v9880_v19  ;;  %4050 = vmatpush1.bf16.msra.mxu1 %v9884_v35  ;;  %v3233_v19 = vld [vmem:[#allocation18 + $0xb8] sm:$0xff] }
 0x5e2   : > { %4060 = vmatprep.subr.bf16.mxu0 %v9886_v18  ;;  %4101 = vmatprep.subr.bf16.mxu1 %v9889_v26  ;;  %12157 = vst [vmem:[#allocation119_spill] sm:$0xff] %v9912_v4  ;;  %v9915_v12 = vcombine.high %v3229_v59, %v3233_v19  ;;  %v3236_v26 = vld [vmem:[#allocation18 + $0xd0] sm:$0xff]  ;;  %v3237_v35 = vld [vmem:[#allocation18 + $0xd8] sm:$0xff]  ;;  %12159 = vst [vmem:[#allocation121_spill] sm:$0xff] %v9920_v3  ;;  %v9924_v5 = vcombine.low %v3229_v59, %v3233_v19 }
 0x5e3   : > { %v3240_v18 = vld [vmem:[#allocation18 + $0xf0] sm:$0xff] }
 0x5e4   : > { %4011 = vmatmul.mubr.bf16.vlgmr.msra.gmra.mrb[16].mxu0 %v12154_v8  ;;  %4052 = vmatmul.mubr.bf16.vlgmr.msra.gmra.mrb[16].mxu1 %v12154_v8  ;;  %12158 = vst [vmem:[#allocation120_spill] sm:$0xff] %v9915_v12  ;;  %12160 = vst [vmem:[#allocation122_spill] sm:$0xff] %v9924_v5  ;;  %v9926_v7 = vcombine.high %v3236_v26, %v3240_v18  ;;  %v9932_v37 = vcombine.low %v3236_v26, %v3240_v18 }
 0x5e5   : > { %4061 = vmatpush1.bf16.msra.mxu0 %v9892_v29  ;;  %4102 = vmatpush1.bf16.msra.mxu1 %v9896_v27  ;;  %v3241_v29 = vld [vmem:[#allocation18 + $0xf8] sm:$0xff] }
 0x5e6   : > { %4062 = vmatprep.subr.bf16.mxu0 %v9898_v1  ;;  %4103 = vmatprep.subr.bf16.mxu1 %v9901_v34  ;;  %12161 = vst [vmem:[#allocation123_spill] sm:$0xff] %v9926_v7  ;;  %v9929_v17 = vcombine.high %v3237_v35, %v3241_v29  ;;  %v3244_v34 = vld [vmem:[#allocation18 + $0x110] sm:$0xff]  ;;  %v3245_v27 = vld [vmem:[#allocation18 + $0x118] sm:$0xff]  ;;  %12163 = vst [vmem:[#allocation125_spill] sm:$0xff] %v9932_v37  ;;  %v9936_v59 = vcombine.low %v3237_v35, %v3241_v29 }
 0x5e7   : > { %4092 = vmatprep.mubr.bf16.mxu0 %v12154_v8  ;;  %4133 = vmatprep.mubr.bf16.mxu1 %v12154_v8  ;;  %v3248_v1 = vld [vmem:[#allocation18 + $0x130] sm:$0xff]  ;;  %v9941_v19 = vcombine.high %v3245_v27, %v3249_v55  ;;  %v9948_v35 = vcombine.low %v3245_v27, %v3249_v55 }
 0x5e8   : > { %12162 = vst [vmem:[#allocation124_spill] sm:$0xff] %v9929_v17  ;;  %12164 = vst [vmem:[#allocation126_spill] sm:$0xff] %v9936_v59  ;;  %v9938_v10 = vcombine.high %v3244_v34, %v3248_v1  ;;  %v9944_v18 = vcombine.low %v3244_v34, %v3248_v1 }
 0x5e9   : > { %4063 = vmatpush1.bf16.msra.mxu0 %v9906_v11  ;;  %4104 = vmatpush1.bf16.msra.mxu1 %v9910_v60  ;;  %12166 = vst [vmem:[#allocation128_spill] sm:$0xff] %v9941_v19  ;;  %v3253_v60 = vld [vmem:[#allocation18 + $0x158] sm:$0xff]  ;;  %12168 = vst [vmem:[#allocation130_spill] sm:$0xff] %v9948_v35 }
 0x5ea   : > { %4064 = vmatprep.subr.bf16.mxu0 %v9912_v4  ;;  %4105 = vmatprep.subr.bf16.mxu1 %v9915_v12  ;;  %12165 = vst [vmem:[#allocation127_spill] sm:$0xff] %v9938_v10  ;;  %v3252_v12 = vld [vmem:[#allocation18 + $0x150] sm:$0xff]  ;;  %v3257_v11 = vld [vmem:[#allocation18 + $0x178] sm:$0xff]  ;;  %12167 = vst [vmem:[#allocation129_spill] sm:$0xff] %v9944_v18 }
 0x5eb   : > { %v3256_v4 = vld [vmem:[#allocation18 + $0x170] sm:$0xff]  ;;  %v9953_v29 = vcombine.high %v3253_v60, %v3257_v11  ;;  %v9960_v55 = vcombine.low %v3253_v60, %v3257_v11 }
 0x5ec   : > { %v9950_v26 = vcombine.high %v3252_v12, %v3256_v4  ;;  %v9956_v1 = vcombine.low %v3252_v12, %v3256_v4  ;;  %v3269_v12 = vld [vmem:[#allocation18 + $0x1d8] sm:$0xff] }
 0x5ed   : > { %4065 = vmatpush1.bf16.msra.mxu0 %v9920_v3  ;;  %4106 = vmatpush1.bf16.msra.mxu1 %v9924_v5  ;;  %12170 = vst [vmem:[#allocation132_spill] sm:$0xff] %v9953_v29  ;;  %v3261_v5 = vld [vmem:[#allocation18 + $0x198] sm:$0xff]  ;;  %12172 = vst [vmem:[#allocation134_spill] sm:$0xff] %v9960_v55 }
 0x5ee   : > { %4066 = vmatprep.subr.bf16.mxu0 %v9926_v7  ;;  %4107 = vmatprep.subr.bf16.mxu1 %v9929_v17  ;;  %12169 = vst [vmem:[#allocation131_spill] sm:$0xff] %v9950_v26  ;;  %v3260_v17 = vld [vmem:[#allocation18 + $0x190] sm:$0xff]  ;;  %v3265_v3 = vld [vmem:[#allocation18 + $0x1b8] sm:$0xff]  ;;  %12171 = vst [vmem:[#allocation133_spill] sm:$0xff] %v9956_v1 }
 0x5ef   : > { %v3264_v7 = vld [vmem:[#allocation18 + $0x1b0] sm:$0xff] }
 0x5f0   : > { %v9962_v27 = vcombine.high %v3260_v17, %v3264_v7  ;;  %v9976_v60 = vcombine.low %v3260_v17, %v3264_v7  ;;  %v3281_v7 = vld [vmem:[#allocation18 + $0x238] sm:$0xff] }
 0x5f1   : > { %4067 = vmatpush1.bf16.msra.mxu0 %v9932_v37  ;;  %4108 = vmatpush1.bf16.msra.mxu1 %v9936_v59  ;;  %v3272_v59 = vld [vmem:[#allocation18 + $0x1f0] sm:$0xff] }
 0x5f2   : > { %4068 = vmatprep.subr.bf16.mxu0 %v9938_v10  ;;  %4109 = vmatprep.subr.bf16.mxu1 %v9941_v19  ;;  %12173 = vst [vmem:[#allocation135_spill] sm:$0xff] %v9962_v27  ;;  %v9967_v19 = vcombine.high %v3261_v5, %v3265_v3  ;;  %v3268_v10 = vld [vmem:[#allocation18 + $0x1d0] sm:$0xff]  ;;  %12179 = vst [vmem:[#allocation141_spill] sm:$0xff] %v9976_v60 }
 0x5f3   : > { %v9988_v17 = vcombine.low %v3268_v10, %v3272_v59 }
 0x5f4   : > { %12175 = vst [vmem:[#allocation137_spill] sm:$0xff] %v9967_v19 }
 0x5f5   : > { %4069 = vmatpush1.bf16.msra.mxu0 %v9944_v18  ;;  %4110 = vmatpush1.bf16.msra.mxu1 %v9948_v35  ;;  %v3273_v35 = vld [vmem:[#allocation18 + $0x1f8] sm:$0xff]  ;;  %12183 = vst [vmem:[#allocation145_spill] sm:$0xff] %v9988_v17 }
 0x5f6   : > { %4070 = vmatprep.subr.bf16.mxu0 %v9950_v26  ;;  %4111 = vmatprep.subr.bf16.mxu1 %v9953_v29  ;;  %v9985_v54 = vcombine.high %v3269_v12, %v3273_v35 }
 0x5f7   : > { %v9964_v34 = vpop.f32.mrb[4].mxu0  ;;  %v9969_v37 = vpop.f32.mrb[4].mxu1 }
 0x5f8   : > { %12174 = vst [vmem:[#allocation136_spill] sm:$0xff] %v9964_v34  ;;  %12176 = vst [vmem:[#allocation138_spill] sm:$0xff] %v9969_v37  ;;  %v9971_v4 = vpop.f32.mrb[5].mxu0  ;;  %v9973_v18 = vpop.f32.mrb[5].mxu1  ;;  %v9980_v34 = vcombine.low %v3261_v5, %v3265_v3  ;;  %v9982_v37 = vcombine.high %v3268_v10, %v3272_v59  ;;  %v9992_v3 = vcombine.low %v3269_v12, %v3273_v35 }
 0x5f9   : > { %12177 = vst [vmem:[#allocation139_spill] sm:$0xff] %v9971_v4  ;;  %12178 = vst [vmem:[#allocation140_spill] sm:$0xff] %v9973_v18  ;;  %v2186_v11 = vpop.f32.mrb[6].mxu0  ;;  %4071 = vmatpush1.bf16.msra.mxu0 %v9956_v1  ;;  %v2227_v26 = vpop.f32.mrb[6].mxu1  ;;  %4112 = vmatpush1.bf16.msra.mxu1 %v9960_v55  ;;  %v3280_v18 = vld [vmem:[#allocation18 + $0x230] sm:$0xff]  ;;  %v3277_v1 = vld [vmem:[#allocation18 + $0x218] sm:$0xff] }
 0x5fa   : > { %v2187_v29 = vpop.f32.mrb[7].mxu0  ;;  %4072 = vmatprep.subr.bf16.mxu0 %v9962_v27  ;;  %12180 = vst [vmem:[#allocation142_spill] sm:$0xff] %v9980_v34  ;;  %12181 = vst [vmem:[#allocation143_spill] sm:$0xff] %v9982_v37  ;;  %v2228_v4 = vpop.f32.mrb[7].mxu1  ;;  %4113 = vmatprep.subr.bf16.mxu1 %v9967_v19  ;;  %v3276_v11 = vld [vmem:[#allocation18 + $0x210] sm:$0xff]  ;;  %v9997_v26 = vcombine.high %v3277_v1, %v3281_v7  ;;  %v3285_v19 = vld [vmem:[#allocation18 + $0x258] sm:$0xff]  ;;  %v10004_v10 = vcombine.low %v3277_v1, %v3281_v7 }
 0x5fb   : > { %12182 = vst [vmem:[#allocation144_spill] sm:$0xff] %v9985_v54  ;;  %12184 = vst [vmem:[#allocation146_spill] sm:$0xff] %v9992_v3  ;;  %v9994_v5 = vcombine.high %v3276_v11, %v3280_v18  ;;  %v3284_v29 = vld [vmem:[#allocation18 + $0x250] sm:$0xff]  ;;  %v3289_v27 = vld [vmem:[#allocation18 + $0x278] sm:$0xff]  ;;  %v10000_v59 = vcombine.low %v3276_v11, %v3280_v18 }
 0x5fc   : > { %12186 = vst [vmem:[#allocation148_spill] sm:$0xff] %v9997_v26  ;;  %v3288_v4 = vld [vmem:[#allocation18 + $0x270] sm:$0xff]  ;;  %12188 = vst [vmem:[#allocation150_spill] sm:$0xff] %v10004_v10  ;;  %v10009_v12 = vcombine.high %v3285_v19, %v3289_v27  ;;  %v10016_v1 = vcombine.low %v3285_v19, %v3289_v27 }
 0x5fd   : > { %4073 = vmatpush1.bf16.msra.mxu0 %v9976_v60  ;;  %4114 = vmatpush1.bf16.msra.mxu1 %v9980_v34  ;;  %12185 = vst [vmem:[#allocation147_spill] sm:$0xff] %v9994_v5  ;;  %12187 = vst [vmem:[#allocation149_spill] sm:$0xff] %v10000_v59  ;;  %v10006_v35 = vcombine.high %v3284_v29, %v3288_v4  ;;  %v3293_v34 = vld [vmem:[#allocation18 + $0x298] sm:$0xff]  ;;  %v10012_v18 = vcombine.low %v3284_v29, %v3288_v4 }
 0x5fe   : > { %4074 = vmatprep.subr.bf16.mxu0 %v9982_v37  ;;  %4115 = vmatprep.subr.bf16.mxu1 %v9985_v54  ;;  %12190 = vst [vmem:[#allocation152_spill] sm:$0xff] %v10009_v12  ;;  %v3292_v54 = vld [vmem:[#allocation18 + $0x290] sm:$0xff]  ;;  %v3297_v60 = vld [vmem:[#allocation18 + $0x2b8] sm:$0xff]  ;;  %12192 = vst [vmem:[#allocation154_spill] sm:$0xff] %v10016_v1 }
 0x5ff   : > { %12189 = vst [vmem:[#allocation151_spill] sm:$0xff] %v10006_v35  ;;  %v3296_v37 = vld [vmem:[#allocation18 + $0x2b0] sm:$0xff]  ;;  %12191 = vst [vmem:[#allocation153_spill] sm:$0xff] %v10012_v18  ;;  %v10021_v7 = vcombine.high %v3293_v34, %v3297_v60  ;;  %v10028_v19 = vcombine.low %v3293_v34, %v3297_v60 }
 0x600   : > { %v10018_v11 = vcombine.high %v3292_v54, %v3296_v37  ;;  %v10024_v29 = vcombine.low %v3292_v54, %v3296_v37 }
 0x601   : > { %4075 = vmatpush1.bf16.msra.mxu0 %v9988_v17  ;;  %4116 = vmatpush1.bf16.msra.mxu1 %v9992_v3  ;;  %12194 = vst [vmem:[#allocation156_spill] sm:$0xff] %v10021_v7  ;;  %v3301_v3 = vld [vmem:[#allocation18 + $0x2d8] sm:$0xff]  ;;  %12196 = vst [vmem:[#allocation158_spill] sm:$0xff] %v10028_v19 }
 0x602   : > { %4076 = vmatprep.subr.bf16.mxu0 %v9994_v5  ;;  %4117 = vmatprep.subr.bf16.mxu1 %v9997_v26  ;;  %12193 = vst [vmem:[#allocation155_spill] sm:$0xff] %v10018_v11  ;;  %v3300_v26 = vld [vmem:[#allocation18 + $0x2d0] sm:$0xff]  ;;  %v3305_v17 = vld [vmem:[#allocation18 + $0x2f8] sm:$0xff]  ;;  %12195 = vst [vmem:[#allocation157_spill] sm:$0xff] %v10024_v29 }
 0x603   : > { %v3304_v5 = vld [vmem:[#allocation18 + $0x2f0] sm:$0xff]  ;;  %v10033_v4 = vcombine.high %v3301_v3, %v3305_v17  ;;  %v10040_v37 = vcombine.low %v3301_v3, %v3305_v17 }
 0x604   : > { %v10030_v27 = vcombine.high %v3300_v26, %v3304_v5  ;;  %v10036_v54 = vcombine.low %v3300_v26, %v3304_v5 }
 0x605   : > { %4077 = vmatpush1.bf16.msra.mxu0 %v10000_v59  ;;  %4118 = vmatpush1.bf16.msra.mxu1 %v10004_v10  ;;  %12198 = vst [vmem:[#allocation160_spill] sm:$0xff] %v10033_v4  ;;  %v3309_v10 = vld [vmem:[#allocation18 + $0x318] sm:$0xff]  ;;  %12200 = vst [vmem:[#allocation162_spill] sm:$0xff] %v10040_v37 }
 0x606   : > { %4078 = vmatprep.subr.bf16.mxu0 %v10006_v35  ;;  %4119 = vmatprep.subr.bf16.mxu1 %v10009_v12  ;;  %12197 = vst [vmem:[#allocation159_spill] sm:$0xff] %v10030_v27  ;;  %v3308_v12 = vld [vmem:[#allocation18 + $0x310] sm:$0xff]  ;;  %v3313_v59 = vld [vmem:[#allocation18 + $0x338] sm:$0xff]  ;;  %12199 = vst [vmem:[#allocation161_spill] sm:$0xff] %v10036_v54 }
 0x607   : > { %v3312_v35 = vld [vmem:[#allocation18 + $0x330] sm:$0xff]  ;;  %v10045_v60 = vcombine.high %v3309_v10, %v3313_v59  ;;  %v10052_v17 = vcombine.low %v3309_v10, %v3313_v59 }
 0x608   : > { %v10042_v34 = vcombine.high %v3308_v12, %v3312_v35  ;;  %v10048_v5 = vcombine.low %v3308_v12, %v3312_v35 }
 0x609   : > { %4079 = vmatpush1.bf16.msra.mxu0 %v10012_v18  ;;  %4120 = vmatpush1.bf16.msra.mxu1 %v10016_v1  ;;  %12202 = vst [vmem:[#allocation164_spill] sm:$0xff] %v10045_v60  ;;  %v3317_v1 = vld [vmem:[#allocation18 + $0x358] sm:$0xff]  ;;  %12204 = vst [vmem:[#allocation166_spill] sm:$0xff] %v10052_v17 }
 0x60a   : > { %4080 = vmatprep.subr.bf16.mxu0 %v10018_v11  ;;  %4121 = vmatprep.subr.bf16.mxu1 %v10021_v7  ;;  %12201 = vst [vmem:[#allocation163_spill] sm:$0xff] %v10042_v34  ;;  %v3316_v7 = vld [vmem:[#allocation18 + $0x350] sm:$0xff]  ;;  %v3321_v18 = vld [vmem:[#allocation18 + $0x378] sm:$0xff]  ;;  %12203 = vst [vmem:[#allocation165_spill] sm:$0xff] %v10048_v5 }
 0x60b   : > { %v3320_v11 = vld [vmem:[#allocation18 + $0x370] sm:$0xff]  ;;  %v10057_v26 = vcombine.high %v3317_v1, %v3321_v18  ;;  %v10064_v59 = vcombine.low %v3317_v1, %v3321_v18 }
 0x60c   : > { %v10054_v3 = vcombine.high %v3316_v7, %v3320_v11  ;;  %v10060_v35 = vcombine.low %v3316_v7, %v3320_v11 }
 0x60d   : > { %4081 = vmatpush1.bf16.msra.mxu0 %v10024_v29  ;;  %4122 = vmatpush1.bf16.msra.mxu1 %v10028_v19  ;;  %12206 = vst [vmem:[#allocation168_spill] sm:$0xff] %v10057_v26  ;;  %v3325_v19 = vld [vmem:[#allocation18 + $0x398] sm:$0xff]  ;;  %12208 = vst [vmem:[#allocation170_spill] sm:$0xff] %v10064_v59 }
 0x60e   : > { %4082 = vmatprep.subr.bf16.mxu0 %v10030_v27  ;;  %4123 = vmatprep.subr.bf16.mxu1 %v10033_v4  ;;  %12205 = vst [vmem:[#allocation167_spill] sm:$0xff] %v10054_v3  ;;  %v3324_v4 = vld [vmem:[#allocation18 + $0x390] sm:$0xff]  ;;  %v3329_v29 = vld [vmem:[#allocation18 + $0x3b8] sm:$0xff]  ;;  %12207 = vst [vmem:[#allocation169_spill] sm:$0xff] %v10060_v35 }
 0x60f   : > { %v3328_v27 = vld [vmem:[#allocation18 + $0x3b0] sm:$0xff]  ;;  %v10069_v12 = vcombine.high %v3325_v19, %v3329_v29  ;;  %v10076_v18 = vcombine.low %v3325_v19, %v3329_v29 }
 0x610   : > { %v10066_v10 = vcombine.high %v3324_v4, %v3328_v27  ;;  %v10072_v11 = vcombine.low %v3324_v4, %v3328_v27 }
 0x611   : > { %4083 = vmatpush1.bf16.msra.mxu0 %v10036_v54  ;;  %4124 = vmatpush1.bf16.msra.mxu1 %v10040_v37  ;;  %12210 = vst [vmem:[#allocation172_spill] sm:$0xff] %v10069_v12  ;;  %v3333_v37 = vld [vmem:[#allocation18 + $0x3d8] sm:$0xff]  ;;  %12212 = vst [vmem:[#allocation174_spill] sm:$0xff] %v10076_v18 }
 0x612   : > { %4084 = vmatprep.subr.bf16.mxu0 %v10042_v34  ;;  %4125 = vmatprep.subr.bf16.mxu1 %v10045_v60  ;;  %12209 = vst [vmem:[#allocation171_spill] sm:$0xff] %v10066_v10  ;;  %v3332_v60 = vld [vmem:[#allocation18 + $0x3d0] sm:$0xff]  ;;  %v3337_v54 = vld [vmem:[#allocation18 + $0x3f8] sm:$0xff]  ;;  %12211 = vst [vmem:[#allocation173_spill] sm:$0xff] %v10072_v11 }
 0x613   : > { %v3336_v34 = vld [vmem:[#allocation18 + $0x3f0] sm:$0xff]  ;;  %v10081_v7 = vcombine.high %v3333_v37, %v3337_v54  ;;  %v10088_v29 = vcombine.low %v3333_v37, %v3337_v54 }
 0x614   : > { %v10078_v1 = vcombine.high %v3332_v60, %v3336_v34  ;;  %v10084_v27 = vcombine.low %v3332_v60, %v3336_v34 }
 0x615   : > { %4085 = vmatpush1.bf16.msra.mxu0 %v10048_v5  ;;  %4126 = vmatpush1.bf16.msra.mxu1 %v10052_v17  ;;  %12214 = vst [vmem:[#allocation176_spill] sm:$0xff] %v10081_v7  ;;  %v4151_v17 = vld [vmem:[#allocation21 + $0x8] sm:$0xff]  ;;  %12216 = vst [vmem:[#allocation178_spill] sm:$0xff] %v10088_v29 }
 0x616   : > { %4086 = vmatprep.subr.bf16.mxu0 %v10054_v3  ;;  %4127 = vmatprep.subr.bf16.mxu1 %v10057_v26  ;;  %12213 = vst [vmem:[#allocation175_spill] sm:$0xff] %v10078_v1  ;;  %v4150_v26 = vld [vmem:[#allocation21] sm:$0xff]  ;;  %v4155_v5 = vld [vmem:[#allocation21 + $0x28] sm:$0xff]  ;;  %12215 = vst [vmem:[#allocation177_spill] sm:$0xff] %v10084_v27 }
 0x617   : > { %v4154_v3 = vld [vmem:[#allocation21 + $0x20] sm:$0xff]  ;;  %v10093_v4 = vcombine.high %v4151_v17, %v4155_v5  ;;  %v10100_v54 = vcombine.low %v4151_v17, %v4155_v5 }
 0x618   : > { %v10090_v19 = vcombine.high %v4150_v26, %v4154_v3  ;;  %v10096_v34 = vcombine.low %v4150_v26, %v4154_v3 }
 0x619   : > { %4087 = vmatpush1.bf16.msra.mxu0 %v10060_v35  ;;  %4128 = vmatpush1.bf16.msra.mxu1 %v10064_v59  ;;  %12218 = vst [vmem:[#allocation180_spill] sm:$0xff] %v10093_v4  ;;  %v4159_v59 = vld [vmem:[#allocation21 + $0x48] sm:$0xff]  ;;  %12220 = vst [vmem:[#allocation182_spill] sm:$0xff] %v10100_v54 }
 0x61a   : > { %4088 = vmatprep.subr.bf16.mxu0 %v10066_v10  ;;  %4129 = vmatprep.subr.bf16.mxu1 %v10069_v12  ;;  %12217 = vst [vmem:[#allocation179_spill] sm:$0xff] %v10090_v19  ;;  %v4158_v12 = vld [vmem:[#allocation21 + $0x40] sm:$0xff]  ;;  %v4163_v35 = vld [vmem:[#allocation21 + $0x68] sm:$0xff]  ;;  %12219 = vst [vmem:[#allocation181_spill] sm:$0xff] %v10096_v34 }
 0x61b   : > { %v4162_v10 = vld [vmem:[#allocation21 + $0x60] sm:$0xff]  ;;  %v10105_v60 = vcombine.high %v4159_v59, %v4163_v35  ;;  %v10114_v5 = vcombine.low %v4159_v59, %v4163_v35 }
 0x61c   : > { %v10102_v37 = vcombine.high %v4158_v12, %v4162_v10  ;;  %v10110_v3 = vcombine.low %v4158_v12, %v4162_v10 }
 0x61d   : > { %4089 = vmatpush1.bf16.msra.mxu0 %v10072_v11  ;;  %4130 = vmatpush1.bf16.msra.mxu1 %v10076_v18  ;;  %12222 = vst [vmem:[#allocation184_spill] sm:$0xff] %v10105_v60  ;;  %v4167_v18 = vld [vmem:[#allocation21 + $0x88] sm:$0xff]  ;;  %12224 = vst [vmem:[#allocation186_spill] sm:$0xff] %v10114_v5 }
 0x61e   : > { %4090 = vmatprep.subr.bf16.mxu0 %v10078_v1  ;;  %4131 = vmatprep.subr.bf16.mxu1 %v10081_v7  ;;  %12221 = vst [vmem:[#allocation183_spill] sm:$0xff] %v10102_v37  ;;  %v4166_v7 = vld [vmem:[#allocation21 + $0x80] sm:$0xff]  ;;  %12223 = vst [vmem:[#allocation185_spill] sm:$0xff] %v10110_v3  ;;  %v4187_v11 = vld [vmem:[#allocation21 + $0x128] sm:$0xff] }
 0x61f   : > { %v4170_v1 = vld [vmem:[#allocation21 + $0xa0] sm:$0xff] }
 0x620   : > { %v10116_v17 = vcombine.high %v4166_v7, %v4170_v1  ;;  %v10124_v10 = vcombine.low %v4166_v7, %v4170_v1 }
 0x621   : > { %4091 = vmatpush1.bf16.msra.mxu0 %v10084_v27  ;;  %4132 = vmatpush1.bf16.msra.mxu1 %v10088_v29  ;;  %v4171_v27 = vld [vmem:[#allocation21 + $0xa8] sm:$0xff] }
 0x622   : > { %4918 = vmatprep.subr.bf16.mxu0 %v10090_v19  ;;  %4959 = vmatprep.subr.bf16.mxu1 %v10093_v4  ;;  %12225 = vst [vmem:[#allocation187_spill] sm:$0xff] %v10116_v17  ;;  %v10119_v26 = vcombine.high %v4167_v18, %v4171_v27  ;;  %v4174_v4 = vld [vmem:[#allocation21 + $0xc0] sm:$0xff]  ;;  %v4175_v29 = vld [vmem:[#allocation21 + $0xc8] sm:$0xff]  ;;  %12227 = vst [vmem:[#allocation189_spill] sm:$0xff] %v10124_v10  ;;  %v10128_v35 = vcombine.low %v4167_v18, %v4171_v27 }
 0x623   : > { %v4178_v19 = vld [vmem:[#allocation21 + $0xe0] sm:$0xff] }
 0x624   : > { %4093 = vmatmul.mubr.bf16.vlgmr.msra.gmra.mrb[20].mxu0 %v12154_v8  ;;  %4134 = vmatmul.mubr.bf16.vlgmr.msra.gmra.mrb[20].mxu1 %v12154_v8  ;;  %12226 = vst [vmem:[#allocation188_spill] sm:$0xff] %v10119_v26  ;;  %12228 = vst [vmem:[#allocation190_spill] sm:$0xff] %v10128_v35  ;;  %v10130_v59 = vcombine.high %v4174_v4, %v4178_v19  ;;  %v10136_v1 = vcombine.low %v4174_v4, %v4178_v19 }
 0x625   : > { %4919 = vmatpush1.bf16.msra.mxu0 %v10096_v34  ;;  %4960 = vmatpush1.bf16.msra.mxu1 %v10100_v54  ;;  %v4179_v34 = vld [vmem:[#allocation21 + $0xe8] sm:$0xff] }
 0x626   : > { %4920 = vmatprep.subr.bf16.mxu0 %v10102_v37  ;;  %4961 = vmatprep.subr.bf16.mxu1 %v10105_v60  ;;  %12229 = vst [vmem:[#allocation191_spill] sm:$0xff] %v10130_v59  ;;  %v10133_v12 = vcombine.high %v4175_v29, %v4179_v34  ;;  %v4182_v60 = vld [vmem:[#allocation21 + $0x100] sm:$0xff]  ;;  %v4183_v54 = vld [vmem:[#allocation21 + $0x108] sm:$0xff]  ;;  %12231 = vst [vmem:[#allocation193_spill] sm:$0xff] %v10136_v1  ;;  %v10140_v18 = vcombine.low %v4175_v29, %v4179_v34 }
 0x627   : > { %4950 = vmatprep.mubr.bf16.mxu0 %v12154_v8  ;;  %4991 = vmatprep.mubr.bf16.mxu1 %v12154_v8  ;;  %v4186_v37 = vld [vmem:[#allocation21 + $0x120] sm:$0xff]  ;;  %v10145_v27 = vcombine.high %v4183_v54, %v4187_v11  ;;  %v10152_v29 = vcombine.low %v4183_v54, %v4187_v11 }
 0x628   : > { %12230 = vst [vmem:[#allocation192_spill] sm:$0xff] %v10133_v12  ;;  %12232 = vst [vmem:[#allocation194_spill] sm:$0xff] %v10140_v18  ;;  %v10142_v7 = vcombine.high %v4182_v60, %v4186_v37  ;;  %v10148_v19 = vcombine.low %v4182_v60, %v4186_v37 }
 0x629   : > { %4921 = vmatpush1.bf16.msra.mxu0 %v10110_v3  ;;  %4962 = vmatpush1.bf16.msra.mxu1 %v10114_v5  ;;  %12234 = vst [vmem:[#allocation196_spill] sm:$0xff] %v10145_v27  ;;  %v4191_v5 = vld [vmem:[#allocation21 + $0x148] sm:$0xff]  ;;  %12236 = vst [vmem:[#allocation198_spill] sm:$0xff] %v10152_v29 }
 0x62a   : > { %4922 = vmatprep.subr.bf16.mxu0 %v10116_v17  ;;  %4963 = vmatprep.subr.bf16.mxu1 %v10119_v26  ;;  %12233 = vst [vmem:[#allocation195_spill] sm:$0xff] %v10142_v7  ;;  %v4190_v26 = vld [vmem:[#allocation21 + $0x140] sm:$0xff]  ;;  %v4195_v3 = vld [vmem:[#allocation21 + $0x168] sm:$0xff]  ;;  %12235 = vst [vmem:[#allocation197_spill] sm:$0xff] %v10148_v19 }
 0x62b   : > { %v4194_v17 = vld [vmem:[#allocation21 + $0x160] sm:$0xff]  ;;  %v10157_v34 = vcombine.high %v4191_v5, %v4195_v3  ;;  %v10164_v11 = vcombine.low %v4191_v5, %v4195_v3 }
 0x62c   : > { %v10154_v4 = vcombine.high %v4190_v26, %v4194_v17  ;;  %v10160_v37 = vcombine.low %v4190_v26, %v4194_v17  ;;  %v4207_v26 = vld [vmem:[#allocation21 + $0x1c8] sm:$0xff] }
 0x62d   : > { %4923 = vmatpush1.bf16.msra.mxu0 %v10124_v10  ;;  %4964 = vmatpush1.bf16.msra.mxu1 %v10128_v35  ;;  %12238 = vst [vmem:[#allocation200_spill] sm:$0xff] %v10157_v34  ;;  %v4199_v35 = vld [vmem:[#allocation21 + $0x188] sm:$0xff]  ;;  %12240 = vst [vmem:[#allocation202_spill] sm:$0xff] %v10164_v11 }
 0x62e   : > { %4924 = vmatprep.subr.bf16.mxu0 %v10130_v59  ;;  %4965 = vmatprep.subr.bf16.mxu1 %v10133_v12  ;;  %12237 = vst [vmem:[#allocation199_spill] sm:$0xff] %v10154_v4  ;;  %v4198_v12 = vld [vmem:[#allocation21 + $0x180] sm:$0xff]  ;;  %v4203_v10 = vld [vmem:[#allocation21 + $0x1a8] sm:$0xff]  ;;  %12239 = vst [vmem:[#allocation201_spill] sm:$0xff] %v10160_v37 }
 0x62f   : > { %v4202_v59 = vld [vmem:[#allocation21 + $0x1a0] sm:$0xff] }
 0x630   : > { %v10166_v54 = vcombine.high %v4198_v12, %v4202_v59  ;;  %v10180_v5 = vcombine.low %v4198_v12, %v4202_v59  ;;  %v4219_v59 = vld [vmem:[#allocation21 + $0x228] sm:$0xff] }
 0x631   : > { %4925 = vmatpush1.bf16.msra.mxu0 %v10136_v1  ;;  %4966 = vmatpush1.bf16.msra.mxu1 %v10140_v18  ;;  %v4210_v18 = vld [vmem:[#allocation21 + $0x1e0] sm:$0xff] }
 0x632   : > { %4926 = vmatprep.subr.bf16.mxu0 %v10142_v7  ;;  %4967 = vmatprep.subr.bf16.mxu1 %v10145_v27  ;;  %12241 = vst [vmem:[#allocation203_spill] sm:$0xff] %v10166_v54  ;;  %v10171_v27 = vcombine.high %v4199_v35, %v4203_v10  ;;  %v4206_v7 = vld [vmem:[#allocation21 + $0x1c0] sm:$0xff]  ;;  %12247 = vst [vmem:[#allocation209_spill] sm:$0xff] %v10180_v5 }
 0x633   : > { %v10192_v12 = vcombine.low %v4206_v7, %v4210_v18 }
 0x634   : > { %12243 = vst [vmem:[#allocation205_spill] sm:$0xff] %v10171_v27 }
 0x635   : > { %4927 = vmatpush1.bf16.msra.mxu0 %v10148_v19  ;;  %4968 = vmatpush1.bf16.msra.mxu1 %v10152_v29  ;;  %v4211_v29 = vld [vmem:[#allocation21 + $0x1e8] sm:$0xff]  ;;  %12251 = vst [vmem:[#allocation213_spill] sm:$0xff] %v10192_v12 }
 0x636   : > { %4928 = vmatprep.subr.bf16.mxu0 %v10154_v4  ;;  %4969 = vmatprep.subr.bf16.mxu1 %v10157_v34  ;;  %v10189_v55 = vcombine.high %v4207_v26, %v4211_v29 }
 0x637   : > { %v10168_v60 = vpop.f32.mrb[8].mxu0  ;;  %v10173_v1 = vpop.f32.mrb[8].mxu1 }
 0x638   : > { %12242 = vst [vmem:[#allocation204_spill] sm:$0xff] %v10168_v60  ;;  %12244 = vst [vmem:[#allocation206_spill] sm:$0xff] %v10173_v1  ;;  %v10175_v17 = vpop.f32.mrb[9].mxu0  ;;  %v10177_v19 = vpop.f32.mrb[9].mxu1  ;;  %v10184_v60 = vcombine.low %v4199_v35, %v4203_v10  ;;  %v10186_v1 = vcombine.high %v4206_v7, %v4210_v18  ;;  %v10196_v10 = vcombine.low %v4207_v26, %v4211_v29 }
 0x639   : > { %12245 = vst [vmem:[#allocation207_spill] sm:$0xff] %v10175_v17  ;;  %12246 = vst [vmem:[#allocation208_spill] sm:$0xff] %v10177_v19  ;;  %v3084_v3 = vpop.f32.mrb[10].mxu0  ;;  %4929 = vmatpush1.bf16.msra.mxu0 %v10160_v37  ;;  %v3125_v4 = vpop.f32.mrb[10].mxu1  ;;  %4970 = vmatpush1.bf16.msra.mxu1 %v10164_v11  ;;  %v4218_v19 = vld [vmem:[#allocation21 + $0x220] sm:$0xff]  ;;  %v4215_v37 = vld [vmem:[#allocation21 + $0x208] sm:$0xff] }
 0x63a   : > { %v3085_v34 = vpop.f32.mrb[11].mxu0  ;;  %4930 = vmatprep.subr.bf16.mxu0 %v10166_v54  ;;  %12248 = vst [vmem:[#allocation210_spill] sm:$0xff] %v10184_v60  ;;  %12249 = vst [vmem:[#allocation211_spill] sm:$0xff] %v10186_v1  ;;  %v3126_v17 = vpop.f32.mrb[11].mxu1  ;;  %4971 = vmatprep.subr.bf16.mxu1 %v10171_v27  ;;  %v4214_v3 = vld [vmem:[#allocation21 + $0x200] sm:$0xff]  ;;  %v10201_v4 = vcombine.high %v4215_v37, %v4219_v59  ;;  %v4223_v27 = vld [vmem:[#allocation21 + $0x248] sm:$0xff]  ;;  %v10208_v7 = vcombine.low %v4215_v37, %v4219_v59 }
 0x63b   : > { %12250 = vst [vmem:[#allocation212_spill] sm:$0xff] %v10189_v55  ;;  %12252 = vst [vmem:[#allocation214_spill] sm:$0xff] %v10196_v10  ;;  %v10198_v35 = vcombine.high %v4214_v3, %v4218_v19  ;;  %v4222_v34 = vld [vmem:[#allocation21 + $0x240] sm:$0xff]  ;;  %v4227_v54 = vld [vmem:[#allocation21 + $0x268] sm:$0xff]  ;;  %v10204_v18 = vcombine.low %v4214_v3, %v4218_v19 }
 0x63c   : > { %12254 = vst [vmem:[#allocation216_spill] sm:$0xff] %v10201_v4  ;;  %v4226_v17 = vld [vmem:[#allocation21 + $0x260] sm:$0xff]  ;;  %12256 = vst [vmem:[#allocation218_spill] sm:$0xff] %v10208_v7  ;;  %v10213_v26 = vcombine.high %v4223_v27, %v4227_v54  ;;  %v10220_v37 = vcombine.low %v4223_v27, %v4227_v54 }
 0x63d   : > { %4931 = vmatpush1.bf16.msra.mxu0 %v10180_v5  ;;  %4972 = vmatpush1.bf16.msra.mxu1 %v10184_v60  ;;  %12253 = vst [vmem:[#allocation215_spill] sm:$0xff] %v10198_v35  ;;  %12255 = vst [vmem:[#allocation217_spill] sm:$0xff] %v10204_v18  ;;  %v10210_v29 = vcombine.high %v4222_v34, %v4226_v17  ;;  %v4231_v60 = vld [vmem:[#allocation21 + $0x288] sm:$0xff]  ;;  %v10216_v19 = vcombine.low %v4222_v34, %v4226_v17 }
 0x63e   : > { %4932 = vmatprep.subr.bf16.mxu0 %v10186_v1  ;;  %4973 = vmatprep.subr.bf16.mxu1 %v10189_v55  ;;  %12258 = vst [vmem:[#allocation220_spill] sm:$0xff] %v10213_v26  ;;  %v4230_v55 = vld [vmem:[#allocation21 + $0x280] sm:$0xff]  ;;  %v4235_v5 = vld [vmem:[#allocation21 + $0x2a8] sm:$0xff]  ;;  %12260 = vst [vmem:[#allocation222_spill] sm:$0xff] %v10220_v37 }
 0x63f   : > { %12257 = vst [vmem:[#allocation219_spill] sm:$0xff] %v10210_v29  ;;  %v4234_v1 = vld [vmem:[#allocation21 + $0x2a0] sm:$0xff]  ;;  %12259 = vst [vmem:[#allocation221_spill] sm:$0xff] %v10216_v19  ;;  %v10225_v59 = vcombine.high %v4231_v60, %v4235_v5  ;;  %v10232_v27 = vcombine.low %v4231_v60, %v4235_v5 }
 0x640   : > { %v10222_v3 = vcombine.high %v4230_v55, %v4234_v1  ;;  %v10228_v34 = vcombine.low %v4230_v55, %v4234_v1 }
 0x641   : > { %4933 = vmatpush1.bf16.msra.mxu0 %v10192_v12  ;;  %4974 = vmatpush1.bf16.msra.mxu1 %v10196_v10  ;;  %12262 = vst [vmem:[#allocation224_spill] sm:$0xff] %v10225_v59  ;;  %v4239_v10 = vld [vmem:[#allocation21 + $0x2c8] sm:$0xff]  ;;  %12264 = vst [vmem:[#allocation226_spill] sm:$0xff] %v10232_v27 }
 0x642   : > { %4934 = vmatprep.subr.bf16.mxu0 %v10198_v35  ;;  %4975 = vmatprep.subr.bf16.mxu1 %v10201_v4  ;;  %12261 = vst [vmem:[#allocation223_spill] sm:$0xff] %v10222_v3  ;;  %v4238_v4 = vld [vmem:[#allocation21 + $0x2c0] sm:$0xff]  ;;  %v4243_v12 = vld [vmem:[#allocation21 + $0x2e8] sm:$0xff]  ;;  %12263 = vst [vmem:[#allocation225_spill] sm:$0xff] %v10228_v34 }
 0x643   : > { %v4242_v35 = vld [vmem:[#allocation21 + $0x2e0] sm:$0xff]  ;;  %v10237_v17 = vcombine.high %v4239_v10, %v4243_v12  ;;  %v10244_v1 = vcombine.low %v4239_v10, %v4243_v12 }
 0x644   : > { %v10234_v54 = vcombine.high %v4238_v4, %v4242_v35  ;;  %v10240_v55 = vcombine.low %v4238_v4, %v4242_v35 }
 0x645   : > { %4935 = vmatpush1.bf16.msra.mxu0 %v10204_v18  ;;  %4976 = vmatpush1.bf16.msra.mxu1 %v10208_v7  ;;  %12266 = vst [vmem:[#allocation228_spill] sm:$0xff] %v10237_v17  ;;  %v4247_v7 = vld [vmem:[#allocation21 + $0x308] sm:$0xff]  ;;  %12268 = vst [vmem:[#allocation230_spill] sm:$0xff] %v10244_v1 }
 0x646   : > { %4936 = vmatprep.subr.bf16.mxu0 %v10210_v29  ;;  %4977 = vmatprep.subr.bf16.mxu1 %v10213_v26  ;;  %12265 = vst [vmem:[#allocation227_spill] sm:$0xff] %v10234_v54  ;;  %v4246_v26 = vld [vmem:[#allocation21 + $0x300] sm:$0xff]  ;;  %v4251_v18 = vld [vmem:[#allocation21 + $0x328] sm:$0xff]  ;;  %12267 = vst [vmem:[#allocation229_spill] sm:$0xff] %v10240_v55 }
 0x647   : > { %v4250_v29 = vld [vmem:[#allocation21 + $0x320] sm:$0xff]  ;;  %v10249_v5 = vcombine.high %v4247_v7, %v4251_v18  ;;  %v10256_v12 = vcombine.low %v4247_v7, %v4251_v18 }
 0x648   : > { %v10246_v60 = vcombine.high %v4246_v26, %v4250_v29  ;;  %v10252_v35 = vcombine.low %v4246_v26, %v4250_v29 }
 0x649   : > { %4937 = vmatpush1.bf16.msra.mxu0 %v10216_v19  ;;  %4978 = vmatpush1.bf16.msra.mxu1 %v10220_v37  ;;  %12270 = vst [vmem:[#allocation232_spill] sm:$0xff] %v10249_v5  ;;  %v4255_v37 = vld [vmem:[#allocation21 + $0x348] sm:$0xff]  ;;  %12272 = vst [vmem:[#allocation234_spill] sm:$0xff] %v10256_v12 }
 0x64a   : > { %4938 = vmatprep.subr.bf16.mxu0 %v10222_v3  ;;  %4979 = vmatprep.subr.bf16.mxu1 %v10225_v59  ;;  %12269 = vst [vmem:[#allocation231_spill] sm:$0xff] %v10246_v60  ;;  %v4254_v59 = vld [vmem:[#allocation21 + $0x340] sm:$0xff]  ;;  %v4259_v19 = vld [vmem:[#allocation21 + $0x368] sm:$0xff]  ;;  %12271 = vst [vmem:[#allocation233_spill] sm:$0xff] %v10252_v35 }
 0x64b   : > { %v4258_v3 = vld [vmem:[#allocation21 + $0x360] sm:$0xff]  ;;  %v10261_v4 = vcombine.high %v4255_v37, %v4259_v19  ;;  %v10268_v18 = vcombine.low %v4255_v37, %v4259_v19 }
 0x64c   : > { %v10258_v10 = vcombine.high %v4254_v59, %v4258_v3  ;;  %v10264_v29 = vcombine.low %v4254_v59, %v4258_v3 }
 0x64d   : > { %4939 = vmatpush1.bf16.msra.mxu0 %v10228_v34  ;;  %4980 = vmatpush1.bf16.msra.mxu1 %v10232_v27  ;;  %12274 = vst [vmem:[#allocation236_spill] sm:$0xff] %v10261_v4  ;;  %v4263_v27 = vld [vmem:[#allocation21 + $0x388] sm:$0xff]  ;;  %12276 = vst [vmem:[#allocation238_spill] sm:$0xff] %v10268_v18 }
 0x64e   : > { %4940 = vmatprep.subr.bf16.mxu0 %v10234_v54  ;;  %4981 = vmatprep.subr.bf16.mxu1 %v10237_v17  ;;  %12273 = vst [vmem:[#allocation235_spill] sm:$0xff] %v10258_v10  ;;  %v4262_v17 = vld [vmem:[#allocation21 + $0x380] sm:$0xff]  ;;  %v4267_v34 = vld [vmem:[#allocation21 + $0x3a8] sm:$0xff]  ;;  %12275 = vst [vmem:[#allocation237_spill] sm:$0xff] %v10264_v29 }
 0x64f   : > { %v4266_v54 = vld [vmem:[#allocation21 + $0x3a0] sm:$0xff]  ;;  %v10273_v26 = vcombine.high %v4263_v27, %v4267_v34  ;;  %v10280_v19 = vcombine.low %v4263_v27, %v4267_v34 }
 0x650   : > { %v10270_v7 = vcombine.high %v4262_v17, %v4266_v54  ;;  %v10276_v3 = vcombine.low %v4262_v17, %v4266_v54 }
 0x651   : > { %4941 = vmatpush1.bf16.msra.mxu0 %v10240_v55  ;;  %4982 = vmatpush1.bf16.msra.mxu1 %v10244_v1  ;;  %12278 = vst [vmem:[#allocation240_spill] sm:$0xff] %v10273_v26  ;;  %v4271_v1 = vld [vmem:[#allocation21 + $0x3c8] sm:$0xff]  ;;  %12280 = vst [vmem:[#allocation242_spill] sm:$0xff] %v10280_v19 }
 0x652   : > { %4942 = vmatprep.subr.bf16.mxu0 %v10246_v60  ;;  %4983 = vmatprep.subr.bf16.mxu1 %v10249_v5  ;;  %12277 = vst [vmem:[#allocation239_spill] sm:$0xff] %v10270_v7  ;;  %v4270_v5 = vld [vmem:[#allocation21 + $0x3c0] sm:$0xff]  ;;  %v4275_v55 = vld [vmem:[#allocation21 + $0x3e8] sm:$0xff]  ;;  %12279 = vst [vmem:[#allocation241_spill] sm:$0xff] %v10276_v3 }
 0x653   : > { %v4274_v60 = vld [vmem:[#allocation21 + $0x3e0] sm:$0xff]  ;;  %v10285_v59 = vcombine.high %v4271_v1, %v4275_v55  ;;  %v10292_v34 = vcombine.low %v4271_v1, %v4275_v55 }
 0x654   : > { %v10282_v37 = vcombine.high %v4270_v5, %v4274_v60  ;;  %v10288_v54 = vcombine.low %v4270_v5, %v4274_v60 }
 0x655   : > { %4943 = vmatpush1.bf16.msra.mxu0 %v10252_v35  ;;  %4984 = vmatpush1.bf16.msra.mxu1 %v10256_v12  ;;  %12282 = vst [vmem:[#allocation244_spill] sm:$0xff] %v10285_v59  ;;  %v4153_v12 = vld [vmem:[#allocation21 + $0x18] sm:$0xff]  ;;  %12284 = vst [vmem:[#allocation246_spill] sm:$0xff] %v10292_v34 }
 0x656   : > { %4944 = vmatprep.subr.bf16.mxu0 %v10258_v10  ;;  %4985 = vmatprep.subr.bf16.mxu1 %v10261_v4  ;;  %12281 = vst [vmem:[#allocation243_spill] sm:$0xff] %v10282_v37  ;;  %v4152_v4 = vld [vmem:[#allocation21 + $0x10] sm:$0xff]  ;;  %v4157_v35 = vld [vmem:[#allocation21 + $0x38] sm:$0xff]  ;;  %12283 = vst [vmem:[#allocation245_spill] sm:$0xff] %v10288_v54 }
 0x657   : > { %v4156_v10 = vld [vmem:[#allocation21 + $0x30] sm:$0xff]  ;;  %v10297_v17 = vcombine.high %v4153_v12, %v4157_v35  ;;  %v10304_v55 = vcombine.low %v4153_v12, %v4157_v35 }
 0x658   : > { %v10294_v27 = vcombine.high %v4152_v4, %v4156_v10  ;;  %v10300_v60 = vcombine.low %v4152_v4, %v4156_v10 }
 0x659   : > { %4945 = vmatpush1.bf16.msra.mxu0 %v10264_v29  ;;  %4986 = vmatpush1.bf16.msra.mxu1 %v10268_v18  ;;  %12286 = vst [vmem:[#allocation248_spill] sm:$0xff] %v10297_v17  ;;  %v4161_v18 = vld [vmem:[#allocation21 + $0x58] sm:$0xff]  ;;  %12288 = vst [vmem:[#allocation250_spill] sm:$0xff] %v10304_v55 }
 0x65a   : > { %4946 = vmatprep.subr.bf16.mxu0 %v10270_v7  ;;  %4987 = vmatprep.subr.bf16.mxu1 %v10273_v26  ;;  %12285 = vst [vmem:[#allocation247_spill] sm:$0xff] %v10294_v27  ;;  %v4160_v26 = vld [vmem:[#allocation21 + $0x50] sm:$0xff]  ;;  %v4165_v29 = vld [vmem:[#allocation21 + $0x78] sm:$0xff]  ;;  %12287 = vst [vmem:[#allocation249_spill] sm:$0xff] %v10300_v60 }
 0x65b   : > { %v4164_v7 = vld [vmem:[#allocation21 + $0x70] sm:$0xff]  ;;  %v10309_v5 = vcombine.high %v4161_v18, %v4165_v29  ;;  %v10318_v35 = vcombine.low %v4161_v18, %v4165_v29 }
 0x65c   : > { %v10306_v1 = vcombine.high %v4160_v26, %v4164_v7  ;;  %v10314_v10 = vcombine.low %v4160_v26, %v4164_v7 }
 0x65d   : > { %4947 = vmatpush1.bf16.msra.mxu0 %v10276_v3  ;;  %4988 = vmatpush1.bf16.msra.mxu1 %v10280_v19  ;;  %12290 = vst [vmem:[#allocation252_spill] sm:$0xff] %v10309_v5  ;;  %v4169_v19 = vld [vmem:[#allocation21 + $0x98] sm:$0xff]  ;;  %12292 = vst [vmem:[#allocation254_spill] sm:$0xff] %v10318_v35 }
 0x65e   : > { %4948 = vmatprep.subr.bf16.mxu0 %v10282_v37  ;;  %4989 = vmatprep.subr.bf16.mxu1 %v10285_v59  ;;  %12289 = vst [vmem:[#allocation251_spill] sm:$0xff] %v10306_v1  ;;  %v4168_v59 = vld [vmem:[#allocation21 + $0x90] sm:$0xff]  ;;  %12291 = vst [vmem:[#allocation253_spill] sm:$0xff] %v10314_v10  ;;  %v4189_v3 = vld [vmem:[#allocation21 + $0x138] sm:$0xff] }
 0x65f   : > { %v4172_v37 = vld [vmem:[#allocation21 + $0xb0] sm:$0xff] }
 0x660   : > { %v10320_v12 = vcombine.high %v4168_v59, %v4172_v37  ;;  %v10328_v7 = vcombine.low %v4168_v59, %v4172_v37 }
 0x661   : > { %4949 = vmatpush1.bf16.msra.mxu0 %v10288_v54  ;;  %4990 = vmatpush1.bf16.msra.mxu1 %v10292_v34  ;;  %v4173_v54 = vld [vmem:[#allocation21 + $0xb8] sm:$0xff] }
 0x662   : > { %5000 = vmatprep.subr.bf16.mxu0 %v10294_v27  ;;  %5041 = vmatprep.subr.bf16.mxu1 %v10297_v17  ;;  %12293 = vst [vmem:[#allocation255_spill] sm:$0xff] %v10320_v12  ;;  %v10323_v4 = vcombine.high %v4169_v19, %v4173_v54  ;;  %v4176_v17 = vld [vmem:[#allocation21 + $0xd0] sm:$0xff]  ;;  %v4177_v34 = vld [vmem:[#allocation21 + $0xd8] sm:$0xff]  ;;  %12295 = vst [vmem:[#allocation257_spill] sm:$0xff] %v10328_v7  ;;  %v10332_v29 = vcombine.low %v4169_v19, %v4173_v54 }
 0x663   : > { %v4180_v27 = vld [vmem:[#allocation21 + $0xf0] sm:$0xff] }
 0x664   : > { %4951 = vmatmul.mubr.bf16.vlgmr.msra.gmra.mrb[24].mxu0 %v12154_v8  ;;  %4992 = vmatmul.mubr.bf16.vlgmr.msra.gmra.mrb[24].mxu1 %v12154_v8  ;;  %12294 = vst [vmem:[#allocation256_spill] sm:$0xff] %v10323_v4  ;;  %12296 = vst [vmem:[#allocation258_spill] sm:$0xff] %v10332_v29  ;;  %v10334_v18 = vcombine.high %v4176_v17, %v4180_v27  ;;  %v10340_v37 = vcombine.low %v4176_v17, %v4180_v27 }
 0x665   : > { %5001 = vmatpush1.bf16.msra.mxu0 %v10300_v60  ;;  %5042 = vmatpush1.bf16.msra.mxu1 %v10304_v55  ;;  %v4181_v60 = vld [vmem:[#allocation21 + $0xf8] sm:$0xff] }
 0x666   : > { %5002 = vmatprep.subr.bf16.mxu0 %v10306_v1  ;;  %5043 = vmatprep.subr.bf16.mxu1 %v10309_v5  ;;  %12297 = vst [vmem:[#allocation259_spill] sm:$0xff] %v10334_v18  ;;  %v10337_v26 = vcombine.high %v4177_v34, %v4181_v60  ;;  %v4184_v5 = vld [vmem:[#allocation21 + $0x110] sm:$0xff]  ;;  %v4185_v55 = vld [vmem:[#allocation21 + $0x118] sm:$0xff]  ;;  %12299 = vst [vmem:[#allocation261_spill] sm:$0xff] %v10340_v37  ;;  %v10344_v19 = vcombine.low %v4177_v34, %v4181_v60 }
 0x667   : > { %5032 = vmatprep.mubr.bf16.mxu0 %v12154_v8  ;;  %5073 = vmatprep.mubr.bf16.mxu1 %v12154_v8  ;;  %v4188_v1 = vld [vmem:[#allocation21 + $0x130] sm:$0xff]  ;;  %v10349_v54 = vcombine.high %v4185_v55, %v4189_v3  ;;  %v10356_v34 = vcombine.low %v4185_v55, %v4189_v3 }
 0x668   : > { %12298 = vst [vmem:[#allocation260_spill] sm:$0xff] %v10337_v26  ;;  %12300 = vst [vmem:[#allocation262_spill] sm:$0xff] %v10344_v19  ;;  %v10346_v59 = vcombine.high %v4184_v5, %v4188_v1  ;;  %v10352_v27 = vcombine.low %v4184_v5, %v4188_v1 }
 0x669   : > { %5003 = vmatpush1.bf16.msra.mxu0 %v10314_v10  ;;  %5044 = vmatpush1.bf16.msra.mxu1 %v10318_v35  ;;  %12302 = vst [vmem:[#allocation264_spill] sm:$0xff] %v10349_v54  ;;  %v4193_v35 = vld [vmem:[#allocation21 + $0x158] sm:$0xff]  ;;  %12304 = vst [vmem:[#allocation266_spill] sm:$0xff] %v10356_v34 }
 0x66a   : > { %5004 = vmatprep.subr.bf16.mxu0 %v10320_v12  ;;  %5045 = vmatprep.subr.bf16.mxu1 %v10323_v4  ;;  %12301 = vst [vmem:[#allocation263_spill] sm:$0xff] %v10346_v59  ;;  %v4192_v4 = vld [vmem:[#allocation21 + $0x150] sm:$0xff]  ;;  %v4197_v10 = vld [vmem:[#allocation21 + $0x178] sm:$0xff]  ;;  %12303 = vst [vmem:[#allocation265_spill] sm:$0xff] %v10352_v27 }
 0x66b   : > { %v4196_v12 = vld [vmem:[#allocation21 + $0x170] sm:$0xff]  ;;  %v10361_v60 = vcombine.high %v4193_v35, %v4197_v10  ;;  %v10368_v3 = vcombine.low %v4193_v35, %v4197_v10 }
 0x66c   : > { %v10358_v17 = vcombine.high %v4192_v4, %v4196_v12  ;;  %v10364_v1 = vcombine.low %v4192_v4, %v4196_v12  ;;  %v4209_v4 = vld [vmem:[#allocation21 + $0x1d8] sm:$0xff] }
 0x66d   : > { %5005 = vmatpush1.bf16.msra.mxu0 %v10328_v7  ;;  %5046 = vmatpush1.bf16.msra.mxu1 %v10332_v29  ;;  %12306 = vst [vmem:[#allocation268_spill] sm:$0xff] %v10361_v60  ;;  %v4201_v29 = vld [vmem:[#allocation21 + $0x198] sm:$0xff]  ;;  %12308 = vst [vmem:[#allocation270_spill] sm:$0xff] %v10368_v3 }
 0x66e   : > { %5006 = vmatprep.subr.bf16.mxu0 %v10334_v18  ;;  %5047 = vmatprep.subr.bf16.mxu1 %v10337_v26  ;;  %12305 = vst [vmem:[#allocation267_spill] sm:$0xff] %v10358_v17  ;;  %v4200_v26 = vld [vmem:[#allocation21 + $0x190] sm:$0xff]  ;;  %v4205_v7 = vld [vmem:[#allocation21 + $0x1b8] sm:$0xff]  ;;  %12307 = vst [vmem:[#allocation269_spill] sm:$0xff] %v10364_v1 }
 0x66f   : > { %v4204_v18 = vld [vmem:[#allocation21 + $0x1b0] sm:$0xff] }
 0x670   : > { %v10370_v55 = vcombine.high %v4200_v26, %v4204_v18  ;;  %v10384_v35 = vcombine.low %v4200_v26, %v4204_v18  ;;  %v4221_v18 = vld [vmem:[#allocation21 + $0x238] sm:$0xff] }
 0x671   : > { %5007 = vmatpush1.bf16.msra.mxu0 %v10340_v37  ;;  %5048 = vmatpush1.bf16.msra.mxu1 %v10344_v19  ;;  %v4212_v19 = vld [vmem:[#allocation21 + $0x1f0] sm:$0xff] }
 0x672   : > { %5008 = vmatprep.subr.bf16.mxu0 %v10346_v59  ;;  %5049 = vmatprep.subr.bf16.mxu1 %v10349_v54  ;;  %12309 = vst [vmem:[#allocation271_spill] sm:$0xff] %v10370_v55  ;;  %v10375_v54 = vcombine.high %v4201_v29, %v4205_v7  ;;  %v4208_v59 = vld [vmem:[#allocation21 + $0x1d0] sm:$0xff]  ;;  %12315 = vst [vmem:[#allocation277_spill] sm:$0xff] %v10384_v35 }
 0x673   : > { %v10396_v26 = vcombine.low %v4208_v59, %v4212_v19 }
 0x674   : > { %12311 = vst [vmem:[#allocation273_spill] sm:$0xff] %v10375_v54 }
 0x675   : > { %5009 = vmatpush1.bf16.msra.mxu0 %v10352_v27  ;;  %5050 = vmatpush1.bf16.msra.mxu1 %v10356_v34  ;;  %v4213_v34 = vld [vmem:[#allocation21 + $0x1f8] sm:$0xff]  ;;  %12319 = vst [vmem:[#allocation281_spill] sm:$0xff] %v10396_v26 }
 0x676   : > { %5010 = vmatprep.subr.bf16.mxu0 %v10358_v17  ;;  %5051 = vmatprep.subr.bf16.mxu1 %v10361_v60  ;;  %v10393_v11 = vcombine.high %v4209_v4, %v4213_v34 }
 0x677   : > { %v10372_v5 = vpop.f32.mrb[12].mxu0  ;;  %v10377_v37 = vpop.f32.mrb[12].mxu1 }
 0x678   : > { %12310 = vst [vmem:[#allocation272_spill] sm:$0xff] %v10372_v5  ;;  %12312 = vst [vmem:[#allocation274_spill] sm:$0xff] %v10377_v37  ;;  %v10379_v12 = vpop.f32.mrb[13].mxu0  ;;  %v10381_v27 = vpop.f32.mrb[13].mxu1  ;;  %v10388_v5 = vcombine.low %v4201_v29, %v4205_v7  ;;  %v10390_v37 = vcombine.high %v4208_v59, %v4212_v19  ;;  %v10400_v7 = vcombine.low %v4209_v4, %v4213_v34 }
 0x679   : > { %12313 = vst [vmem:[#allocation275_spill] sm:$0xff] %v10379_v12  ;;  %12314 = vst [vmem:[#allocation276_spill] sm:$0xff] %v10381_v27  ;;  %v3166_v10 = vpop.f32.mrb[14].mxu0  ;;  %5011 = vmatpush1.bf16.msra.mxu0 %v10364_v1  ;;  %v3207_v17 = vpop.f32.mrb[14].mxu1  ;;  %5052 = vmatpush1.bf16.msra.mxu1 %v10368_v3  ;;  %v4220_v27 = vld [vmem:[#allocation21 + $0x230] sm:$0xff]  ;;  %v4217_v1 = vld [vmem:[#allocation21 + $0x218] sm:$0xff] }
 0x67a   : > { %v3167_v60 = vpop.f32.mrb[15].mxu0  ;;  %5012 = vmatprep.subr.bf16.mxu0 %v10370_v55  ;;  %12316 = vst [vmem:[#allocation278_spill] sm:$0xff] %v10388_v5  ;;  %12317 = vst [vmem:[#allocation279_spill] sm:$0xff] %v10390_v37  ;;  %v3208_v12 = vpop.f32.mrb[15].mxu1  ;;  %5053 = vmatprep.subr.bf16.mxu1 %v10375_v54  ;;  %v4216_v10 = vld [vmem:[#allocation21 + $0x210] sm:$0xff]  ;;  %v10405_v17 = vcombine.high %v4217_v1, %v4221_v18  ;;  %v4225_v54 = vld [vmem:[#allocation21 + $0x258] sm:$0xff]  ;;  %v10412_v59 = vcombine.low %v4217_v1, %v4221_v18 }
 0x67b   : > { %12318 = vst [vmem:[#allocation280_spill] sm:$0xff] %v10393_v11  ;;  %12320 = vst [vmem:[#allocation282_spill] sm:$0xff] %v10400_v7  ;;  %v10402_v29 = vcombine.high %v4216_v10, %v4220_v27  ;;  %v4224_v60 = vld [vmem:[#allocation21 + $0x250] sm:$0xff]  ;;  %v4229_v55 = vld [vmem:[#allocation21 + $0x278] sm:$0xff]  ;;  %v10408_v19 = vcombine.low %v4216_v10, %v4220_v27 }
 0x67c   : > { %12322 = vst [vmem:[#allocation284_spill] sm:$0xff] %v10405_v17  ;;  %v4228_v12 = vld [vmem:[#allocation21 + $0x270] sm:$0xff]  ;;  %12324 = vst [vmem:[#allocation286_spill] sm:$0xff] %v10412_v59  ;;  %v10417_v4 = vcombine.high %v4225_v54, %v4229_v55  ;;  %v10424_v1 = vcombine.low %v4225_v54, %v4229_v55 }
 0x67d   : > { %5013 = vmatpush1.bf16.msra.mxu0 %v10384_v35  ;;  %5054 = vmatpush1.bf16.msra.mxu1 %v10388_v5  ;;  %12321 = vst [vmem:[#allocation283_spill] sm:$0xff] %v10402_v29  ;;  %12323 = vst [vmem:[#allocation285_spill] sm:$0xff] %v10408_v19  ;;  %v10414_v34 = vcombine.high %v4224_v60, %v4228_v12  ;;  %v4233_v5 = vld [vmem:[#allocation21 + $0x298] sm:$0xff]  ;;  %v10420_v27 = vcombine.low %v4224_v60, %v4228_v12 }
 0x67e   : > { %5014 = vmatprep.subr.bf16.mxu0 %v10390_v37  ;;  %5055 = vmatprep.subr.bf16.mxu1 %v10393_v11  ;;  %12326 = vst [vmem:[#allocation288_spill] sm:$0xff] %v10417_v4  ;;  %v4232_v11 = vld [vmem:[#allocation21 + $0x290] sm:$0xff]  ;;  %v4237_v35 = vld [vmem:[#allocation21 + $0x2b8] sm:$0xff]  ;;  %12328 = vst [vmem:[#allocation290_spill] sm:$0xff] %v10424_v1 }
 0x67f   : > { %12325 = vst [vmem:[#allocation287_spill] sm:$0xff] %v10414_v34  ;;  %v4236_v37 = vld [vmem:[#allocation21 + $0x2b0] sm:$0xff]  ;;  %12327 = vst [vmem:[#allocation289_spill] sm:$0xff] %v10420_v27  ;;  %v10429_v18 = vcombine.high %v4233_v5, %v4237_v35  ;;  %v10436_v54 = vcombine.low %v4233_v5, %v4237_v35 }
 0x680   : > { %v10426_v10 = vcombine.high %v4232_v11, %v4236_v37  ;;  %v10432_v60 = vcombine.low %v4232_v11, %v4236_v37 }
 0x681   : > { %5015 = vmatpush1.bf16.msra.mxu0 %v10396_v26  ;;  %5056 = vmatpush1.bf16.msra.mxu1 %v10400_v7  ;;  %12330 = vst [vmem:[#allocation292_spill] sm:$0xff] %v10429_v18  ;;  %v4241_v7 = vld [vmem:[#allocation21 + $0x2d8] sm:$0xff]  ;;  %12332 = vst [vmem:[#allocation294_spill] sm:$0xff] %v10436_v54 }
 0x682   : > { %5016 = vmatprep.subr.bf16.mxu0 %v10402_v29  ;;  %5057 = vmatprep.subr.bf16.mxu1 %v10405_v17  ;;  %12329 = vst [vmem:[#allocation291_spill] sm:$0xff] %v10426_v10  ;;  %v4240_v17 = vld [vmem:[#allocation21 + $0x2d0] sm:$0xff]  ;;  %v4245_v26 = vld [vmem:[#allocation21 + $0x2f8] sm:$0xff]  ;;  %12331 = vst [vmem:[#allocation293_spill] sm:$0xff] %v10432_v60 }
 0x683   : > { %v4244_v29 = vld [vmem:[#allocation21 + $0x2f0] sm:$0xff]  ;;  %v10441_v12 = vcombine.high %v4241_v7, %v4245_v26  ;;  %v10448_v37 = vcombine.low %v4241_v7, %v4245_v26 }
 0x684   : > { %v10438_v55 = vcombine.high %v4240_v17, %v4244_v29  ;;  %v10444_v11 = vcombine.low %v4240_v17, %v4244_v29 }
 0x685   : > { %5017 = vmatpush1.bf16.msra.mxu0 %v10408_v19  ;;  %5058 = vmatpush1.bf16.msra.mxu1 %v10412_v59  ;;  %12334 = vst [vmem:[#allocation296_spill] sm:$0xff] %v10441_v12  ;;  %v4249_v59 = vld [vmem:[#allocation21 + $0x318] sm:$0xff]  ;;  %12336 = vst [vmem:[#allocation298_spill] sm:$0xff] %v10448_v37 }
 0x686   : > { %5018 = vmatprep.subr.bf16.mxu0 %v10414_v34  ;;  %5059 = vmatprep.subr.bf16.mxu1 %v10417_v4  ;;  %12333 = vst [vmem:[#allocation295_spill] sm:$0xff] %v10438_v55  ;;  %v4248_v4 = vld [vmem:[#allocation21 + $0x310] sm:$0xff]  ;;  %v4253_v19 = vld [vmem:[#allocation21 + $0x338] sm:$0xff]  ;;  %12335 = vst [vmem:[#allocation297_spill] sm:$0xff] %v10444_v11 }
 0x687   : > { %v4252_v34 = vld [vmem:[#allocation21 + $0x330] sm:$0xff]  ;;  %v10453_v35 = vcombine.high %v4249_v59, %v4253_v19  ;;  %v10460_v26 = vcombine.low %v4249_v59, %v4253_v19 }
 0x688   : > { %v10450_v5 = vcombine.high %v4248_v4, %v4252_v34  ;;  %v10456_v29 = vcombine.low %v4248_v4, %v4252_v34 }
 0x689   : > { %5019 = vmatpush1.bf16.msra.mxu0 %v10420_v27  ;;  %5060 = vmatpush1.bf16.msra.mxu1 %v10424_v1  ;;  %12338 = vst [vmem:[#allocation300_spill] sm:$0xff] %v10453_v35  ;;  %v4257_v1 = vld [vmem:[#allocation21 + $0x358] sm:$0xff] }
 0x68a   : > { %5020 = vmatprep.subr.bf16.mxu0 %v10426_v10  ;;  %5061 = vmatprep.subr.bf16.mxu1 %v10429_v18  ;;  %12337 = vst [vmem:[#allocation299_spill] sm:$0xff] %v10450_v5  ;;  %v4256_v18 = vld [vmem:[#allocation21 + $0x350] sm:$0xff]  ;;  %v4261_v27 = vld [vmem:[#allocation21 + $0x378] sm:$0xff] }
 0x68b   : > { %v4260_v10 = vld [vmem:[#allocation21 + $0x370] sm:$0xff]  ;;  %v10465_v17 = vcombine.high %v4257_v1, %v4261_v27  ;;  %v10472_v19 = vcombine.low %v4257_v1, %v4261_v27 }
 0x68c   : > { %v10462_v7 = vcombine.high %v4256_v18, %v4260_v10  ;;  %v10468_v34 = vcombine.low %v4256_v18, %v4260_v10 }
 0x68d   : > { %5021 = vmatpush1.bf16.msra.mxu0 %v10432_v60  ;;  %5062 = vmatpush1.bf16.msra.mxu1 %v10436_v54  ;;  %12339 = vst [vmem:[#allocation301_spill] sm:$0xff] %v10465_v17  ;;  %v4265_v54 = vld [vmem:[#allocation21 + $0x398] sm:$0xff] }
 0x68e   : > { %5022 = vmatprep.subr.bf16.mxu0 %v10438_v55  ;;  %5063 = vmatprep.subr.bf16.mxu1 %v10441_v12  ;;  %v4264_v12 = vld [vmem:[#allocation21 + $0x390] sm:$0xff]  ;;  %v4269_v60 = vld [vmem:[#allocation21 + $0x3b8] sm:$0xff] }
 0x68f   : > { %v4268_v55 = vld [vmem:[#allocation21 + $0x3b0] sm:$0xff]  ;;  %v10477_v4 = vcombine.high %v4265_v54, %v4269_v60  ;;  %v10484_v27 = vcombine.low %v4265_v54, %v4269_v60 }
 0x690   : > { %v10474_v59 = vcombine.high %v4264_v12, %v4268_v55  ;;  %v10480_v10 = vcombine.low %v4264_v12, %v4268_v55 }
 0x691   : > { %5023 = vmatpush1.bf16.msra.mxu0 %v10444_v11  ;;  %5064 = vmatpush1.bf16.msra.mxu1 %v10448_v37  ;;  %v4273_v37 = vld [vmem:[#allocation21 + $0x3d8] sm:$0xff] }
 0x692   : > { %5024 = vmatprep.subr.bf16.mxu0 %v10450_v5  ;;  %5065 = vmatprep.subr.bf16.mxu1 %v10453_v35  ;;  %v4272_v35 = vld [vmem:[#allocation21 + $0x3d0] sm:$0xff]  ;;  %v4277_v11 = vld [vmem:[#allocation21 + $0x3f8] sm:$0xff] }
 0x693   : > { %v4276_v5 = vld [vmem:[#allocation21 + $0x3f0] sm:$0xff]  ;;  %v10489_v18 = vcombine.high %v4273_v37, %v4277_v11  ;;  %v10496_v55 = vcombine.low %v4273_v37, %v4277_v11 }
 0x694   : > { %v10486_v1 = vcombine.high %v4272_v35, %v4276_v5 }
 0x695   : > { %5025 = vmatpush1.bf16.msra.mxu0 %v10456_v29  ;;  %5066 = vmatpush1.bf16.msra.mxu1 %v10460_v26 }
 0x696   : > { %5026 = vmatprep.subr.bf16.mxu0 %v10462_v7  ;;  %5067 = vmatprep.subr.bf16.mxu1 %v10465_v17  ;;  %v10492_v17 = vcombine.low %v4272_v35, %v4276_v5 }
 0x699   : > { %5027 = vmatpush1.bf16.msra.mxu0 %v10468_v34  ;;  %5068 = vmatpush1.bf16.msra.mxu1 %v10472_v19 }
 0x69a   : > { %5028 = vmatprep.subr.bf16.mxu0 %v10474_v59  ;;  %5069 = vmatprep.subr.bf16.mxu1 %v10477_v4 }
 0x69d   : > { %5029 = vmatpush1.bf16.msra.mxu0 %v10480_v10  ;;  %5070 = vmatpush1.bf16.msra.mxu1 %v10484_v27 }
 0x69e   : > { %5030 = vmatprep.subr.bf16.mxu0 %v10486_v1  ;;  %5071 = vmatprep.subr.bf16.mxu1 %v10489_v18 }
 0x6a1   : > { %5031 = vmatpush1.bf16.msra.mxu0 %v10492_v17  ;;  %5072 = vmatpush1.bf16.msra.mxu1 %v10496_v55 }
 0x6a2   : > { %5204 = vmatprep.subr.bf16.mxu0 %v9685_v0  ;;  %5245 = vmatprep.subr.bf16.mxu1 %v9687_v2 }
 0x6a4   : > { %5033 = vmatmul.mubr.bf16.vlgmr.msra.gmra.mrb[28].mxu0 %v12154_v8  ;;  %5074 = vmatmul.mubr.bf16.vlgmr.msra.gmra.mrb[28].mxu1 %v12154_v8 }
 0x6a5   : > { %5205 = vmatpush1.bf16.msra.mxu0 %v9689_v14  ;;  %5246 = vmatpush1.bf16.msra.mxu1 %v9692_v15 }
 0x6a6   : > { %5206 = vmatprep.subr.bf16.mxu0 %v9694_v16  ;;  %5247 = vmatprep.subr.bf16.mxu1 %v9697_v6 }
 0x6a9   : > { %5207 = vmatpush1.bf16.msra.mxu0 %v9702_v22  ;;  %5248 = vmatpush1.bf16.msra.mxu1 %v9706_v23 }
 0x6aa   : > { %5208 = vmatprep.subr.bf16.mxu0 %v9708_v24  ;;  %5249 = vmatprep.subr.bf16.mxu1 %v9711_v25 }
 0x6ad   : > { %5209 = vmatpush1.bf16.msra.mxu0 %v9716_v31  ;;  %5250 = vmatpush1.bf16.msra.mxu1 %v9720_v32 }
 0x6ae   : > { %5210 = vmatprep.subr.bf16.mxu0 %v9722_v33  ;;  %5251 = vmatprep.subr.bf16.mxu1 %v9725_v39 }
 0x6b1   : > { %5211 = vmatpush1.bf16.msra.mxu0 %v9728_v41  ;;  %5252 = vmatpush1.bf16.msra.mxu1 %v9732_v42 }
 0x6b2   : > { %5212 = vmatprep.subr.bf16.mxu0 %v9734_v44  ;;  %5253 = vmatprep.subr.bf16.mxu1 %v9737_v45 }
 0x6b5   : > { %5213 = vmatpush1.bf16.msra.mxu0 %v9740_v49  ;;  %5254 = vmatpush1.bf16.msra.mxu1 %v9744_v50 }
 0x6b6   : > { %5214 = vmatprep.subr.bf16.mxu0 %v9746_v51  ;;  %5255 = vmatprep.subr.bf16.mxu1 %v9749_v52 }
 0x6b7   : > { %v4012_v60 = vpop.f32.mrb[16].mxu0  ;;  %v4053_v54 = vpop.f32.mrb[16].mxu1 }
 0x6b8   : > { %v4014_v12 = vpop.f32.mrb[17].mxu0  ;;  %v4055_v11 = vpop.f32.mrb[17].mxu1 }
 0x6b9   : > { %v4016_v37 = vpop.f32.mrb[18].mxu0  ;;  %5215 = vmatpush1.bf16.msra.mxu0 %v9752_v56  ;;  %v4057_v5 = vpop.f32.mrb[18].mxu1  ;;  %5256 = vmatpush1.bf16.msra.mxu1 %v9756_v57  ;;  %v12387_v56 = vld [vmem:[#allocation140_spill] sm:$0xff] }
 0x6ba   : > { %v4017_v35 = vpop.f32.mrb[19].mxu0  ;;  %5216 = vmatprep.subr.bf16.mxu0 %v9758_v58  ;;  %v4058_v8 = vpop.f32.mrb[19].mxu1  ;;  %5257 = vmatprep.subr.bf16.mxu1 %v9763_v62  ;;  %v12342_v37 = vld [vmem:[#allocation90_spill] sm:$0xff]  ;;  %v12343_v5 = vld [vmem:[#allocation91_spill] sm:$0xff]  ;;  %v12368_v62 = vld [vmem:[#allocation72_spill] sm:$0xff] }
 0x6bb   : > { %v12341_v8 = vld [vmem:[#allocation89_spill] sm:$0xff]  ;;  %v12344_v35 = vld [vmem:[#allocation92_spill] sm:$0xff] }
 0x6bd   : > { %5217 = vmatpush1.bf16.msra.mxu0 %v9772_v20  ;;  %5258 = vmatpush1.bf16.msra.mxu1 %v9776_v43 }
 0x6be   : > { %5218 = vmatprep.subr.bf16.mxu0 %v9778_v30  ;;  %5259 = vmatprep.subr.bf16.mxu1 %v9781_v36  ;;  %v12363_v36 = vld [vmem:[#allocation70_spill] sm:$0xff] }
 0x6c1   : > { %5219 = vmatpush1.bf16.msra.mxu0 %v9784_v48  ;;  %5260 = vmatpush1.bf16.msra.mxu1 %v9788_v21  ;;  %v12359_v48 = vld [vmem:[#allocation103_spill] sm:$0xff] }
 0x6c2   : > { %5220 = vmatprep.subr.bf16.mxu0 %v9790_v61  ;;  %5261 = vmatprep.subr.bf16.mxu1 %v9793_v53 }
 0x6c5   : > { %5221 = vmatpush1.bf16.msra.mxu0 %v9796_v63  ;;  %5262 = vmatpush1.bf16.msra.mxu1 %v9800_v9  ;;  %v12345_v9 = vld [vmem:[#allocation93_spill] sm:$0xff] }
 0x6c6   : > { %5222 = vmatprep.subr.bf16.mxu0 %v9802_v13  ;;  %5263 = vmatprep.subr.bf16.mxu1 %v9805_v28  ;;  %v12346_v13 = vld [vmem:[#allocation94_spill] sm:$0xff]  ;;  %v12347_v28 = vld [vmem:[#allocation95_spill] sm:$0xff] }
 0x6c9   : > { %5223 = vmatpush1.bf16.msra.mxu0 %v9808_v38  ;;  %5264 = vmatpush1.bf16.msra.mxu1 %v9812_v40  ;;  %v12348_v38 = vld [vmem:[#allocation96_spill] sm:$0xff] }
 0x6ca   : > { %5224 = vmatprep.subr.bf16.mxu0 %v9814_v46  ;;  %5265 = vmatprep.subr.bf16.mxu1 %v9817_v47  ;;  %v1384_v40 = vld [vmem:[%s12340_s16] sm:$0xff]  ;;  %v12350_v47 = vld [vmem:[#allocation98_spill] sm:$0xff] }
 0x6cb   : > { %v12349_v46 = vld [vmem:[#allocation97_spill] sm:$0xff] }
 0x6cd   : > { %5225 = vmatpush1.bf16.msra.mxu0 %v12341_v8  ;;  %5266 = vmatpush1.bf16.msra.mxu1 %v12342_v37  ;;  %v12351_v8 = vld [vmem:[#allocation99_spill] sm:$0xff] }
 0x6ce   : > { %5226 = vmatprep.subr.bf16.mxu0 %v12343_v5  ;;  %5267 = vmatprep.subr.bf16.mxu1 %v12344_v35  ;;  %v12352_v37 = vld [vmem:[#allocation55_spill] sm:$0xff]  ;;  %v12353_v5 = vld [vmem:[#allocation100_spill] sm:$0xff] }
 0x6cf   : > { %v1389_v63 = vrot.slane %v1384_v40, %v12352_v37  ;;  %v12354_v35 = vld [vmem:[#allocation56_spill] sm:$0xff] }
 0x6d0   : > { %v1397_v53 = vrot.slane %v1384_v40, %v12354_v35 }
 0x6d1   : > { %5227 = vmatpush1.bf16.msra.mxu0 %v12345_v9  ;;  %5268 = vmatpush1.bf16.msra.mxu1 %v12346_v13  ;;  %v12355_v9 = vld [vmem:[#allocation54_spill] sm:$0xff]  ;;  %v12356_v13 = vld [vmem:[#allocation101_spill] sm:$0xff] }
 0x6d2   : > { %5228 = vmatprep.subr.bf16.mxu0 %v12347_v28  ;;  %5269 = vmatprep.subr.bf16.mxu1 %v12348_v38  ;;  %v1393_v61 = vrot.slane %v1384_v40, %v12355_v9  ;;  %v12357_v28 = vld [vmem:[#allocation57_spill] sm:$0xff]  ;;  %v12358_v38 = vld [vmem:[#allocation102_spill] sm:$0xff]  ;;  %v10570_v30 = vadd.f32 %v12363_v36, %v1397_v53  ;;  %v12372_v36 = vld [vmem:[#allocation108_spill] sm:$0xff] }
 0x6d3   : > { %v1401_v21 = vrot.slane %v1384_v40, %v12357_v28 }
 0x6d4   : > { %12364 = vst [vmem:[#allocation70_spill] sm:$0xff] %v10570_v30 }
 0x6d5   : > { %5229 = vmatpush1.bf16.msra.mxu0 %v12349_v46  ;;  %5270 = vmatpush1.bf16.msra.mxu1 %v12350_v47  ;;  %v12360_v46 = vld [vmem:[#allocation68_spill] sm:$0xff]  ;;  %v10578_v58 = vadd.f32 %v12368_v62, %v1401_v21  ;;  %v12375_v62 = vld [vmem:[#allocation111_spill] sm:$0xff] }
 0x6d6   : > { %5230 = vmatprep.subr.bf16.mxu0 %v12351_v8  ;;  %5271 = vmatprep.subr.bf16.mxu1 %v12353_v5  ;;  %v10566_v47 = vadd.f32 %v12360_v46, %v1389_v63  ;;  %v12362_v8 = vld [vmem:[#allocation104_spill] sm:$0xff]  ;;  %v12365_v5 = vld [vmem:[#allocation71_spill] sm:$0xff] }
 0x6d7   : > { %v10573_v43 = vadd.f32 %v12365_v5, %v1393_v61  ;;  %12369 = vst [vmem:[#allocation72_spill] sm:$0xff] %v10578_v58  ;;  %v12371_v63 = vld [vmem:[#allocation107_spill] sm:$0xff]  ;;  %v4145_v61 = vadd.f32 %v4055_v11, %v10578_v58  ;;  %v12373_v5 = vld [vmem:[#allocation109_spill] sm:$0xff] }
 0x6d8   : > { %12361 = vst [vmem:[#allocation68_spill] sm:$0xff] %v10566_v47  ;;  %v4142_v20 = vadd.f32 %v4012_v60, %v10566_v47  ;;  %v12374_v47 = vld [vmem:[#allocation110_spill] sm:$0xff] }
 0x6d9   : > { %5231 = vmatpush1.bf16.msra.mxu0 %v12356_v13  ;;  %5272 = vmatpush1.bf16.msra.mxu1 %v12358_v38  ;;  %12366 = vst [vmem:[#allocation71_spill] sm:$0xff] %v10573_v43  ;;  %v12367_v13 = vld [vmem:[#allocation105_spill] sm:$0xff]  ;;  %v12370_v38 = vld [vmem:[#allocation106_spill] sm:$0xff]  ;;  %v4143_v46 = vadd.f32 %v4014_v12, %v10573_v43 }
 0x6da   : > { %5232 = vmatprep.subr.bf16.mxu0 %v12359_v48  ;;  %5273 = vmatprep.subr.bf16.mxu1 %v12362_v8  ;;  %v4144_v48 = vadd.f32 %v4053_v54, %v10570_v30  ;;  %v8141_v53 = vmul.f32 -1.442695, %v4142_v20  ;;  %v12376_v54 = vld [vmem:[#allocation112_spill] sm:$0xff]  ;;  %v12385_v30 = vld [vmem:[#allocation139_spill] sm:$0xff] }
 0x6db   : > { %v8142_v21 = vmul.f32 -1.442695, %v4143_v46  ;;  %v12377_v20 = vld [vmem:[#allocation60_spill] sm:$0xff]  ;;  %v12380_v46 = vld [vmem:[#allocation63_spill] sm:$0xff] }
 0x6dc   : > { %v8143_v60 = vmul.f32 -1.442695, %v4144_v48  ;;  %8637 = vpow2.f32 %v8141_v53  ;;  %v12378_v48 = vld [vmem:[#allocation61_spill] sm:$0xff]  ;;  %v1417_v58 = vrot.slane %v1384_v40, %v12380_v46  ;;  %v12381_v53 = vld [vmem:[#allocation136_spill] sm:$0xff] }
 0x6dd   : > { %5233 = vmatpush1.bf16.msra.mxu0 %v12367_v13  ;;  %5274 = vmatpush1.bf16.msra.mxu1 %v12370_v38  ;;  %v8144_v38 = vmul.f32 -1.442695, %v4145_v61  ;;  %v1413_v13 = vrot.slane %v1384_v40, %v12378_v48 }
 0x6de   : > { %5234 = vmatprep.subr.bf16.mxu0 %v12371_v63  ;;  %5275 = vmatprep.subr.bf16.mxu1 %v12372_v36  ;;  %8639 = vpow2.f32 %v8143_v60  ;;  %v1405_v63 = vrot.slane %v1384_v40, %v12377_v20  ;;  %v10604_v52 = vadd.f32 %v12387_v56, %v1417_v58 }
 0x6df   : > { %8641 = vpow2.f32 %v8142_v21 }
 0x6e0   : > { %8643 = vpow2.f32 %v8144_v38  ;;  %v10595_v60 = vadd.f32 %v12381_v53, %v1405_v63  ;;  %v12383_v38 = vld [vmem:[#allocation138_spill] sm:$0xff]  ;;  %12388 = vst [vmem:[#allocation140_spill] sm:$0xff] %v10604_v52 }
 0x6e1   : > { %5235 = vmatpush1.bf16.msra.mxu0 %v12373_v5  ;;  %5276 = vmatpush1.bf16.msra.mxu1 %v12374_v47  ;;  %v12379_v47 = vld [vmem:[#allocation62_spill] sm:$0xff]  ;;  %v10598_v21 = vadd.f32 %v12383_v38, %v1413_v13 }
 0x6e2   : > { %5286 = vmatprep.subr.bf16.mxu0 %v12375_v62  ;;  %5327 = vmatprep.subr.bf16.mxu1 %v12376_v54  ;;  %v1409_v8 = vrot.slane %v1384_v40, %v12379_v47  ;;  %12382 = vst [vmem:[#allocation136_spill] sm:$0xff] %v10595_v60 }
 0x6e3   : > { %12384 = vst [vmem:[#allocation138_spill] sm:$0xff] %v10598_v21 }
 0x6e4   : > { %v10601_v57 = vadd.f32 %v12385_v30, %v1409_v8 }
 0x6e6   : > { %v8638_v12 = vpop.eup %8637  ;;  %12386 = vst [vmem:[#allocation139_spill] sm:$0xff] %v10601_v57 }
 0x6e7   : > { %v5097_v5 = vadd.f32 1.0, %v8638_v12 }
 0x6e8   : > { %v8640_v43 = vpop.eup %8639 }
 0x6e9   : > { %v8642_v36 = vpop.eup %8641  ;;  %v5109_v62 = vadd.f32 1.0, %v8640_v43  ;;  %8645 = vrcp.f32 %v5097_v5 }
 0x6ea   : > { %v8644_v11 = vpop.eup %8643  ;;  %v5098_v54 = vadd.f32 1.0, %v8642_v36 }
 0x6eb   : > { %v5110_v61 = vadd.f32 1.0, %v8644_v11  ;;  %8647 = vrcp.f32 %v5109_v62 }
 0x6ec   : > { %8649 = vrcp.f32 %v5098_v54 }
 0x6ed   : > { %8651 = vrcp.f32 %v5110_v61 }
 0x6f3   : > { %v8646_v53 = vpop.eup %8645 }
 0x6f5   : > { %v8648_v61 = vpop.eup %8647 }
 0x6f6   : > { %v8650_v38 = vpop.eup %8649 }
 0x6f7   : > { %v4094_v12 = vpop.f32.mrb[20].mxu0  ;;  %v4135_v40 = vpop.f32.mrb[20].mxu1 }
 0x6f8   : > { %v4146_v43 = vadd.f32 %v4094_v12, %v10595_v60  ;;  %v4096_v36 = vpop.f32.mrb[21].mxu0  ;;  %v4148_v63 = vadd.f32 %v4135_v40, %v10598_v21  ;;  %v4137_v13 = vpop.f32.mrb[21].mxu1  ;;  %v12428_v21 = vld [vmem:[#allocation149_spill] sm:$0xff]  ;;  %v12431_v60 = vld [vmem:[#allocation152_spill] sm:$0xff] }
 0x6f9   : > { %v4147_v5 = vadd.f32 %v4096_v36, %v10601_v57  ;;  %v4098_v11 = vpop.f32.mrb[22].mxu0  ;;  %v4149_v30 = vadd.f32 %v4137_v13, %v10604_v52  ;;  %v4139_v8 = vpop.f32.mrb[22].mxu1  ;;  %v12426_v57 = vld [vmem:[#allocation147_spill] sm:$0xff] }
 0x6fa   : > { %8653 = vtanh.f32 %v4146_v43  ;;  %v4099_v62 = vpop.f32.mrb[23].mxu0  ;;  %v8145_v56 = vmul.f32 -1.442695, %v4148_v63  ;;  %v4140_v58 = vpop.f32.mrb[23].mxu1  ;;  %v5129_v43 = vmul.f32 0.0, %v8648_v61  ;;  %v5140_v61 = vstv %s5139_s20 }
 0x6fb   : > { %8655 = vtanh.f32 %v4147_v5  ;;  %v8146_v54 = vmul.f32 -1.442695, %v4149_v30  ;;  %v8652_v12 = vpop.eup %8651  ;;  %vm10622_vm4 = vcmp.eq.s32.totalorder %v5140_v61, 1  ;;  %v12402_v61 = vld [vmem:[#allocation119_spill] sm:$0xff] }
 0x6fc   : > { %8657 = vpow2.f32 %v8145_v56  ;;  %v5130_v13 = vmul.f32 0.0, %v8652_v12  ;;  %vm10631_vm5 = vmpackc.low %vm10622_vm4, %vm10622_vm4 }
 0x6fd   : > { %8659 = vpow2.f32 %v8146_v54 }
 0x704   : > { %v8654_v40 = vpop.eup %8653 }
 0x705   : > { %v8656_v36 = vpop.eup %8655  ;;  %v5131_v11 = vmul.f32 %v8654_v40, %v8646_v53 }
 0x706   : > { %v5132_v8 = vmul.f32 %v8656_v36, %v8650_v38  ;;  %v8658_v62 = vpop.eup %8657  ;;  %v12390_v36 = vmov 0 }
 0x707   : > { %v10613_v63 = vadd.f32 %v5131_v11, %v5129_v43  ;;  %v8660_v5 = vpop.eup %8659  ;;  %v5123_v30 = vadd.f32 1.0, %v8658_v62  ;;  %v12391_v36 = vsel %vm10622_vm4, 4294967295, %v12390_v36  ;;  %v12396_v62 = vld [vmem:[#allocation113_spill] sm:$0xff] }
 0x708   : > { %v10615_v56 = vadd.f32 %v5132_v8, %v5130_v13  ;;  %v5124_v58 = vadd.f32 1.0, %v8660_v5  ;;  %12392 = vst [vmem:[#allocation303_spill] sm:$0xff] %v12391_v36  ;;  %v12397_v5 = vld [vmem:[#allocation114_spill] sm:$0xff]  ;;  %v12673_v36 = vld [vmem:[#allocation141_spill] sm:$0xff] }
 0x709   : > { %8661 = vtanh.f32 %v10613_v63 }
 0x70a   : > { %8663 = vrcp.f32 %v5123_v30  ;;  %v12398_v30 = vld [vmem:[#allocation115_spill] sm:$0xff] }
 0x70b   : > { %8665 = vtanh.f32 %v10615_v56 }
 0x70c   : > { %8667 = vrcp.f32 %v5124_v58  ;;  %v12399_v58 = vld [vmem:[#allocation116_spill] sm:$0xff] }
 0x713   : > { %v8662_v54 = vpop.eup %8661 }
 0x714   : > { %v8664_v53 = vpop.eup %8663 }
 0x715   : > { %v8666_v38 = vpop.eup %8665  ;;  %v10620_v12 = vmul.f32 %v8664_v53, %v8662_v54  ;;  %v12400_v54 = vld [vmem:[#allocation117_spill] sm:$0xff]  ;;  %v12401_v53 = vld [vmem:[#allocation118_spill] sm:$0xff] }
 0x716   : > { %v8668_v40 = vpop.eup %8667 }
 0x717   : > { %12389 = vst [vmem:[#allocation302_spill] sm:$0xff] %v10620_v12  ;;  %v10626_v43 = vmul.f32 %v8668_v40, %v8666_v38  ;;  %v10639_v8 = vpack.c.bf16 %v10620_v12, %v10620_v12  ;;  %v12403_v38 = vld [vmem:[#allocation120_spill] sm:$0xff]  ;;  %v12404_v40 = vld [vmem:[#allocation121_spill] sm:$0xff] }
 0x719   : > { %12393 = vst [vmem:[#allocation304_spill] sm:$0xff] %v10626_v43  ;;  %v8154_v13 = vpack.c.bf16 %v10626_v43, %v10626_v43  ;;  %v12407_v43 = vld [vmem:[#allocation124_spill] sm:$0xff] }
 0x71b   : > { %8155 = vmatprep.mubr.msk.bf16.mxu0 %vm10631_vm5, %v8154_v13  ;;  %8161 = vmatprep.mubr.msk.bf16.mxu1 %vm10631_vm5, %v8154_v13 }
 0x71c   : > { %8158 = vmatmul.mubr.msk.bf16.vlgmr.msra.gmra.mrb[32].mxu0 %vm10631_vm5, %v10639_v8  ;;  %8164 = vmatmul.mubr.msk.bf16.vlgmr.msra.gmra.mrb[32].mxu1 %vm10631_vm5, %v10639_v8 }
 0x71d   : > { %5287 = vmatpush1.bf16.msra.mxu0 %v12396_v62  ;;  %5328 = vmatpush1.bf16.msra.mxu1 %v12397_v5  ;;  %v12405_v5 = vld [vmem:[#allocation122_spill] sm:$0xff]  ;;  %v12406_v62 = vld [vmem:[#allocation123_spill] sm:$0xff] }
 0x71e   : > { %8167 = vmatprep.mubr.msk.bf16.mxu0 %vm10631_vm5, %v8154_v13  ;;  %8173 = vmatprep.mubr.msk.bf16.mxu1 %vm10631_vm5, %v8154_v13  ;;  %v12408_v13 = vld [vmem:[#allocation125_spill] sm:$0xff] }
 0x71f   : > { %5288 = vmatprep.subr.bf16.mxu0 %v12398_v30  ;;  %5329 = vmatprep.subr.bf16.mxu1 %v12399_v58  ;;  %v12409_v30 = vld [vmem:[#allocation126_spill] sm:$0xff]  ;;  %v12410_v58 = vld [vmem:[#allocation127_spill] sm:$0xff] }
 0x721   : > { %5289 = vmatpush1.bf16.msra.mxu0 %v12400_v54  ;;  %5330 = vmatpush1.bf16.msra.mxu1 %v12401_v53  ;;  %v12411_v54 = vld [vmem:[#allocation128_spill] sm:$0xff]  ;;  %v12412_v53 = vld [vmem:[#allocation129_spill] sm:$0xff] }
 0x722   : > { %5290 = vmatprep.subr.bf16.mxu0 %v12402_v61  ;;  %5331 = vmatprep.subr.bf16.mxu1 %v12403_v38  ;;  %v12413_v61 = vld [vmem:[#allocation130_spill] sm:$0xff]  ;;  %v12414_v38 = vld [vmem:[#allocation131_spill] sm:$0xff] }
 0x725   : > { %5291 = vmatpush1.bf16.msra.mxu0 %v12404_v40  ;;  %5332 = vmatpush1.bf16.msra.mxu1 %v12405_v5  ;;  %v12415_v40 = vld [vmem:[#allocation132_spill] sm:$0xff]  ;;  %v12416_v5 = vld [vmem:[#allocation133_spill] sm:$0xff] }
 0x726   : > { %5292 = vmatprep.subr.bf16.mxu0 %v12406_v62  ;;  %5333 = vmatprep.subr.bf16.mxu1 %v12407_v43  ;;  %v12417_v62 = vld [vmem:[#allocation134_spill] sm:$0xff]  ;;  %v12418_v43 = vld [vmem:[#allocation135_spill] sm:$0xff] }
 0x729   : > { %5293 = vmatpush1.bf16.msra.mxu0 %v12408_v13  ;;  %5334 = vmatpush1.bf16.msra.mxu1 %v12409_v30  ;;  %v12419_v13 = vld [vmem:[#allocation137_spill] sm:$0xff] }
 0x72a   : > { %5294 = vmatprep.subr.bf16.mxu0 %v12410_v58  ;;  %5335 = vmatprep.subr.bf16.mxu1 %v12411_v54  ;;  %v12420_v30 = vld [vmem:[#allocation141_spill] sm:$0xff]  ;;  %v12421_v58 = vld [vmem:[#allocation142_spill] sm:$0xff]  ;;  %v12422_v54 = vld [vmem:[#allocation143_spill] sm:$0xff] }
 0x72d   : > { %5295 = vmatpush1.bf16.msra.mxu0 %v12412_v53  ;;  %5336 = vmatpush1.bf16.msra.mxu1 %v12413_v61  ;;  %v12423_v53 = vld [vmem:[#allocation144_spill] sm:$0xff] }
 0x72e   : > { %5296 = vmatprep.subr.bf16.mxu0 %v12414_v38  ;;  %5337 = vmatprep.subr.bf16.mxu1 %v12415_v40  ;;  %v12424_v40 = vld [vmem:[#allocation145_spill] sm:$0xff] }
 0x731   : > { %5297 = vmatpush1.bf16.msra.mxu0 %v12416_v5  ;;  %5338 = vmatpush1.bf16.msra.mxu1 %v12417_v62  ;;  %v12425_v5 = vld [vmem:[#allocation146_spill] sm:$0xff] }
 0x732   : > { %5298 = vmatprep.subr.bf16.mxu0 %v12418_v43  ;;  %5339 = vmatprep.subr.bf16.mxu1 %v12419_v13  ;;  %v12427_v13 = vld [vmem:[#allocation148_spill] sm:$0xff] }
 0x735   : > { %5299 = vmatpush1.bf16.msra.mxu0 %v12420_v30  ;;  %5340 = vmatpush1.bf16.msra.mxu1 %v12421_v58 }
 0x736   : > { %5300 = vmatprep.subr.bf16.mxu0 %v12422_v54  ;;  %5341 = vmatprep.subr.bf16.mxu1 %v12423_v53  ;;  %v12429_v54 = vld [vmem:[#allocation150_spill] sm:$0xff]  ;;  %v12430_v53 = vld [vmem:[#allocation151_spill] sm:$0xff] }
 0x737   : > { %v4952_v61 = vpop.f32.mrb[24].mxu0  ;;  %v4993_v38 = vpop.f32.mrb[24].mxu1 }
 0x738   : > { %v4954_v12 = vpop.f32.mrb[25].mxu0  ;;  %v4995_v62 = vpop.f32.mrb[25].mxu1 }
 0x739   : > { %5301 = vmatpush1.bf16.msra.mxu0 %v12424_v40  ;;  %5342 = vmatpush1.bf16.msra.mxu1 %v12425_v5  ;;  %v4956_v52 = vpop.f32.mrb[26].mxu0  ;;  %v4997_v43 = vpop.f32.mrb[26].mxu1  ;;  %v12432_v40 = vld [vmem:[#allocation153_spill] sm:$0xff]  ;;  %v12433_v5 = vld [vmem:[#allocation154_spill] sm:$0xff] }
 0x73a   : > { %5302 = vmatprep.subr.bf16.mxu0 %v12426_v57  ;;  %5343 = vmatprep.subr.bf16.mxu1 %v12427_v13  ;;  %v4957_v30 = vpop.f32.mrb[27].mxu0  ;;  %v4998_v58 = vpop.f32.mrb[27].mxu1  ;;  %v12434_v52 = vld [vmem:[#allocation155_spill] sm:$0xff]  ;;  %v12435_v43 = vld [vmem:[#allocation156_spill] sm:$0xff]  ;;  %v12436_v57 = vld [vmem:[#allocation157_spill] sm:$0xff] }
 0x73b   : > { %v12437_v30 = vld [vmem:[#allocation158_spill] sm:$0xff]  ;;  %v12439_v58 = vld [vmem:[#allocation159_spill] sm:$0xff] }
 0x73d   : > { %5303 = vmatpush1.bf16.msra.mxu0 %v12428_v21  ;;  %5344 = vmatpush1.bf16.msra.mxu1 %v12429_v54  ;;  %v12440_v54 = vld [vmem:[#allocation160_spill] sm:$0xff] }
 0x73e   : > { %5304 = vmatprep.subr.bf16.mxu0 %v12430_v53  ;;  %5345 = vmatprep.subr.bf16.mxu1 %v12431_v60  ;;  %v12441_v53 = vld [vmem:[#allocation161_spill] sm:$0xff]  ;;  %v12442_v60 = vld [vmem:[#allocation162_spill] sm:$0xff]  ;;  %v12448_v21 = vld [vmem:[#allocation168_spill] sm:$0xff] }
 0x741   : > { %5305 = vmatpush1.bf16.msra.mxu0 %v12432_v40  ;;  %5346 = vmatpush1.bf16.msra.mxu1 %v12433_v5  ;;  %v12443_v40 = vld [vmem:[#allocation163_spill] sm:$0xff]  ;;  %v12444_v5 = vld [vmem:[#allocation164_spill] sm:$0xff] }
 0x742   : > { %5306 = vmatprep.subr.bf16.mxu0 %v12434_v52  ;;  %5347 = vmatprep.subr.bf16.mxu1 %v12435_v43  ;;  %v12445_v52 = vld [vmem:[#allocation165_spill] sm:$0xff]  ;;  %v12446_v43 = vld [vmem:[#allocation166_spill] sm:$0xff] }
 0x745   : > { %5307 = vmatpush1.bf16.msra.mxu0 %v12436_v57  ;;  %5348 = vmatpush1.bf16.msra.mxu1 %v12437_v30  ;;  %v12447_v57 = vld [vmem:[#allocation167_spill] sm:$0xff]  ;;  %v12449_v30 = vld [vmem:[#allocation169_spill] sm:$0xff] }
 0x746   : > { %5308 = vmatprep.subr.bf16.mxu0 %v12439_v58  ;;  %5349 = vmatprep.subr.bf16.mxu1 %v12440_v54  ;;  %v12450_v58 = vld [vmem:[#allocation170_spill] sm:$0xff]  ;;  %v12451_v54 = vld [vmem:[#allocation171_spill] sm:$0xff] }
 0x749   : > { %5309 = vmatpush1.bf16.msra.mxu0 %v12441_v53  ;;  %5350 = vmatpush1.bf16.msra.mxu1 %v12442_v60  ;;  %v12452_v53 = vld [vmem:[#allocation172_spill] sm:$0xff] }
 0x74a   : > { %5310 = vmatprep.subr.bf16.mxu0 %v12443_v40  ;;  %5351 = vmatprep.subr.bf16.mxu1 %v12444_v5  ;;  %v10712_v60 = vld [vmem:[%s12438_s19] sm:$0xff]  ;;  %v12454_v5 = vld [vmem:[#allocation174_spill] sm:$0xff] }
 0x74b   : > { %v12453_v40 = vld [vmem:[#allocation173_spill] sm:$0xff] }
 0x74d   : > { %5311 = vmatpush1.bf16.msra.mxu0 %v12445_v52  ;;  %5352 = vmatpush1.bf16.msra.mxu1 %v12446_v43  ;;  %v12455_v52 = vld [vmem:[#allocation175_spill] sm:$0xff]  ;;  %v12456_v43 = vld [vmem:[#allocation176_spill] sm:$0xff] }
 0x74e   : > { %5312 = vmatprep.subr.bf16.mxu0 %v12447_v57  ;;  %5353 = vmatprep.subr.bf16.mxu1 %v12448_v21  ;;  %v2369_v21 = vrot.slane %v10712_v60, %v12352_v37  ;;  %v12462_v37 = vld [vmem:[#allocation206_spill] sm:$0xff] }
 0x751   : > { %5313 = vmatpush1.bf16.msra.mxu0 %v12449_v30  ;;  %5354 = vmatpush1.bf16.msra.mxu1 %v12450_v58  ;;  %v2377_v58 = vrot.slane %v10712_v60, %v12354_v35  ;;  %v12458_v30 = vld [vmem:[#allocation178_spill] sm:$0xff]  ;;  %v12463_v35 = vld [vmem:[#allocation207_spill] sm:$0xff] }
 0x752   : > { %5314 = vmatprep.subr.bf16.mxu0 %v12451_v54  ;;  %5355 = vmatprep.subr.bf16.mxu1 %v12452_v53  ;;  %v2373_v54 = vrot.slane %v10712_v60, %v12355_v9  ;;  %v12457_v53 = vld [vmem:[#allocation177_spill] sm:$0xff] }
 0x753   : > { %v10734_v13 = vadd.f32 %v12462_v37, %v2377_v58 }
 0x755   : > { %5315 = vmatpush1.bf16.msra.mxu0 %v12453_v40  ;;  %5356 = vmatpush1.bf16.msra.mxu1 %v12454_v5  ;;  %v2381_v5 = vrot.slane %v10712_v60, %v12357_v28  ;;  %v12459_v40 = vld [vmem:[#allocation179_spill] sm:$0xff]  ;;  %v10743_v28 = vadd.f32 %v12463_v35, %v2373_v54  ;;  %v5084_v58 = vadd.f32 %v4993_v38, %v10734_v13  ;;  %v12470_v54 = vld [vmem:[#allocation185_spill] sm:$0xff] }
 0x756   : > { %5316 = vmatprep.subr.bf16.mxu0 %v12455_v52  ;;  %5357 = vmatprep.subr.bf16.mxu1 %v12456_v43  ;;  %v12460_v52 = vld [vmem:[#allocation180_spill] sm:$0xff] }
 0x757   : > { %v12461_v43 = vld [vmem:[#allocation204_spill] sm:$0xff]  ;;  %12464 = vst [vmem:[#allocation177_spill] sm:$0xff] %v10743_v28  ;;  %v5083_v11 = vadd.f32 %v4954_v12, %v10743_v28  ;;  %v12476_v12 = vld [vmem:[#allocation191_spill] sm:$0xff] }
 0x758   : > { %v10731_v57 = vadd.f32 %v12461_v43, %v2369_v21  ;;  %v12466_v21 = vld [vmem:[#allocation182_spill] sm:$0xff]  ;;  %v12467_v43 = vld [vmem:[#allocation208_spill] sm:$0xff] }
 0x759   : > { %5317 = vmatpush1.bf16.msra.mxu0 %v12457_v53  ;;  %5358 = vmatpush1.bf16.msra.mxu1 %v12458_v30  ;;  %v10749_v37 = vadd.f32 %v12467_v43, %v2381_v5  ;;  %v12469_v30 = vld [vmem:[#allocation184_spill] sm:$0xff]  ;;  %v8148_v43 = vmul.f32 -1.442695, %v5083_v11 }
 0x75a   : > { %5402 = vmatprep.subr.bf16.mxu0 %v12459_v40  ;;  %5443 = vmatprep.subr.bf16.mxu1 %v12460_v52  ;;  %v5082_v9 = vadd.f32 %v4952_v61, %v10731_v57  ;;  %v12465_v52 = vld [vmem:[#allocation181_spill] sm:$0xff]  ;;  %v12468_v40 = vld [vmem:[#allocation183_spill] sm:$0xff]  ;;  %v12471_v61 = vld [vmem:[#allocation186_spill] sm:$0xff] }
 0x75b   : > { %v5085_v35 = vadd.f32 %v4995_v62, %v10749_v37  ;;  %v12473_v5 = vld [vmem:[#allocation188_spill] sm:$0xff]  ;;  %v12478_v62 = vld [vmem:[#allocation193_spill] sm:$0xff] }
 0x75c   : > { %8170 = vmatmul.mubr.msk.bf16.vlgmr.msra.gmra.mrb[36].mxu0 %vm10631_vm5, %v10639_v8  ;;  %8176 = vmatmul.mubr.msk.bf16.vlgmr.msra.gmra.mrb[36].mxu1 %vm10631_vm5, %v10639_v8  ;;  %v8147_v8 = vmul.f32 -1.442695, %v5082_v9  ;;  %v12477_v9 = vld [vmem:[#allocation192_spill] sm:$0xff] }
 0x75d   : > { %5403 = vmatpush1.bf16.msra.mxu0 %v12465_v52  ;;  %5444 = vmatpush1.bf16.msra.mxu1 %v12466_v21  ;;  %v8149_v52 = vmul.f32 -1.442695, %v5084_v58  ;;  %v12472_v21 = vld [vmem:[#allocation187_spill] sm:$0xff]  ;;  %v8150_v38 = vmul.f32 -1.442695, %v5085_v35  ;;  %v12479_v58 = vld [vmem:[#allocation194_spill] sm:$0xff] }
 0x75e   : > { %5404 = vmatprep.subr.bf16.mxu0 %v12468_v40  ;;  %5445 = vmatprep.subr.bf16.mxu1 %v12469_v30  ;;  %8669 = vpow2.f32 %v8147_v8  ;;  %v12474_v40 = vld [vmem:[#allocation189_spill] sm:$0xff]  ;;  %v12475_v30 = vld [vmem:[#allocation190_spill] sm:$0xff]  ;;  %v12481_v11 = vld [vmem:[#allocation196_spill] sm:$0xff] }
 0x75f   : > { %8671 = vpow2.f32 %v8149_v52  ;;  %v12482_v35 = vld [vmem:[#allocation197_spill] sm:$0xff]  ;;  %v12483_v8 = vld [vmem:[#allocation198_spill] sm:$0xff]  ;;  %v12485_v52 = vld [vmem:[#allocation200_spill] sm:$0xff] }
 0x760   : > { %8673 = vpow2.f32 %v8148_v43 }
 0x761   : > { %5405 = vmatpush1.bf16.msra.mxu0 %v12470_v54  ;;  %5446 = vmatpush1.bf16.msra.mxu1 %v12471_v61  ;;  %8675 = vpow2.f32 %v8150_v38  ;;  %v12486_v38 = vld [vmem:[#allocation201_spill] sm:$0xff]  ;;  %v12495_v54 = vld [vmem:[#allocation274_spill] sm:$0xff] }
 0x762   : > { %5406 = vmatprep.subr.bf16.mxu0 %v12472_v21  ;;  %5447 = vmatprep.subr.bf16.mxu1 %v12473_v5  ;;  %v12480_v21 = vld [vmem:[#allocation195_spill] sm:$0xff]  ;;  %v12490_v61 = vld [vmem:[#allocation209_spill] sm:$0xff] }
 0x765   : > { %5407 = vmatpush1.bf16.msra.mxu0 %v12474_v40  ;;  %5448 = vmatpush1.bf16.msra.mxu1 %v12475_v30  ;;  %v12484_v30 = vld [vmem:[#allocation199_spill] sm:$0xff] }
 0x766   : > { %5408 = vmatprep.subr.bf16.mxu0 %v12476_v12  ;;  %5449 = vmatprep.subr.bf16.mxu1 %v12477_v9  ;;  %v12488_v40 = vld [vmem:[#allocation203_spill] sm:$0xff] }
 0x768   : > { %v8670_v12 = vpop.eup %8669 }
 0x769   : > { %5409 = vmatpush1.bf16.msra.mxu0 %v12478_v62  ;;  %5450 = vmatpush1.bf16.msra.mxu1 %v12479_v58  ;;  %v8672_v9 = vpop.eup %8671  ;;  %v12487_v62 = vld [vmem:[#allocation202_spill] sm:$0xff] }
 0x76a   : > { %5410 = vmatprep.subr.bf16.mxu0 %v12480_v21  ;;  %5451 = vmatprep.subr.bf16.mxu1 %v12481_v11  ;;  %v8674_v43 = vpop.eup %8673  ;;  %v2385_v21 = vrot.slane %v10712_v60, %v12377_v20  ;;  %v5153_v11 = vadd.f32 1.0, %v8670_v12  ;;  %v12491_v20 = vld [vmem:[#allocation210_spill] sm:$0xff]  ;;  %v12492_v12 = vld [vmem:[#allocation272_spill] sm:$0xff] }
 0x76b   : > { %v8676_v58 = vpop.eup %8675 }
 0x76c   : > { %v5166_v5 = vadd.f32 1.0, %v8676_v58  ;;  %8677 = vrcp.f32 %v5153_v11  ;;  %v12498_v58 = vld [vmem:[#allocation276_spill] sm:$0xff] }
 0x76d   : > { %5411 = vmatpush1.bf16.msra.mxu0 %v12482_v35  ;;  %5452 = vmatpush1.bf16.msra.mxu1 %v12483_v8  ;;  %v12489_v35 = vld [vmem:[#allocation205_spill] sm:$0xff]  ;;  %v5165_v8 = vadd.f32 1.0, %v8672_v9  ;;  %v12496_v9 = vld [vmem:[#allocation275_spill] sm:$0xff] }
 0x76e   : > { %5412 = vmatprep.subr.bf16.mxu0 %v12484_v30  ;;  %5453 = vmatprep.subr.bf16.mxu1 %v12485_v52  ;;  %v2393_v30 = vrot.slane %v10712_v60, %v12378_v48  ;;  %v2389_v52 = vrot.slane %v10712_v60, %v12379_v47  ;;  %v12494_v48 = vld [vmem:[#allocation212_spill] sm:$0xff] }
 0x76f   : > { %8679 = vrcp.f32 %v5165_v8 }
 0x770   : > { %v10792_v47 = vadd.f32 %v12495_v54, %v2393_v30  ;;  %v10795_v28 = vadd.f32 %v12496_v9, %v2389_v52 }
 0x771   : > { %5413 = vmatpush1.bf16.msra.mxu0 %v12486_v38  ;;  %5454 = vmatpush1.bf16.msra.mxu1 %v12487_v62  ;;  %v2397_v38 = vrot.slane %v10712_v60, %v12380_v46  ;;  %v5154_v62 = vadd.f32 1.0, %v8674_v43  ;;  %v12500_v46 = vld [vmem:[#allocation213_spill] sm:$0xff] }
 0x772   : > { %5414 = vmatprep.subr.bf16.mxu0 %v12488_v40  ;;  %5455 = vmatprep.subr.bf16.mxu1 %v12489_v35  ;;  %v10787_v40 = vadd.f32 %v12492_v12, %v2385_v21  ;;  %v12493_v35 = vld [vmem:[#allocation211_spill] sm:$0xff]  ;;  %12497 = vst [vmem:[#allocation204_spill] sm:$0xff] %v10795_v28 }
 0x773   : > { %v10798_v43 = vadd.f32 %v12498_v58, %v2397_v38  ;;  %8681 = vrcp.f32 %v5154_v62  ;;  %v12502_v62 = vld [vmem:[#allocation215_spill] sm:$0xff] }
 0x774   : > { %8683 = vrcp.f32 %v5166_v5 }
 0x775   : > { %5415 = vmatpush1.bf16.msra.mxu0 %v12490_v61  ;;  %5456 = vmatpush1.bf16.msra.mxu1 %v12491_v20  ;;  %12499 = vst [vmem:[#allocation206_spill] sm:$0xff] %v10798_v43 }
 0x776   : > { %5416 = vmatprep.subr.bf16.mxu0 %v12493_v35  ;;  %5457 = vmatprep.subr.bf16.mxu1 %v12494_v48  ;;  %v12501_v48 = vld [vmem:[#allocation214_spill] sm:$0xff] }
 0x777   : > { %v5034_v60 = vpop.f32.mrb[28].mxu0  ;;  %v5075_v12 = vpop.f32.mrb[28].mxu1 }
 0x778   : > { %v5086_v21 = vadd.f32 %v5034_v60, %v10787_v40  ;;  %v5036_v11 = vpop.f32.mrb[29].mxu0  ;;  %v5088_v30 = vadd.f32 %v5075_v12, %v10792_v47  ;;  %v5077_v52 = vpop.f32.mrb[29].mxu1  ;;  %v12503_v60 = vld [vmem:[#allocation216_spill] sm:$0xff]  ;;  %v12504_v12 = vld [vmem:[#allocation217_spill] sm:$0xff] }
 0x779   : > { %5417 = vmatpush1.bf16.msra.mxu0 %v12500_v46  ;;  %5458 = vmatpush1.bf16.msra.mxu1 %v12501_v48  ;;  %v5087_v54 = vadd.f32 %v5036_v11, %v10795_v28  ;;  %v5038_v8 = vpop.f32.mrb[30].mxu0  ;;  %v5089_v38 = vadd.f32 %v5077_v52, %v10798_v43  ;;  %v5079_v9 = vpop.f32.mrb[30].mxu1  ;;  %v12505_v11 = vld [vmem:[#allocation218_spill] sm:$0xff]  ;;  %v12507_v52 = vld [vmem:[#allocation220_spill] sm:$0xff]  ;;  %v12514_v48 = vld [vmem:[#allocation227_spill] sm:$0xff] }
 0x77a   : > { %8685 = vtanh.f32 %v5086_v21  ;;  %5418 = vmatprep.subr.bf16.mxu0 %v12502_v62  ;;  %5459 = vmatprep.subr.bf16.mxu1 %v12503_v60  ;;  %v5039_v58 = vpop.f32.mrb[31].mxu0  ;;  %v8151_v5 = vmul.f32 -1.442695, %v5088_v30  ;;  %v5080_v46 = vpop.f32.mrb[31].mxu1  ;;  %v12506_v21 = vld [vmem:[#allocation219_spill] sm:$0xff]  ;;  %v12508_v62 = vld [vmem:[#allocation221_spill] sm:$0xff] }
 0x77b   : > { %8687 = vtanh.f32 %v5087_v54  ;;  %v8152_v35 = vmul.f32 -1.442695, %v5089_v38  ;;  %v8678_v8 = vpop.eup %8677  ;;  %v12509_v58 = vld [vmem:[#allocation222_spill] sm:$0xff]  ;;  %v12510_v46 = vld [vmem:[#allocation223_spill] sm:$0xff]  ;;  %v12511_v54 = vld [vmem:[#allocation224_spill] sm:$0xff] }
 0x77c   : > { %8689 = vpow2.f32 %v8151_v5  ;;  %v8680_v9 = vpop.eup %8679 }
 0x77d   : > { %5419 = vmatpush1.bf16.msra.mxu0 %v12504_v12  ;;  %5460 = vmatpush1.bf16.msra.mxu1 %v12505_v11  ;;  %8691 = vpow2.f32 %v8152_v35  ;;  %v8682_v30 = vpop.eup %8681  ;;  %v5185_v11 = vmul.f32 0.0, %v8680_v9  ;;  %v12512_v12 = vld [vmem:[#allocation225_spill] sm:$0xff] }
 0x77e   : > { %5420 = vmatprep.subr.bf16.mxu0 %v12506_v21  ;;  %5461 = vmatprep.subr.bf16.mxu1 %v12507_v52  ;;  %v8684_v38 = vpop.eup %8683  ;;  %v12513_v52 = vld [vmem:[#allocation226_spill] sm:$0xff]  ;;  %v12516_v9 = vld [vmem:[#allocation229_spill] sm:$0xff] }
 0x77f   : > { %v5186_v60 = vmul.f32 0.0, %v8684_v38  ;;  %v12519_v38 = vld [vmem:[#allocation232_spill] sm:$0xff] }
 0x781   : > { %5421 = vmatpush1.bf16.msra.mxu0 %v12508_v62  ;;  %5462 = vmatpush1.bf16.msra.mxu1 %v12509_v58  ;;  %v12515_v58 = vld [vmem:[#allocation228_spill] sm:$0xff] }
 0x782   : > { %5422 = vmatprep.subr.bf16.mxu0 %v12510_v46  ;;  %5463 = vmatprep.subr.bf16.mxu1 %v12511_v54 }
 0x784   : > { %v8686_v5 = vpop.eup %8685 }
 0x785   : > { %v8688_v35 = vpop.eup %8687  ;;  %v5187_v21 = vmul.f32 %v8686_v5, %v8678_v8  ;;  %5423 = vmatpush1.bf16.msra.mxu0 %v12512_v12  ;;  %5464 = vmatpush1.bf16.msra.mxu1 %v12513_v52  ;;  %v12517_v5 = vld [vmem:[#allocation230_spill] sm:$0xff] }
 0x786   : > { %v5188_v62 = vmul.f32 %v8688_v35, %v8682_v30  ;;  %5424 = vmatprep.subr.bf16.mxu0 %v12514_v48  ;;  %5465 = vmatprep.subr.bf16.mxu1 %v12515_v58  ;;  %v8690_v46 = vpop.eup %8689  ;;  %v12518_v30 = vld [vmem:[#allocation231_spill] sm:$0xff]  ;;  %v12527_v35 = vld [vmem:[#allocation240_spill] sm:$0xff] }
 0x787   : > { %v10823_v54 = vadd.f32 %v5187_v21, %v5185_v11  ;;  %v8692_v43 = vpop.eup %8691  ;;  %v5179_v28 = vadd.f32 1.0, %v8690_v46  ;;  %v12520_v11 = vld [vmem:[#allocation233_spill] sm:$0xff]  ;;  %v12526_v46 = vld [vmem:[#allocation239_spill] sm:$0xff]  ;;  %v12553_v58 = vld [vmem:[#allocation260_spill] sm:$0xff] }
 0x788   : > { %v10825_v20 = vadd.f32 %v5188_v62, %v5186_v60  ;;  %v5180_v8 = vadd.f32 1.0, %v8692_v43  ;;  %v12521_v62 = vld [vmem:[#allocation234_spill] sm:$0xff]  ;;  %v12522_v60 = vld [vmem:[#allocation235_spill] sm:$0xff]  ;;  %v12523_v43 = vld [vmem:[#allocation236_spill] sm:$0xff] }
 0x789   : > { %8693 = vtanh.f32 %v10823_v54  ;;  %5425 = vmatpush1.bf16.msra.mxu0 %v12516_v9  ;;  %5466 = vmatpush1.bf16.msra.mxu1 %v12517_v5  ;;  %v12524_v21 = vld [vmem:[#allocation237_spill] sm:$0xff]  ;;  %v12531_v9 = vld [vmem:[#allocation243_spill] sm:$0xff] }
 0x78a   : > { %8695 = vrcp.f32 %v5179_v28  ;;  %5426 = vmatprep.subr.bf16.mxu0 %v12518_v30  ;;  %5467 = vmatprep.subr.bf16.mxu1 %v12519_v38  ;;  %v12525_v28 = vld [vmem:[#allocation238_spill] sm:$0xff] }
 0x78b   : > { %8697 = vtanh.f32 %v10825_v20 }
 0x78c   : > { %8699 = vrcp.f32 %v5180_v8  ;;  %v5196_v8 = vstv %s5195_s7 }
 0x78d   : > { %5427 = vmatpush1.bf16.msra.mxu0 %v12520_v11  ;;  %5468 = vmatpush1.bf16.msra.mxu1 %v12521_v62  ;;  %v12528_v11 = vld [vmem:[#allocation241_spill] sm:$0xff]  ;;  %v12529_v62 = vld [vmem:[#allocation242_spill] sm:$0xff]  ;;  %vm10848_vm6 = vcmp.eq.s32.totalorder %v5196_v8, 1  ;;  %v12540_v8 = vld [vmem:[#allocation247_spill] sm:$0xff] }
 0x78e   : > { %5428 = vmatprep.subr.bf16.mxu0 %v12522_v60  ;;  %5469 = vmatprep.subr.bf16.mxu1 %v12523_v43  ;;  %vm10857_vm7 = vmpackc.low %vm10848_vm6, %vm10848_vm6 }
 0x791   : > { %5429 = vmatpush1.bf16.msra.mxu0 %v12524_v21  ;;  %5470 = vmatpush1.bf16.msra.mxu1 %v12525_v28  ;;  %v12532_v21 = vld [vmem:[#allocation244_spill] sm:$0xff]  ;;  %v12771_v28 = vld [vmem:[#allocation241_spill] sm:$0xff] }
 0x792   : > { %5430 = vmatprep.subr.bf16.mxu0 %v12526_v46  ;;  %5471 = vmatprep.subr.bf16.mxu1 %v12527_v35  ;;  %v12548_v46 = vld [vmem:[#allocation255_spill] sm:$0xff] }
 0x793   : > { %v8694_v38 = vpop.eup %8693 }
 0x794   : > { %v8696_v30 = vpop.eup %8695 }
 0x795   : > { %v8698_v5 = vpop.eup %8697  ;;  %5431 = vmatpush1.bf16.msra.mxu0 %v12528_v11  ;;  %5472 = vmatpush1.bf16.msra.mxu1 %v12529_v62  ;;  %v10844_v60 = vmul.f32 %v8696_v30, %v8694_v38  ;;  %v12538_v30 = vld [vmem:[#allocation245_spill] sm:$0xff]  ;;  %v12539_v38 = vld [vmem:[#allocation246_spill] sm:$0xff] }
 0x796   : > { %v8700_v43 = vpop.eup %8699  ;;  %5432 = vmatprep.subr.bf16.mxu0 %v12531_v9  ;;  %5473 = vmatprep.subr.bf16.mxu1 %v12532_v21  ;;  %v12541_v9 = vld [vmem:[#allocation248_spill] sm:$0xff]  ;;  %v12547_v62 = vld [vmem:[#allocation254_spill] sm:$0xff]  ;;  %v12597_v11 = vld [vmem:[#allocation73_spill] sm:$0xff] }
 0x797   : > { %12530 = vst [vmem:[#allocation207_spill] sm:$0xff] %v10844_v60  ;;  %v10852_v35 = vmul.f32 %v8700_v43, %v8698_v5  ;;  %v10869_v5 = vpack.c.bf16 %v10844_v60, %v10844_v60  ;;  %v12542_v43 = vld [vmem:[#allocation249_spill] sm:$0xff]  ;;  %v12552_v60 = vld [vmem:[#allocation259_spill] sm:$0xff] }
 0x799   : > { %12535 = vst [vmem:[#allocation208_spill] sm:$0xff] %v10852_v35  ;;  %5433 = vmatpush1.bf16.msra.mxu0 %v12538_v30  ;;  %5474 = vmatpush1.bf16.msra.mxu1 %v12539_v38  ;;  %v8178_v21 = vpack.c.bf16 %v10852_v35, %v10852_v35  ;;  %v12545_v38 = vld [vmem:[#allocation252_spill] sm:$0xff]  ;;  %v12546_v30 = vld [vmem:[#allocation253_spill] sm:$0xff] }
 0x79a   : > { %5484 = vmatprep.subr.bf16.mxu0 %v12540_v8  ;;  %5525 = vmatprep.subr.bf16.mxu1 %v12541_v9  ;;  %v12543_v9 = vld [vmem:[#allocation250_spill] sm:$0xff]  ;;  %v12544_v8 = vld [vmem:[#allocation251_spill] sm:$0xff]  ;;  %v12549_v35 = vld [vmem:[#allocation256_spill] sm:$0xff] }
 0x79b   : > { %8179 = vmatprep.mubr.msk.bf16.mxu0 %vm10857_vm7, %v8178_v21  ;;  %8185 = vmatprep.mubr.msk.bf16.mxu1 %vm10857_vm7, %v8178_v21 }
 0x79c   : > { %8182 = vmatmul.mubr.msk.bf16.vlgmr.msra.gmra.mrb[40].mxu0 %vm10857_vm7, %v10869_v5  ;;  %8188 = vmatmul.mubr.msk.bf16.vlgmr.msra.gmra.mrb[40].mxu1 %vm10857_vm7, %v10869_v5 }
 0x79d   : > { %5485 = vmatpush1.bf16.msra.mxu0 %v12542_v43  ;;  %5526 = vmatpush1.bf16.msra.mxu1 %v12543_v9  ;;  %v12550_v43 = vld [vmem:[#allocation257_spill] sm:$0xff]  ;;  %v12551_v9 = vld [vmem:[#allocation258_spill] sm:$0xff] }
 0x79e   : > { %8191 = vmatprep.mubr.msk.bf16.mxu0 %vm10857_vm7, %v8178_v21  ;;  %8197 = vmatprep.mubr.msk.bf16.mxu1 %vm10857_vm7, %v8178_v21  ;;  %v12554_v21 = vld [vmem:[#allocation261_spill] sm:$0xff] }
 0x79f   : > { %5486 = vmatprep.subr.bf16.mxu0 %v12544_v8  ;;  %5527 = vmatprep.subr.bf16.mxu1 %v12545_v38  ;;  %v12555_v8 = vld [vmem:[#allocation262_spill] sm:$0xff]  ;;  %v12556_v38 = vld [vmem:[#allocation263_spill] sm:$0xff] }
 0x7a1   : > { %5487 = vmatpush1.bf16.msra.mxu0 %v12546_v30  ;;  %5528 = vmatpush1.bf16.msra.mxu1 %v12547_v62  ;;  %v12557_v30 = vld [vmem:[#allocation264_spill] sm:$0xff]  ;;  %v12558_v62 = vld [vmem:[#allocation265_spill] sm:$0xff] }
 0x7a2   : > { %5488 = vmatprep.subr.bf16.mxu0 %v12548_v46  ;;  %5529 = vmatprep.subr.bf16.mxu1 %v12549_v35  ;;  %v12559_v46 = vld [vmem:[#allocation266_spill] sm:$0xff]  ;;  %v12560_v35 = vld [vmem:[#allocation267_spill] sm:$0xff] }
 0x7a5   : > { %5489 = vmatpush1.bf16.msra.mxu0 %v12550_v43  ;;  %5530 = vmatpush1.bf16.msra.mxu1 %v12551_v9  ;;  %v12561_v43 = vld [vmem:[#allocation268_spill] sm:$0xff]  ;;  %v12562_v9 = vld [vmem:[#allocation269_spill] sm:$0xff] }
 0x7a6   : > { %5490 = vmatprep.subr.bf16.mxu0 %v12552_v60  ;;  %5531 = vmatprep.subr.bf16.mxu1 %v12553_v58  ;;  %v12563_v58 = vld [vmem:[#allocation271_spill] sm:$0xff] }
 0x7a9   : > { %5491 = vmatpush1.bf16.msra.mxu0 %v12554_v21  ;;  %5532 = vmatpush1.bf16.msra.mxu1 %v12555_v8  ;;  %v12564_v21 = vld [vmem:[#allocation273_spill] sm:$0xff] }
 0x7aa   : > { %5492 = vmatprep.subr.bf16.mxu0 %v12556_v38  ;;  %5533 = vmatprep.subr.bf16.mxu1 %v12557_v30  ;;  %v12565_v8 = vld [vmem:[#allocation277_spill] sm:$0xff]  ;;  %v12566_v38 = vld [vmem:[#allocation278_spill] sm:$0xff]  ;;  %v12567_v30 = vld [vmem:[#allocation279_spill] sm:$0xff] }
 0x7ad   : > { %5493 = vmatpush1.bf16.msra.mxu0 %v12558_v62  ;;  %5534 = vmatpush1.bf16.msra.mxu1 %v12559_v46  ;;  %v12568_v62 = vld [vmem:[#allocation280_spill] sm:$0xff]  ;;  %v12569_v46 = vld [vmem:[#allocation281_spill] sm:$0xff] }
 0x7ae   : > { %5494 = vmatprep.subr.bf16.mxu0 %v12560_v35  ;;  %5535 = vmatprep.subr.bf16.mxu1 %v12561_v43  ;;  %v12570_v35 = vld [vmem:[#allocation282_spill] sm:$0xff]  ;;  %v12571_v43 = vld [vmem:[#allocation283_spill] sm:$0xff] }
 0x7b1   : > { %5495 = vmatpush1.bf16.msra.mxu0 %v12562_v9  ;;  %5536 = vmatpush1.bf16.msra.mxu1 %v10368_v3  ;;  %v12572_v9 = vld [vmem:[#allocation284_spill] sm:$0xff]  ;;  %v12573_v3 = vld [vmem:[#allocation285_spill] sm:$0xff] }
 0x7b2   : > { %5496 = vmatprep.subr.bf16.mxu0 %v12563_v58  ;;  %5537 = vmatprep.subr.bf16.mxu1 %v12564_v21  ;;  %v12574_v58 = vld [vmem:[#allocation286_spill] sm:$0xff]  ;;  %v12575_v21 = vld [vmem:[#allocation287_spill] sm:$0xff] }
 0x7b5   : > { %5497 = vmatpush1.bf16.msra.mxu0 %v12565_v8  ;;  %5538 = vmatpush1.bf16.msra.mxu1 %v12566_v38  ;;  %v12576_v8 = vld [vmem:[#allocation288_spill] sm:$0xff]  ;;  %v12577_v38 = vld [vmem:[#allocation289_spill] sm:$0xff] }
 0x7b6   : > { %5498 = vmatprep.subr.bf16.mxu0 %v12567_v30  ;;  %5539 = vmatprep.subr.bf16.mxu1 %v12568_v62  ;;  %v12578_v30 = vld [vmem:[#allocation290_spill] sm:$0xff]  ;;  %v12579_v62 = vld [vmem:[#allocation291_spill] sm:$0xff] }
 0x7b9   : > { %5499 = vmatpush1.bf16.msra.mxu0 %v12569_v46  ;;  %5540 = vmatpush1.bf16.msra.mxu1 %v12570_v35  ;;  %v12580_v46 = vld [vmem:[#allocation292_spill] sm:$0xff]  ;;  %v12581_v35 = vld [vmem:[#allocation293_spill] sm:$0xff] }
 0x7ba   : > { %5500 = vmatprep.subr.bf16.mxu0 %v12571_v43  ;;  %5541 = vmatprep.subr.bf16.mxu1 %v12572_v9  ;;  %v12582_v43 = vld [vmem:[#allocation294_spill] sm:$0xff]  ;;  %v12583_v9 = vld [vmem:[#allocation295_spill] sm:$0xff] }
 0x7bd   : > { %5501 = vmatpush1.bf16.msra.mxu0 %v12573_v3  ;;  %5542 = vmatpush1.bf16.msra.mxu1 %v12574_v58  ;;  %v12584_v3 = vld [vmem:[#allocation296_spill] sm:$0xff]  ;;  %v12585_v58 = vld [vmem:[#allocation297_spill] sm:$0xff] }
 0x7be   : > { %5502 = vmatprep.subr.bf16.mxu0 %v12575_v21  ;;  %5543 = vmatprep.subr.bf16.mxu1 %v12576_v8  ;;  %v12586_v21 = vld [vmem:[#allocation298_spill] sm:$0xff]  ;;  %v12587_v8 = vld [vmem:[#allocation299_spill] sm:$0xff] }
 0x7c1   : > { %5503 = vmatpush1.bf16.msra.mxu0 %v12577_v38  ;;  %5544 = vmatpush1.bf16.msra.mxu1 %v12578_v30  ;;  %v12588_v38 = vld [vmem:[#allocation300_spill] sm:$0xff] }
 0x7c2   : > { %5504 = vmatprep.subr.bf16.mxu0 %v12579_v62  ;;  %5545 = vmatprep.subr.bf16.mxu1 %v12580_v46 }
 0x7c5   : > { %5505 = vmatpush1.bf16.msra.mxu0 %v12581_v35  ;;  %5546 = vmatpush1.bf16.msra.mxu1 %v12582_v43  ;;  %v12589_v35 = vld [vmem:[#allocation301_spill] sm:$0xff] }
 0x7c6   : > { %5506 = vmatprep.subr.bf16.mxu0 %v12583_v9  ;;  %5547 = vmatprep.subr.bf16.mxu1 %v12584_v3 }
 0x7c9   : > { %5507 = vmatpush1.bf16.msra.mxu0 %v12585_v58  ;;  %5548 = vmatpush1.bf16.msra.mxu1 %v12586_v21 }
 0x7ca   : > { %5508 = vmatprep.subr.bf16.mxu0 %v12587_v8  ;;  %5549 = vmatprep.subr.bf16.mxu1 %v12588_v38 }
 0x7cd   : > { %5509 = vmatpush1.bf16.msra.mxu0 %v10456_v29  ;;  %5550 = vmatpush1.bf16.msra.mxu1 %v10460_v26 }
 0x7ce   : > { %5510 = vmatprep.subr.bf16.mxu0 %v10462_v7  ;;  %5551 = vmatprep.subr.bf16.mxu1 %v12589_v35 }
 0x7d1   : > { %5511 = vmatpush1.bf16.msra.mxu0 %v10468_v34  ;;  %5552 = vmatpush1.bf16.msra.mxu1 %v10472_v19 }
 0x7d2   : > { %5512 = vmatprep.subr.bf16.mxu0 %v10474_v59  ;;  %5553 = vmatprep.subr.bf16.mxu1 %v10477_v4 }
 0x7d5   : > { %5513 = vmatpush1.bf16.msra.mxu0 %v10480_v10  ;;  %5554 = vmatpush1.bf16.msra.mxu1 %v10484_v27 }
 0x7d6   : > { %5514 = vmatprep.subr.bf16.mxu0 %v10486_v1  ;;  %5555 = vmatprep.subr.bf16.mxu1 %v10489_v18 }
 0x7d9   : > { %5515 = vmatpush1.bf16.msra.mxu0 %v10492_v17  ;;  %5556 = vmatpush1.bf16.msra.mxu1 %v10496_v55 }
 0x7da   : > { %5744 = vmatprep.subr.bf16.mxu0 %v9685_v0  ;;  %5785 = vmatprep.subr.bf16.mxu1 %v9687_v2  ;;  %v12590_v0 = vld [vmem:[#allocation64_spill] sm:$0xff] }
 0x7dc   : > { %8194 = vmatmul.mubr.msk.bf16.vlgmr.msra.gmra.mrb[44].mxu0 %vm10857_vm7, %v10869_v5  ;;  %8200 = vmatmul.mubr.msk.bf16.vlgmr.msra.gmra.mrb[44].mxu1 %vm10857_vm7, %v10869_v5  ;;  %v12598_v5 = vld [vmem:[#allocation74_spill] sm:$0xff] }
 0x7dd   : > { %5745 = vmatpush1.bf16.msra.mxu0 %v9689_v14  ;;  %5786 = vmatpush1.bf16.msra.mxu1 %v9692_v15 }
 0x7de   : > { %5746 = vmatprep.subr.bf16.mxu0 %v9694_v16  ;;  %5787 = vmatprep.subr.bf16.mxu1 %v9697_v6 }
 0x7e1   : > { %5747 = vmatpush1.bf16.msra.mxu0 %v9702_v22  ;;  %5788 = vmatpush1.bf16.msra.mxu1 %v9706_v23 }
 0x7e2   : > { %5748 = vmatprep.subr.bf16.mxu0 %v9708_v24  ;;  %5789 = vmatprep.subr.bf16.mxu1 %v9711_v25  ;;  %v12591_v25 = vld [vmem:[#allocation65_spill] sm:$0xff] }
 0x7e5   : > { %5749 = vmatpush1.bf16.msra.mxu0 %v9716_v31  ;;  %5790 = vmatpush1.bf16.msra.mxu1 %v9720_v32  ;;  %v12592_v31 = vld [vmem:[#allocation66_spill] sm:$0xff] }
 0x7e6   : > { %5750 = vmatprep.subr.bf16.mxu0 %v9722_v33  ;;  %5791 = vmatprep.subr.bf16.mxu1 %v9725_v39  ;;  %v12593_v32 = vld [vmem:[#allocation70_spill] sm:$0xff] }
 0x7e9   : > { %5751 = vmatpush1.bf16.msra.mxu0 %v9728_v41  ;;  %5792 = vmatpush1.bf16.msra.mxu1 %v9732_v42  ;;  %v12594_v42 = vld [vmem:[#allocation67_spill] sm:$0xff] }
 0x7ea   : > { %5752 = vmatprep.subr.bf16.mxu0 %v9734_v44  ;;  %5793 = vmatprep.subr.bf16.mxu1 %v9737_v45  ;;  %v12595_v44 = vld [vmem:[#allocation69_spill] sm:$0xff]  ;;  %v12596_v45 = vld [vmem:[#allocation72_spill] sm:$0xff] }
 0x7ed   : > { %5753 = vmatpush1.bf16.msra.mxu0 %v9740_v49  ;;  %5794 = vmatpush1.bf16.msra.mxu1 %v9744_v50 }
 0x7ee   : > { %5754 = vmatprep.subr.bf16.mxu0 %v9746_v51  ;;  %5795 = vmatprep.subr.bf16.mxu1 %v12590_v0  ;;  %v12599_v0 = vld [vmem:[#allocation75_spill] sm:$0xff] }
 0x7ef   : > { %v10975_v2 = vpop.f32.mrb[32].mxu0  ;;  %v5279_v14 = vpop.f32.mrb[32].mxu1 }
 0x7f0   : > { %v5378_v15 = vrot.slane %v5279_v14, 7  ;;  %v10977_v16 = vpop.f32.mrb[33].mxu0  ;;  %v5281_v6 = vpop.f32.mrb[33].mxu1  ;;  %v12600_v14 = vld [vmem:[#allocation76_spill] sm:$0xff] }
 0x7f1   : > { %v5379_v22 = vrot.slane %v5281_v6, 7  ;;  %v5242_v23 = vpop.f32.mrb[34].mxu0  ;;  %v5283_v24 = vpop.f32.mrb[34].mxu1  ;;  %5755 = vmatpush1.bf16.msra.mxu0 %v12591_v25  ;;  %5796 = vmatpush1.bf16.msra.mxu1 %v12592_v31  ;;  %v12602_v6 = vld [vmem:[#allocation78_spill] sm:$0xff]  ;;  %v12607_v31 = vld [vmem:[#allocation83_spill] sm:$0xff] }
 0x7f2   : > { %v5394_v33 = vadd.f32 %v5378_v15, %v12593_v32  ;;  %v5243_v39 = vpop.f32.mrb[35].mxu0  ;;  %v5284_v41 = vpop.f32.mrb[35].mxu1  ;;  %5756 = vmatprep.subr.bf16.mxu0 %v12594_v42  ;;  %5797 = vmatprep.subr.bf16.mxu1 %v12595_v44  ;;  %v12601_v15 = vld [vmem:[#allocation77_spill] sm:$0xff]  ;;  %v12603_v23 = vld [vmem:[#allocation79_spill] sm:$0xff]  ;;  %v12604_v24 = vld [vmem:[#allocation80_spill] sm:$0xff] }
 0x7f3   : > { %v5395_v49 = vadd.f32 %v5379_v22, %v12596_v45  ;;  %v12605_v22 = vld [vmem:[#allocation81_spill] sm:$0xff]  ;;  %v12606_v25 = vld [vmem:[#allocation82_spill] sm:$0xff]  ;;  %v12642_v32 = vld [vmem:[#allocation140_spill] sm:$0xff] }
 0x7f4   : > { %v8203_v50 = vmul.f32 -1.442695, %v5394_v33  ;;  %v12608_v33 = vld [vmem:[#allocation84_spill] sm:$0xff]  ;;  %v12609_v41 = vld [vmem:[#allocation85_spill] sm:$0xff]  ;;  %v12610_v42 = vld [vmem:[#allocation86_spill] sm:$0xff] }
 0x7f5   : > { %v8204_v51 = vmul.f32 -1.442695, %v5395_v49  ;;  %5757 = vmatpush1.bf16.msra.mxu0 %v12597_v11  ;;  %5798 = vmatpush1.bf16.msra.mxu1 %v12598_v5  ;;  %v12611_v49 = vld [vmem:[#allocation87_spill] sm:$0xff]  ;;  %v12613_v5 = vld [vmem:[#allocation89_spill] sm:$0xff] }
 0x7f6   : > { %5758 = vmatprep.subr.bf16.mxu0 %v12599_v0  ;;  %5799 = vmatprep.subr.bf16.mxu1 %v12600_v14  ;;  %8701 = vpow2.f32 %v8203_v50  ;;  %v12612_v50 = vld [vmem:[#allocation88_spill] sm:$0xff]  ;;  %v12614_v0 = vld [vmem:[#allocation90_spill] sm:$0xff]  ;;  %v12615_v14 = vld [vmem:[#allocation91_spill] sm:$0xff] }
 0x7f7   : > { %8703 = vpow2.f32 %v8204_v51 }
 0x7f9   : > { %5759 = vmatpush1.bf16.msra.mxu0 %v12601_v15  ;;  %5800 = vmatpush1.bf16.msra.mxu1 %v12602_v6  ;;  %v12616_v15 = vld [vmem:[#allocation92_spill] sm:$0xff]  ;;  %v12617_v6 = vld [vmem:[#allocation93_spill] sm:$0xff] }
 0x7fa   : > { %5760 = vmatprep.subr.bf16.mxu0 %v12603_v23  ;;  %5801 = vmatprep.subr.bf16.mxu1 %v12604_v24  ;;  %v12618_v23 = vld [vmem:[#allocation94_spill] sm:$0xff]  ;;  %v5144_v24 = vsel %vm10622_vm4, %v10613_v63, 0.0 }
 0x7fd   : > { %5761 = vmatpush1.bf16.msra.mxu0 %v12605_v22  ;;  %5802 = vmatpush1.bf16.msra.mxu1 %v12606_v25  ;;  %v12619_v22 = vld [vmem:[#allocation95_spill] sm:$0xff]  ;;  %v12620_v25 = vld [vmem:[#allocation96_spill] sm:$0xff] }
 0x7fe   : > { %5762 = vmatprep.subr.bf16.mxu0 %v12607_v31  ;;  %5803 = vmatprep.subr.bf16.mxu1 %v12608_v33  ;;  %v5145_v31 = vsel %vm10622_vm4, %v10615_v56, 0.0  ;;  %v11015_v33 = vrot.slane %v5144_v24, 7  ;;  %v12625_v56 = vld [vmem:[#allocation101_spill] sm:$0xff]  ;;  %v5377_v24 = vrot.slane %v10977_v16, 7 }
 0x7ff   : > { %v11021_v63 = vrot.slane %v5145_v31, 7  ;;  %v12633_v31 = vld [vmem:[#allocation68_spill] sm:$0xff] }
 0x800   : > { %v8702_v39 = vpop.eup %8701 }
 0x801   : > { %5763 = vmatpush1.bf16.msra.mxu0 %v12609_v41  ;;  %5804 = vmatpush1.bf16.msra.mxu1 %v12610_v42  ;;  %v5617_v44 = vadd.f32 1.0, %v8702_v39  ;;  %v8704_v51 = vpop.eup %8703  ;;  %v12621_v39 = vld [vmem:[#allocation97_spill] sm:$0xff]  ;;  %v12622_v41 = vld [vmem:[#allocation98_spill] sm:$0xff] }
 0x802   : > { %5764 = vmatprep.subr.bf16.mxu0 %v12611_v49  ;;  %5805 = vmatprep.subr.bf16.mxu1 %v12612_v50  ;;  %v5618_v11 = vadd.f32 1.0, %v8704_v51  ;;  %v12624_v49 = vld [vmem:[#allocation100_spill] sm:$0xff] }
 0x803   : > { %8705 = vrcp.f32 %v5617_v44  ;;  %v12623_v44 = vld [vmem:[#allocation99_spill] sm:$0xff] }
 0x804   : > { %8707 = vrcp.f32 %v5618_v11 }
 0x805   : > { %5765 = vmatpush1.bf16.msra.mxu0 %v12613_v5  ;;  %5806 = vmatpush1.bf16.msra.mxu1 %v12614_v0  ;;  %v12626_v5 = vld [vmem:[#allocation102_spill] sm:$0xff]  ;;  %v12627_v0 = vld [vmem:[#allocation103_spill] sm:$0xff] }
 0x806   : > { %5766 = vmatprep.subr.bf16.mxu0 %v12615_v14  ;;  %5807 = vmatprep.subr.bf16.mxu1 %v12616_v15  ;;  %v12628_v14 = vld [vmem:[#allocation104_spill] sm:$0xff]  ;;  %v5376_v15 = vrot.slane %v10975_v2, 7 }
 0x807   : > { %v12638_v2 = vld [vmem:[#allocation112_spill] sm:$0xff] }
 0x809   : > { %5767 = vmatpush1.bf16.msra.mxu0 %v12617_v6  ;;  %5808 = vmatpush1.bf16.msra.mxu1 %v12618_v23  ;;  %v12629_v6 = vld [vmem:[#allocation105_spill] sm:$0xff]  ;;  %v12630_v23 = vld [vmem:[#allocation106_spill] sm:$0xff] }
 0x80a   : > { %5768 = vmatprep.subr.bf16.mxu0 %v12619_v22  ;;  %5809 = vmatprep.subr.bf16.mxu1 %v12620_v25  ;;  %v12631_v22 = vld [vmem:[#allocation107_spill] sm:$0xff]  ;;  %v12632_v25 = vld [vmem:[#allocation108_spill] sm:$0xff] }
 0x80d   : > { %5769 = vmatpush1.bf16.msra.mxu0 %v12621_v39  ;;  %5810 = vmatpush1.bf16.msra.mxu1 %v12622_v41  ;;  %v8706_v42 = vpop.eup %8705  ;;  %v5392_v39 = vadd.f32 %v5376_v15, %v12633_v31  ;;  %v12634_v41 = vld [vmem:[#allocation109_spill] sm:$0xff] }
 0x80e   : > { %5770 = vmatprep.subr.bf16.mxu0 %v12623_v44  ;;  %5811 = vmatprep.subr.bf16.mxu1 %v12624_v49  ;;  %v11024_v50 = vmul.f32 %v8706_v42, %v11015_v33  ;;  %v8708_v51 = vpop.eup %8707  ;;  %v12635_v42 = vld [vmem:[#allocation110_spill] sm:$0xff]  ;;  %v12636_v44 = vld [vmem:[#allocation71_spill] sm:$0xff] }
 0x80f   : > { %v11027_v11 = vmul.f32 %v8708_v51, %v11021_v63  ;;  %v5393_v49 = vadd.f32 %v5377_v24, %v12636_v44  ;;  %v12637_v51 = vld [vmem:[#allocation111_spill] sm:$0xff] }
 0x811   : > { %5771 = vmatpush1.bf16.msra.mxu0 %v12625_v56  ;;  %5812 = vmatpush1.bf16.msra.mxu1 %v12626_v5  ;;  %v8201_v56 = vmul.f32 -1.442695, %v5392_v39  ;;  %v8202_v5 = vmul.f32 -1.442695, %v5393_v49  ;;  %v12639_v39 = vld [vmem:[#allocation136_spill] sm:$0xff] }
 0x812   : > { %5772 = vmatprep.subr.bf16.mxu0 %v12627_v0  ;;  %5813 = vmatprep.subr.bf16.mxu1 %v12628_v14 }
 0x813   : > { %8709 = vpow2.f32 %v8201_v56 }
 0x814   : > { %8711 = vpow2.f32 %v8202_v5 }
 0x815   : > { %5773 = vmatpush1.bf16.msra.mxu0 %v12629_v6  ;;  %5814 = vmatpush1.bf16.msra.mxu1 %v12630_v23 }
 0x816   : > { %5774 = vmatprep.subr.bf16.mxu0 %v12631_v22  ;;  %5815 = vmatprep.subr.bf16.mxu1 %v12632_v25 }
 0x819   : > { %5775 = vmatpush1.bf16.msra.mxu0 %v12634_v41  ;;  %5816 = vmatpush1.bf16.msra.mxu1 %v12635_v42 }
 0x81a   : > { %5826 = vmatprep.subr.bf16.mxu0 %v12637_v51  ;;  %5867 = vmatprep.subr.bf16.mxu1 %v12638_v2  ;;  %v12640_v2 = vld [vmem:[#allocation138_spill] sm:$0xff] }
 0x81d   : > { %v8710_v16 = vpop.eup %8709 }
 0x81e   : > { %v8712_v0 = vpop.eup %8711  ;;  %v5605_v14 = vadd.f32 1.0, %v8710_v16  ;;  %v12641_v16 = vld [vmem:[#allocation139_spill] sm:$0xff] }
 0x81f   : > { %v5606_v6 = vadd.f32 1.0, %v8712_v0 }
 0x820   : > { %8713 = vrcp.f32 %v5605_v14 }
 0x821   : > { %8715 = vrcp.f32 %v5606_v6 }
 0x82f   : > { %v5320_v23 = vpop.f32.mrb[36].mxu0  ;;  %v5361_v15 = vpop.f32.mrb[36].mxu1 }
 0x830   : > { %v5380_v22 = vrot.slane %v5320_v23, 7  ;;  %v5382_v25 = vrot.slane %v5361_v15, 7  ;;  %v5322_v41 = vpop.f32.mrb[37].mxu0  ;;  %v5363_v42 = vpop.f32.mrb[37].mxu1 }
 0x831   : > { %v5381_v31 = vrot.slane %v5322_v41, 7  ;;  %v5383_v24 = vrot.slane %v5363_v42, 7  ;;  %v5324_v51 = vpop.f32.mrb[38].mxu0  ;;  %v5365_v44 = vpop.f32.mrb[38].mxu1 }
 0x832   : > { %v5396_v49 = vadd.f32 %v5380_v22, %v12639_v39  ;;  %v5398_v56 = vadd.f32 %v5382_v25, %v12640_v2  ;;  %v5325_v5 = vpop.f32.mrb[39].mxu0  ;;  %v5366_v45 = vpop.f32.mrb[39].mxu1  ;;  %v5654_v22 = vstv %s5653_s11 }
 0x833   : > { %v5397_v0 = vadd.f32 %v5381_v31, %v12641_v16  ;;  %v5399_v23 = vadd.f32 %v5383_v24, %v12642_v32  ;;  %v8714_v44 = vpop.eup %8713  ;;  %vm11050_vm8 = vcmp.eq.s32.totalorder %v5654_v22, 1  ;;  %v12677_v16 = vld [vmem:[#allocation145_spill] sm:$0xff] }
 0x834   : > { %8717 = vtanh.f32 %v5396_v49  ;;  %v8205_v15 = vmul.f32 -1.442695, %v5398_v56  ;;  %v8716_v14 = vpop.eup %8715 }
 0x835   : > { %8719 = vtanh.f32 %v5397_v0  ;;  %v8206_v41 = vmul.f32 -1.442695, %v5399_v23 }
 0x836   : > { %8721 = vpow2.f32 %v8205_v15 }
 0x837   : > { %8723 = vpow2.f32 %v8206_v41 }
 0x83e   : > { %v8718_v42 = vpop.eup %8717 }
 0x83f   : > { %v8720_v25 = vpop.eup %8719  ;;  %v5645_v51 = vmul.f32 %v8718_v42, %v8714_v44 }
 0x840   : > { %v8722_v45 = vpop.eup %8721  ;;  %v5646_v6 = vmul.f32 %v8720_v25, %v8716_v14  ;;  %v12646_v14 = vld [vmem:[#allocation304_spill] sm:$0xff] }
 0x841   : > { %v8724_v24 = vpop.eup %8723  ;;  %v11055_v49 = vadd.f32 %v5645_v51, %v11024_v50  ;;  %v5631_v56 = vadd.f32 1.0, %v8722_v45  ;;  %v12645_v50 = vld [vmem:[#allocation302_spill] sm:$0xff]  ;;  %v5143_v22 = vsel %vm10622_vm4, %v12646_v14, 0.0 }
 0x842   : > { %v11058_v5 = vadd.f32 %v5646_v6, %v11027_v11  ;;  %v5632_v0 = vadd.f32 1.0, %v8724_v24  ;;  %v5142_v11 = vsel %vm10622_vm4, %v12645_v50, 0.0  ;;  %v5659_v6 = vrot.slane %v5143_v22, 7  ;;  %v12651_v22 = vld [vmem:[#allocation115_spill] sm:$0xff] }
 0x843   : > { %8725 = vtanh.f32 %v11055_v49  ;;  %v5658_v51 = vrot.slane %v5142_v11, 7  ;;  %v12649_v11 = vld [vmem:[#allocation113_spill] sm:$0xff] }
 0x844   : > { %8727 = vrcp.f32 %v5631_v56 }
 0x845   : > { %8729 = vtanh.f32 %v11058_v5 }
 0x846   : > { %8731 = vrcp.f32 %v5632_v0 }
 0x84d   : > { %v8726_v41 = vpop.eup %8725 }
 0x84e   : > { %v8728_v44 = vpop.eup %8727 }
 0x84f   : > { %v8730_v42 = vpop.eup %8729  ;;  %v5651_v25 = vmul.f32 %v8728_v44, %v8726_v41  ;;  %v12650_v44 = vld [vmem:[#allocation114_spill] sm:$0xff] }
 0x850   : > { %v8732_v45 = vpop.eup %8731 }
 0x851   : > { %v5652_v24 = vmul.f32 %v8732_v45, %v8730_v42  ;;  %v11078_v56 = vsel %vm11050_vm8, %v5651_v25, %v5658_v51  ;;  %v12652_v42 = vld [vmem:[#allocation116_spill] sm:$0xff]  ;;  %v12653_v25 = vld [vmem:[#allocation117_spill] sm:$0xff]  ;;  %v12654_v51 = vld [vmem:[#allocation118_spill] sm:$0xff] }
 0x852   : > { %12647 = vst [vmem:[#allocation209_spill] sm:$0xff] %v11078_v56  ;;  %v5734_v50 = vpack.c.bf16 %v11078_v56, %v11078_v56  ;;  %v12655_v45 = vld [vmem:[#allocation119_spill] sm:$0xff]  ;;  %v12676_v56 = vld [vmem:[#allocation144_spill] sm:$0xff] }
 0x853   : > { %v11082_v0 = vsel %vm11050_vm8, %v5652_v24, %v5659_v6  ;;  %v12656_v6 = vld [vmem:[#allocation120_spill] sm:$0xff]  ;;  %v12657_v24 = vld [vmem:[#allocation121_spill] sm:$0xff] }
 0x854   : > { %12648 = vst [vmem:[#allocation272_spill] sm:$0xff] %v11082_v0  ;;  %v5735_v14 = vpack.c.bf16 %v11082_v0, %v11082_v0  ;;  %v11088_v41 = vshrl.u32 %v5734_v50, 16  ;;  %v12658_v50 = vld [vmem:[#allocation122_spill] sm:$0xff]  ;;  %v12675_v0 = vld [vmem:[#allocation143_spill] sm:$0xff] }
 0x856   : > { %v5740_v15 = vshrl.u32 %v5735_v14, 16  ;;  %v12659_v14 = vld [vmem:[#allocation123_spill] sm:$0xff] }
 0x858   : > { %5776 = vmatprep.mubr.bf16.mxu0 %v5740_v15  ;;  %5817 = vmatprep.mubr.bf16.mxu1 %v5740_v15 }
 0x859   : > { %5777 = vmatmul.mubr.bf16.vlgmr.msra.gmra.mrb[48].mxu0 %v11088_v41  ;;  %5818 = vmatmul.mubr.bf16.vlgmr.msra.gmra.mrb[48].mxu1 %v11088_v41 }
 0x85a   : > { %5827 = vmatpush1.bf16.msra.mxu0 %v12649_v11  ;;  %5868 = vmatpush1.bf16.msra.mxu1 %v12650_v44  ;;  %v12660_v11 = vld [vmem:[#allocation124_spill] sm:$0xff]  ;;  %v12662_v44 = vld [vmem:[#allocation126_spill] sm:$0xff] }
 0x85b   : > { %5858 = vmatprep.mubr.bf16.mxu0 %v5740_v15  ;;  %5899 = vmatprep.mubr.bf16.mxu1 %v5740_v15  ;;  %v12661_v15 = vld [vmem:[#allocation125_spill] sm:$0xff] }
 0x85c   : > { %5828 = vmatprep.subr.bf16.mxu0 %v12651_v22  ;;  %5869 = vmatprep.subr.bf16.mxu1 %v12652_v42  ;;  %v12663_v22 = vld [vmem:[#allocation127_spill] sm:$0xff]  ;;  %v12664_v42 = vld [vmem:[#allocation128_spill] sm:$0xff] }
 0x85e   : > { %5829 = vmatpush1.bf16.msra.mxu0 %v12653_v25  ;;  %5870 = vmatpush1.bf16.msra.mxu1 %v12654_v51  ;;  %v12665_v25 = vld [vmem:[#allocation129_spill] sm:$0xff]  ;;  %v12666_v51 = vld [vmem:[#allocation130_spill] sm:$0xff] }
 0x85f   : > { %5830 = vmatprep.subr.bf16.mxu0 %v12655_v45  ;;  %5871 = vmatprep.subr.bf16.mxu1 %v12656_v6  ;;  %v12667_v45 = vld [vmem:[#allocation131_spill] sm:$0xff]  ;;  %v12668_v6 = vld [vmem:[#allocation132_spill] sm:$0xff] }
 0x862   : > { %5831 = vmatpush1.bf16.msra.mxu0 %v12657_v24  ;;  %5872 = vmatpush1.bf16.msra.mxu1 %v12658_v50  ;;  %v12669_v24 = vld [vmem:[#allocation133_spill] sm:$0xff]  ;;  %v12670_v50 = vld [vmem:[#allocation134_spill] sm:$0xff] }
 0x863   : > { %5832 = vmatprep.subr.bf16.mxu0 %v12659_v14  ;;  %5873 = vmatprep.subr.bf16.mxu1 %v12660_v11  ;;  %v12671_v14 = vld [vmem:[#allocation135_spill] sm:$0xff]  ;;  %v12672_v11 = vld [vmem:[#allocation137_spill] sm:$0xff] }
 0x866   : > { %5833 = vmatpush1.bf16.msra.mxu0 %v12661_v15  ;;  %5874 = vmatpush1.bf16.msra.mxu1 %v12662_v44 }
 0x867   : > { %5834 = vmatprep.subr.bf16.mxu0 %v12663_v22  ;;  %5875 = vmatprep.subr.bf16.mxu1 %v12664_v42 }
 0x86a   : > { %5835 = vmatpush1.bf16.msra.mxu0 %v12665_v25  ;;  %5876 = vmatpush1.bf16.msra.mxu1 %v12666_v51 }
 0x86b   : > { %5836 = vmatprep.subr.bf16.mxu0 %v12667_v45  ;;  %5877 = vmatprep.subr.bf16.mxu1 %v12668_v6  ;;  %v12674_v6 = vld [vmem:[#allocation142_spill] sm:$0xff] }
 0x86e   : > { %5837 = vmatpush1.bf16.msra.mxu0 %v12669_v24  ;;  %5878 = vmatpush1.bf16.msra.mxu1 %v12670_v50 }
 0x86f   : > { %5838 = vmatprep.subr.bf16.mxu0 %v12671_v14  ;;  %5879 = vmatprep.subr.bf16.mxu1 %v12672_v11  ;;  %v11116_v15 = vpop.f32.mrb[40].mxu0  ;;  %v5477_v44 = vpop.f32.mrb[40].mxu1 }
 0x870   : > { %v5576_v22 = vrot.slane %v5477_v44, 7  ;;  %v11118_v42 = vpop.f32.mrb[41].mxu0  ;;  %v5479_v25 = vpop.f32.mrb[41].mxu1 }
 0x871   : > { %v5577_v51 = vrot.slane %v5479_v25, 7  ;;  %v5440_v23 = vpop.f32.mrb[42].mxu0  ;;  %v5481_v45 = vpop.f32.mrb[42].mxu1  ;;  %v12680_v25 = vld [vmem:[#allocation148_spill] sm:$0xff] }
 0x872   : > { %5839 = vmatpush1.bf16.msra.mxu0 %v12673_v36  ;;  %5880 = vmatpush1.bf16.msra.mxu1 %v12674_v6  ;;  %v5592_v24 = vadd.f32 %v5576_v22, %v10734_v13  ;;  %v5441_v50 = vpop.f32.mrb[43].mxu0  ;;  %v5482_v14 = vpop.f32.mrb[43].mxu1  ;;  %v12678_v23 = vld [vmem:[#allocation146_spill] sm:$0xff]  ;;  %v12679_v36 = vld [vmem:[#allocation147_spill] sm:$0xff]  ;;  %v12681_v22 = vld [vmem:[#allocation149_spill] sm:$0xff] }
 0x873   : > { %v5593_v11 = vadd.f32 %v5577_v51, %v10749_v37  ;;  %5840 = vmatprep.subr.bf16.mxu0 %v12675_v0  ;;  %5881 = vmatprep.subr.bf16.mxu1 %v12676_v56  ;;  %v12682_v45 = vld [vmem:[#allocation150_spill] sm:$0xff]  ;;  %v12683_v51 = vld [vmem:[#allocation151_spill] sm:$0xff]  ;;  %v12684_v0 = vld [vmem:[#allocation152_spill] sm:$0xff] }
 0x874   : > { %v8209_v44 = vmul.f32 -1.442695, %v5592_v24  ;;  %v12685_v56 = vld [vmem:[#allocation153_spill] sm:$0xff]  ;;  %v12686_v6 = vld [vmem:[#allocation154_spill] sm:$0xff]  ;;  %v12688_v24 = vld [vmem:[#allocation156_spill] sm:$0xff] }
 0x875   : > { %v8210_v32 = vmul.f32 -1.442695, %v5593_v11  ;;  %v12689_v11 = vld [vmem:[#allocation157_spill] sm:$0xff] }
 0x876   : > { %5841 = vmatpush1.bf16.msra.mxu0 %v12677_v16  ;;  %5882 = vmatpush1.bf16.msra.mxu1 %v12678_v23  ;;  %8733 = vpow2.f32 %v8209_v44  ;;  %v12687_v16 = vld [vmem:[#allocation155_spill] sm:$0xff] }
 0x877   : > { %5842 = vmatprep.subr.bf16.mxu0 %v12679_v36  ;;  %5883 = vmatprep.subr.bf16.mxu1 %v12680_v25  ;;  %8735 = vpow2.f32 %v8210_v32  ;;  %v12690_v32 = vld [vmem:[#allocation158_spill] sm:$0xff]  ;;  %v12691_v23 = vld [vmem:[#allocation159_spill] sm:$0xff]  ;;  %v12692_v36 = vld [vmem:[#allocation160_spill] sm:$0xff] }
 0x87a   : > { %5843 = vmatpush1.bf16.msra.mxu0 %v12681_v22  ;;  %5884 = vmatpush1.bf16.msra.mxu1 %v12682_v45  ;;  %v12693_v22 = vld [vmem:[#allocation161_spill] sm:$0xff]  ;;  %v12694_v45 = vld [vmem:[#allocation162_spill] sm:$0xff] }
 0x87b   : > { %5844 = vmatprep.subr.bf16.mxu0 %v12683_v51  ;;  %5885 = vmatprep.subr.bf16.mxu1 %v12684_v0  ;;  %v12695_v51 = vld [vmem:[#allocation163_spill] sm:$0xff]  ;;  %v12696_v0 = vld [vmem:[#allocation164_spill] sm:$0xff] }
 0x87e   : > { %5845 = vmatpush1.bf16.msra.mxu0 %v12685_v56  ;;  %5886 = vmatpush1.bf16.msra.mxu1 %v12686_v6  ;;  %v5200_v56 = vsel %vm10848_vm6, %v10823_v54, 0.0  ;;  %v12697_v6 = vld [vmem:[#allocation165_spill] sm:$0xff] }
 0x87f   : > { %5846 = vmatprep.subr.bf16.mxu0 %v12687_v16  ;;  %5887 = vmatprep.subr.bf16.mxu1 %v12688_v24  ;;  %v12698_v16 = vld [vmem:[#allocation166_spill] sm:$0xff]  ;;  %v12699_v24 = vld [vmem:[#allocation167_spill] sm:$0xff] }
 0x880   : > { %v8734_v50 = vpop.eup %8733 }
 0x881   : > { %v5685_v14 = vadd.f32 1.0, %v8734_v50  ;;  %v8736_v44 = vpop.eup %8735  ;;  %v12700_v50 = vld [vmem:[#allocation168_spill] sm:$0xff] }
 0x882   : > { %5847 = vmatpush1.bf16.msra.mxu0 %v12689_v11  ;;  %5888 = vmatpush1.bf16.msra.mxu1 %v12690_v32  ;;  %v5686_v25 = vadd.f32 1.0, %v8736_v44  ;;  %v11156_v11 = vrot.slane %v5200_v56, 7  ;;  %v12701_v44 = vld [vmem:[#allocation169_spill] sm:$0xff]  ;;  %v12707_v56 = vld [vmem:[#allocation175_spill] sm:$0xff] }
 0x883   : > { %5848 = vmatprep.subr.bf16.mxu0 %v12691_v23  ;;  %5889 = vmatprep.subr.bf16.mxu1 %v12692_v36  ;;  %8737 = vrcp.f32 %v5685_v14  ;;  %v5201_v14 = vsel %vm10848_vm6, %v10825_v20, 0.0  ;;  %v12702_v23 = vld [vmem:[#allocation170_spill] sm:$0xff]  ;;  %v12705_v20 = vld [vmem:[#allocation173_spill] sm:$0xff] }
 0x884   : > { %8739 = vrcp.f32 %v5686_v25  ;;  %v11160_v54 = vrot.slane %v5201_v14, 7  ;;  %v12703_v25 = vld [vmem:[#allocation171_spill] sm:$0xff] }
 0x885   : > { %v12710_v14 = vld [vmem:[#allocation179_spill] sm:$0xff] }
 0x886   : > { %5849 = vmatpush1.bf16.msra.mxu0 %v12693_v22  ;;  %5890 = vmatpush1.bf16.msra.mxu1 %v12694_v45  ;;  %v12704_v22 = vld [vmem:[#allocation172_spill] sm:$0xff] }
 0x887   : > { %5850 = vmatprep.subr.bf16.mxu0 %v12695_v51  ;;  %5891 = vmatprep.subr.bf16.mxu1 %v12696_v0  ;;  %v12706_v0 = vld [vmem:[#allocation174_spill] sm:$0xff] }
 0x88a   : > { %5851 = vmatpush1.bf16.msra.mxu0 %v12697_v6  ;;  %5892 = vmatpush1.bf16.msra.mxu1 %v12698_v16  ;;  %v12708_v6 = vld [vmem:[#allocation176_spill] sm:$0xff]  ;;  %v5574_v16 = vrot.slane %v11116_v15, 7  ;;  %v12714_v15 = vld [vmem:[#allocation182_spill] sm:$0xff] }
 0x88b   : > { %5852 = vmatprep.subr.bf16.mxu0 %v12699_v24  ;;  %5893 = vmatprep.subr.bf16.mxu1 %v12700_v50  ;;  %v5575_v24 = vrot.slane %v11118_v42, 7  ;;  %v12709_v50 = vld [vmem:[#allocation178_spill] sm:$0xff]  ;;  %v12715_v42 = vld [vmem:[#allocation183_spill] sm:$0xff] }
 0x88d   : > { %v8738_v32 = vpop.eup %8737 }
 0x88e   : > { %5853 = vmatpush1.bf16.msra.mxu0 %v12701_v44  ;;  %5894 = vmatpush1.bf16.msra.mxu1 %v12702_v23  ;;  %v11163_v36 = vmul.f32 %v8738_v32, %v11156_v11  ;;  %v8740_v45 = vpop.eup %8739  ;;  %v12711_v32 = vld [vmem:[#allocation180_spill] sm:$0xff]  ;;  %v5590_v44 = vadd.f32 %v5574_v16, %v10731_v57  ;;  %v12712_v23 = vld [vmem:[#allocation177_spill] sm:$0xff] }
 0x88f   : > { %5854 = vmatprep.subr.bf16.mxu0 %v12703_v25  ;;  %5895 = vmatprep.subr.bf16.mxu1 %v12704_v22  ;;  %v11168_v51 = vmul.f32 %v8740_v45, %v11160_v54  ;;  %v5591_v25 = vadd.f32 %v5575_v24, %v12712_v23  ;;  %v12713_v22 = vld [vmem:[#allocation181_spill] sm:$0xff]  ;;  %v12720_v16 = vld [vmem:[#allocation188_spill] sm:$0xff]  ;;  %v12722_v24 = vld [vmem:[#allocation190_spill] sm:$0xff] }
 0x890   : > { %v8207_v45 = vmul.f32 -1.442695, %v5590_v44  ;;  %v12726_v44 = vld [vmem:[#allocation194_spill] sm:$0xff] }
 0x892   : > { %5855 = vmatpush1.bf16.msra.mxu0 %v12705_v20  ;;  %5896 = vmatpush1.bf16.msra.mxu1 %v12706_v0  ;;  %v8208_v20 = vmul.f32 -1.442695, %v5591_v25  ;;  %v12717_v0 = vld [vmem:[#allocation185_spill] sm:$0xff]  ;;  %8741 = vpow2.f32 %v8207_v45  ;;  %v12727_v25 = vld [vmem:[#allocation195_spill] sm:$0xff] }
 0x893   : > { %5856 = vmatprep.subr.bf16.mxu0 %v12707_v56  ;;  %5897 = vmatprep.subr.bf16.mxu1 %v12708_v6  ;;  %v12718_v56 = vld [vmem:[#allocation186_spill] sm:$0xff]  ;;  %v12719_v6 = vld [vmem:[#allocation187_spill] sm:$0xff] }
 0x894   : > { %8743 = vpow2.f32 %v8208_v20  ;;  %v12731_v45 = vld [vmem:[#allocation199_spill] sm:$0xff]  ;;  %v12732_v20 = vld [vmem:[#allocation200_spill] sm:$0xff] }
 0x896   : > { %5857 = vmatpush1.bf16.msra.mxu0 %v12457_v53  ;;  %5898 = vmatpush1.bf16.msra.mxu1 %v12709_v50  ;;  %v12716_v53 = vld [vmem:[#allocation184_spill] sm:$0xff]  ;;  %v12723_v50 = vld [vmem:[#allocation191_spill] sm:$0xff] }
 0x897   : > { %5950 = vmatprep.subr.bf16.mxu0 %v12710_v14  ;;  %5991 = vmatprep.subr.bf16.mxu1 %v12711_v32  ;;  %v12724_v14 = vld [vmem:[#allocation192_spill] sm:$0xff]  ;;  %v12725_v32 = vld [vmem:[#allocation193_spill] sm:$0xff] }
 0x899   : > { %5859 = vmatmul.mubr.bf16.vlgmr.msra.gmra.mrb[52].mxu0 %v11088_v41  ;;  %5900 = vmatmul.mubr.bf16.vlgmr.msra.gmra.mrb[52].mxu1 %v11088_v41  ;;  %v12721_v41 = vld [vmem:[#allocation189_spill] sm:$0xff] }
 0x89a   : > { %5951 = vmatpush1.bf16.msra.mxu0 %v12713_v22  ;;  %5992 = vmatpush1.bf16.msra.mxu1 %v12714_v15  ;;  %v12728_v22 = vld [vmem:[#allocation196_spill] sm:$0xff]  ;;  %v12729_v15 = vld [vmem:[#allocation197_spill] sm:$0xff] }
 0x89b   : > { %5952 = vmatprep.subr.bf16.mxu0 %v12715_v42  ;;  %5993 = vmatprep.subr.bf16.mxu1 %v12716_v53  ;;  %v12730_v42 = vld [vmem:[#allocation198_spill] sm:$0xff] }
 0x89c   : > { %v8742_v53 = vpop.eup %8741 }
 0x89e   : > { %5953 = vmatpush1.bf16.msra.mxu0 %v12717_v0  ;;  %5994 = vmatpush1.bf16.msra.mxu1 %v12718_v56  ;;  %v8744_v0 = vpop.eup %8743  ;;  %v5673_v56 = vadd.f32 1.0, %v8742_v53 }
 0x89f   : > { %5954 = vmatprep.subr.bf16.mxu0 %v12719_v6  ;;  %5995 = vmatprep.subr.bf16.mxu1 %v12720_v16  ;;  %v12733_v6 = vld [vmem:[#allocation201_spill] sm:$0xff]  ;;  %v12734_v16 = vld [vmem:[#allocation202_spill] sm:$0xff] }
 0x8a0   : > { %8745 = vrcp.f32 %v5673_v56 }
 0x8a2   : > { %5955 = vmatpush1.bf16.msra.mxu0 %v12721_v41  ;;  %5996 = vmatpush1.bf16.msra.mxu1 %v12722_v24  ;;  %v5674_v41 = vadd.f32 1.0, %v8744_v0  ;;  %v12735_v24 = vld [vmem:[#allocation203_spill] sm:$0xff] }
 0x8a3   : > { %5956 = vmatprep.subr.bf16.mxu0 %v12723_v50  ;;  %5997 = vmatprep.subr.bf16.mxu1 %v12724_v14  ;;  %v12736_v50 = vld [vmem:[#allocation205_spill] sm:$0xff] }
 0x8a4   : > { %8747 = vrcp.f32 %v5674_v41  ;;  %v12744_v41 = vld [vmem:[#allocation215_spill] sm:$0xff] }
 0x8a6   : > { %5957 = vmatpush1.bf16.msra.mxu0 %v12725_v32  ;;  %5998 = vmatpush1.bf16.msra.mxu1 %v12726_v44 }
 0x8a7   : > { %5958 = vmatprep.subr.bf16.mxu0 %v12727_v25  ;;  %5999 = vmatprep.subr.bf16.mxu1 %v12728_v22 }
 0x8aa   : > { %5959 = vmatpush1.bf16.msra.mxu0 %v12729_v15  ;;  %6000 = vmatpush1.bf16.msra.mxu1 %v12730_v42 }
 0x8ab   : > { %5960 = vmatprep.subr.bf16.mxu0 %v12731_v45  ;;  %6001 = vmatprep.subr.bf16.mxu1 %v12732_v20 }
 0x8ae   : > { %5961 = vmatpush1.bf16.msra.mxu0 %v12733_v6  ;;  %6002 = vmatpush1.bf16.msra.mxu1 %v12734_v16  ;;  %v12737_v6 = vld [vmem:[#allocation210_spill] sm:$0xff] }
 0x8af   : > { %5962 = vmatprep.subr.bf16.mxu0 %v12735_v24  ;;  %6003 = vmatprep.subr.bf16.mxu1 %v12736_v50  ;;  %v5518_v14 = vpop.f32.mrb[44].mxu0  ;;  %v5559_v32 = vpop.f32.mrb[44].mxu1  ;;  %v12738_v50 = vld [vmem:[#allocation204_spill] sm:$0xff] }
 0x8b0   : > { %v5578_v44 = vrot.slane %v5518_v14, 7  ;;  %v5580_v25 = vrot.slane %v5559_v32, 7  ;;  %v5520_v22 = vpop.f32.mrb[45].mxu0  ;;  %v5561_v15 = vpop.f32.mrb[45].mxu1  ;;  %v12739_v32 = vld [vmem:[#allocation206_spill] sm:$0xff] }
 0x8b1   : > { %v5579_v42 = vrot.slane %v5520_v22, 7  ;;  %v5581_v45 = vrot.slane %v5561_v15, 7  ;;  %v5522_v20 = vpop.f32.mrb[46].mxu0  ;;  %v5563_v23 = vpop.f32.mrb[46].mxu1  ;;  %v12740_v15 = vld [vmem:[#allocation211_spill] sm:$0xff] }
 0x8b2   : > { %v5594_v53 = vadd.f32 %v5578_v44, %v10787_v40  ;;  %v5596_v0 = vadd.f32 %v5580_v25, %v10792_v47  ;;  %5963 = vmatpush1.bf16.msra.mxu0 %v12490_v61  ;;  %6004 = vmatpush1.bf16.msra.mxu1 %v12737_v6  ;;  %v5523_v16 = vpop.f32.mrb[47].mxu0  ;;  %v5564_v24 = vpop.f32.mrb[47].mxu1  ;;  %v12741_v23 = vld [vmem:[#allocation212_spill] sm:$0xff]  ;;  %v12742_v61 = vld [vmem:[#allocation213_spill] sm:$0xff]  ;;  %v12743_v25 = vld [vmem:[#allocation214_spill] sm:$0xff] }
 0x8b3   : > { %v5595_v14 = vadd.f32 %v5579_v42, %v12738_v50  ;;  %v5597_v22 = vadd.f32 %v5581_v45, %v12739_v32  ;;  %5964 = vmatprep.subr.bf16.mxu0 %v12740_v15  ;;  %6005 = vmatprep.subr.bf16.mxu1 %v12741_v23  ;;  %v12745_v42 = vld [vmem:[#allocation216_spill] sm:$0xff]  ;;  %v12746_v45 = vld [vmem:[#allocation217_spill] sm:$0xff]  ;;  %v12747_v20 = vld [vmem:[#allocation218_spill] sm:$0xff]  ;;  %v8746_v6 = vpop.eup %8745  ;;  %v5722_v24 = vstv %s5721_s15 }
 0x8b4   : > { %8749 = vtanh.f32 %v5594_v53  ;;  %v8211_v56 = vmul.f32 -1.442695, %v5596_v0  ;;  %v12748_v53 = vld [vmem:[#allocation219_spill] sm:$0xff]  ;;  %v12749_v0 = vld [vmem:[#allocation220_spill] sm:$0xff]  ;;  %v8748_v16 = vpop.eup %8747  ;;  %v12751_v15 = vld [vmem:[#allocation222_spill] sm:$0xff]  ;;  %vm11229_vm9 = vcmp.eq.s32.totalorder %v5722_v24, 1 }
 0x8b5   : > { %8751 = vtanh.f32 %v5595_v14  ;;  %v8212_v44 = vmul.f32 -1.442695, %v5597_v22  ;;  %v12750_v22 = vld [vmem:[#allocation221_spill] sm:$0xff] }
 0x8b6   : > { %8753 = vpow2.f32 %v8211_v56  ;;  %5965 = vmatpush1.bf16.msra.mxu0 %v12742_v61  ;;  %6006 = vmatpush1.bf16.msra.mxu1 %v12743_v25  ;;  %v12753_v61 = vld [vmem:[#allocation224_spill] sm:$0xff]  ;;  %v12761_v24 = vld [vmem:[#allocation233_spill] sm:$0xff] }
 0x8b7   : > { %8755 = vpow2.f32 %v8212_v44  ;;  %5966 = vmatprep.subr.bf16.mxu0 %v12744_v41  ;;  %6007 = vmatprep.subr.bf16.mxu1 %v12745_v42  ;;  %v12752_v44 = vld [vmem:[#allocation223_spill] sm:$0xff] }
 0x8ba   : > { %5967 = vmatpush1.bf16.msra.mxu0 %v12746_v45  ;;  %6008 = vmatpush1.bf16.msra.mxu1 %v12747_v20 }
 0x8bb   : > { %5968 = vmatprep.subr.bf16.mxu0 %v12748_v53  ;;  %6009 = vmatprep.subr.bf16.mxu1 %v12749_v0 }
 0x8be   : > { %v8750_v14 = vpop.eup %8749  ;;  %5969 = vmatpush1.bf16.msra.mxu0 %v12750_v22  ;;  %6010 = vmatpush1.bf16.msra.mxu1 %v12751_v15  ;;  %v12763_v15 = vld [vmem:[#allocation235_spill] sm:$0xff] }
 0x8bf   : > { %v8752_v23 = vpop.eup %8751  ;;  %v5713_v56 = vmul.f32 %v8750_v14, %v8746_v6  ;;  %5970 = vmatprep.subr.bf16.mxu0 %v12752_v44  ;;  %6011 = vmatprep.subr.bf16.mxu1 %v12753_v61  ;;  %v12756_v6 = vld [vmem:[#allocation228_spill] sm:$0xff]  ;;  %v12762_v14 = vld [vmem:[#allocation234_spill] sm:$0xff] }
 0x8c0   : > { %v8754_v25 = vpop.eup %8753  ;;  %v5714_v41 = vmul.f32 %v8752_v23, %v8748_v16  ;;  %v12760_v16 = vld [vmem:[#allocation232_spill] sm:$0xff] }
 0x8c1   : > { %v8756_v45 = vpop.eup %8755  ;;  %v11234_v20 = vadd.f32 %v5713_v56, %v11163_v36  ;;  %v5699_v53 = vadd.f32 1.0, %v8754_v25  ;;  %v12764_v23 = vld [vmem:[#allocation236_spill] sm:$0xff]  ;;  %v12765_v56 = vld [vmem:[#allocation207_spill] sm:$0xff] }
 0x8c2   : > { %v11237_v0 = vadd.f32 %v5714_v41, %v11168_v51  ;;  %v5700_v22 = vadd.f32 1.0, %v8756_v45  ;;  %5971 = vmatpush1.bf16.msra.mxu0 %v12512_v12  ;;  %6012 = vmatpush1.bf16.msra.mxu1 %v12513_v52  ;;  %v12757_v12 = vld [vmem:[#allocation229_spill] sm:$0xff]  ;;  %v12758_v52 = vld [vmem:[#allocation230_spill] sm:$0xff]  ;;  %v5198_v44 = vsel %vm10848_vm6, %v12765_v56, 0.0  ;;  %v12766_v41 = vld [vmem:[#allocation208_spill] sm:$0xff] }
 0x8c3   : > { %8757 = vtanh.f32 %v11234_v20  ;;  %5972 = vmatprep.subr.bf16.mxu0 %v12514_v48  ;;  %6013 = vmatprep.subr.bf16.mxu1 %v12756_v6  ;;  %v5732_v36 = vsel %vm11229_vm9, %v11234_v20, %v11156_v11  ;;  %v12759_v48 = vld [vmem:[#allocation231_spill] sm:$0xff]  ;;  %v5199_v45 = vsel %vm10848_vm6, %v12766_v41, 0.0  ;;  %v12772_v56 = vld [vmem:[#allocation242_spill] sm:$0xff] }
 0x8c4   : > { %8759 = vrcp.f32 %v5699_v53  ;;  %v5733_v51 = vsel %vm11229_vm9, %v11237_v0, %v11160_v54  ;;  %v12767_v53 = vld [vmem:[#allocation237_spill] sm:$0xff]  ;;  %v12773_v41 = vld [vmem:[#allocation243_spill] sm:$0xff] }
 0x8c5   : > { %8761 = vtanh.f32 %v11237_v0 }
 0x8c6   : > { %8763 = vrcp.f32 %v5700_v22  ;;  %5973 = vmatpush1.bf16.msra.mxu0 %v12757_v12  ;;  %6014 = vmatpush1.bf16.msra.mxu1 %v12758_v52  ;;  %v12768_v22 = vld [vmem:[#allocation238_spill] sm:$0xff]  ;;  %v12769_v12 = vld [vmem:[#allocation239_spill] sm:$0xff]  ;;  %v12770_v52 = vld [vmem:[#allocation240_spill] sm:$0xff] }
 0x8c7   : > { %5974 = vmatprep.subr.bf16.mxu0 %v12759_v48  ;;  %6015 = vmatprep.subr.bf16.mxu1 %v12760_v16  ;;  %v5726_v16 = vrot.slane %v5198_v44, 7 }
 0x8ca   : > { %5975 = vmatpush1.bf16.msra.mxu0 %v12761_v24  ;;  %6016 = vmatpush1.bf16.msra.mxu1 %v12762_v14  ;;  %v5727_v14 = vrot.slane %v5199_v45, 7  ;;  %v12776_v45 = vld [vmem:[#allocation246_spill] sm:$0xff] }
 0x8cb   : > { %5976 = vmatprep.subr.bf16.mxu0 %v12763_v15  ;;  %6017 = vmatprep.subr.bf16.mxu1 %v12764_v23 }
 0x8cd   : > { %v8758_v61 = vpop.eup %8757 }
 0x8ce   : > { %v8760_v25 = vpop.eup %8759  ;;  %5977 = vmatpush1.bf16.msra.mxu0 %v12767_v53  ;;  %6018 = vmatpush1.bf16.msra.mxu1 %v12768_v22  ;;  %v12774_v53 = vld [vmem:[#allocation244_spill] sm:$0xff] }
 0x8cf   : > { %v8762_v6 = vpop.eup %8761  ;;  %5978 = vmatprep.subr.bf16.mxu0 %v12769_v12  ;;  %6019 = vmatprep.subr.bf16.mxu1 %v12770_v52  ;;  %v5719_v48 = vmul.f32 %v8760_v25, %v8758_v61  ;;  %v12775_v25 = vld [vmem:[#allocation245_spill] sm:$0xff]  ;;  %v12777_v12 = vld [vmem:[#allocation247_spill] sm:$0xff]  ;;  %v12778_v52 = vld [vmem:[#allocation248_spill] sm:$0xff] }
 0x8d0   : > { %v8764_v24 = vpop.eup %8763 }
 0x8d1   : > { %v5720_v15 = vmul.f32 %v8764_v24, %v8762_v6  ;;  %v11273_v23 = vsel %vm11229_vm9, %v5719_v48, %v5726_v16  ;;  %v12779_v16 = vld [vmem:[#allocation249_spill] sm:$0xff]  ;;  %v12780_v24 = vld [vmem:[#allocation250_spill] sm:$0xff] }
 0x8d2   : > { %5979 = vmatpush1.bf16.msra.mxu0 %v12771_v28  ;;  %6020 = vmatpush1.bf16.msra.mxu1 %v12772_v56  ;;  %v5940_v44 = vpack.c.bf16 %v11273_v23, %v11273_v23  ;;  %v12783_v28 = vld [vmem:[#allocation253_spill] sm:$0xff]  ;;  %v12784_v56 = vld [vmem:[#allocation254_spill] sm:$0xff] }
 0x8d3   : > { %5980 = vmatprep.subr.bf16.mxu0 %v12773_v41  ;;  %6021 = vmatprep.subr.bf16.mxu1 %v12774_v53  ;;  %v11281_v22 = vsel %vm11229_vm9, %v5720_v15, %v5727_v14  ;;  %v12781_v14 = vld [vmem:[#allocation251_spill] sm:$0xff]  ;;  %v12782_v15 = vld [vmem:[#allocation252_spill] sm:$0xff] }
 0x8d4   : > { %v5941_v61 = vpack.c.bf16 %v11281_v22, %v11281_v22  ;;  %v11291_v48 = vshrl.u32 %v5940_v44, 16  ;;  %v12785_v41 = vld [vmem:[#allocation255_spill] sm:$0xff]  ;;  %v12786_v53 = vld [vmem:[#allocation256_spill] sm:$0xff]  ;;  %v12787_v44 = vld [vmem:[#allocation257_spill] sm:$0xff] }
 0x8d6   : > { %5981 = vmatpush1.bf16.msra.mxu0 %v12775_v25  ;;  %6022 = vmatpush1.bf16.msra.mxu1 %v12776_v45  ;;  %v5946_v6 = vshrl.u32 %v5941_v61, 16  ;;  %v12788_v61 = vld [vmem:[#allocation258_spill] sm:$0xff]  ;;  %v12789_v25 = vld [vmem:[#allocation260_spill] sm:$0xff]  ;;  %v12790_v45 = vld [vmem:[#allocation261_spill] sm:$0xff] }
 0x8d7   : > { %6032 = vmatprep.subr.bf16.mxu0 %v12777_v12  ;;  %6073 = vmatprep.subr.bf16.mxu1 %v12778_v52  ;;  %v12792_v12 = vld [vmem:[#allocation263_spill] sm:$0xff]  ;;  %v12793_v52 = vld [vmem:[#allocation264_spill] sm:$0xff] }
 0x8d8   : > { %5982 = vmatprep.mubr.bf16.mxu0 %v5946_v6  ;;  %6023 = vmatprep.mubr.bf16.mxu1 %v5946_v6 }
 0x8d9   : > { %5983 = vmatmul.mubr.bf16.vlgmr.msra.gmra.mrb[56].mxu0 %v11291_v48  ;;  %6024 = vmatmul.mubr.bf16.vlgmr.msra.gmra.mrb[56].mxu1 %v11291_v48 }
 0x8da   : > { %6033 = vmatpush1.bf16.msra.mxu0 %v12779_v16  ;;  %6074 = vmatpush1.bf16.msra.mxu1 %v12780_v24  ;;  %v12794_v16 = vld [vmem:[#allocation265_spill] sm:$0xff]  ;;  %v12795_v24 = vld [vmem:[#allocation266_spill] sm:$0xff] }
 0x8db   : > { %6064 = vmatprep.mubr.bf16.mxu0 %v5946_v6  ;;  %6105 = vmatprep.mubr.bf16.mxu1 %v5946_v6  ;;  %v12791_v6 = vld [vmem:[#allocation262_spill] sm:$0xff] }
 0x8dc   : > { %6034 = vmatprep.subr.bf16.mxu0 %v12781_v14  ;;  %6075 = vmatprep.subr.bf16.mxu1 %v12782_v15  ;;  %v12796_v14 = vld [vmem:[#allocation267_spill] sm:$0xff]  ;;  %v12797_v15 = vld [vmem:[#allocation268_spill] sm:$0xff] }
 0x8de   : > { %6035 = vmatpush1.bf16.msra.mxu0 %v12783_v28  ;;  %6076 = vmatpush1.bf16.msra.mxu1 %v12784_v56  ;;  %v12798_v28 = vld [vmem:[#allocation269_spill] sm:$0xff]  ;;  %v12800_v56 = vld [vmem:[#allocation271_spill] sm:$0xff] }
 0x8df   : > { %6036 = vmatprep.subr.bf16.mxu0 %v12785_v41  ;;  %6077 = vmatprep.subr.bf16.mxu1 %v12786_v53  ;;  %v12801_v41 = vld [vmem:[#allocation273_spill] sm:$0xff] }
 0x8e0   : > { %v12802_v53 = vld [vmem:[#allocation277_spill] sm:$0xff] }
 0x8e2   : > { %6037 = vmatpush1.bf16.msra.mxu0 %v12787_v44  ;;  %6078 = vmatpush1.bf16.msra.mxu1 %v12788_v61  ;;  %v12803_v44 = vld [vmem:[#allocation278_spill] sm:$0xff]  ;;  %v12804_v61 = vld [vmem:[#allocation279_spill] sm:$0xff] }
 0x8e3   : > { %6038 = vmatprep.subr.bf16.mxu0 %v12552_v60  ;;  %6079 = vmatprep.subr.bf16.mxu1 %v12789_v25  ;;  %v12799_v60 = vld [vmem:[#allocation270_spill] sm:$0xff]  ;;  %v12805_v25 = vld [vmem:[#allocation280_spill] sm:$0xff] }
 0x8e6   : > { %6039 = vmatpush1.bf16.msra.mxu0 %v12790_v45  ;;  %6080 = vmatpush1.bf16.msra.mxu1 %v12791_v6  ;;  %v12806_v45 = vld [vmem:[#allocation281_spill] sm:$0xff]  ;;  %v12807_v6 = vld [vmem:[#allocation282_spill] sm:$0xff] }
 0x8e7   : > { %6040 = vmatprep.subr.bf16.mxu0 %v12792_v12  ;;  %6081 = vmatprep.subr.bf16.mxu1 %v12793_v52  ;;  %v12808_v12 = vld [vmem:[#allocation283_spill] sm:$0xff]  ;;  %v12809_v52 = vld [vmem:[#allocation284_spill] sm:$0xff] }
 0x8ea   : > { %6041 = vmatpush1.bf16.msra.mxu0 %v12794_v16  ;;  %6082 = vmatpush1.bf16.msra.mxu1 %v12795_v24  ;;  %v12810_v16 = vld [vmem:[#allocation285_spill] sm:$0xff]  ;;  %v12811_v24 = vld [vmem:[#allocation286_spill] sm:$0xff] }
 0x8eb   : > { %6042 = vmatprep.subr.bf16.mxu0 %v12796_v14  ;;  %6083 = vmatprep.subr.bf16.mxu1 %v12797_v15  ;;  %v12812_v14 = vld [vmem:[#allocation287_spill] sm:$0xff]  ;;  %v12813_v15 = vld [vmem:[#allocation288_spill] sm:$0xff] }
 0x8ee   : > { %6043 = vmatpush1.bf16.msra.mxu0 %v12798_v28  ;;  %6084 = vmatpush1.bf16.msra.mxu1 %v12799_v60  ;;  %v12814_v28 = vld [vmem:[#allocation289_spill] sm:$0xff] }
 0x8ef   : > { %6044 = vmatprep.subr.bf16.mxu0 %v12800_v56  ;;  %6085 = vmatprep.subr.bf16.mxu1 %v12801_v41  ;;  %v12815_v60 = vld [vmem:[#allocation293_spill] sm:$0xff]  ;;  %v8605_v41 = vld [vmem:[%s12816_s23 + $0x78] sm:$0xff]  }
 0x8f2   : > { %6045 = vmatpush1.bf16.msra.mxu0 %v12802_v53  ;;  %6086 = vmatpush1.bf16.msra.mxu1 %v12803_v44  ;;  %v12818_v53 = vld [vmem:[#allocation72_spill] sm:$0xff] }
 0x8f3   : > { %6046 = vmatprep.subr.bf16.mxu0 %v12804_v61  ;;  %6087 = vmatprep.subr.bf16.mxu1 %v12805_v25 }
 0x8f6   : > { %6047 = vmatpush1.bf16.msra.mxu0 %v12806_v45  ;;  %6088 = vmatpush1.bf16.msra.mxu1 %v12807_v6  ;;  %v8606_v45 = vld [vmem:[%s12816_s23 + $0x38] sm:$0xff]  }
 0x8f7   : > { %6048 = vmatprep.subr.bf16.mxu0 %v12808_v12  ;;  %6089 = vmatprep.subr.bf16.mxu1 %v12809_v52 }
 0x8fa   : > { %6049 = vmatpush1.bf16.msra.mxu0 %v12810_v16  ;;  %6090 = vmatpush1.bf16.msra.mxu1 %v12811_v24  ;;  %v12819_v24 = vsel %vm11050_vm8, %v11055_v49, %v11015_v33 }
 0x8fb   : > { %6050 = vmatprep.subr.bf16.mxu0 %v12812_v14  ;;  %6091 = vmatprep.subr.bf16.mxu1 %v12813_v15  ;;  %v6187_v14 = vrot.slane %v12819_v24, 7 }
 0x8fe   : > { %6051 = vmatpush1.bf16.msra.mxu0 %v12814_v28  ;;  %6092 = vmatpush1.bf16.msra.mxu1 %v12578_v30  ;;  %v12820_v28 = vsel %vm11050_vm8, %v11058_v5, %v11021_v63 }
 0x8ff   : > { %6052 = vmatprep.subr.bf16.mxu0 %v12579_v62  ;;  %6093 = vmatprep.subr.bf16.mxu1 %v12580_v46 }
 0x902   : > { %6053 = vmatpush1.bf16.msra.mxu0 %v12815_v60  ;;  %6094 = vmatpush1.bf16.msra.mxu1 %v12582_v43  ;;  %v12817_v43 = vld [vmem:[#allocation70_spill] sm:$0xff]  ;;  %v6188_v60 = vrot.slane %v12820_v28, 7 }
 0x903   : > { %6054 = vmatprep.subr.bf16.mxu0 %v12583_v9  ;;  %6095 = vmatprep.subr.bf16.mxu1 %v12584_v3  ;;  %v8591_v3 = vld [vmem:[%s12816_s23 + $0x40] sm:$0xff]   ;;  %v8611_v28 = vld [vmem:[%s12823_s18 + $0x50] sm:$0xff]  }
 0x906   : > { %6055 = vmatpush1.bf16.msra.mxu0 %v12585_v58  ;;  %6096 = vmatpush1.bf16.msra.mxu1 %v12586_v21 }
 0x907   : > { %6056 = vmatprep.subr.bf16.mxu0 %v12587_v8  ;;  %6097 = vmatprep.subr.bf16.mxu1 %v12588_v38  ;;  %v8604_v8 = vld [vmem:[%s12816_s23 + $0x30] sm:$0xff]  }
 0x90a   : > { %6057 = vmatpush1.bf16.msra.mxu0 %v10456_v29  ;;  %6098 = vmatpush1.bf16.msra.mxu1 %v10460_v26  ;;  %v8592_v29 = vld [vmem:[%s12816_s23] sm:$0xff]   ;;  %v8593_v26 = vld [vmem:[%s12816_s23 + $0x48] sm:$0xff]  }
 0x90b   : > { %6058 = vmatprep.subr.bf16.mxu0 %v10462_v7  ;;  %6099 = vmatprep.subr.bf16.mxu1 %v12589_v35  ;;  %v8594_v7 = vld [vmem:[%s12816_s23 + $0x8] sm:$0xff]  }
 0x90e   : > { %6059 = vmatpush1.bf16.msra.mxu0 %v10468_v34  ;;  %6100 = vmatpush1.bf16.msra.mxu1 %v10472_v19  ;;  %v8595_v34 = vld [vmem:[%s12816_s23 + $0x50] sm:$0xff]   ;;  %v8597_v19 = vld [vmem:[%s12816_s23 + $0x58] sm:$0xff]  }
 0x90f   : > { %6060 = vmatprep.subr.bf16.mxu0 %v10474_v59  ;;  %6101 = vmatprep.subr.bf16.mxu1 %v10477_v4  ;;  %v8598_v59 = vld [vmem:[%s12816_s23 + $0x18] sm:$0xff]   ;;  %v8599_v4 = vld [vmem:[%s12816_s23 + $0x60] sm:$0xff]  }
 0x912   : > { %6061 = vmatpush1.bf16.msra.mxu0 %v10480_v10  ;;  %6102 = vmatpush1.bf16.msra.mxu1 %v10484_v27  ;;  %v8600_v10 = vld [vmem:[%s12816_s23 + $0x20] sm:$0xff]   ;;  %v8601_v27 = vld [vmem:[%s12816_s23 + $0x68] sm:$0xff]  }
 0x913   : > { %6062 = vmatprep.subr.bf16.mxu0 %v10486_v1  ;;  %6103 = vmatprep.subr.bf16.mxu1 %v10489_v18  ;;  %v8602_v1 = vld [vmem:[%s12816_s23 + $0x28] sm:$0xff]   ;;  %v8603_v18 = vld [vmem:[%s12816_s23 + $0x70] sm:$0xff]  }
 0x916   : > { %6063 = vmatpush1.bf16.msra.mxu0 %v10492_v17  ;;  %6104 = vmatpush1.bf16.msra.mxu1 %v10496_v55  ;;  %v8596_v17 = vld [vmem:[%s12816_s23 + $0x10] sm:$0xff]  }
 0x917   : > { %8361 = vmatprep.subr.bf16.mxu1 %v8591_v3 }
 0x919   : > { %6065 = vmatmul.mubr.bf16.vlgmr.msra.gmra.mrb[60].mxu0 %v11291_v48  ;;  %6106 = vmatmul.mubr.bf16.vlgmr.msra.gmra.mrb[60].mxu1 %v11291_v48 }
 0x91a   : > { %8362 = vmatpush3.bf16.msra.mxu1 %v8592_v29 }
 0x91b   : > { %8363 = vmatprep.subr.bf16.mxu1 %v8593_v26 }
 0x91e   : > { %8364 = vmatpush3.bf16.msra.mxu1 %v8594_v7 }
 0x91f   : > { %8365 = vmatprep.subr.bf16.mxu1 %v8595_v34 }
 0x922   : > { %8366 = vmatpush3.bf16.msra.mxu1 %v8596_v17  ;;  %v12821_v17 = vld [vmem:[#allocation68_spill] sm:$0xff] }
 0x923   : > { %8367 = vmatprep.subr.bf16.mxu1 %v8597_v19 }
 0x926   : > { %8368 = vmatpush3.bf16.msra.mxu1 %v8598_v59  ;;  %v12822_v59 = vld [vmem:[#allocation71_spill] sm:$0xff] }
 0x927   : > { %8369 = vmatprep.subr.bf16.mxu1 %v8599_v4 }
 0x92a   : > { %8370 = vmatpush3.bf16.msra.mxu1 %v8600_v10 }
 0x92b   : > { %8371 = vmatprep.subr.bf16.mxu1 %v8601_v27 }
 0x92c   : > { %v5778_v55 = vpop.f32.mrb[48].mxu0  ;;  %v5819_v58 = vpop.f32.mrb[48].mxu1 }
 0x92d   : > { %v5918_v9 = vrot.slane %v5819_v58, 6  ;;  %v5780_v62 = vpop.f32.mrb[49].mxu0  ;;  %v5821_v46 = vpop.f32.mrb[49].mxu1  ;;  %v5916_v7 = vrot.slane %v5778_v55, 6 }
 0x92e   : > { %v5919_v35 = vrot.slane %v5821_v46, 6  ;;  %v5782_v30 = vpop.f32.mrb[50].mxu0  ;;  %v5823_v38 = vpop.f32.mrb[50].mxu1  ;;  %8372 = vmatpush3.bf16.msra.mxu1 %v8602_v1  ;;  %v5917_v34 = vrot.slane %v5780_v62, 6 }
 0x92f   : > { %v5934_v21 = vadd.f32 %v5918_v9, %v12817_v43  ;;  %v5783_v48 = vpop.f32.mrb[51].mxu0  ;;  %v5824_v56 = vpop.f32.mrb[51].mxu1  ;;  %8373 = vmatprep.subr.bf16.mxu1 %v8603_v18  ;;  %v5932_v19 = vadd.f32 %v5916_v7, %v12821_v17 }
 0x930   : > { %v5935_v44 = vadd.f32 %v5919_v35, %v12818_v53  ;;  %v5933_v4 = vadd.f32 %v5917_v34, %v12822_v59  ;;  %v12824_v48 = vld [vmem:[#allocation139_spill] sm:$0xff] }
 0x931   : > { %v8215_v61 = vmul.f32 -1.442695, %v5934_v21  ;;  %v8213_v10 = vmul.f32 -1.442695, %v5932_v19  ;;  %v8612_v34 = vld [vmem:[%s12823_s18 + $0x10] sm:$0xff]   ;;  %v8613_v59 = vld [vmem:[%s12823_s18 + $0x58] sm:$0xff]  }
 0x932   : > { %v8216_v25 = vmul.f32 -1.442695, %v5935_v44  ;;  %8374 = vmatpush3.bf16.msra.mxu1 %v8604_v8  ;;  %v8214_v27 = vmul.f32 -1.442695, %v5933_v4  ;;  %v8614_v4 = vld [vmem:[%s12823_s18 + $0x18] sm:$0xff]  }
 0x933   : > { %8375 = vmatprep.subr.bf16.mxu1 %v8605_v41  ;;  %8765 = vpow2.f32 %v8215_v61  ;;  %v12825_v41 = vld [vmem:[#allocation140_spill] sm:$0xff] }
 0x934   : > { %8767 = vpow2.f32 %v8216_v25  ;;  %v8607_v25 = vld [vmem:[%s12823_s18 + $0x40] sm:$0xff]  }
 0x935   : > { %8339 = vmatprep.subr.bf16.mxu0 %v8607_v25 }
 0x936   : > { %8376 = vmatpush3.bf16.msra.mxu1 %v8606_v45  ;;  %v8609_v45 = vld [vmem:[%s12823_s18 + $0x48] sm:$0xff]  }
 0x93d   : > { %v8766_v6 = vpop.eup %8765 }
 0x93e   : > { %v6165_v12 = vadd.f32 1.0, %v8766_v6  ;;  %v8768_v52 = vpop.eup %8767 }
 0x93f   : > { %v6166_v16 = vadd.f32 1.0, %v8768_v52 }
 0x940   : > { %8769 = vrcp.f32 %v6165_v12  ;;  %v8610_v12 = vld [vmem:[%s12823_s18 + $0x8] sm:$0xff]  }
 0x941   : > { %8771 = vrcp.f32 %v6166_v16 }
 0x942   : > { %8773 = vpow2.f32 %v8213_v10  ;;  %v8616_v10 = vld [vmem:[%s12823_s18 + $0x20] sm:$0xff]  }
 0x943   : > { %8775 = vpow2.f32 %v8214_v27  ;;  %v6202_v27 = vstv %s6201_s12 }
 0x944   : > { %vm6203_vm10 = vcmp.eq.s32.totalorder %v6202_v27, 1 }
 0x94a   : > { %v8770_v15 = vpop.eup %8769 }
 0x94b   : > { %v6191_v3 = vmul.f32 %v8770_v15, %v6187_v14  ;;  %v8772_v29 = vpop.eup %8771 }
 0x94c   : > { %v6192_v26 = vmul.f32 %v8772_v29, %v6188_v60  ;;  %v8774_v33 = vpop.eup %8773 }
 0x94d   : > { %v8776_v49 = vpop.eup %8775  ;;  %v6153_v31 = vadd.f32 1.0, %v8774_v33  ;;  %v6278_v33 = vld [vmem:[%s12826_s22] sm:$0x3] }
 0x94e   : > { %v6154_v1 = vadd.f32 1.0, %v8776_v49  ;;  %v8618_v49 = vld [vmem:[%s12823_s18 + $0x28] sm:$0xff]  }
 0x94f   : > { %8777 = vrcp.f32 %v6153_v31  ;;  %v8619_v31 = vld [vmem:[%s12823_s18 + $0x70] sm:$0xff]  }
 0x950   : > { %8779 = vrcp.f32 %v6154_v1 }
 0x96c   : > { %v5860_v18 = vpop.f32.mrb[52].mxu0  ;;  %v5901_v63 = vpop.f32.mrb[52].mxu1 }
 0x96d   : > { %v5920_v5 = vrot.slane %v5860_v18, 6  ;;  %v5922_v58 = vrot.slane %v5901_v63, 6  ;;  %v5862_v9 = vpop.f32.mrb[53].mxu0  ;;  %v5903_v46 = vpop.f32.mrb[53].mxu1  ;;  %v12827_v63 = vld [vmem:[#allocation55_spill] sm:$0xff] }
 0x96e   : > { %v5921_v55 = vrot.slane %v5862_v9, 6  ;;  %v5923_v62 = vrot.slane %v5903_v46, 6  ;;  %v5864_v35 = vpop.f32.mrb[54].mxu0  ;;  %v5905_v30 = vpop.f32.mrb[54].mxu1  ;;  %v12828_v9 = vld [vmem:[#allocation209_spill] sm:$0xff] }
 0x96f   : > { %v5936_v38 = vadd.f32 %v5920_v5, %v12639_v39  ;;  %v5938_v8 = vadd.f32 %v5922_v58, %v12640_v2  ;;  %v5865_v43 = vpop.f32.mrb[55].mxu0  ;;  %v5906_v21 = vpop.f32.mrb[55].mxu1  ;;  %v8608_v39 = vld [vmem:[%s12823_s18] sm:$0xff]   ;;  %v6283_v5 = vrot.slane %v6278_v33, %v12827_v63  ;;  %v6206_v46 = vrot.slane %v12828_v9, 7  ;;  %v12829_v30 = vld [vmem:[#allocation54_spill] sm:$0xff] }
 0x970   : > { %v5937_v56 = vadd.f32 %v5921_v55, %v12824_v48  ;;  %v5939_v53 = vadd.f32 %v5923_v62, %v12825_v41  ;;  %8340 = vmatpush3.bf16.msra.mxu0 %v8608_v39  ;;  %v8778_v2 = vpop.eup %8777  ;;  %v8620_v62 = vld [vmem:[%s12823_s18 + $0x30] sm:$0xff]   ;;  %v12830_v43 = vld [vmem:[#allocation272_spill] sm:$0xff] }
 0x971   : > { %8781 = vtanh.f32 %v5936_v38  ;;  %v8217_v44 = vmul.f32 -1.442695, %v5938_v8  ;;  %v8780_v6 = vpop.eup %8779  ;;  %8341 = vmatprep.subr.bf16.mxu0 %v8609_v45  ;;  %v6287_v38 = vrot.slane %v6278_v33, %v12829_v30  ;;  %v8621_v8 = vld [vmem:[%s12823_s18 + $0x78] sm:$0xff]   ;;  %v6207_v21 = vrot.slane %v12830_v43, 7 }
 0x972   : > { %8783 = vtanh.f32 %v5937_v56  ;;  %v8218_v61 = vmul.f32 -1.442695, %v5939_v53 }
 0x973   : > { %8785 = vpow2.f32 %v8217_v44 }
 0x974   : > { %8787 = vpow2.f32 %v8218_v61  ;;  %8342 = vmatpush3.bf16.msra.mxu0 %v8610_v12  ;;  %v8622_v61 = vld [vmem:[%s12823_s18 + $0x38] sm:$0xff]   ;;  %v9176_v12 = vmov 0.0  }
 0x975   : > { %8343 = vmatprep.subr.bf16.mxu0 %v8611_v28 }
 0x978   : > { %8344 = vmatpush3.bf16.msra.mxu0 %v8612_v34 }
 0x979   : > { %8345 = vmatprep.subr.bf16.mxu0 %v8613_v59 }
 0x97b   : > { %v8782_v52 = vpop.eup %8781 }
 0x97c   : > { %v8784_v16 = vpop.eup %8783  ;;  %v6193_v24 = vmul.f32 %v8782_v52, %v8778_v2  ;;  %8346 = vmatpush3.bf16.msra.mxu0 %v8614_v4  ;;  %v12832_v52 = vmov 0  }
 0x97d   : > { %v8786_v14 = vpop.eup %8785  ;;  %v6194_v15 = vmul.f32 %v8784_v16, %v8780_v6 }
 0x97e   : > { %v8788_v60 = vpop.eup %8787  ;;  %v6195_v29 = vadd.f32 %v6193_v24, %v6191_v3  ;;  %v6179_v7 = vadd.f32 1.0, %v8786_v14  ;;  %v8615_v3 = vld [vmem:[%s12823_s18 + $0x60] sm:$0xff]  }
 0x97f   : > { %v6196_v17 = vadd.f32 %v6194_v15, %v6192_v26  ;;  %v6180_v19 = vadd.f32 1.0, %v8788_v60  ;;  %8347 = vmatprep.subr.bf16.mxu0 %v8615_v3  ;;  %v8617_v26 = vld [vmem:[%s12823_s18 + $0x68] sm:$0xff]  }
 0x980   : > { %8789 = vtanh.f32 %v6195_v29  ;;  %8348 = vmatpush3.bf16.msra.mxu0 %v8616_v10 }
 0x981   : > { %8791 = vrcp.f32 %v6179_v7  ;;  %8349 = vmatprep.subr.bf16.mxu0 %v8617_v26 }
 0x982   : > { %8793 = vtanh.f32 %v6196_v17 }
 0x983   : > { %8795 = vrcp.f32 %v6180_v19 }
 0x984   : > { %8350 = vmatpush3.bf16.msra.mxu0 %v8618_v49 }
 0x985   : > { %8351 = vmatprep.subr.bf16.mxu0 %v8619_v31 }
 0x988   : > { %8352 = vmatpush3.bf16.msra.mxu0 %v8620_v62 }
 0x989   : > { %8353 = vmatprep.subr.bf16.mxu0 %v8621_v8 }
 0x98a   : > { %v8790_v1 = vpop.eup %8789 }
 0x98b   : > { %v8792_v18 = vpop.eup %8791 }
 0x98c   : > { %v8794_v58 = vpop.eup %8793  ;;  %v6199_v55 = vmul.f32 %v8792_v18, %v8790_v1  ;;  %8354 = vmatpush3.bf16.msra.mxu0 %v8622_v61 }
 0x98d   : > { %v8796_v35 = vpop.eup %8795  ;;  %8432 = vmatprep.subr.bf16.mxu0 %v9176_v12 }
 0x98e   : > { %v6200_v48 = vmul.f32 %v8796_v35, %v8794_v58  ;;  %v6210_v56 = vsel %vm6203_vm10, %v6199_v55, %v6206_v46  ;;  %v12833_v46 = vld [vmem:[#allocation177_spill] sm:$0xff] }
 0x98f   : > { %v6290_v53 = vsel %vm10622_vm4, %v6210_v56, %v6283_v5 }
 0x990   : > { %v6211_v44 = vsel %vm6203_vm10, %v6200_v48, %v6207_v21  ;;  %v6346_v39 = vpack.c.bf16 %v6290_v53, %v6290_v53 }
 0x991   : > { %v6291_v25 = vsel %vm10622_vm4, %v6211_v44, %v6287_v38 }
 0x992   : > { %v6347_v2 = vpack.c.bf16 %v6291_v25, %v6291_v25  ;;  %v6526_v6 = vrot.slane %v6346_v39, 1 }
 0x994   : > { %v6527_v45 = vrot.slane %v6347_v2, 1 }
 0x996   : > { %6658 = vmatprep.mubr.bf16.mxu1 %v6527_v45 }
 0x997   : > { %6659 = vmatmul.mubr.bf16.vlgmr.msra.gmra.mrb[64].mxu1 %v6526_v6 }
 0x998   : > { %6830 = vmatprep.mubr.bf16.mxu1 %v12832_v52 }
 0x9ac   : > { %v5984_v16 = vpop.f32.mrb[56].mxu0  ;;  %v6025_v24 = vpop.f32.mrb[56].mxu1 }
 0x9ad   : > { %v6124_v14 = vrot.slane %v6025_v24, 6  ;;  %v5986_v15 = vpop.f32.mrb[57].mxu0  ;;  %v6027_v28 = vpop.f32.mrb[57].mxu1  ;;  %v6122_v5 = vrot.slane %v5984_v16, 6 }
 0x9ae   : > { %v6125_v60 = vrot.slane %v6027_v28, 6  ;;  %v5988_v29 = vpop.f32.mrb[58].mxu0  ;;  %v6029_v7 = vpop.f32.mrb[58].mxu1  ;;  %v6123_v58 = vrot.slane %v5986_v15, 6 }
 0x9af   : > { %v6140_v34 = vadd.f32 %v6124_v14, %v10734_v13  ;;  %v5989_v17 = vpop.f32.mrb[59].mxu0  ;;  %v6030_v19 = vpop.f32.mrb[59].mxu1  ;;  %v6253_v13 = vrot.slane %v5732_v36, 7  ;;  %v6138_v9 = vadd.f32 %v6122_v5, %v10731_v57  ;;  %v6268_v29 = vstv %s6267_s28  ;;  %v6294_v7 = vld [vmem:[%s12834_s26] sm:$0x3] }
 0x9b0   : > { %v6141_v59 = vadd.f32 %v6125_v60, %v10749_v37  ;;  %v6254_v37 = vrot.slane %v5733_v51, 7  ;;  %v6139_v55 = vadd.f32 %v6123_v58, %v12833_v46  ;;  %vm6269_vm11 = vcmp.eq.s32.totalorder %v6268_v29, 1  ;;  %v8624_v46 = vld [vmem:[%s12835_s10 + $0x8] sm:$0x1f]  }
 0x9b1   : > { %v8221_v4 = vmul.f32 -1.442695, %v6140_v34  ;;  %v8219_v62 = vmul.f32 -1.442695, %v6138_v9  ;;  %v6296_v34 = vstv %s6295_s2  ;;  %v8623_v9 = vld [vmem:[%s12835_s10] sm:$0xff]  }
 0x9b2   : > { %v8222_v3 = vmul.f32 -1.442695, %v6141_v59  ;;  %v8220_v35 = vmul.f32 -1.442695, %v6139_v55  ;;  %v6302_v59 = vrot.slane %v6294_v7, %v12827_v63  ;;  %vm6297_vm12 = vcmp.eq.s32.totalorder %v6296_v34, 1 }
 0x9b3   : > { %8797 = vpow2.f32 %v8221_v4  ;;  %v6688_v55 = vsel %vm6686_vm13, %v8624_v46, 0 }
 0x9b4   : > { %8799 = vpow2.f32 %v8222_v3  ;;  %v6272_v3 = vrot.slane %v11273_v23, 7 }
 0x9bd   : > { %v8798_v10 = vpop.eup %8797 }
 0x9be   : > { %v6231_v26 = vadd.f32 1.0, %v8798_v10  ;;  %v8800_v27 = vpop.eup %8799 }
 0x9bf   : > { %v6232_v33 = vadd.f32 1.0, %v8800_v27  ;;  %v6306_v27 = vrot.slane %v6294_v7, %v12829_v30 }
 0x9c0   : > { %8801 = vrcp.f32 %v6231_v26 }
 0x9c1   : > { %8803 = vrcp.f32 %v6232_v33  ;;  %v6273_v33 = vrot.slane %v11281_v22, 7  ;;  %v6313_v22 = vld [vmem:[%s6312_s17] sm:$0x1] }
 0x9c2   : > { %8805 = vpow2.f32 %v8219_v62  ;;  %v6670_v62 = vpack.c.bf16 %v6313_v22, %v6313_v22 }
 0x9c3   : > { %8807 = vpow2.f32 %v8220_v35  ;;  %v8627_v35 = vld [vmem:[%s12837_s9 + $0x4] ss:$8 sps:$4 sm:$0xff]  }
 0x9c4   : > { %6798 = vmatprep.subr.bf16.mxu1 %v8627_v35 }
 0x9ca   : > { %v8802_v49 = vpop.eup %8801 }
 0x9cb   : > { %v6257_v31 = vmul.f32 %v8802_v49, %v6253_v13  ;;  %v8804_v1 = vpop.eup %8803 }
 0x9cc   : > { %v6258_v18 = vmul.f32 %v8804_v1, %v6254_v37  ;;  %v8806_v11 = vpop.eup %8805 }
 0x9cd   : > { %v8808_v20 = vpop.eup %8807  ;;  %v6219_v42 = vadd.f32 1.0, %v8806_v11 }
 0x9ce   : > { %v6220_v36 = vadd.f32 1.0, %v8808_v20  ;;  %v8625_v20 = vld [vmem:[%s12837_s9] ss:$8 sps:$4 sm:$0xff]  }
 0x9cf   : > { %8809 = vrcp.f32 %v6219_v42  ;;  %6799 = vmatpush1.bf16.msra.mxu1 %v8625_v20 }
 0x9d0   : > { %8811 = vrcp.f32 %v6220_v36 }
 0x9d9   : > { %v8810_v6 = vpop.eup %8809 }
 0x9da   : > { %v8812_v52 = vpop.eup %8811 }
 0x9ec   : > { %v6066_v38 = vpop.f32.mrb[60].mxu0  ;;  %v6107_v54 = vpop.f32.mrb[60].mxu1 }
 0x9ed   : > { %v6126_v0 = vrot.slane %v6066_v38, 6  ;;  %v6128_v51 = vrot.slane %v6107_v54, 6  ;;  %v6068_v8 = vpop.f32.mrb[61].mxu0  ;;  %v6109_v43 = vpop.f32.mrb[61].mxu1 }
 0x9ee   : > { %v6127_v21 = vrot.slane %v6068_v8, 6  ;;  %v6129_v48 = vrot.slane %v6109_v43, 6  ;;  %v6070_v56 = vpop.f32.mrb[62].mxu0  ;;  %v6111_v57 = vpop.f32.mrb[62].mxu1  ;;  %v8631_v8 = vld [vmem:[%s12837_s9 + $0x20] ss:$8 sps:$4 sm:$0xff]  }
 0x9ef   : > { %v6142_v41 = vadd.f32 %v6126_v0, %v10787_v40  ;;  %v6144_v53 = vadd.f32 %v6128_v51, %v10792_v47  ;;  %v6071_v44 = vpop.f32.mrb[63].mxu0  ;;  %v6112_v61 = vpop.f32.mrb[63].mxu1  ;;  %v8630_v0 = vld [vmem:[%s12837_s9 + $0x14] ss:$8 sps:$4 sm:$0xff]   ;;  %v8633_v51 = vld [vmem:[%s12837_s9 + $0x24] ss:$8 sps:$4 sm:$0xff]  }
 0x9f0   : > { %v6143_v25 = vadd.f32 %v6127_v21, %v12738_v50  ;;  %v6145_v39 = vadd.f32 %v6129_v48, %v12739_v32  ;;  %6800 = vmatprep.subr.bf16.mxu1 %v8630_v0  ;;  %v8636_v43 = vld [vmem:[%s12837_s9 + $0x34] ss:$8 sps:$4 sm:$0xff]   ;;  %v8634_v21 = vld [vmem:[%s12837_s9 + $0x30] ss:$8 sps:$4 sm:$0xff]  }
 0x9f1   : > { %8813 = vtanh.f32 %v6142_v41  ;;  %v8223_v2 = vmul.f32 -1.442695, %v6144_v53 }
 0x9f2   : > { %8815 = vtanh.f32 %v6143_v25  ;;  %v8224_v45 = vmul.f32 -1.442695, %v6145_v39  ;;  %v6731_v25 = vld [vmem:[%s12838_s21] sm:$0x1] }
 0x9f3   : > { %8817 = vpow2.f32 %v8223_v2 }
 0x9f4   : > { %8819 = vpow2.f32 %v8224_v45 }
 0x9fb   : > { %v8814_v40 = vpop.eup %8813 }
 0x9fc   : > { %v8816_v16 = vpop.eup %8815  ;;  %v6259_v47 = vmul.f32 %v8814_v40, %v8810_v6 }
 0x9fd   : > { %v8818_v24 = vpop.eup %8817  ;;  %v6260_v14 = vmul.f32 %v8816_v16, %v8812_v52 }
 0x9fe   : > { %v8820_v15 = vpop.eup %8819  ;;  %v6261_v50 = vadd.f32 %v6259_v47, %v6257_v31  ;;  %v6245_v28 = vadd.f32 1.0, %v8818_v24  ;;  %v6743_v47 = vld [vmem:[%s12839_s25] sm:$0x3] }
 0x9ff   : > { %v6262_v32 = vadd.f32 %v6260_v14, %v6258_v18  ;;  %v6246_v60 = vadd.f32 1.0, %v8820_v15  ;;  %v6788_v24 = vrot.slane %v6743_v47, %v12827_v63  ;;  %v6792_v14 = vrot.slane %v6743_v47, %v12829_v30 }
 0xa00   : > { %8821 = vtanh.f32 %v6261_v50 }
 0xa01   : > { %8823 = vrcp.f32 %v6245_v28 }
 0xa02   : > { %8825 = vtanh.f32 %v6262_v32 }
 0xa03   : > { %8827 = vrcp.f32 %v6246_v60 }
 0xa0a   : > { %v8822_v17 = vpop.eup %8821 }
 0xa0b   : > { %v8824_v19 = vpop.eup %8823 }
 0xa0c   : > { %v8826_v4 = vpop.eup %8825  ;;  %v6265_v10 = vmul.f32 %v8824_v19, %v8822_v17  ;;  %v12840_v19 = vld [vmem:[#allocation58_spill] sm:$0xff] }
 0xa0d   : > { %v8828_v26 = vpop.eup %8827 }
 0xa0e   : > { %v6266_v13 = vmul.f32 %v8828_v26, %v8826_v4  ;;  %v6276_v49 = vsel %vm6269_vm11, %v6265_v10, %v6272_v3 }
 0xa0f   : > { %v6309_v37 = vsel %vm6297_vm12, %v6276_v49, %v6302_v59 }
 0xa10   : > { %v6277_v31 = vsel %vm6269_vm11, %v6266_v13, %v6273_v33  ;;  %v6380_v18 = vpack.c.bf16 %v6309_v37, %v6309_v37 }
 0xa11   : > { %v6310_v1 = vsel %vm6297_vm12, %v6277_v31, %v6306_v27 }
 0xa12   : > { %v6381_v5 = vpack.c.bf16 %v6310_v1, %v6310_v1  ;;  %v6384_v23 = vrot.slane %v6380_v18, 1 }
 0xa14   : > { %v6385_v58 = vrot.slane %v6381_v5, 1 }
 0xa16   : > { %6516 = vmatprep.mubr.bf16.mxu0 %v6385_v58 }
 0xa17   : > { %6517 = vmatmul.mubr.bf16.vlgmr.msra.gmra.mrb[64].mxu0 %v6384_v23 }
 0xa18   : > { %8433 = vmatpush3.bf16.msra.mxu0 %v8623_v9  ;;  %8436 = vmatprep.mubr.msk.bf16.mxu0 %vm9177_vm14, %v9176_v12 }
 0xa19   : > { %8434 = vmatprep.subr.bf16.mxu0 %v9176_v12  ;;  %v8628_v12 = vld [vmem:[%s12837_s9 + $0x10] ss:$8 sps:$4 sm:$0xff]  }
 0xa1a   : > { %6801 = vmatpush1.bf16.msra.mxu1 %v8628_v12 }
 0xa1b   : > { %6802 = vmatprep.subr.bf16.mxu1 %v8633_v51 }
 0xa1c   : > { %8435 = vmatpush3.bf16.msra.mxu0 %v6688_v55 }
 0xa1e   : > { %6803 = vmatpush1.bf16.msra.mxu1 %v8631_v8 }
 0xa1f   : > { %8437 = vmatmul.mubr.msk.bf16.vlgmr.msra.gmra.mrb[68].mxu0 %vm6682_vm15, %v6670_v62  ;;  %6804 = vmatprep.subr.bf16.mxu1 %v8636_v43 }
 0xa22   : > { %6805 = vmatpush1.bf16.msra.mxu1 %v8634_v21 }
 0xa6a   : > { %v8377_v11 = vpop.f32.mrb[64].mxu1 }
 0xa6b   : > { %v8378_v42 = vpop.f32.mrb[65].mxu1 }
 0xa6c   : > { %v8379_v36 = vadd.f32 %v8378_v42, %v8377_v11  ;;  %v8380_v38 = vpop.f32.mrb[66].mxu1 }
 0xa6d   : > { %v8381_v54 = vpop.f32.mrb[67].mxu1 }
 0xaea   : > { %v8355_v48 = vpop.f32.mrb[64].mxu0 }
 0xaeb   : > { %v8356_v56 = vpop.f32.mrb[65].mxu0 }
 0xaec   : > { %v8357_v57 = vadd.f32 %v8356_v56, %v8355_v48  ;;  %v8358_v41 = vpop.f32.mrb[66].mxu0 }
 0xaed   : > { %v8359_v53 = vpop.f32.mrb[67].mxu0 }
 0xaee   : > { %v6661_v44 = vadd.f32 %v8379_v36, %v8357_v57 }
 0xaf2   : > { %v6724_v61 = vpop.f32.mrb[68].mxu0 }
 0xaf3   : > { %v6730_v39 = vadd.f32 %v6724_v61, %v6661_v44  ;;  %v8438_v2 = vpop.f32.mrb[69].mxu0 }
 0xaf4   : > { %v6727_v45 = vpop.f32.mrb[70].mxu0 }
 0xaf5   : > { %v6732_v6 = vadd.f32 %v6731_v25, %v6730_v39  ;;  %v8439_v52 = vpop.f32.mrb[71].mxu0 }
 0xaf7   : > { %v6733_v40 = vmax.f32 %v6732_v6, 0.0 }
 0xaf9   : > { %v6742_v16 = vpack.c.bf16 %v6733_v40, %v6733_v40 }
 0xafb   : > { %8268 = vmatmul.mubr.msk.bf16.vlgmr.msra.gmra.mrb[68].mxu1 %vm419_vm2, %v6742_v16 }
 0xbce   : > { %v6832_v15 = vpop.f32.mrb[68].mxu1 }
 0xbcf   : > { %v6833_v50 = vadd.f32 %v6832_v15, %v6788_v24  ;;  %v6834_v28 = vpop.f32.mrb[69].mxu1 }
 0xbd0   : > { %v6835_v32 = vadd.f32 %v6834_v28, %v6792_v14  ;;  %v6836_v60 = vpop.f32.mrb[70].mxu1 }
 0xbd1   : > { %v6839_v29 = vmax.f32 %v6833_v50, 0.0  ;;  %v6837_v7 = vpop.f32.mrb[71].mxu1 }
 0xbd2   : > { %v6840_v34 = vmax.f32 %v6835_v32, 0.0 }
 0xbd4   : > { %v6843_v17 = vcombine.low %v6839_v29, %v6840_v34 }
 0xbd6   : > { %v6850_v59 = vrot.slane %v6843_v17, %v12840_v19 }
 0xbd8   : > { %v6857_v4 = vrot.slane %v6850_v59, %v12840_v19 }
 0xbda   : > { %6867 = vst.msk [vmem:[%s6866_s4] ss:$2 sm:$0x3] %vm9553_vm3, %v6857_v4 }
 0xbdb PF: > { %s1169_s13 = sadd.s32 1, %s9115_s13  }
 0xbdc   : > { %p1166_p5 = scmp.ge.s32.totalorder %s1169_s13, 2  }
 0xbdd   :  { %s12842_s1 = sld [smem:[#allocation44_spill]] (%p1166_p5)  ;;  %v12843_v3 = vmov (%p1166_p5), 0   ;;  %s12844_s13 = sld [smem:[#allocation46_spill]] (%p1166_p5)  ;;  %v12845_v9 = vld [vmem:[#allocation54_spill] sm:$0xff] (%p1166_p5)  ;;  %v12846_v38 = vld [vmem:[#allocation55_spill] sm:$0xff] (%p1166_p5)  ;;  %vm7259_vm0 = vcmask (%p1166_p5), 1041408  }
 0xbde   :  { %1168 = sbr.rel (!%p1166_p5) target bundleno = 1169 (0x491), region = 245  ;;  %7149 = vmatprep.mubr.bf16.mxu1 (%p1166_p5), %v12843_v3  ;;  %s12847_s14 = sld [smem:[#allocation50_spill]] (%p1166_p5)  ;;  %vm7255_vm1 = vcmask (%p1166_p5), 424960   ;;  %vm7311_vm3 = vcmask (%p1166_p5), 254976  }
 0xbdf   :  { %s12848_s16 = sld [smem:[#allocation45_spill]] (%p1166_p5)  ;;  %s12849_s0 = sld [smem:[#allocation48_spill]] (%p1166_p5) }
 0xbe0   :  { %s12850_s20 = sld [smem:[#allocation47_spill]] (%p1166_p5)  ;;  %s12851_s19 = sld [smem:[#allocation51_spill]] (%p1166_p5) }
 0xbe1   :  { %v6869_v5 = vld [vmem:[#allocation3 + $0x1] ss:$2 sm:$0x3] (%p1166_p5)  ;;  %s12852_s5 = sld [smem:[#allocation49_spill]] (%p1166_p5)  ;;  %s9178_s7 = smov (%p1166_p5), [#allocation24]  }
 0xbe2   :  { %v6910_v23 = vrot.slane (%p1166_p5), %v6869_v5, %v12845_v9  ;;  %v6906_v54 = vrot.slane (%p1166_p5), %v6869_v5, %v12846_v38  ;;  %s7467_s11 = sshll.u32 (%p1166_p5), %s9178_s7, 4  ;;  %s9179_s15 = smov (%p1166_p5), [#allocation23]   ;;  %s7468_s11 = int_to_ptr.vmem [resolvable:$true] %s7467_s11 }
 0xbe3   :  { %v8829_v30 = vld [vmem:[%s12842_s1 + $0x40] sm:$0xff] (%p1166_p5)   ;;  %v8831_v26 = vld [vmem:[%s12842_s1 + $0x48] sm:$0xff] (%p1166_p5)   ;;  %v8833_v33 = vld [vmem:[%s12842_s1 + $0x50] sm:$0xff] (%p1166_p5)   ;;  %s7457_s23 = sshll.u32 (%p1166_p5), %s9179_s15, 4  ;;  %s9053_s18 = scalar_lea.vmem (%p1166_p5), %s7468_s11, 16  ;;  %s7458_s23 = int_to_ptr.vmem [resolvable:$true] %s7457_s23 }
 0xbe4   :  { %v8830_v10 = vld [vmem:[%s12842_s1] sm:$0xff] (%p1166_p5)   ;;  %8386 = vmatprep.subr.bf16.mxu0 (%p1166_p5), %v8829_v30  ;;  %v8832_v27 = vld [vmem:[%s12842_s1 + $0x8] sm:$0xff] (%p1166_p5)   ;;  %v8834_v13 = vld [vmem:[%s12842_s1 + $0x10] sm:$0xff] (%p1166_p5)   ;;  %v6914_v11 = vpack.c.bf16 (%p1166_p5), %v6910_v23, %v6910_v23  ;;  %v6913_v12 = vpack.c.bf16 (%p1166_p5), %v6906_v54, %v6906_v54  ;;  %p9054_p6 = scmp.ne.s32.totalorder (%p1166_p5), %s7468_s11, %s9053_s18  ;;  %s9057_s22 = scalar_lea.vmem (%p1166_p5), %s7468_s11, 32 }
 0xbe5   :  { %8387 = vmatpush3.bf16.msra.mxu0 %v8830_v10  ;;  %v8835_v49 = vld [vmem:[%s12842_s1 + $0x58] sm:$0xff]   ;;  %v8837_v31 = vld [vmem:[%s12842_s1 + $0x60] sm:$0xff]   ;;  %v8839_v18 = vld [vmem:[%s12842_s1 + $0x68] sm:$0xff]   ;;  %p9058_p7 = scmp.lt.s32.totalorder %s7468_s11, %s7468_s11  ;;  %p9059_p8 = scmp.lt.s32.totalorder %s9057_s22, %s9053_s18 }
 0xbe6   :  { %8388 = vmatprep.subr.bf16.mxu0 %v8831_v26  ;;  %v8836_v37 = vld [vmem:[%s12842_s1 + $0x18] sm:$0xff]   ;;  %v8838_v1 = vld [vmem:[%s12842_s1 + $0x20] sm:$0xff]   ;;  %v8840_v58 = vld [vmem:[%s12842_s1 + $0x28] sm:$0xff]   ;;  %7044 = vmatprep.mubr.bf16.mxu0 %v6914_v11 }
 0xbe7   :  { %v8845_v46 = vld [vmem:[%s12844_s13 + $0x4] ss:$8 sps:$4 sm:$0xff]   ;;  %v8847_v22 = vld [vmem:[%s12844_s13] ss:$8 sps:$4 sm:$0xff]   ;;  %v8841_v55 = vld [vmem:[%s12842_s1 + $0x70] sm:$0xff]   ;;  %p9060_p9 = por %p9059_p8, %p9058_p7 }
 0xbe8   :  { %v8848_v62 = vld [vmem:[%s12844_s13 + $0x14] ss:$8 sps:$4 sm:$0xff]   ;;  %v8850_v35 = vld [vmem:[%s12844_s13 + $0x10] ss:$8 sps:$4 sm:$0xff]   ;;  %7117 = vmatprep.subr.bf16.mxu1 %v8845_v46  ;;  %v8851_v0 = vld [vmem:[%s12844_s13 + $0x24] ss:$8 sps:$4 sm:$0xff]  }
 0xbe9   :  { %8389 = vmatpush3.bf16.msra.mxu0 %v8832_v27  ;;  %7118 = vmatpush1.bf16.msra.mxu1 %v8847_v22  ;;  %v8842_v20 = vld [vmem:[%s12842_s1 + $0x30] sm:$0xff]   ;;  %v8843_v42 = vld [vmem:[%s12842_s1 + $0x78] sm:$0xff]   ;;  %v8853_v51 = vld [vmem:[%s12844_s13 + $0x20] ss:$8 sps:$4 sm:$0xff]   ;;  %p9061_p10 = pnand %p9060_p9, %p9054_p6 }
 0xbea   :  { %8390 = vmatprep.subr.bf16.mxu0 %v8833_v33  ;;  %7119 = vmatprep.subr.bf16.mxu1 %v8848_v62  ;;  %v8844_v36 = vld [vmem:[%s12842_s1 + $0x38] sm:$0xff]   ;;  %v8858_v21 = vld [vmem:[%s12847_s14] sm:$0xff]   ;;  %v8860_v48 = vld [vmem:[%s12847_s14 + $0x8] sm:$0xff]  }
 0xbeb   :  { %v8854_v8 = vld [vmem:[%s12844_s13 + $0x34] ss:$8 sps:$4 sm:$0xff]   ;;  %v8856_v43 = vld [vmem:[%s12844_s13 + $0x30] ss:$8 sps:$4 sm:$0xff]   ;;  %v8866_v41 = vld [vmem:[%s12847_s14 + $0x20] sm:$0xff]  }
 0xbec   :  { %v8862_v56 = vld [vmem:[%s12847_s14 + $0x10] sm:$0xff]   ;;  %v8864_v57 = vld [vmem:[%s12847_s14 + $0x18] sm:$0xff]   ;;  %v8868_v53 = vld [vmem:[%s12847_s14 + $0x28] sm:$0xff]  }
 0xbed   :  { %8391 = vmatpush3.bf16.msra.mxu0 %v8834_v13  ;;  %7120 = vmatpush1.bf16.msra.mxu1 %v8850_v35  ;;  %v8870_v44 = vld [vmem:[%s12847_s14 + $0x30] sm:$0xff]   ;;  %v8872_v61 = vld [vmem:[%s12847_s14 + $0x38] sm:$0xff]   ;;  %v8874_v25 = vld [vmem:[%s12847_s14 + $0x40] sm:$0xff]  }
 0xbee   :  { %8392 = vmatprep.subr.bf16.mxu0 %v8835_v49  ;;  %7121 = vmatprep.subr.bf16.mxu1 %v8851_v0  ;;  %v8876_v39 = vld [vmem:[%s12847_s14 + $0x48] sm:$0xff]   ;;  %v6915_v45 = vld [vmem:[%s12848_s16] sm:$0x1]  ;;  %v8861_v28 = vld [vmem:[%s12849_s0 + $0x10] sm:$0xff]  }
 0xbef   :  { %v8857_v14 = vld [vmem:[%s12849_s0] sm:$0xff]   ;;  %v8859_v50 = vld [vmem:[%s12849_s0 + $0x8] sm:$0xff]   ;;  %v8863_v32 = vld [vmem:[%s12849_s0 + $0x18] sm:$0xff]  }
 0xbf0   :  { %v8865_v60 = vld [vmem:[%s12849_s0 + $0x20] sm:$0xff]   ;;  %v8867_v29 = vld [vmem:[%s12849_s0 + $0x28] sm:$0xff]   ;;  %v8869_v7 = vld [vmem:[%s12849_s0 + $0x30] sm:$0xff]  }
 0xbf1   :  { %8393 = vmatpush3.bf16.msra.mxu0 %v8836_v37  ;;  %7122 = vmatpush1.bf16.msra.mxu1 %v8853_v51  ;;  %v8871_v34 = vld [vmem:[%s12849_s0 + $0x38] sm:$0xff]   ;;  %v8873_v17 = vld [vmem:[%s12849_s0 + $0x40] sm:$0xff]   ;;  %v8875_v19 = vld [vmem:[%s12849_s0 + $0x48] sm:$0xff]  }
 0xbf2   :  { %8394 = vmatprep.subr.bf16.mxu0 %v8837_v31  ;;  %7123 = vmatprep.subr.bf16.mxu1 %v8854_v8  ;;  %v8877_v59 = vld [vmem:[%s12849_s0 + $0x50] sm:$0xff]   ;;  %v8879_v63 = vld [vmem:[%s12849_s0 + $0x58] ss:$0 sps:$4 sm:$0x33]   ;;  %v7062_v27 = vld [vmem:[%s12850_s20] sm:$0x3] }
 0xbf3   :  { %v8878_v4 = vld [vmem:[%s12847_s14 + $0x50] sm:$0xff]   ;;  %v8880_v30 = vld [vmem:[%s12847_s14 + $0x58] ss:$0 sps:$4 sm:$0x33]   ;;  %v7261_v10 = vsel %vm7259_vm0, %v8879_v63, 0  ;;  %v7107_v33 = vrot.slane %v7062_v27, %v12846_v38  ;;  %v7111_v13 = vrot.slane %v7062_v27, %v12845_v9 }
 0xbf4   :  { %v7407_v26 = vsel %vm7259_vm0, %v8880_v30, 0  ;;  %v7303_v22 = vld [vmem:[%s12851_s19] sm:$0x3]  ;;  %v7336_v62 = vld [vmem:[#allocation14] sm:$0x1] }
 0xbf5   :  { %8395 = vmatpush3.bf16.msra.mxu0 %v8838_v1  ;;  %7124 = vmatpush1.bf16.msra.mxu1 %v8856_v43  ;;  %v7185_v9 = vld [vmem:[%s12852_s5] sm:$0x1] }
 0xbf6   :  { %8396 = vmatprep.subr.bf16.mxu0 %v8839_v18  ;;  %7263 = vmatprep.subr.bf16.mxu1 %v12843_v3 }
 0xbf9   :  { %8397 = vmatpush3.bf16.msra.mxu0 %v8840_v58 }
 0xbfa   :  { %8398 = vmatprep.subr.bf16.mxu0 %v8841_v55  ;;  %v7304_v55 = vsub.f32 1.0, %v7303_v22 }
 0xbfd   :  { %8399 = vmatpush3.bf16.msra.mxu0 %v8842_v20 }
 0xbfe   :  { %8400 = vmatprep.subr.bf16.mxu0 %v8843_v42 }
 0xc01   :  { %8401 = vmatpush3.bf16.msra.mxu0 %v8844_v36 }
 0xc02   :  { %7409 = vmatprep.subr.bf16.mxu0 %v12843_v3 }
 0xc04   :  { %7045 = vmatmul.mubr.bf16.vlgmr.msra.gmra.mrb[0].mxu0 %v6913_v12  ;;  %v7305_v12 = vmul.f32 1e+10, %v7304_v55 }
 0xc05   :  { %7410 = vmatpush1.bf16.msra.mxu0 %v8858_v21 }
 0xc06   :  { %7411 = vmatprep.subr.bf16.mxu0 %v12843_v3 }
 0xc09   :  { %7412 = vmatpush1.bf16.msra.mxu0 %v8860_v48 }
 0xc0a   :  { %7413 = vmatprep.subr.bf16.mxu0 %v12843_v3 }
 0xc0d   :  { %7414 = vmatpush1.bf16.msra.mxu0 %v8862_v56 }
 0xc0e   :  { %7415 = vmatprep.subr.bf16.mxu0 %v12843_v3 }
 0xc11   :  { %7416 = vmatpush1.bf16.msra.mxu0 %v8864_v57 }
 0xc12   :  { %7417 = vmatprep.subr.bf16.mxu0 %v12843_v3 }
 0xc15   :  { %7418 = vmatpush1.bf16.msra.mxu0 %v8866_v41 }
 0xc16   :  { %7419 = vmatprep.subr.bf16.mxu0 %v12843_v3 }
 0xc19   :  { %7420 = vmatpush1.bf16.msra.mxu0 %v8868_v53 }
 0xc1a   :  { %7421 = vmatprep.subr.bf16.mxu0 %v12843_v3 }
 0xc1d   :  { %7422 = vmatpush1.bf16.msra.mxu0 %v8870_v44 }
 0xc1e   :  { %7423 = vmatprep.subr.bf16.mxu0 %v12843_v3 }
 0xc21   :  { %7424 = vmatpush1.bf16.msra.mxu0 %v8872_v61 }
 0xc22   :  { %7425 = vmatprep.subr.bf16.mxu0 %v12843_v3 }
 0xc25   :  { %7426 = vmatpush1.bf16.msra.mxu0 %v8874_v25 }
 0xc26   :  { %7427 = vmatprep.subr.bf16.mxu0 %v12843_v3 }
 0xc29   :  { %7428 = vmatpush1.bf16.msra.mxu0 %v8876_v39 }
 0xc2a   :  { %7429 = vmatprep.subr.bf16.mxu0 %v12843_v3 }
 0xc2d   :  { %7430 = vmatpush1.bf16.msra.mxu0 %v8878_v4 }
 0xc2e   :  { %7431 = vmatprep.subr.bf16.mxu0 %v12843_v3 }
 0xc31   :  { %7432 = vmatpush1.bf16.msra.mxu0 %v7407_v26 }
 0xcd7   :  { %v8402_v2 = vpop.f32.mrb[0].mxu0 }
 0xcd8   :  { %v8403_v6 = vpop.f32.mrb[1].mxu0 }
 0xcd9   :  { %v8404_v52 = vadd.f32 %v8403_v6, %v8402_v2  ;;  %v8405_v40 = vpop.f32.mrb[2].mxu0 }
 0xcda   :  { %v8406_v16 = vpop.f32.mrb[3].mxu0 }
 0xcdb   :  { %v7047_v47 = vadd.f32 %v8404_v52, %v6915_v45 }
 0xcdd   :  { %v7052_v24 = vmax.f32 %v7047_v47, 0.0 }
 0xcdf   :  { %v7061_v15 = vpack.c.bf16 %v7052_v24, %v7052_v24 }
 0xce1   :  { %8295 = vmatmul.mubr.msk.bf16.vlgmr.msra.gmra.mrb[0].mxu1 %vm419_vm2, %v7061_v15  ;;  %vm7449_vm2 = vcmask 0  }
 0xce2   :  { %7264 = vmatpush1.bf16.msra.mxu1 %v8857_v14 }
 0xce3   :  { %7265 = vmatprep.subr.bf16.mxu1 %v12843_v3 }
 0xce6   :  { %7266 = vmatpush1.bf16.msra.mxu1 %v8859_v50 }
 0xce7   :  { %7267 = vmatprep.subr.bf16.mxu1 %v12843_v3 }
 0xcea   :  { %7268 = vmatpush1.bf16.msra.mxu1 %v8861_v28 }
 0xceb   :  { %7269 = vmatprep.subr.bf16.mxu1 %v12843_v3 }
 0xcee   :  { %7270 = vmatpush1.bf16.msra.mxu1 %v8863_v32 }
 0xcef   :  { %7271 = vmatprep.subr.bf16.mxu1 %v12843_v3 }
 0xcf2   :  { %7272 = vmatpush1.bf16.msra.mxu1 %v8865_v60 }
 0xcf3   :  { %7273 = vmatprep.subr.bf16.mxu1 %v12843_v3 }
 0xcf6   :  { %7274 = vmatpush1.bf16.msra.mxu1 %v8867_v29 }
 0xcf7   :  { %7275 = vmatprep.subr.bf16.mxu1 %v12843_v3 }
 0xcfa   :  { %7276 = vmatpush1.bf16.msra.mxu1 %v8869_v7 }
 0xcfb   :  { %7277 = vmatprep.subr.bf16.mxu1 %v12843_v3 }
 0xcfe   :  { %7278 = vmatpush1.bf16.msra.mxu1 %v8871_v34 }
 0xcff   :  { %7279 = vmatprep.subr.bf16.mxu1 %v12843_v3 }
 0xd02   :  { %7280 = vmatpush1.bf16.msra.mxu1 %v8873_v17 }
 0xd03   :  { %7281 = vmatprep.subr.bf16.mxu1 %v12843_v3 }
 0xd06   :  { %7282 = vmatpush1.bf16.msra.mxu1 %v8875_v19 }
 0xd07   :  { %7283 = vmatprep.subr.bf16.mxu1 %v12843_v3 }
 0xd0a   :  { %7284 = vmatpush1.bf16.msra.mxu1 %v8877_v59 }
 0xd0b   :  { %7285 = vmatprep.subr.bf16.mxu1 %v12843_v3 }
 0xd0e   :  { %7286 = vmatpush1.bf16.msra.mxu1 %v7261_v10 }
 0xdb4   :  { %v7151_v49 = vpop.f32.mrb[0].mxu1 }
 0xdb5   :  { %v7152_v37 = vadd.f32 %v7151_v49, %v7107_v33  ;;  %v7153_v31 = vpop.f32.mrb[1].mxu1 }
 0xdb6   :  { %v7154_v1 = vadd.f32 %v7153_v31, %v7111_v13  ;;  %v7155_v18 = vpop.f32.mrb[2].mxu1 }
 0xdb7   :  { %v7158_v3 = vmax.f32 %v7152_v37, 0.0  ;;  %v7156_v5 = vpop.f32.mrb[3].mxu1 }
 0xdb8   :  { %v7159_v58 = vmax.f32 %v7154_v1, 0.0 }
 0xdb9   :  { %v7183_v46 = vpack.c.bf16 %v7158_v3, %v7158_v3 }
 0xdba   :  { %v7184_v23 = vpack.c.bf16 %v7159_v58, %v7159_v58 }
 0xdbc   :  { %8308 = vmatprep.mubr.msk.bf16.mxu1 %vm7255_vm1, %v7184_v23  ;;  %8321 = vmatprep.mubr.msk.bf16.mxu0 %vm7255_vm1, %v7184_v23 }
 0xdbd   :  { %7296 = vmatmul.mubr.bf16.vlgmr.msra.gmra.mrb[4].mxu1 %v7183_v46  ;;  %7442 = vmatmul.mubr.bf16.vlgmr.msra.gmra.mrb[4].mxu0 %v7183_v46 }
 0xe90   :  { %v7297_v35 = vpop.f32.mrb[4].mxu1  ;;  %v7443_v11 = vpop.f32.mrb[4].mxu0 }
 0xe91   :  { %v7298_v20 = vadd.f32 %v7297_v35, %v7185_v9  ;;  %v7444_v42 = vadd.f32 %v7443_v11, %v7336_v62  ;;  %v7299_v36 = vpop.f32.mrb[5].mxu1  ;;  %v7445_v54 = vpop.f32.mrb[5].mxu0 }
 0xe92   :  { %v7300_v0 = vpop.f32.mrb[6].mxu1  ;;  %v7446_v51 = vpop.f32.mrb[6].mxu0 }
 0xe93   :  { %v7309_v8 = vrot.slane %v7298_v20, %v12846_v38  ;;  %v7301_v43 = vpop.f32.mrb[7].mxu1  ;;  %v7447_v21 = vpop.f32.mrb[7].mxu0  ;;  %7450 = vst.msk [vmem:[#allocation24] sm:$0x1] %vm7449_vm2, %v7444_v42 }
 0xe94   :  { %9064 = shalt.err (!%p9061_p10)
}
 0xe95   :  { %s12853_s12 = sld [smem:[#allocation53_spill]] }
 0xe9b   :  { %s9065_s24 = scalar_lea.hbm %s12853_s12, 16 }
 0xe9c   :  { %p9066_p11 = scmp.ne.s32.totalorder %s12853_s12, %s9065_s24  ;;  %p9069_p12 = scmp.lt.u32.totalorder %s9065_s24, %s12853_s12 }
 0xe9e   :  { %p9071_p13 = pnand %p9069_p12, %p9066_p11 }
 0xea0   :  { %9074 = shalt.err (!%p9071_p13)
}
 0xea1   :  { %7470 = dma.vmem_to_hbm [thread:$0]  %s7468_s11, 16, %s12853_s12, [#allocation25]   ;;  %v7310_v38 = vsub.f32 %v7309_v8, %v7305_v12 }
 0xea2   :  { %s9075_s26 = scalar_lea.vmem %s7458_s23, 32  ;;  %p9080_p1 = scmp.lt.s32.totalorder %s7458_s23, %s7458_s23 }
 0xea3   :  { %7312 = vst.msk [vmem:[#allocation23] sm:$0x3] %vm7311_vm3, %v7310_v38  ;;  %p9076_p0 = scmp.ne.s32.totalorder %s7458_s23, %s9075_s26  ;;  %p9081_p2 = scmp.lt.s32.totalorder %s9075_s26, %s9075_s26 }
 0xea5   :  { %p9082_p3 = por %p9081_p2, %p9080_p1 }
 0xea7   :  { %p9083_p4 = pnand %p9082_p3, %p9076_p0 }
 0xea9   :  { %9086 = shalt.err (!%p9083_p4)
}
 0xeaa   :  { %s12854_s28 = sld [smem:[#allocation52_spill]] }
 0xeb0   :  { %s9087_s2 = scalar_lea.hbm %s12854_s28, 32 }
 0xeb1   :  { %p9088_p5 = scmp.ne.s32.totalorder %s12854_s28, %s9087_s2  ;;  %p9091_p6 = scmp.lt.u32.totalorder %s9087_s2, %s12854_s28 }
 0xeb3   :  { %p9093_p7 = pnand %p9091_p6, %p9088_p5 }
 0xeb5   :  { %9096 = shalt.err (!%p9093_p7)
}
 0xeb6   :  { %7460 = dma.vmem_to_hbm [thread:$0]  %s7458_s23, 32, %s12854_s28, [#allocation17]  }
 0xeb7   :  { %9109 = dma.done.wait [#allocation17], 32  }
 0xeb8   :  { %9110 = vsyncadd [#allocation17], 4294967264 }
 0xeb9   :  { %9111 = dma.done.wait [#allocation25], 16  }
 0xeba   :  { %9112 = vsyncadd [#allocation25], 4294967280 }
 0xebb   :  { %7477 = vsyncpa [#allocation16], 1 }
 0xebc   :  { %7478 = vsyncpa [#allocation19], 1 }
 0xebd   :  { %7479 = vsyncpa [#allocation22], 1 }
 0xebe   :  { %7480 = vsyncpa [#allocation17], 1 }
 0xebf   :  { %7481 = vsyncpa [#allocation25], 1 }

</bundles_post_ra>
